<compile_context>
chip_gen: v6e
topology: v6e:2x2x1
jax: 0.10.0
libtpu: 0.0.40
codegen_flags: <defaults>
</compile_context>

<pallas_src>
import functools

import jax
import jax.numpy as jnp
from jax.experimental import pallas as pl
from jax.experimental.pallas import tpu as pltpu

ACT_DTYPE = jnp.bfloat16  # dtype of inter-layer activations


def _ceil_to(x, m):
    return -(-x // m) * m


def _sublane(dtype):
    """Minimum sublane multiple for a dtype (packed dtypes use 16)."""
    return 16 if jnp.dtype(dtype).itemsize == 2 else 8


def _pick_tk(kp):
    """K-tile that exactly divides kp (kp is always a multiple of 128)."""
    if kp <= 1024:
        return kp
    for tk in (1024, 768, 512, 384, 256, 128):
        if kp % tk == 0:
            return tk
    return 128


def _pick_rows(mp, cap=512):
    """Row-block that exactly divides mp (mp is a multiple of 8 or 16)."""
    for br in (cap, 256, 128, 64, 32, 16, 8):
        if br <= cap and mp % br == 0:
            return br
    return mp


# ----------------------------------------------------------------------------
# Pallas kernels
# ----------------------------------------------------------------------------
def _mm_bn_act_kernel(a_ref, b_ref, s_ref, t_ref, o_ref, acc_ref, *, relu):
    """Tiled matmul with fused per-channel affine (+ReLU) epilogue."""
    @pl.when(pl.program_id(2) == 0)
    def _():
        acc_ref[...] = jnp.zeros_like(acc_ref)

    acc_ref[...] += jnp.dot(a_ref[...], b_ref[...],
                            preferred_element_type=jnp.float32)

    @pl.when(pl.program_id(2) == pl.num_programs(2) - 1)
    def _():
        y = acc_ref[...] * s_ref[...] + t_ref[...]
        if relu:
            y = jnp.maximum(y, 0.0)
        o_ref[...] = y.astype(o_ref.dtype)


def _mm_bn_res_act_kernel(a_ref, b_ref, s_ref, t_ref, r_ref, o_ref, acc_ref,
                          *, relu):
    """Same as above, plus a residual add before the activation."""
    @pl.when(pl.program_id(2) == 0)
    def _():
        acc_ref[...] = jnp.zeros_like(acc_ref)

    acc_ref[...] += jnp.dot(a_ref[...], b_ref[...],
                            preferred_element_type=jnp.float32)

    @pl.when(pl.program_id(2) == pl.num_programs(2) - 1)
    def _():
        y = (acc_ref[...] * s_ref[...] + t_ref[...]
             + r_ref[...].astype(jnp.float32))
        if relu:
            y = jnp.maximum(y, 0.0)
        o_ref[...] = y.astype(o_ref.dtype)


def _max_taps_kernel(x_ref, o_ref):
    """(taps, rows, C) -> (rows, C) max over the tap axis."""
    o_ref[...] = jnp.max(x_ref[...], axis=0)


def _avgpool_kernel(x_ref, o_ref, *, inv_hw):
    """(1, HW, C) -> (1, 1, C) spatial mean, accumulated in f32."""
    o_ref[...] = (jnp.sum(x_ref[...].astype(jnp.float32), axis=1,
                          keepdims=True) * inv_hw)


# ----------------------------------------------------------------------------
# Fused matmul wrapper
# ----------------------------------------------------------------------------
def matmul_fused(a, w_p, s_p, t_p, *, residual=None, relu=True, out_n,
                 out_dtype=jnp.float32):
    """relu?((a @ w_p) * s + t [+ residual]) with a tiled MXU kernel.

    a:    (M, K)  activation (any float dtype; cast to bf16 here)
    w_p:  (Kp, Np) bf16 weight, pre-padded at prepare time
    s_p, t_p: (1, Np) f32 folded scale / shift, pre-padded
    residual: (M, out_n) or None (any float dtype; cast to f32 in-kernel)
    returns (M, out_n) out_dtype
    """
    M, K = a.shape
    Kp, Np = w_p.shape

    TM = min(256, _ceil_to(M, 8))
    TN = 256 if Np % 256 == 0 else 128
    TK = _pick_tk(Kp)
    Mp = _ceil_to(M, TM)

    a = a.astype(jnp.bfloat16)
    if (Mp, Kp) != (M, K):
        a_p = jnp.zeros((Mp, Kp), jnp.bfloat16).at[:M, :K].set(a)
    else:
        a_p = a

    grid = (Mp // TM, Np // TN, Kp // TK)
    flops = 2 * Mp * Np * Kp
    bytes_accessed = (a_p.size * 2 + w_p.size * 2 + s_p.size * 4 +
                      t_p.size * 4 + Mp * Np * jnp.dtype(out_dtype).itemsize)

    a_spec = pl.BlockSpec((TM, TK), lambda i, j, k: (i, k))
    b_spec = pl.BlockSpec((TK, TN), lambda i, j, k: (k, j))
    s_spec = pl.BlockSpec((1, TN), lambda i, j, k: (0, j))
    t_spec = pl.BlockSpec((1, TN), lambda i, j, k: (0, j))
    o_spec = pl.BlockSpec((TM, TN), lambda i, j, k: (i, j))

    if residual is not None:
        r = residual
        if r.shape != (Mp, Np):
            r_p = jnp.zeros((Mp, Np), r.dtype).at[:M, :out_n].set(r)
        else:
            r_p = r
        kernel = functools.partial(_mm_bn_res_act_kernel, relu=relu)
        in_specs = [a_spec, b_spec, s_spec, t_spec,
                    pl.BlockSpec((TM, TN), lambda i, j, k: (i, j))]
        args = (a_p, w_p, s_p, t_p, r_p)
        bytes_accessed += r_p.size * r_p.dtype.itemsize
    else:
        kernel = functools.partial(_mm_bn_act_kernel, relu=relu)
        in_specs = [a_spec, b_spec, s_spec, t_spec]
        args = (a_p, w_p, s_p, t_p)

    out = pl.pallas_call(
        kernel,
        out_shape=jax.ShapeDtypeStruct((Mp, Np), out_dtype),
        grid_spec=pltpu.PrefetchScalarGridSpec(
            num_scalar_prefetch=0,
            grid=grid,
            in_specs=in_specs,
            out_specs=o_spec,
            scratch_shapes=[pltpu.VMEM((TM, TN), jnp.float32)]),
        compiler_params=pltpu.CompilerParams(
            dimension_semantics=("parallel", "parallel", "arbitrary")),
        cost_estimate=pl.CostEstimate(flops=flops, transcendentals=0,
                                      bytes_accessed=bytes_accessed),
    )(*args)

    if (Mp, Np) == (M, out_n):
        return out
    return out[:M, :out_n]


# ----------------------------------------------------------------------------
# NN building blocks (im2col / padding / reshapes in plain JAX glue)
# ----------------------------------------------------------------------------
def conv_bn_act(x, cp, *, kh, kw, stride, pad, cout, relu, residual=None,
                out_dtype=ACT_DTYPE):
    """Conv (no bias) + folded BN + optional residual + optional ReLU.

    x: (N, H, W, Cin) NHWC; cp: prepared {'w','s','t'} dict.
    """
    N, H, W, Cin = x.shape
    Ho = (H + 2 * pad - kh) // stride + 1
    Wo = (W + 2 * pad - kw) // stride + 1
    xq = jnp.pad(x, ((0, 0), (pad, pad), (pad, pad), (0, 0))) if pad else x
    if kh == 1 and kw == 1 and stride == 1:
        patches = xq.reshape(N * Ho * Wo, Cin)
    else:
        cols = []
        for ki in range(kh):
            for kj in range(kw):
                cols.append(xq[:, ki:ki + stride * Ho:stride,
                               kj:kj + stride * Wo:stride, :])
        patches = jnp.concatenate(cols, axis=-1).reshape(
            N * Ho * Wo, kh * kw * Cin)
    out = matmul_fused(patches, cp['w'], cp['s'], cp['t'],
                       residual=residual, relu=relu, out_n=cout,
                       out_dtype=out_dtype)
    return out.reshape(N, Ho, Wo, cout)


def maxpool2d_3x3_s2(x):
    """MaxPool2d(kernel=3, stride=2, padding=1) on NHWC input, tiled over rows."""
    N, H, W, C = x.shape
    k, s, pad = 3, 2, 1
    Ho = (H + 2 * pad - k) // s + 1
    Wo = (W + 2 * pad - k) // s + 1
    neg = float(jnp.finfo(x.dtype).min)
    xp = jnp.pad(x, ((0, 0), (pad, pad), (pad, pad), (0, 0)),
                 constant_values=neg)
    views = []
    for ki in range(k):
        for kj in range(k):
            views.append(xp[:, ki:ki + s * Ho:s, kj:kj + s * Wo:s, :])
    M = N * Ho * Wo
    stk = jnp.stack(views, axis=0).reshape(k * k, M, C)
    sub = _sublane(x.dtype)
    Mp, Cp = _ceil_to(M, sub), _ceil_to(C, 128)
    if (Mp, Cp) != (M, C):
        stkp = jnp.full((k * k, Mp, Cp), neg, x.dtype).at[:, :M, :C].set(stk)
    else:
        stkp = stk
    BR = _pick_rows(Mp)
    out = pl.pallas_call(
        _max_taps_kernel,
        out_shape=jax.ShapeDtypeStruct((Mp, Cp), x.dtype),
        grid=(Mp // BR,),
        in_specs=[pl.BlockSpec((k * k, BR, Cp), lambda i: (0, i, 0))],
        out_specs=pl.BlockSpec((BR, Cp), lambda i: (i, 0)),
        compiler_params=pltpu.CompilerParams(
            dimension_semantics=("parallel",)),
    )(stkp)
    return out[:M, :C].reshape(N, Ho, Wo, C)


def global_avgpool(x):
    """(N, H, W, C) -> (N, C) f32 mean over spatial dims, one step per batch row."""
    N, H, W, C = x.shape
    M = H * W
    sub = _sublane(x.dtype)
    Mp, Cp = _ceil_to(M, sub), _ceil_to(C, 128)
    x3 = x.reshape(N, M, C)
    if (Mp, Cp) != (M, C):
        x3 = jnp.zeros((N, Mp, Cp), x.dtype).at[:, :M, :C].set(x3)
    out = pl.pallas_call(
        functools.partial(_avgpool_kernel, inv_hw=1.0 / float(M)),
        out_shape=jax.ShapeDtypeStruct((N, 1, Cp), jnp.float32),
        grid=(N,),
        in_specs=[pl.BlockSpec((1, Mp, Cp), lambda i: (i, 0, 0))],
        out_specs=pl.BlockSpec((1, 1, Cp), lambda i: (i, 0, 0)),
        compiler_params=pltpu.CompilerParams(
            dimension_semantics=("parallel",)),
    )(x3)
    return out.reshape(N, Cp)[:, :C]


def basic_block(x, blk, stride, cout):
    """ResNet BasicBlock: conv3x3-BN-ReLU-conv3x3-BN (+shortcut) -ReLU, all fused."""
    N, H, W, Cin = x.shape
    out = conv_bn_act(x, blk['conv1'], kh=3, kw=3, stride=stride, pad=1,
                      cout=cout, relu=True)
    if 'ds' in blk:
        idt = conv_bn_act(x, blk['ds'], kh=1, kw=1, stride=stride, pad=0,
                          cout=cout, relu=False)
        idt2 = idt.reshape(-1, cout)
    else:
        idt2 = x.reshape(-1, Cin)  # Cin == cout, same spatial shape
    out = conv_bn_act(out, blk['conv2'], kh=3, kw=3, stride=1, pad=1,
                      cout=cout, relu=True, residual=idt2)
    return out


def simclr_forward(x_nchw, prep, *, projection_dim):
    # NCHW (PyTorch) -> NHWC (kernel layout: channels on the lane axis)
    x = jnp.transpose(x_nchw, (0, 2, 3, 1)).astype(ACT_DTYPE)
    # stem: conv7x7/s2 + BN + ReLU, then maxpool 3x3/s2
    x = conv_bn_act(x, prep['conv1'], kh=7, kw=7, stride=2, pad=3,
                    cout=64, relu=True)
    x = maxpool2d_3x3_s2(x)
    # residual stages
    stage_cfg = [(64, 1), (128, 2), (256, 2), (512, 2)]
    for li, (cout, s0) in enumerate(stage_cfg):
        for bi in range(2):
            stride = s0 if bi == 0 else 1
            x = basic_block(x, prep['layers'][li][bi], stride, cout)
    # global average pool -> features (N, 512) f32
    feat = global_avgpool(x)
    # projection head: Linear(512,512)+bias+ReLU, Linear(512,proj_dim)+bias
    h = matmul_fused(feat, prep['fc1']['w'], prep['fc1']['s'], prep['fc1']['t'],
                     relu=True, out_n=512, out_dtype=ACT_DTYPE)
    z = matmul_fused(h, prep['fc2']['w'], prep['fc2']['s'], prep['fc2']['t'],
                     relu=False, out_n=projection_dim, out_dtype=jnp.float32)
    return z


# ----------------------------------------------------------------------------
# Parameter preparation: fold BN, transpose/pad/cast weights ONCE
# ----------------------------------------------------------------------------
def prepare_params(params):
    def prep_conv(w, s, t):
        cout, cin, kh, kw = w.shape
        K = kh * kw * cin
        Kp, Np = _ceil_to(K, 128), _ceil_to(cout, 128)
        wm = jnp.transpose(w, (2, 3, 1, 0)).reshape(K, cout).astype(jnp.bfloat16)
        wp = jnp.zeros((Kp, Np), jnp.bfloat16).at[:K, :cout].set(wm)
        sp = jnp.zeros((1, Np), jnp.float32).at[0, :cout].set(
            s.astype(jnp.float32))
        tp = jnp.zeros((1, Np), jnp.float32).at[0, :cout].set(
            t.astype(jnp.float32))
        return {'w': wp, 's': sp, 't': tp}

    def prep_fc(w, b):
        nout, nin = w.shape
        Kp, Np = _ceil_to(nin, 128), _ceil_to(nout, 128)
        wp = jnp.zeros((Kp, Np), jnp.bfloat16).at[:nin, :nout].set(
            w.T.astype(jnp.bfloat16))
        sp = jnp.zeros((1, Np), jnp.float32).at[0, :nout].set(1.0)
        tp = jnp.zeros((1, Np), jnp.float32).at[0, :nout].set(
            b.astype(jnp.float32))
        return {'w': wp, 's': sp, 't': tp}

    prep = {'conv1': prep_conv(params['conv1_w'],
                               params['bn1_s'], params['bn1_t'])}
    layers = []
    for layer in params['layers']:
        blocks = []
        for blk in layer:
            pb = {'conv1': prep_conv(blk['conv1_w'], blk['bn1_s'], blk['bn1_t']),
                  'conv2': prep_conv(blk['conv2_w'], blk['bn2_s'], blk['bn2_t'])}
            if 'ds_w' in blk:
                pb['ds'] = prep_conv(blk['ds_w'], blk['ds_bn_s'], blk['ds_bn_t'])
            blocks.append(pb)
        layers.append(blocks)
    prep['layers'] = layers
    prep['fc1'] = prep_fc(params['fc1_w'], params['fc1_b'])
    prep['fc2'] = prep_fc(params['fc2_w'], params['fc2_b'])
    return prep


# ----------------------------------------------------------------------------
# Deterministic parameter initialization (ResNet18, grayscale, proj head)
# ----------------------------------------------------------------------------
def init_params(key, projection_dim):
    keys = iter(jax.random.split(key, 256))

    def conv_w(cout, cin, kh, kw):
        fan_in = cin * kh * kw
        return (jax.random.normal(next(keys), (cout, cin, kh, kw), jnp.float32)
                * jnp.sqrt(2.0 / fan_in))

    def bn(c):
        k1, k2, k3, k4 = jax.random.split(next(keys), 4)
        gamma = 1.0 + 0.1 * jax.random.normal(k1, (c,), jnp.float32)
        beta = 0.1 * jax.random.normal(k2, (c,), jnp.float32)
        mean = 0.1 * jax.random.normal(k3, (c,), jnp.float32)
        var = jnp.abs(1.0 + 0.1 * jax.random.normal(k4, (c,), jnp.float32))
        eps = 1e-5
        scale = gamma / jnp.sqrt(var + eps)
        shift = beta - mean * scale
        return scale, shift

    params = {}
    # stem: grayscale -> 1 input channel
    params['conv1_w'] = conv_w(64, 1, 7, 7)
    params['bn1_s'], params['bn1_t'] = bn(64)
    # 4 stages x 2 BasicBlocks
    stage_cfg = [(64, 64), (64, 128), (128, 256), (256, 512)]
    layers = []
    for li, (cin, cout) in enumerate(stage_cfg):
        blocks = []
        for bi in range(2):
            b_cin = cin if bi == 0 else cout
            blk = {
                'conv1_w': conv_w(cout, b_cin, 3, 3),
                'conv2_w': conv_w(cout, cout, 3, 3),
            }
            blk['bn1_s'], blk['bn1_t'] = bn(cout)
            blk['bn2_s'], blk['bn2_t'] = bn(cout)
            if li > 0 and bi == 0:  # stride-2 block with channel change
                blk['ds_w'] = conv_w(cout, b_cin, 1, 1)
                blk['ds_bn_s'], blk['ds_bn_t'] = bn(cout)
            blocks.append(blk)
        layers.append(blocks)
    params['layers'] = layers
    # projection head replacing backbone.fc:
    # Sequential(Linear(512,512), ReLU, Linear(512, projection_dim))
    lim = 1.0 / jnp.sqrt(512.0)
    params['fc1_w'] = jax.random.uniform(next(keys), (512, 512), jnp.float32,
                                         -lim, lim)
    params['fc1_b'] = jax.random.uniform(next(keys), (512,), jnp.float32,
                                         -lim, lim)
    params['fc2_w'] = jax.random.uniform(next(keys), (projection_dim, 512),
                                         jnp.float32, -lim, lim)
    params['fc2_b'] = jax.random.uniform(next(keys), (projection_dim,),
                                         jnp.float32, -lim, lim)
    return params


if __name__ == "__main__":
    projection_dim = 64
    key = jax.random.PRNGKey(0)
    pkey, xkey = jax.random.split(key)
    params = init_params(pkey, projection_dim)
    prep = prepare_params(params)   # fold/pad/cast weights once, outside forward

    # GRAYSCALE = True -> 1 input channel; small NCHW input (batch=2, 32x32).
    x = jax.random.normal(xkey, (2, 1, 32, 32), jnp.float32)

    fwd = jax.jit(functools.partial(simclr_forward,
                                    projection_dim=projection_dim))
    z = fwd(x, prep)
    jax.block_until_ready(z)

    assert z.shape == (2, projection_dim), z.shape
    assert jnp.all(jnp.isfinite(z))
    print("KERNEL_OK")
</pallas_src>

<mosaic_0001>
module attributes {stable_mosaic.version = 11 : i64} {
  func.func @_mm_bn_act_kernel(%arg0: i32, %arg1: i32, %arg2: i32, %arg3: memref<256x128xbf16, #tpu.memory_space<vmem>>, %arg4: memref<128x128xbf16, #tpu.memory_space<vmem>>, %arg5: memref<1x128xf32, #tpu.memory_space<vmem>>, %arg6: memref<1x128xf32, #tpu.memory_space<vmem>>, %arg7: memref<256x128xbf16, #tpu.memory_space<vmem>>, %arg8: memref<256x128xf32, #tpu.memory_space<vmem>>) attributes {dimension_semantics = [#tpu.dimension_semantics<parallel>, #tpu.dimension_semantics<parallel>, #tpu.dimension_semantics<arbitrary>], iteration_bounds = array<i64: 2, 1, 1>, scalar_prefetch = 0 : i64, scratch_operands = 1 : i64, tpu.core_type = #tpu.core_type<tc>, window_params = [{transform_indices = @transform_0, window_bounds = array<i64: 256, 128>}, {transform_indices = @transform_1, window_bounds = array<i64: 128, 128>}, {transform_indices = @transform_2, window_bounds = array<i64: 1, 128>}, {transform_indices = @transform_3, window_bounds = array<i64: 1, 128>}, {transform_indices = @transform_4, window_bounds = array<i64: 256, 128>}]} {
    %c0_i32 = arith.constant 0 : i32
    %0 = arith.cmpi eq, %arg2, %c0_i32 : i32
    %1 = arith.extui %0 : i1 to i32
    %c0_i32_0 = arith.constant 0 : i32
    %2 = arith.cmpi ne, %1, %c0_i32_0 : i32
    scf.if %2 {
      %cst_10 = arith.constant 0.000000e+00 : f32
      %12 = vector.broadcast %cst_10 : f32 to vector<256x128xf32>
      %c0_11 = arith.constant 0 : index
      %c0_12 = arith.constant 0 : index
      %13 = vector.load %arg8[%c0_11, %c0_12] : memref<256x128xf32, #tpu.memory_space<vmem>>, vector<256x128xf32>
      tpu.vector_store %arg8[%c0_11, %c0_12], %12 {strides = array<i32>} : memref<256x128xf32, #tpu.memory_space<vmem>>, vector<256x128xf32>,
    } else {
    }
    %c0 = arith.constant 0 : index
    %c0_1 = arith.constant 0 : index
    %3 = vector.load %arg8[%c0, %c0_1] : memref<256x128xf32, #tpu.memory_space<vmem>>, vector<256x128xf32>
    %c0_2 = arith.constant 0 : index
    %c0_3 = arith.constant 0 : index
    %4 = vector.load %arg3[%c0_2, %c0_3] : memref<256x128xbf16, #tpu.memory_space<vmem>>, vector<256x128xbf16>
    %c0_4 = arith.constant 0 : index
    %c0_5 = arith.constant 0 : index
    %5 = vector.load %arg4[%c0_4, %c0_5] : memref<128x128xbf16, #tpu.memory_space<vmem>>, vector<128x128xbf16>
    %cst = arith.constant dense<0.000000e+00> : vector<256x128xf32>
    %6 = tpu.matmul %4, %5, %cst {dimension_numbers = #tpu.dot_dimension_numbers<[1], [0], [0], [1], [0, 0, 1, 1], [], []>} : vector<256x128xbf16>, vector<128x128xbf16>, vector<256x128xf32> -> vector<256x128xf32>
    %7 = arith.addf %3, %6 : vector<256x128xf32>
    %c0_6 = arith.constant 0 : index
    %c0_7 = arith.constant 0 : index
    %8 = vector.load %arg8[%c0_6, %c0_7] : memref<256x128xf32, #tpu.memory_space<vmem>>, vector<256x128xf32>
    tpu.vector_store %arg8[%c0_6, %c0_7], %7 {strides = array<i32>} : memref<256x128xf32, #tpu.memory_space<vmem>>, vector<256x128xf32>,
    %c0_i32_8 = arith.constant 0 : i32
    %9 = arith.cmpi eq, %arg2, %c0_i32_8 : i32
    %10 = arith.extui %9 : i1 to i32
    %c0_i32_9 = arith.constant 0 : i32
    %11 = arith.cmpi ne, %10, %c0_i32_9 : i32
    scf.if %11 {
      %c0_10 = arith.constant 0 : index
      %c0_11 = arith.constant 0 : index
      %12 = vector.load %arg8[%c0_10, %c0_11] : memref<256x128xf32, #tpu.memory_space<vmem>>, vector<256x128xf32>
      %c0_12 = arith.constant 0 : index
      %c0_13 = arith.constant 0 : index
      %13 = vector.load %arg5[%c0_12, %c0_13] : memref<1x128xf32, #tpu.memory_space<vmem>>, vector<1x128xf32>
      %14 = vector.broadcast %13 : vector<1x128xf32> to vector<256x128xf32>
      %15 = arith.mulf %12, %14 : vector<256x128xf32>
      %c0_14 = arith.constant 0 : index
      %c0_15 = arith.constant 0 : index
      %16 = vector.load %arg6[%c0_14, %c0_15] : memref<1x128xf32, #tpu.memory_space<vmem>>, vector<1x128xf32>
      %17 = vector.broadcast %16 : vector<1x128xf32> to vector<256x128xf32>
      %18 = arith.addf %15, %17 : vector<256x128xf32>
      %cst_16 = arith.constant 0.000000e+00 : f32
      %19 = vector.broadcast %cst_16 : f32 to vector<256x128xf32>
      %20 = arith.maximumf %18, %19 : vector<256x128xf32>
      %21 = arith.truncf %20 : vector<256x128xf32> to vector<256x128xbf16>
      %c0_17 = arith.constant 0 : index
      %c0_18 = arith.constant 0 : index
      %22 = vector.load %arg7[%c0_17, %c0_18] : memref<256x128xbf16, #tpu.memory_space<vmem>>, vector<256x128xbf16>
      tpu.vector_store %arg7[%c0_17, %c0_18], %21 {strides = array<i32>} : memref<256x128xbf16, #tpu.memory_space<vmem>>, vector<256x128xbf16>,
    } else {
    }
    return
  }
  func.func @transform_0(%arg0: i32, %arg1: i32, %arg2: i32) -> (i32, i32) {
    %c0_i32 = arith.constant 0 : i32
    return %arg0, %arg2 : i32, i32
  }
  func.func @transform_1(%arg0: i32, %arg1: i32, %arg2: i32) -> (i32, i32) {
    %c0_i32 = arith.constant 0 : i32
    return %arg2, %arg1 : i32, i32
  }
  func.func @transform_2(%arg0: i32, %arg1: i32, %arg2: i32) -> (i32, i32) {
    %c0_i32 = arith.constant 0 : i32
    %c0_i32_0 = arith.constant 0 : i32
    return %c0_i32, %arg1 : i32, i32
  }
  func.func @transform_3(%arg0: i32, %arg1: i32, %arg2: i32) -> (i32, i32) {
    %c0_i32 = arith.constant 0 : i32
    %c0_i32_0 = arith.constant 0 : i32
    return %c0_i32, %arg1 : i32, i32
  }
  func.func @transform_4(%arg0: i32, %arg1: i32, %arg2: i32) -> (i32, i32) {
    %c0_i32 = arith.constant 0 : i32
    return %arg0, %arg1 : i32, i32
  }
}

module attributes {stable_mosaic.version = 11 : i64} {
  func.func @_max_taps_kernel(%arg0: i32, %arg1: memref<9x128x128xbf16, #tpu.memory_space<vmem>>, %arg2: memref<128x128xbf16, #tpu.memory_space<vmem>>) attributes {dimension_semantics = [#tpu.dimension_semantics<parallel>], iteration_bounds = array<i64: 1>, scalar_prefetch = 0 : i64, scratch_operands = 0 : i64, tpu.core_type = #tpu.core_type<tc>, window_params = [{transform_indices = @transform_0, window_bounds = array<i64: 9, 128, 128>}, {transform_indices = @transform_1, window_bounds = array<i64: 128, 128>}]} {
    %c0 = arith.constant 0 : index
    %c0_0 = arith.constant 0 : index
    %c0_1 = arith.constant 0 : index
    %0 = vector.load %arg1[%c0, %c0_0, %c0_1] : memref<9x128x128xbf16, #tpu.memory_space<vmem>>, vector<9x128x128xbf16>
    %cst = arith.constant dense<0xFF80> : vector<128x128xbf16>
    %1 = vector.multi_reduction <maximumf>, %0, %cst [0] : vector<9x128x128xbf16> to vector<128x128xbf16>
    %c0_2 = arith.constant 0 : index
    %c0_3 = arith.constant 0 : index
    %2 = vector.load %arg2[%c0_2, %c0_3] : memref<128x128xbf16, #tpu.memory_space<vmem>>, vector<128x128xbf16>
    tpu.vector_store %arg2[%c0_2, %c0_3], %1 {strides = array<i32>} : memref<128x128xbf16, #tpu.memory_space<vmem>>, vector<128x128xbf16>,
    return
  }
  func.func @transform_0(%arg0: i32) -> (i32, i32, i32) {
    %c0_i32 = arith.constant 0 : i32
    %c0_i32_0 = arith.constant 0 : i32
    %c0_i32_1 = arith.constant 0 : i32
    return %c0_i32, %arg0, %c0_i32_0 : i32, i32, i32
  }
  func.func @transform_1(%arg0: i32) -> (i32, i32) {
    %c0_i32 = arith.constant 0 : i32
    %c0_i32_0 = arith.constant 0 : i32
    return %arg0, %c0_i32 : i32, i32
  }
}

module attributes {stable_mosaic.version = 11 : i64} {
  func.func @_mm_bn_res_act_kernel(%arg0: i32, %arg1: i32, %arg2: i32, %arg3: memref<128x640xbf16, #tpu.memory_space<vmem>>, %arg4: memref<640x128xbf16, #tpu.memory_space<vmem>>, %arg5: memref<1x128xf32, #tpu.memory_space<vmem>>, %arg6: memref<1x128xf32, #tpu.memory_space<vmem>>, %arg7: memref<128x128xbf16, #tpu.memory_space<vmem>>, %arg8: memref<128x128xbf16, #tpu.memory_space<vmem>>, %arg9: memref<128x128xf32, #tpu.memory_space<vmem>>) attributes {dimension_semantics = [#tpu.dimension_semantics<parallel>, #tpu.dimension_semantics<parallel>, #tpu.dimension_semantics<arbitrary>], iteration_bounds = array<i64: 1, 1, 1>, scalar_prefetch = 0 : i64, scratch_operands = 1 : i64, tpu.core_type = #tpu.core_type<tc>, window_params = [{transform_indices = @transform_0, window_bounds = array<i64: 128, 640>}, {transform_indices = @transform_1, window_bounds = array<i64: 640, 128>}, {transform_indices = @transform_2, window_bounds = array<i64: 1, 128>}, {transform_indices = @transform_3, window_bounds = array<i64: 1, 128>}, {transform_indices = @transform_4, window_bounds = array<i64: 128, 128>}, {transform_indices = @transform_5, window_bounds = array<i64: 128, 128>}]} {
    %c0_i32 = arith.constant 0 : i32
    %0 = arith.cmpi eq, %arg2, %c0_i32 : i32
    %1 = arith.extui %0 : i1 to i32
    %c0_i32_0 = arith.constant 0 : i32
    %2 = arith.cmpi ne, %1, %c0_i32_0 : i32
    scf.if %2 {
      %cst_10 = arith.constant 0.000000e+00 : f32
      %12 = vector.broadcast %cst_10 : f32 to vector<128x128xf32>
      %c0_11 = arith.constant 0 : index
      %c0_12 = arith.constant 0 : index
      %13 = vector.load %arg9[%c0_11, %c0_12] : memref<128x128xf32, #tpu.memory_space<vmem>>, vector<128x128xf32>
      tpu.vector_store %arg9[%c0_11, %c0_12], %12 {strides = array<i32>} : memref<128x128xf32, #tpu.memory_space<vmem>>, vector<128x128xf32>,
    } else {
    }
    %c0 = arith.constant 0 : index
    %c0_1 = arith.constant 0 : index
    %3 = vector.load %arg9[%c0, %c0_1] : memref<128x128xf32, #tpu.memory_space<vmem>>, vector<128x128xf32>
    %c0_2 = arith.constant 0 : index
    %c0_3 = arith.constant 0 : index
    %4 = vector.load %arg3[%c0_2, %c0_3] : memref<128x640xbf16, #tpu.memory_space<vmem>>, vector<128x640xbf16>
    %c0_4 = arith.constant 0 : index
    %c0_5 = arith.constant 0 : index
    %5 = vector.load %arg4[%c0_4, %c0_5] : memref<640x128xbf16, #tpu.memory_space<vmem>>, vector<640x128xbf16>
    %cst = arith.constant dense<0.000000e+00> : vector<128x128xf32>
    %6 = tpu.matmul %4, %5, %cst {dimension_numbers = #tpu.dot_dimension_numbers<[1], [0], [0], [1], [0, 0, 1, 1], [], []>} : vector<128x640xbf16>, vector<640x128xbf16>, vector<128x128xf32> -> vector<128x128xf32>
    %7 = arith.addf %3, %6 : vector<128x128xf32>
    %c0_6 = arith.constant 0 : index
    %c0_7 = arith.constant 0 : index
    %8 = vector.load %arg9[%c0_6, %c0_7] : memref<128x128xf32, #tpu.memory_space<vmem>>, vector<128x128xf32>
    tpu.vector_store %arg9[%c0_6, %c0_7], %7 {strides = array<i32>} : memref<128x128xf32, #tpu.memory_space<vmem>>, vector<128x128xf32>,
    %c0_i32_8 = arith.constant 0 : i32
    %9 = arith.cmpi eq, %arg2, %c0_i32_8 : i32
    %10 = arith.extui %9 : i1 to i32
    %c0_i32_9 = arith.constant 0 : i32
    %11 = arith.cmpi ne, %10, %c0_i32_9 : i32
    scf.if %11 {
      %c0_10 = arith.constant 0 : index
      %c0_11 = arith.constant 0 : index
      %12 = vector.load %arg9[%c0_10, %c0_11] : memref<128x128xf32, #tpu.memory_space<vmem>>, vector<128x128xf32>
      %c0_12 = arith.constant 0 : index
      %c0_13 = arith.constant 0 : index
      %13 = vector.load %arg5[%c0_12, %c0_13] : memref<1x128xf32, #tpu.memory_space<vmem>>, vector<1x128xf32>
      %14 = vector.broadcast %13 : vector<1x128xf32> to vector<128x128xf32>
      %15 = arith.mulf %12, %14 : vector<128x128xf32>
      %c0_14 = arith.constant 0 : index
      %c0_15 = arith.constant 0 : index
      %16 = vector.load %arg6[%c0_14, %c0_15] : memref<1x128xf32, #tpu.memory_space<vmem>>, vector<1x128xf32>
      %17 = vector.broadcast %16 : vector<1x128xf32> to vector<128x128xf32>
      %18 = arith.addf %15, %17 : vector<128x128xf32>
      %c0_16 = arith.constant 0 : index
      %c0_17 = arith.constant 0 : index
      %19 = vector.load %arg7[%c0_16, %c0_17] : memref<128x128xbf16, #tpu.memory_space<vmem>>, vector<128x128xbf16>
      %20 = arith.extf %19 : vector<128x128xbf16> to vector<128x128xf32>
      %21 = arith.addf %18, %20 : vector<128x128xf32>
      %cst_18 = arith.constant 0.000000e+00 : f32
      %22 = vector.broadcast %cst_18 : f32 to vector<128x128xf32>
      %23 = arith.maximumf %21, %22 : vector<128x128xf32>
      %24 = arith.truncf %23 : vector<128x128xf32> to vector<128x128xbf16>
      %c0_19 = arith.constant 0 : index
      %c0_20 = arith.constant 0 : index
      %25 = vector.load %arg8[%c0_19, %c0_20] : memref<128x128xbf16, #tpu.memory_space<vmem>>, vector<128x128xbf16>
      tpu.vector_store %arg8[%c0_19, %c0_20], %24 {strides = array<i32>} : memref<128x128xbf16, #tpu.memory_space<vmem>>, vector<128x128xbf16>,
    } else {
    }
    return
  }
  func.func @transform_0(%arg0: i32, %arg1: i32, %arg2: i32) -> (i32, i32) {
    %c0_i32 = arith.constant 0 : i32
    return %arg0, %arg2 : i32, i32
  }
  func.func @transform_1(%arg0: i32, %arg1: i32, %arg2: i32) -> (i32, i32) {
    %c0_i32 = arith.constant 0 : i32
    return %arg2, %arg1 : i32, i32
  }
  func.func @transform_2(%arg0: i32, %arg1: i32, %arg2: i32) -> (i32, i32) {
    %c0_i32 = arith.constant 0 : i32
    %c0_i32_0 = arith.constant 0 : i32
    return %c0_i32, %arg1 : i32, i32
  }
  func.func @transform_3(%arg0: i32, %arg1: i32, %arg2: i32) -> (i32, i32) {
    %c0_i32 = arith.constant 0 : i32
    %c0_i32_0 = arith.constant 0 : i32
    return %c0_i32, %arg1 : i32, i32
  }
  func.func @transform_4(%arg0: i32, %arg1: i32, %arg2: i32) -> (i32, i32) {
    %c0_i32 = arith.constant 0 : i32
    return %arg0, %arg1 : i32, i32
  }
  func.func @transform_5(%arg0: i32, %arg1: i32, %arg2: i32) -> (i32, i32) {
    %c0_i32 = arith.constant 0 : i32
    return %arg0, %arg1 : i32, i32
  }
}

module attributes {stable_mosaic.version = 11 : i64} {
  func.func @_mm_bn_act_kernel(%arg0: i32, %arg1: i32, %arg2: i32, %arg3: memref<128x640xbf16, #tpu.memory_space<vmem>>, %arg4: memref<640x128xbf16, #tpu.memory_space<vmem>>, %arg5: memref<1x128xf32, #tpu.memory_space<vmem>>, %arg6: memref<1x128xf32, #tpu.memory_space<vmem>>, %arg7: memref<128x128xbf16, #tpu.memory_space<vmem>>, %arg8: memref<128x128xf32, #tpu.memory_space<vmem>>) attributes {dimension_semantics = [#tpu.dimension_semantics<parallel>, #tpu.dimension_semantics<parallel>, #tpu.dimension_semantics<arbitrary>], iteration_bounds = array<i64: 1, 1, 1>, scalar_prefetch = 0 : i64, scratch_operands = 1 : i64, tpu.core_type = #tpu.core_type<tc>, window_params = [{transform_indices = @transform_0, window_bounds = array<i64: 128, 640>}, {transform_indices = @transform_1, window_bounds = array<i64: 640, 128>}, {transform_indices = @transform_2, window_bounds = array<i64: 1, 128>}, {transform_indices = @transform_3, window_bounds = array<i64: 1, 128>}, {transform_indices = @transform_4, window_bounds = array<i64: 128, 128>}]} {
    %c0_i32 = arith.constant 0 : i32
    %0 = arith.cmpi eq, %arg2, %c0_i32 : i32
    %1 = arith.extui %0 : i1 to i32
    %c0_i32_0 = arith.constant 0 : i32
    %2 = arith.cmpi ne, %1, %c0_i32_0 : i32
    scf.if %2 {
      %cst_10 = arith.constant 0.000000e+00 : f32
      %12 = vector.broadcast %cst_10 : f32 to vector<128x128xf32>
      %c0_11 = arith.constant 0 : index
      %c0_12 = arith.constant 0 : index
      %13 = vector.load %arg8[%c0_11, %c0_12] : memref<128x128xf32, #tpu.memory_space<vmem>>, vector<128x128xf32>
      tpu.vector_store %arg8[%c0_11, %c0_12], %12 {strides = array<i32>} : memref<128x128xf32, #tpu.memory_space<vmem>>, vector<128x128xf32>,
    } else {
    }
    %c0 = arith.constant 0 : index
    %c0_1 = arith.constant 0 : index
    %3 = vector.load %arg8[%c0, %c0_1] : memref<128x128xf32, #tpu.memory_space<vmem>>, vector<128x128xf32>
    %c0_2 = arith.constant 0 : index
    %c0_3 = arith.constant 0 : index
    %4 = vector.load %arg3[%c0_2, %c0_3] : memref<128x640xbf16, #tpu.memory_space<vmem>>, vector<128x640xbf16>
    %c0_4 = arith.constant 0 : index
    %c0_5 = arith.constant 0 : index
    %5 = vector.load %arg4[%c0_4, %c0_5] : memref<640x128xbf16, #tpu.memory_space<vmem>>, vector<640x128xbf16>
    %cst = arith.constant dense<0.000000e+00> : vector<128x128xf32>
    %6 = tpu.matmul %4, %5, %cst {dimension_numbers = #tpu.dot_dimension_numbers<[1], [0], [0], [1], [0, 0, 1, 1], [], []>} : vector<128x640xbf16>, vector<640x128xbf16>, vector<128x128xf32> -> vector<128x128xf32>
    %7 = arith.addf %3, %6 : vector<128x128xf32>
    %c0_6 = arith.constant 0 : index
    %c0_7 = arith.constant 0 : index
    %8 = vector.load %arg8[%c0_6, %c0_7] : memref<128x128xf32, #tpu.memory_space<vmem>>, vector<128x128xf32>
    tpu.vector_store %arg8[%c0_6, %c0_7], %7 {strides = array<i32>} : memref<128x128xf32, #tpu.memory_space<vmem>>, vector<128x128xf32>,
    %c0_i32_8 = arith.constant 0 : i32
    %9 = arith.cmpi eq, %arg2, %c0_i32_8 : i32
    %10 = arith.extui %9 : i1 to i32
    %c0_i32_9 = arith.constant 0 : i32
    %11 = arith.cmpi ne, %10, %c0_i32_9 : i32
    scf.if %11 {
      %c0_10 = arith.constant 0 : index
      %c0_11 = arith.constant 0 : index
      %12 = vector.load %arg8[%c0_10, %c0_11] : memref<128x128xf32, #tpu.memory_space<vmem>>, vector<128x128xf32>
      %c0_12 = arith.constant 0 : index
      %c0_13 = arith.constant 0 : index
      %13 = vector.load %arg5[%c0_12, %c0_13] : memref<1x128xf32, #tpu.memory_space<vmem>>, vector<1x128xf32>
      %14 = vector.broadcast %13 : vector<1x128xf32> to vector<128x128xf32>
      %15 = arith.mulf %12, %14 : vector<128x128xf32>
      %c0_14 = arith.constant 0 : index
      %c0_15 = arith.constant 0 : index
      %16 = vector.load %arg6[%c0_14, %c0_15] : memref<1x128xf32, #tpu.memory_space<vmem>>, vector<1x128xf32>
      %17 = vector.broadcast %16 : vector<1x128xf32> to vector<128x128xf32>
      %18 = arith.addf %15, %17 : vector<128x128xf32>
      %cst_16 = arith.constant 0.000000e+00 : f32
      %19 = vector.broadcast %cst_16 : f32 to vector<128x128xf32>
      %20 = arith.maximumf %18, %19 : vector<128x128xf32>
      %21 = arith.truncf %20 : vector<128x128xf32> to vector<128x128xbf16>
      %c0_17 = arith.constant 0 : index
      %c0_18 = arith.constant 0 : index
      %22 = vector.load %arg7[%c0_17, %c0_18] : memref<128x128xbf16, #tpu.memory_space<vmem>>, vector<128x128xbf16>
      tpu.vector_store %arg7[%c0_17, %c0_18], %21 {strides = array<i32>} : memref<128x128xbf16, #tpu.memory_space<vmem>>, vector<128x128xbf16>,
    } else {
    }
    return
  }
  func.func @transform_0(%arg0: i32, %arg1: i32, %arg2: i32) -> (i32, i32) {
    %c0_i32 = arith.constant 0 : i32
    return %arg0, %arg2 : i32, i32
  }
  func.func @transform_1(%arg0: i32, %arg1: i32, %arg2: i32) -> (i32, i32) {
    %c0_i32 = arith.constant 0 : i32
    return %arg2, %arg1 : i32, i32
  }
  func.func @transform_2(%arg0: i32, %arg1: i32, %arg2: i32) -> (i32, i32) {
    %c0_i32 = arith.constant 0 : i32
    %c0_i32_0 = arith.constant 0 : i32
    return %c0_i32, %arg1 : i32, i32
  }
  func.func @transform_3(%arg0: i32, %arg1: i32, %arg2: i32) -> (i32, i32) {
    %c0_i32 = arith.constant 0 : i32
    %c0_i32_0 = arith.constant 0 : i32
    return %c0_i32, %arg1 : i32, i32
  }
  func.func @transform_4(%arg0: i32, %arg1: i32, %arg2: i32) -> (i32, i32) {
    %c0_i32 = arith.constant 0 : i32
    return %arg0, %arg1 : i32, i32
  }
}

module attributes {stable_mosaic.version = 11 : i64} {
  func.func @_mm_bn_act_kernel(%arg0: i32, %arg1: i32, %arg2: i32, %arg3: memref<32x640xbf16, #tpu.memory_space<vmem>>, %arg4: memref<640x128xbf16, #tpu.memory_space<vmem>>, %arg5: memref<1x128xf32, #tpu.memory_space<vmem>>, %arg6: memref<1x128xf32, #tpu.memory_space<vmem>>, %arg7: memref<32x128xbf16, #tpu.memory_space<vmem>>, %arg8: memref<32x128xf32, #tpu.memory_space<vmem>>) attributes {dimension_semantics = [#tpu.dimension_semantics<parallel>, #tpu.dimension_semantics<parallel>, #tpu.dimension_semantics<arbitrary>], iteration_bounds = array<i64: 1, 1, 1>, scalar_prefetch = 0 : i64, scratch_operands = 1 : i64, tpu.core_type = #tpu.core_type<tc>, window_params = [{transform_indices = @transform_0, window_bounds = array<i64: 32, 640>}, {transform_indices = @transform_1, window_bounds = array<i64: 640, 128>}, {transform_indices = @transform_2, window_bounds = array<i64: 1, 128>}, {transform_indices = @transform_3, window_bounds = array<i64: 1, 128>}, {transform_indices = @transform_4, window_bounds = array<i64: 32, 128>}]} {
    %c0_i32 = arith.constant 0 : i32
    %0 = arith.cmpi eq, %arg2, %c0_i32 : i32
    %1 = arith.extui %0 : i1 to i32
    %c0_i32_0 = arith.constant 0 : i32
    %2 = arith.cmpi ne, %1, %c0_i32_0 : i32
    scf.if %2 {
      %cst_10 = arith.constant 0.000000e+00 : f32
      %12 = vector.broadcast %cst_10 : f32 to vector<32x128xf32>
      %c0_11 = arith.constant 0 : index
      %c0_12 = arith.constant 0 : index
      %13 = vector.load %arg8[%c0_11, %c0_12] : memref<32x128xf32, #tpu.memory_space<vmem>>, vector<32x128xf32>
      tpu.vector_store %arg8[%c0_11, %c0_12], %12 {strides = array<i32>} : memref<32x128xf32, #tpu.memory_space<vmem>>, vector<32x128xf32>,
    } else {
    }
    %c0 = arith.constant 0 : index
    %c0_1 = arith.constant 0 : index
    %3 = vector.load %arg8[%c0, %c0_1] : memref<32x128xf32, #tpu.memory_space<vmem>>, vector<32x128xf32>
    %c0_2 = arith.constant 0 : index
    %c0_3 = arith.constant 0 : index
    %4 = vector.load %arg3[%c0_2, %c0_3] : memref<32x640xbf16, #tpu.memory_space<vmem>>, vector<32x640xbf16>
    %c0_4 = arith.constant 0 : index
    %c0_5 = arith.constant 0 : index
    %5 = vector.load %arg4[%c0_4, %c0_5] : memref<640x128xbf16, #tpu.memory_space<vmem>>, vector<640x128xbf16>
    %cst = arith.constant dense<0.000000e+00> : vector<32x128xf32>
    %6 = tpu.matmul %4, %5, %cst {dimension_numbers = #tpu.dot_dimension_numbers<[1], [0], [0], [1], [0, 0, 1, 1], [], []>} : vector<32x640xbf16>, vector<640x128xbf16>, vector<32x128xf32> -> vector<32x128xf32>
    %7 = arith.addf %3, %6 : vector<32x128xf32>
    %c0_6 = arith.constant 0 : index
    %c0_7 = arith.constant 0 : index
    %8 = vector.load %arg8[%c0_6, %c0_7] : memref<32x128xf32, #tpu.memory_space<vmem>>, vector<32x128xf32>
    tpu.vector_store %arg8[%c0_6, %c0_7], %7 {strides = array<i32>} : memref<32x128xf32, #tpu.memory_space<vmem>>, vector<32x128xf32>,
    %c0_i32_8 = arith.constant 0 : i32
    %9 = arith.cmpi eq, %arg2, %c0_i32_8 : i32
    %10 = arith.extui %9 : i1 to i32
    %c0_i32_9 = arith.constant 0 : i32
    %11 = arith.cmpi ne, %10, %c0_i32_9 : i32
    scf.if %11 {
      %c0_10 = arith.constant 0 : index
      %c0_11 = arith.constant 0 : index
      %12 = vector.load %arg8[%c0_10, %c0_11] : memref<32x128xf32, #tpu.memory_space<vmem>>, vector<32x128xf32>
      %c0_12 = arith.constant 0 : index
      %c0_13 = arith.constant 0 : index
      %13 = vector.load %arg5[%c0_12, %c0_13] : memref<1x128xf32, #tpu.memory_space<vmem>>, vector<1x128xf32>
      %14 = vector.broadcast %13 : vector<1x128xf32> to vector<32x128xf32>
      %15 = arith.mulf %12, %14 : vector<32x128xf32>
      %c0_14 = arith.constant 0 : index
      %c0_15 = arith.constant 0 : index
      %16 = vector.load %arg6[%c0_14, %c0_15] : memref<1x128xf32, #tpu.memory_space<vmem>>, vector<1x128xf32>
      %17 = vector.broadcast %16 : vector<1x128xf32> to vector<32x128xf32>
      %18 = arith.addf %15, %17 : vector<32x128xf32>
      %cst_16 = arith.constant 0.000000e+00 : f32
      %19 = vector.broadcast %cst_16 : f32 to vector<32x128xf32>
      %20 = arith.maximumf %18, %19 : vector<32x128xf32>
      %21 = arith.truncf %20 : vector<32x128xf32> to vector<32x128xbf16>
      %c0_17 = arith.constant 0 : index
      %c0_18 = arith.constant 0 : index
      %22 = vector.load %arg7[%c0_17, %c0_18] : memref<32x128xbf16, #tpu.memory_space<vmem>>, vector<32x128xbf16>
      tpu.vector_store %arg7[%c0_17, %c0_18], %21 {strides = array<i32>} : memref<32x128xbf16, #tpu.memory_space<vmem>>, vector<32x128xbf16>,
    } else {
    }
    return
  }
  func.func @transform_0(%arg0: i32, %arg1: i32, %arg2: i32) -> (i32, i32) {
    %c0_i32 = arith.constant 0 : i32
    return %arg0, %arg2 : i32, i32
  }
  func.func @transform_1(%arg0: i32, %arg1: i32, %arg2: i32) -> (i32, i32) {
    %c0_i32 = arith.constant 0 : i32
    return %arg2, %arg1 : i32, i32
  }
  func.func @transform_2(%arg0: i32, %arg1: i32, %arg2: i32) -> (i32, i32) {
    %c0_i32 = arith.constant 0 : i32
    %c0_i32_0 = arith.constant 0 : i32
    return %c0_i32, %arg1 : i32, i32
  }
  func.func @transform_3(%arg0: i32, %arg1: i32, %arg2: i32) -> (i32, i32) {
    %c0_i32 = arith.constant 0 : i32
    %c0_i32_0 = arith.constant 0 : i32
    return %c0_i32, %arg1 : i32, i32
  }
  func.func @transform_4(%arg0: i32, %arg1: i32, %arg2: i32) -> (i32, i32) {
    %c0_i32 = arith.constant 0 : i32
    return %arg0, %arg1 : i32, i32
  }
}

module attributes {stable_mosaic.version = 11 : i64} {
  func.func @_mm_bn_res_act_kernel(%arg0: i32, %arg1: i32, %arg2: i32, %arg3: memref<32x384xbf16, #tpu.memory_space<vmem>>, %arg4: memref<384x128xbf16, #tpu.memory_space<vmem>>, %arg5: memref<1x128xf32, #tpu.memory_space<vmem>>, %arg6: memref<1x128xf32, #tpu.memory_space<vmem>>, %arg7: memref<32x128xbf16, #tpu.memory_space<vmem>>, %arg8: memref<32x128xbf16, #tpu.memory_space<vmem>>, %arg9: memref<32x128xf32, #tpu.memory_space<vmem>>) attributes {dimension_semantics = [#tpu.dimension_semantics<parallel>, #tpu.dimension_semantics<parallel>, #tpu.dimension_semantics<arbitrary>], iteration_bounds = array<i64: 1, 1, 3>, scalar_prefetch = 0 : i64, scratch_operands = 1 : i64, tpu.core_type = #tpu.core_type<tc>, window_params = [{transform_indices = @transform_0, window_bounds = array<i64: 32, 384>}, {transform_indices = @transform_1, window_bounds = array<i64: 384, 128>}, {transform_indices = @transform_2, window_bounds = array<i64: 1, 128>}, {transform_indices = @transform_3, window_bounds = array<i64: 1, 128>}, {transform_indices = @transform_4, window_bounds = array<i64: 32, 128>}, {transform_indices = @transform_5, window_bounds = array<i64: 32, 128>}]} {
    %c0_i32 = arith.constant 0 : i32
    %0 = arith.cmpi eq, %arg2, %c0_i32 : i32
    %1 = arith.extui %0 : i1 to i32
    %c0_i32_0 = arith.constant 0 : i32
    %2 = arith.cmpi ne, %1, %c0_i32_0 : i32
    scf.if %2 {
      %cst_9 = arith.constant 0.000000e+00 : f32
      %12 = vector.broadcast %cst_9 : f32 to vector<32x128xf32>
      %c0_10 = arith.constant 0 : index
      %c0_11 = arith.constant 0 : index
      %13 = vector.load %arg9[%c0_10, %c0_11] : memref<32x128xf32, #tpu.memory_space<vmem>>, vector<32x128xf32>
      tpu.vector_store %arg9[%c0_10, %c0_11], %12 {strides = array<i32>} : memref<32x128xf32, #tpu.memory_space<vmem>>, vector<32x128xf32>,
    } else {
    }
    %c0 = arith.constant 0 : index
    %c0_1 = arith.constant 0 : index
    %3 = vector.load %arg9[%c0, %c0_1] : memref<32x128xf32, #tpu.memory_space<vmem>>, vector<32x128xf32>
    %c0_2 = arith.constant 0 : index
    %c0_3 = arith.constant 0 : index
    %4 = vector.load %arg3[%c0_2, %c0_3] : memref<32x384xbf16, #tpu.memory_space<vmem>>, vector<32x384xbf16>
    %c0_4 = arith.constant 0 : index
    %c0_5 = arith.constant 0 : index
    %5 = vector.load %arg4[%c0_4, %c0_5] : memref<384x128xbf16, #tpu.memory_space<vmem>>, vector<384x128xbf16>
    %cst = arith.constant dense<0.000000e+00> : vector<32x128xf32>
    %6 = tpu.matmul %4, %5, %cst {dimension_numbers = #tpu.dot_dimension_numbers<[1], [0], [0], [1], [0, 0, 1, 1], [], []>} : vector<32x384xbf16>, vector<384x128xbf16>, vector<32x128xf32> -> vector<32x128xf32>
    %7 = arith.addf %3, %6 : vector<32x128xf32>
    %c0_6 = arith.constant 0 : index
    %c0_7 = arith.constant 0 : index
    %8 = vector.load %arg9[%c0_6, %c0_7] : memref<32x128xf32, #tpu.memory_space<vmem>>, vector<32x128xf32>
    tpu.vector_store %arg9[%c0_6, %c0_7], %7 {strides = array<i32>} : memref<32x128xf32, #tpu.memory_space<vmem>>, vector<32x128xf32>,
    %c2_i32 = arith.constant 2 : i32
    %9 = arith.cmpi eq, %arg2, %c2_i32 : i32
    %10 = arith.extui %9 : i1 to i32
    %c0_i32_8 = arith.constant 0 : i32
    %11 = arith.cmpi ne, %10, %c0_i32_8 : i32
    scf.if %11 {
      %c0_9 = arith.constant 0 : index
      %c0_10 = arith.constant 0 : index
      %12 = vector.load %arg9[%c0_9, %c0_10] : memref<32x128xf32, #tpu.memory_space<vmem>>, vector<32x128xf32>
      %c0_11 = arith.constant 0 : index
      %c0_12 = arith.constant 0 : index
      %13 = vector.load %arg5[%c0_11, %c0_12] : memref<1x128xf32, #tpu.memory_space<vmem>>, vector<1x128xf32>
      %14 = vector.broadcast %13 : vector<1x128xf32> to vector<32x128xf32>
      %15 = arith.mulf %12, %14 : vector<32x128xf32>
      %c0_13 = arith.constant 0 : index
      %c0_14 = arith.constant 0 : index
      %16 = vector.load %arg6[%c0_13, %c0_14] : memref<1x128xf32, #tpu.memory_space<vmem>>, vector<1x128xf32>
      %17 = vector.broadcast %16 : vector<1x128xf32> to vector<32x128xf32>
      %18 = arith.addf %15, %17 : vector<32x128xf32>
      %c0_15 = arith.constant 0 : index
      %c0_16 = arith.constant 0 : index
      %19 = vector.load %arg7[%c0_15, %c0_16] : memref<32x128xbf16, #tpu.memory_space<vmem>>, vector<32x128xbf16>
      %20 = arith.extf %19 : vector<32x128xbf16> to vector<32x128xf32>
      %21 = arith.addf %18, %20 : vector<32x128xf32>
      %cst_17 = arith.constant 0.000000e+00 : f32
      %22 = vector.broadcast %cst_17 : f32 to vector<32x128xf32>
      %23 = arith.maximumf %21, %22 : vector<32x128xf32>
      %24 = arith.truncf %23 : vector<32x128xf32> to vector<32x128xbf16>
      %c0_18 = arith.constant 0 : index
      %c0_19 = arith.constant 0 : index
      %25 = vector.load %arg8[%c0_18, %c0_19] : memref<32x128xbf16, #tpu.memory_space<vmem>>, vector<32x128xbf16>
      tpu.vector_store %arg8[%c0_18, %c0_19], %24 {strides = array<i32>} : memref<32x128xbf16, #tpu.memory_space<vmem>>, vector<32x128xbf16>,
    } else {
    }
    return
  }
  func.func @transform_0(%arg0: i32, %arg1: i32, %arg2: i32) -> (i32, i32) {
    %c0_i32 = arith.constant 0 : i32
    return %arg0, %arg2 : i32, i32
  }
  func.func @transform_1(%arg0: i32, %arg1: i32, %arg2: i32) -> (i32, i32) {
    %c0_i32 = arith.constant 0 : i32
    return %arg2, %arg1 : i32, i32
  }
  func.func @transform_2(%arg0: i32, %arg1: i32, %arg2: i32) -> (i32, i32) {
    %c0_i32 = arith.constant 0 : i32
    %c0_i32_0 = arith.constant 0 : i32
    return %c0_i32, %arg1 : i32, i32
  }
  func.func @transform_3(%arg0: i32, %arg1: i32, %arg2: i32) -> (i32, i32) {
    %c0_i32 = arith.constant 0 : i32
    %c0_i32_0 = arith.constant 0 : i32
    return %c0_i32, %arg1 : i32, i32
  }
  func.func @transform_4(%arg0: i32, %arg1: i32, %arg2: i32) -> (i32, i32) {
    %c0_i32 = arith.constant 0 : i32
    return %arg0, %arg1 : i32, i32
  }
  func.func @transform_5(%arg0: i32, %arg1: i32, %arg2: i32) -> (i32, i32) {
    %c0_i32 = arith.constant 0 : i32
    return %arg0, %arg1 : i32, i32
  }
}

module attributes {stable_mosaic.version = 11 : i64} {
  func.func @_mm_bn_act_kernel(%arg0: i32, %arg1: i32, %arg2: i32, %arg3: memref<32x128xbf16, #tpu.memory_space<vmem>>, %arg4: memref<128x128xbf16, #tpu.memory_space<vmem>>, %arg5: memref<1x128xf32, #tpu.memory_space<vmem>>, %arg6: memref<1x128xf32, #tpu.memory_space<vmem>>, %arg7: memref<32x128xbf16, #tpu.memory_space<vmem>>, %arg8: memref<32x128xf32, #tpu.memory_space<vmem>>) attributes {dimension_semantics = [#tpu.dimension_semantics<parallel>, #tpu.dimension_semantics<parallel>, #tpu.dimension_semantics<arbitrary>], iteration_bounds = array<i64: 1, 1, 1>, scalar_prefetch = 0 : i64, scratch_operands = 1 : i64, tpu.core_type = #tpu.core_type<tc>, window_params = [{transform_indices = @transform_0, window_bounds = array<i64: 32, 128>}, {transform_indices = @transform_1, window_bounds = array<i64: 128, 128>}, {transform_indices = @transform_2, window_bounds = array<i64: 1, 128>}, {transform_indices = @transform_3, window_bounds = array<i64: 1, 128>}, {transform_indices = @transform_4, window_bounds = array<i64: 32, 128>}]} {
    %c0_i32 = arith.constant 0 : i32
    %0 = arith.cmpi eq, %arg2, %c0_i32 : i32
    %1 = arith.extui %0 : i1 to i32
    %c0_i32_0 = arith.constant 0 : i32
    %2 = arith.cmpi ne, %1, %c0_i32_0 : i32
    scf.if %2 {
      %cst_10 = arith.constant 0.000000e+00 : f32
      %12 = vector.broadcast %cst_10 : f32 to vector<32x128xf32>
      %c0_11 = arith.constant 0 : index
      %c0_12 = arith.constant 0 : index
      %13 = vector.load %arg8[%c0_11, %c0_12] : memref<32x128xf32, #tpu.memory_space<vmem>>, vector<32x128xf32>
      tpu.vector_store %arg8[%c0_11, %c0_12], %12 {strides = array<i32>} : memref<32x128xf32, #tpu.memory_space<vmem>>, vector<32x128xf32>,
    } else {
    }
    %c0 = arith.constant 0 : index
    %c0_1 = arith.constant 0 : index
    %3 = vector.load %arg8[%c0, %c0_1] : memref<32x128xf32, #tpu.memory_space<vmem>>, vector<32x128xf32>
    %c0_2 = arith.constant 0 : index
    %c0_3 = arith.constant 0 : index
    %4 = vector.load %arg3[%c0_2, %c0_3] : memref<32x128xbf16, #tpu.memory_space<vmem>>, vector<32x128xbf16>
    %c0_4 = arith.constant 0 : index
    %c0_5 = arith.constant 0 : index
    %5 = vector.load %arg4[%c0_4, %c0_5] : memref<128x128xbf16, #tpu.memory_space<vmem>>, vector<128x128xbf16>
    %cst = arith.constant dense<0.000000e+00> : vector<32x128xf32>
    %6 = tpu.matmul %4, %5, %cst {dimension_numbers = #tpu.dot_dimension_numbers<[1], [0], [0], [1], [0, 0, 1, 1], [], []>} : vector<32x128xbf16>, vector<128x128xbf16>, vector<32x128xf32> -> vector<32x128xf32>
    %7 = arith.addf %3, %6 : vector<32x128xf32>
    %c0_6 = arith.constant 0 : index
    %c0_7 = arith.constant 0 : index
    %8 = vector.load %arg8[%c0_6, %c0_7] : memref<32x128xf32, #tpu.memory_space<vmem>>, vector<32x128xf32>
    tpu.vector_store %arg8[%c0_6, %c0_7], %7 {strides = array<i32>} : memref<32x128xf32, #tpu.memory_space<vmem>>, vector<32x128xf32>,
    %c0_i32_8 = arith.constant 0 : i32
    %9 = arith.cmpi eq, %arg2, %c0_i32_8 : i32
    %10 = arith.extui %9 : i1 to i32
    %c0_i32_9 = arith.constant 0 : i32
    %11 = arith.cmpi ne, %10, %c0_i32_9 : i32
    scf.if %11 {
      %c0_10 = arith.constant 0 : index
      %c0_11 = arith.constant 0 : index
      %12 = vector.load %arg8[%c0_10, %c0_11] : memref<32x128xf32, #tpu.memory_space<vmem>>, vector<32x128xf32>
      %c0_12 = arith.constant 0 : index
      %c0_13 = arith.constant 0 : index
      %13 = vector.load %arg5[%c0_12, %c0_13] : memref<1x128xf32, #tpu.memory_space<vmem>>, vector<1x128xf32>
      %14 = vector.broadcast %13 : vector<1x128xf32> to vector<32x128xf32>
      %15 = arith.mulf %12, %14 : vector<32x128xf32>
      %c0_14 = arith.constant 0 : index
      %c0_15 = arith.constant 0 : index
      %16 = vector.load %arg6[%c0_14, %c0_15] : memref<1x128xf32, #tpu.memory_space<vmem>>, vector<1x128xf32>
      %17 = vector.broadcast %16 : vector<1x128xf32> to vector<32x128xf32>
      %18 = arith.addf %15, %17 : vector<32x128xf32>
      %19 = arith.truncf %18 : vector<32x128xf32> to vector<32x128xbf16>
      %c0_16 = arith.constant 0 : index
      %c0_17 = arith.constant 0 : index
      %20 = vector.load %arg7[%c0_16, %c0_17] : memref<32x128xbf16, #tpu.memory_space<vmem>>, vector<32x128xbf16>
      tpu.vector_store %arg7[%c0_16, %c0_17], %19 {strides = array<i32>} : memref<32x128xbf16, #tpu.memory_space<vmem>>, vector<32x128xbf16>,
    } else {
    }
    return
  }
  func.func @transform_0(%arg0: i32, %arg1: i32, %arg2: i32) -> (i32, i32) {
    %c0_i32 = arith.constant 0 : i32
    return %arg0, %arg2 : i32, i32
  }
  func.func @transform_1(%arg0: i32, %arg1: i32, %arg2: i32) -> (i32, i32) {
    %c0_i32 = arith.constant 0 : i32
    return %arg2, %arg1 : i32, i32
  }
  func.func @transform_2(%arg0: i32, %arg1: i32, %arg2: i32) -> (i32, i32) {
    %c0_i32 = arith.constant 0 : i32
    %c0_i32_0 = arith.constant 0 : i32
    return %c0_i32, %arg1 : i32, i32
  }
  func.func @transform_3(%arg0: i32, %arg1: i32, %arg2: i32) -> (i32, i32) {
    %c0_i32 = arith.constant 0 : i32
    %c0_i32_0 = arith.constant 0 : i32
    return %c0_i32, %arg1 : i32, i32
  }
  func.func @transform_4(%arg0: i32, %arg1: i32, %arg2: i32) -> (i32, i32) {
    %c0_i32 = arith.constant 0 : i32
    return %arg0, %arg1 : i32, i32
  }
}

module attributes {stable_mosaic.version = 11 : i64} {
  func.func @_mm_bn_act_kernel(%arg0: i32, %arg1: i32, %arg2: i32, %arg3: memref<32x384xbf16, #tpu.memory_space<vmem>>, %arg4: memref<384x128xbf16, #tpu.memory_space<vmem>>, %arg5: memref<1x128xf32, #tpu.memory_space<vmem>>, %arg6: memref<1x128xf32, #tpu.memory_space<vmem>>, %arg7: memref<32x128xbf16, #tpu.memory_space<vmem>>, %arg8: memref<32x128xf32, #tpu.memory_space<vmem>>) attributes {dimension_semantics = [#tpu.dimension_semantics<parallel>, #tpu.dimension_semantics<parallel>, #tpu.dimension_semantics<arbitrary>], iteration_bounds = array<i64: 1, 1, 3>, scalar_prefetch = 0 : i64, scratch_operands = 1 : i64, tpu.core_type = #tpu.core_type<tc>, window_params = [{transform_indices = @transform_0, window_bounds = array<i64: 32, 384>}, {transform_indices = @transform_1, window_bounds = array<i64: 384, 128>}, {transform_indices = @transform_2, window_bounds = array<i64: 1, 128>}, {transform_indices = @transform_3, window_bounds = array<i64: 1, 128>}, {transform_indices = @transform_4, window_bounds = array<i64: 32, 128>}]} {
    %c0_i32 = arith.constant 0 : i32
    %0 = arith.cmpi eq, %arg2, %c0_i32 : i32
    %1 = arith.extui %0 : i1 to i32
    %c0_i32_0 = arith.constant 0 : i32
    %2 = arith.cmpi ne, %1, %c0_i32_0 : i32
    scf.if %2 {
      %cst_9 = arith.constant 0.000000e+00 : f32
      %12 = vector.broadcast %cst_9 : f32 to vector<32x128xf32>
      %c0_10 = arith.constant 0 : index
      %c0_11 = arith.constant 0 : index
      %13 = vector.load %arg8[%c0_10, %c0_11] : memref<32x128xf32, #tpu.memory_space<vmem>>, vector<32x128xf32>
      tpu.vector_store %arg8[%c0_10, %c0_11], %12 {strides = array<i32>} : memref<32x128xf32, #tpu.memory_space<vmem>>, vector<32x128xf32>,
    } else {
    }
    %c0 = arith.constant 0 : index
    %c0_1 = arith.constant 0 : index
    %3 = vector.load %arg8[%c0, %c0_1] : memref<32x128xf32, #tpu.memory_space<vmem>>, vector<32x128xf32>
    %c0_2 = arith.constant 0 : index
    %c0_3 = arith.constant 0 : index
    %4 = vector.load %arg3[%c0_2, %c0_3] : memref<32x384xbf16, #tpu.memory_space<vmem>>, vector<32x384xbf16>
    %c0_4 = arith.constant 0 : index
    %c0_5 = arith.constant 0 : index
    %5 = vector.load %arg4[%c0_4, %c0_5] : memref<384x128xbf16, #tpu.memory_space<vmem>>, vector<384x128xbf16>
    %cst = arith.constant dense<0.000000e+00> : vector<32x128xf32>
    %6 = tpu.matmul %4, %5, %cst {dimension_numbers = #tpu.dot_dimension_numbers<[1], [0], [0], [1], [0, 0, 1, 1], [], []>} : vector<32x384xbf16>, vector<384x128xbf16>, vector<32x128xf32> -> vector<32x128xf32>
    %7 = arith.addf %3, %6 : vector<32x128xf32>
    %c0_6 = arith.constant 0 : index
    %c0_7 = arith.constant 0 : index
    %8 = vector.load %arg8[%c0_6, %c0_7] : memref<32x128xf32, #tpu.memory_space<vmem>>, vector<32x128xf32>
    tpu.vector_store %arg8[%c0_6, %c0_7], %7 {strides = array<i32>} : memref<32x128xf32, #tpu.memory_space<vmem>>, vector<32x128xf32>,
    %c2_i32 = arith.constant 2 : i32
    %9 = arith.cmpi eq, %arg2, %c2_i32 : i32
    %10 = arith.extui %9 : i1 to i32
    %c0_i32_8 = arith.constant 0 : i32
    %11 = arith.cmpi ne, %10, %c0_i32_8 : i32
    scf.if %11 {
      %c0_9 = arith.constant 0 : index
      %c0_10 = arith.constant 0 : index
      %12 = vector.load %arg8[%c0_9, %c0_10] : memref<32x128xf32, #tpu.memory_space<vmem>>, vector<32x128xf32>
      %c0_11 = arith.constant 0 : index
      %c0_12 = arith.constant 0 : index
      %13 = vector.load %arg5[%c0_11, %c0_12] : memref<1x128xf32, #tpu.memory_space<vmem>>, vector<1x128xf32>
      %14 = vector.broadcast %13 : vector<1x128xf32> to vector<32x128xf32>
      %15 = arith.mulf %12, %14 : vector<32x128xf32>
      %c0_13 = arith.constant 0 : index
      %c0_14 = arith.constant 0 : index
      %16 = vector.load %arg6[%c0_13, %c0_14] : memref<1x128xf32, #tpu.memory_space<vmem>>, vector<1x128xf32>
      %17 = vector.broadcast %16 : vector<1x128xf32> to vector<32x128xf32>
      %18 = arith.addf %15, %17 : vector<32x128xf32>
      %cst_15 = arith.constant 0.000000e+00 : f32
      %19 = vector.broadcast %cst_15 : f32 to vector<32x128xf32>
      %20 = arith.maximumf %18, %19 : vector<32x128xf32>
      %21 = arith.truncf %20 : vector<32x128xf32> to vector<32x128xbf16>
      %c0_16 = arith.constant 0 : index
      %c0_17 = arith.constant 0 : index
      %22 = vector.load %arg7[%c0_16, %c0_17] : memref<32x128xbf16, #tpu.memory_space<vmem>>, vector<32x128xbf16>
      tpu.vector_store %arg7[%c0_16, %c0_17], %21 {strides = array<i32>} : memref<32x128xbf16, #tpu.memory_space<vmem>>, vector<32x128xbf16>,
    } else {
    }
    return
  }
  func.func @transform_0(%arg0: i32, %arg1: i32, %arg2: i32) -> (i32, i32) {
    %c0_i32 = arith.constant 0 : i32
    return %arg0, %arg2 : i32, i32
  }
  func.func @transform_1(%arg0: i32, %arg1: i32, %arg2: i32) -> (i32, i32) {
    %c0_i32 = arith.constant 0 : i32
    return %arg2, %arg1 : i32, i32
  }
  func.func @transform_2(%arg0: i32, %arg1: i32, %arg2: i32) -> (i32, i32) {
    %c0_i32 = arith.constant 0 : i32
    %c0_i32_0 = arith.constant 0 : i32
    return %c0_i32, %arg1 : i32, i32
  }
  func.func @transform_3(%arg0: i32, %arg1: i32, %arg2: i32) -> (i32, i32) {
    %c0_i32 = arith.constant 0 : i32
    %c0_i32_0 = arith.constant 0 : i32
    return %c0_i32, %arg1 : i32, i32
  }
  func.func @transform_4(%arg0: i32, %arg1: i32, %arg2: i32) -> (i32, i32) {
    %c0_i32 = arith.constant 0 : i32
    return %arg0, %arg1 : i32, i32
  }
}

module attributes {stable_mosaic.version = 11 : i64} {
  func.func @_mm_bn_act_kernel(%arg0: i32, %arg1: i32, %arg2: i32, %arg3: memref<8x384xbf16, #tpu.memory_space<vmem>>, %arg4: memref<384x256xbf16, #tpu.memory_space<vmem>>, %arg5: memref<1x256xf32, #tpu.memory_space<vmem>>, %arg6: memref<1x256xf32, #tpu.memory_space<vmem>>, %arg7: memref<8x256xbf16, #tpu.memory_space<vmem>>, %arg8: memref<8x256xf32, #tpu.memory_space<vmem>>) attributes {dimension_semantics = [#tpu.dimension_semantics<parallel>, #tpu.dimension_semantics<parallel>, #tpu.dimension_semantics<arbitrary>], iteration_bounds = array<i64: 1, 1, 3>, scalar_prefetch = 0 : i64, scratch_operands = 1 : i64, tpu.core_type = #tpu.core_type<tc>, window_params = [{transform_indices = @transform_0, window_bounds = array<i64: 8, 384>}, {transform_indices = @transform_1, window_bounds = array<i64: 384, 256>}, {transform_indices = @transform_2, window_bounds = array<i64: 1, 256>}, {transform_indices = @transform_3, window_bounds = array<i64: 1, 256>}, {transform_indices = @transform_4, window_bounds = array<i64: 8, 256>}]} {
    %c0_i32 = arith.constant 0 : i32
    %0 = arith.cmpi eq, %arg2, %c0_i32 : i32
    %1 = arith.extui %0 : i1 to i32
    %c0_i32_0 = arith.constant 0 : i32
    %2 = arith.cmpi ne, %1, %c0_i32_0 : i32
    scf.if %2 {
      %cst_9 = arith.constant 0.000000e+00 : f32
      %12 = vector.broadcast %cst_9 : f32 to vector<8x256xf32>
      %c0_10 = arith.constant 0 : index
      %c0_11 = arith.constant 0 : index
      %13 = vector.load %arg8[%c0_10, %c0_11] : memref<8x256xf32, #tpu.memory_space<vmem>>, vector<8x256xf32>
      tpu.vector_store %arg8[%c0_10, %c0_11], %12 {strides = array<i32>} : memref<8x256xf32, #tpu.memory_space<vmem>>, vector<8x256xf32>,
    } else {
    }
    %c0 = arith.constant 0 : index
    %c0_1 = arith.constant 0 : index
    %3 = vector.load %arg8[%c0, %c0_1] : memref<8x256xf32, #tpu.memory_space<vmem>>, vector<8x256xf32>
    %c0_2 = arith.constant 0 : index
    %c0_3 = arith.constant 0 : index
    %4 = vector.load %arg3[%c0_2, %c0_3] : memref<8x384xbf16, #tpu.memory_space<vmem>>, vector<8x384xbf16>
    %c0_4 = arith.constant 0 : index
    %c0_5 = arith.constant 0 : index
    %5 = vector.load %arg4[%c0_4, %c0_5] : memref<384x256xbf16, #tpu.memory_space<vmem>>, vector<384x256xbf16>
    %cst = arith.constant dense<0.000000e+00> : vector<8x256xf32>
    %6 = tpu.matmul %4, %5, %cst {dimension_numbers = #tpu.dot_dimension_numbers<[1], [0], [0], [1], [0, 0, 1, 1], [], []>} : vector<8x384xbf16>, vector<384x256xbf16>, vector<8x256xf32> -> vector<8x256xf32>
    %7 = arith.addf %3, %6 : vector<8x256xf32>
    %c0_6 = arith.constant 0 : index
    %c0_7 = arith.constant 0 : index
    %8 = vector.load %arg8[%c0_6, %c0_7] : memref<8x256xf32, #tpu.memory_space<vmem>>, vector<8x256xf32>
    tpu.vector_store %arg8[%c0_6, %c0_7], %7 {strides = array<i32>} : memref<8x256xf32, #tpu.memory_space<vmem>>, vector<8x256xf32>,
    %c2_i32 = arith.constant 2 : i32
    %9 = arith.cmpi eq, %arg2, %c2_i32 : i32
    %10 = arith.extui %9 : i1 to i32
    %c0_i32_8 = arith.constant 0 : i32
    %11 = arith.cmpi ne, %10, %c0_i32_8 : i32
    scf.if %11 {
      %c0_9 = arith.constant 0 : index
      %c0_10 = arith.constant 0 : index
      %12 = vector.load %arg8[%c0_9, %c0_10] : memref<8x256xf32, #tpu.memory_space<vmem>>, vector<8x256xf32>
      %c0_11 = arith.constant 0 : index
      %c0_12 = arith.constant 0 : index
      %13 = vector.load %arg5[%c0_11, %c0_12] : memref<1x256xf32, #tpu.memory_space<vmem>>, vector<1x256xf32>
      %14 = vector.broadcast %13 : vector<1x256xf32> to vector<8x256xf32>
      %15 = arith.mulf %12, %14 : vector<8x256xf32>
      %c0_13 = arith.constant 0 : index
      %c0_14 = arith.constant 0 : index
      %16 = vector.load %arg6[%c0_13, %c0_14] : memref<1x256xf32, #tpu.memory_space<vmem>>, vector<1x256xf32>
      %17 = vector.broadcast %16 : vector<1x256xf32> to vector<8x256xf32>
      %18 = arith.addf %15, %17 : vector<8x256xf32>
      %cst_15 = arith.constant 0.000000e+00 : f32
      %19 = vector.broadcast %cst_15 : f32 to vector<8x256xf32>
      %20 = arith.maximumf %18, %19 : vector<8x256xf32>
      %21 = arith.truncf %20 : vector<8x256xf32> to vector<8x256xbf16>
      %c0_16 = arith.constant 0 : index
      %c0_17 = arith.constant 0 : index
      %22 = vector.load %arg7[%c0_16, %c0_17] : memref<8x256xbf16, #tpu.memory_space<vmem>>, vector<8x256xbf16>
      tpu.vector_store %arg7[%c0_16, %c0_17], %21 {strides = array<i32>} : memref<8x256xbf16, #tpu.memory_space<vmem>>, vector<8x256xbf16>,
    } else {
    }
    return
  }
  func.func @transform_0(%arg0: i32, %arg1: i32, %arg2: i32) -> (i32, i32) {
    %c0_i32 = arith.constant 0 : i32
    return %arg0, %arg2 : i32, i32
  }
  func.func @transform_1(%arg0: i32, %arg1: i32, %arg2: i32) -> (i32, i32) {
    %c0_i32 = arith.constant 0 : i32
    return %arg2, %arg1 : i32, i32
  }
  func.func @transform_2(%arg0: i32, %arg1: i32, %arg2: i32) -> (i32, i32) {
    %c0_i32 = arith.constant 0 : i32
    %c0_i32_0 = arith.constant 0 : i32
    return %c0_i32, %arg1 : i32, i32
  }
  func.func @transform_3(%arg0: i32, %arg1: i32, %arg2: i32) -> (i32, i32) {
    %c0_i32 = arith.constant 0 : i32
    %c0_i32_0 = arith.constant 0 : i32
    return %c0_i32, %arg1 : i32, i32
  }
  func.func @transform_4(%arg0: i32, %arg1: i32, %arg2: i32) -> (i32, i32) {
    %c0_i32 = arith.constant 0 : i32
    return %arg0, %arg1 : i32, i32
  }
}

module attributes {stable_mosaic.version = 11 : i64} {
  func.func @_mm_bn_act_kernel(%arg0: i32, %arg1: i32, %arg2: i32, %arg3: memref<8x768xbf16, #tpu.memory_space<vmem>>, %arg4: memref<768x256xbf16, #tpu.memory_space<vmem>>, %arg5: memref<1x256xf32, #tpu.memory_space<vmem>>, %arg6: memref<1x256xf32, #tpu.memory_space<vmem>>, %arg7: memref<8x256xbf16, #tpu.memory_space<vmem>>, %arg8: memref<8x256xf32, #tpu.memory_space<vmem>>) attributes {dimension_semantics = [#tpu.dimension_semantics<parallel>, #tpu.dimension_semantics<parallel>, #tpu.dimension_semantics<arbitrary>], iteration_bounds = array<i64: 1, 1, 3>, scalar_prefetch = 0 : i64, scratch_operands = 1 : i64, tpu.core_type = #tpu.core_type<tc>, window_params = [{transform_indices = @transform_0, window_bounds = array<i64: 8, 768>}, {transform_indices = @transform_1, window_bounds = array<i64: 768, 256>}, {transform_indices = @transform_2, window_bounds = array<i64: 1, 256>}, {transform_indices = @transform_3, window_bounds = array<i64: 1, 256>}, {transform_indices = @transform_4, window_bounds = array<i64: 8, 256>}]} {
    %c0_i32 = arith.constant 0 : i32
    %0 = arith.cmpi eq, %arg2, %c0_i32 : i32
    %1 = arith.extui %0 : i1 to i32
    %c0_i32_0 = arith.constant 0 : i32
    %2 = arith.cmpi ne, %1, %c0_i32_0 : i32
    scf.if %2 {
      %cst_9 = arith.constant 0.000000e+00 : f32
      %12 = vector.broadcast %cst_9 : f32 to vector<8x256xf32>
      %c0_10 = arith.constant 0 : index
      %c0_11 = arith.constant 0 : index
      %13 = vector.load %arg8[%c0_10, %c0_11] : memref<8x256xf32, #tpu.memory_space<vmem>>, vector<8x256xf32>
      tpu.vector_store %arg8[%c0_10, %c0_11], %12 {strides = array<i32>} : memref<8x256xf32, #tpu.memory_space<vmem>>, vector<8x256xf32>,
    } else {
    }
    %c0 = arith.constant 0 : index
    %c0_1 = arith.constant 0 : index
    %3 = vector.load %arg8[%c0, %c0_1] : memref<8x256xf32, #tpu.memory_space<vmem>>, vector<8x256xf32>
    %c0_2 = arith.constant 0 : index
    %c0_3 = arith.constant 0 : index
    %4 = vector.load %arg3[%c0_2, %c0_3] : memref<8x768xbf16, #tpu.memory_space<vmem>>, vector<8x768xbf16>
    %c0_4 = arith.constant 0 : index
    %c0_5 = arith.constant 0 : index
    %5 = vector.load %arg4[%c0_4, %c0_5] : memref<768x256xbf16, #tpu.memory_space<vmem>>, vector<768x256xbf16>
    %cst = arith.constant dense<0.000000e+00> : vector<8x256xf32>
    %6 = tpu.matmul %4, %5, %cst {dimension_numbers = #tpu.dot_dimension_numbers<[1], [0], [0], [1], [0, 0, 1, 1], [], []>} : vector<8x768xbf16>, vector<768x256xbf16>, vector<8x256xf32> -> vector<8x256xf32>
    %7 = arith.addf %3, %6 : vector<8x256xf32>
    %c0_6 = arith.constant 0 : index
    %c0_7 = arith.constant 0 : index
    %8 = vector.load %arg8[%c0_6, %c0_7] : memref<8x256xf32, #tpu.memory_space<vmem>>, vector<8x256xf32>
    tpu.vector_store %arg8[%c0_6, %c0_7], %7 {strides = array<i32>} : memref<8x256xf32, #tpu.memory_space<vmem>>, vector<8x256xf32>,
    %c2_i32 = arith.constant 2 : i32
    %9 = arith.cmpi eq, %arg2, %c2_i32 : i32
    %10 = arith.extui %9 : i1 to i32
    %c0_i32_8 = arith.constant 0 : i32
    %11 = arith.cmpi ne, %10, %c0_i32_8 : i32
    scf.if %11 {
      %c0_9 = arith.constant 0 : index
      %c0_10 = arith.constant 0 : index
      %12 = vector.load %arg8[%c0_9, %c0_10] : memref<8x256xf32, #tpu.memory_space<vmem>>, vector<8x256xf32>
      %c0_11 = arith.constant 0 : index
      %c0_12 = arith.constant 0 : index
      %13 = vector.load %arg5[%c0_11, %c0_12] : memref<1x256xf32, #tpu.memory_space<vmem>>, vector<1x256xf32>
      %14 = vector.broadcast %13 : vector<1x256xf32> to vector<8x256xf32>
      %15 = arith.mulf %12, %14 : vector<8x256xf32>
      %c0_13 = arith.constant 0 : index
      %c0_14 = arith.constant 0 : index
      %16 = vector.load %arg6[%c0_13, %c0_14] : memref<1x256xf32, #tpu.memory_space<vmem>>, vector<1x256xf32>
      %17 = vector.broadcast %16 : vector<1x256xf32> to vector<8x256xf32>
      %18 = arith.addf %15, %17 : vector<8x256xf32>
      %cst_15 = arith.constant 0.000000e+00 : f32
      %19 = vector.broadcast %cst_15 : f32 to vector<8x256xf32>
      %20 = arith.maximumf %18, %19 : vector<8x256xf32>
      %21 = arith.truncf %20 : vector<8x256xf32> to vector<8x256xbf16>
      %c0_16 = arith.constant 0 : index
      %c0_17 = arith.constant 0 : index
      %22 = vector.load %arg7[%c0_16, %c0_17] : memref<8x256xbf16, #tpu.memory_space<vmem>>, vector<8x256xbf16>
      tpu.vector_store %arg7[%c0_16, %c0_17], %21 {strides = array<i32>} : memref<8x256xbf16, #tpu.memory_space<vmem>>, vector<8x256xbf16>,
    } else {
    }
    return
  }
  func.func @transform_0(%arg0: i32, %arg1: i32, %arg2: i32) -> (i32, i32) {
    %c0_i32 = arith.constant 0 : i32
    return %arg0, %arg2 : i32, i32
  }
  func.func @transform_1(%arg0: i32, %arg1: i32, %arg2: i32) -> (i32, i32) {
    %c0_i32 = arith.constant 0 : i32
    return %arg2, %arg1 : i32, i32
  }
  func.func @transform_2(%arg0: i32, %arg1: i32, %arg2: i32) -> (i32, i32) {
    %c0_i32 = arith.constant 0 : i32
    %c0_i32_0 = arith.constant 0 : i32
    return %c0_i32, %arg1 : i32, i32
  }
  func.func @transform_3(%arg0: i32, %arg1: i32, %arg2: i32) -> (i32, i32) {
    %c0_i32 = arith.constant 0 : i32
    %c0_i32_0 = arith.constant 0 : i32
    return %c0_i32, %arg1 : i32, i32
  }
  func.func @transform_4(%arg0: i32, %arg1: i32, %arg2: i32) -> (i32, i32) {
    %c0_i32 = arith.constant 0 : i32
    return %arg0, %arg1 : i32, i32
  }
}

module attributes {stable_mosaic.version = 11 : i64} {
  func.func @_mm_bn_res_act_kernel(%arg0: i32, %arg1: i32, %arg2: i32, %arg3: memref<8x768xbf16, #tpu.memory_space<vmem>>, %arg4: memref<768x256xbf16, #tpu.memory_space<vmem>>, %arg5: memref<1x256xf32, #tpu.memory_space<vmem>>, %arg6: memref<1x256xf32, #tpu.memory_space<vmem>>, %arg7: memref<8x256xbf16, #tpu.memory_space<vmem>>, %arg8: memref<8x256xbf16, #tpu.memory_space<vmem>>, %arg9: memref<8x256xf32, #tpu.memory_space<vmem>>) attributes {dimension_semantics = [#tpu.dimension_semantics<parallel>, #tpu.dimension_semantics<parallel>, #tpu.dimension_semantics<arbitrary>], iteration_bounds = array<i64: 1, 1, 3>, scalar_prefetch = 0 : i64, scratch_operands = 1 : i64, tpu.core_type = #tpu.core_type<tc>, window_params = [{transform_indices = @transform_0, window_bounds = array<i64: 8, 768>}, {transform_indices = @transform_1, window_bounds = array<i64: 768, 256>}, {transform_indices = @transform_2, window_bounds = array<i64: 1, 256>}, {transform_indices = @transform_3, window_bounds = array<i64: 1, 256>}, {transform_indices = @transform_4, window_bounds = array<i64: 8, 256>}, {transform_indices = @transform_5, window_bounds = array<i64: 8, 256>}]} {
    %c0_i32 = arith.constant 0 : i32
    %0 = arith.cmpi eq, %arg2, %c0_i32 : i32
    %1 = arith.extui %0 : i1 to i32
    %c0_i32_0 = arith.constant 0 : i32
    %2 = arith.cmpi ne, %1, %c0_i32_0 : i32
    scf.if %2 {
      %cst_9 = arith.constant 0.000000e+00 : f32
      %12 = vector.broadcast %cst_9 : f32 to vector<8x256xf32>
      %c0_10 = arith.constant 0 : index
      %c0_11 = arith.constant 0 : index
      %13 = vector.load %arg9[%c0_10, %c0_11] : memref<8x256xf32, #tpu.memory_space<vmem>>, vector<8x256xf32>
      tpu.vector_store %arg9[%c0_10, %c0_11], %12 {strides = array<i32>} : memref<8x256xf32, #tpu.memory_space<vmem>>, vector<8x256xf32>,
    } else {
    }
    %c0 = arith.constant 0 : index
    %c0_1 = arith.constant 0 : index
    %3 = vector.load %arg9[%c0, %c0_1] : memref<8x256xf32, #tpu.memory_space<vmem>>, vector<8x256xf32>
    %c0_2 = arith.constant 0 : index
    %c0_3 = arith.constant 0 : index
    %4 = vector.load %arg3[%c0_2, %c0_3] : memref<8x768xbf16, #tpu.memory_space<vmem>>, vector<8x768xbf16>
    %c0_4 = arith.constant 0 : index
    %c0_5 = arith.constant 0 : index
    %5 = vector.load %arg4[%c0_4, %c0_5] : memref<768x256xbf16, #tpu.memory_space<vmem>>, vector<768x256xbf16>
    %cst = arith.constant dense<0.000000e+00> : vector<8x256xf32>
    %6 = tpu.matmul %4, %5, %cst {dimension_numbers = #tpu.dot_dimension_numbers<[1], [0], [0], [1], [0, 0, 1, 1], [], []>} : vector<8x768xbf16>, vector<768x256xbf16>, vector<8x256xf32> -> vector<8x256xf32>
    %7 = arith.addf %3, %6 : vector<8x256xf32>
    %c0_6 = arith.constant 0 : index
    %c0_7 = arith.constant 0 : index
    %8 = vector.load %arg9[%c0_6, %c0_7] : memref<8x256xf32, #tpu.memory_space<vmem>>, vector<8x256xf32>
    tpu.vector_store %arg9[%c0_6, %c0_7], %7 {strides = array<i32>} : memref<8x256xf32, #tpu.memory_space<vmem>>, vector<8x256xf32>,
    %c2_i32 = arith.constant 2 : i32
    %9 = arith.cmpi eq, %arg2, %c2_i32 : i32
    %10 = arith.extui %9 : i1 to i32
    %c0_i32_8 = arith.constant 0 : i32
    %11 = arith.cmpi ne, %10, %c0_i32_8 : i32
    scf.if %11 {
      %c0_9 = arith.constant 0 : index
      %c0_10 = arith.constant 0 : index
      %12 = vector.load %arg9[%c0_9, %c0_10] : memref<8x256xf32, #tpu.memory_space<vmem>>, vector<8x256xf32>
      %c0_11 = arith.constant 0 : index
      %c0_12 = arith.constant 0 : index
      %13 = vector.load %arg5[%c0_11, %c0_12] : memref<1x256xf32, #tpu.memory_space<vmem>>, vector<1x256xf32>
      %14 = vector.broadcast %13 : vector<1x256xf32> to vector<8x256xf32>
      %15 = arith.mulf %12, %14 : vector<8x256xf32>
      %c0_13 = arith.constant 0 : index
      %c0_14 = arith.constant 0 : index
      %16 = vector.load %arg6[%c0_13, %c0_14] : memref<1x256xf32, #tpu.memory_space<vmem>>, vector<1x256xf32>
      %17 = vector.broadcast %16 : vector<1x256xf32> to vector<8x256xf32>
      %18 = arith.addf %15, %17 : vector<8x256xf32>
      %c0_15 = arith.constant 0 : index
      %c0_16 = arith.constant 0 : index
      %19 = vector.load %arg7[%c0_15, %c0_16] : memref<8x256xbf16, #tpu.memory_space<vmem>>, vector<8x256xbf16>
      %20 = arith.extf %19 : vector<8x256xbf16> to vector<8x256xf32>
      %21 = arith.addf %18, %20 : vector<8x256xf32>
      %cst_17 = arith.constant 0.000000e+00 : f32
      %22 = vector.broadcast %cst_17 : f32 to vector<8x256xf32>
      %23 = arith.maximumf %21, %22 : vector<8x256xf32>
      %24 = arith.truncf %23 : vector<8x256xf32> to vector<8x256xbf16>
      %c0_18 = arith.constant 0 : index
      %c0_19 = arith.constant 0 : index
      %25 = vector.load %arg8[%c0_18, %c0_19] : memref<8x256xbf16, #tpu.memory_space<vmem>>, vector<8x256xbf16>
      tpu.vector_store %arg8[%c0_18, %c0_19], %24 {strides = array<i32>} : memref<8x256xbf16, #tpu.memory_space<vmem>>, vector<8x256xbf16>,
    } else {
    }
    return
  }
  func.func @transform_0(%arg0: i32, %arg1: i32, %arg2: i32) -> (i32, i32) {
    %c0_i32 = arith.constant 0 : i32
    return %arg0, %arg2 : i32, i32
  }
  func.func @transform_1(%arg0: i32, %arg1: i32, %arg2: i32) -> (i32, i32) {
    %c0_i32 = arith.constant 0 : i32
    return %arg2, %arg1 : i32, i32
  }
  func.func @transform_2(%arg0: i32, %arg1: i32, %arg2: i32) -> (i32, i32) {
    %c0_i32 = arith.constant 0 : i32
    %c0_i32_0 = arith.constant 0 : i32
    return %c0_i32, %arg1 : i32, i32
  }
  func.func @transform_3(%arg0: i32, %arg1: i32, %arg2: i32) -> (i32, i32) {
    %c0_i32 = arith.constant 0 : i32
    %c0_i32_0 = arith.constant 0 : i32
    return %c0_i32, %arg1 : i32, i32
  }
  func.func @transform_4(%arg0: i32, %arg1: i32, %arg2: i32) -> (i32, i32) {
    %c0_i32 = arith.constant 0 : i32
    return %arg0, %arg1 : i32, i32
  }
  func.func @transform_5(%arg0: i32, %arg1: i32, %arg2: i32) -> (i32, i32) {
    %c0_i32 = arith.constant 0 : i32
    return %arg0, %arg1 : i32, i32
  }
}

module attributes {stable_mosaic.version = 11 : i64} {
  func.func @_mm_bn_act_kernel(%arg0: i32, %arg1: i32, %arg2: i32, %arg3: memref<8x128xbf16, #tpu.memory_space<vmem>>, %arg4: memref<128x256xbf16, #tpu.memory_space<vmem>>, %arg5: memref<1x256xf32, #tpu.memory_space<vmem>>, %arg6: memref<1x256xf32, #tpu.memory_space<vmem>>, %arg7: memref<8x256xbf16, #tpu.memory_space<vmem>>, %arg8: memref<8x256xf32, #tpu.memory_space<vmem>>) attributes {dimension_semantics = [#tpu.dimension_semantics<parallel>, #tpu.dimension_semantics<parallel>, #tpu.dimension_semantics<arbitrary>], iteration_bounds = array<i64: 1, 1, 1>, scalar_prefetch = 0 : i64, scratch_operands = 1 : i64, tpu.core_type = #tpu.core_type<tc>, window_params = [{transform_indices = @transform_0, window_bounds = array<i64: 8, 128>}, {transform_indices = @transform_1, window_bounds = array<i64: 128, 256>}, {transform_indices = @transform_2, window_bounds = array<i64: 1, 256>}, {transform_indices = @transform_3, window_bounds = array<i64: 1, 256>}, {transform_indices = @transform_4, window_bounds = array<i64: 8, 256>}]} {
    %c0_i32 = arith.constant 0 : i32
    %0 = arith.cmpi eq, %arg2, %c0_i32 : i32
    %1 = arith.extui %0 : i1 to i32
    %c0_i32_0 = arith.constant 0 : i32
    %2 = arith.cmpi ne, %1, %c0_i32_0 : i32
    scf.if %2 {
      %cst_10 = arith.constant 0.000000e+00 : f32
      %12 = vector.broadcast %cst_10 : f32 to vector<8x256xf32>
      %c0_11 = arith.constant 0 : index
      %c0_12 = arith.constant 0 : index
      %13 = vector.load %arg8[%c0_11, %c0_12] : memref<8x256xf32, #tpu.memory_space<vmem>>, vector<8x256xf32>
      tpu.vector_store %arg8[%c0_11, %c0_12], %12 {strides = array<i32>} : memref<8x256xf32, #tpu.memory_space<vmem>>, vector<8x256xf32>,
    } else {
    }
    %c0 = arith.constant 0 : index
    %c0_1 = arith.constant 0 : index
    %3 = vector.load %arg8[%c0, %c0_1] : memref<8x256xf32, #tpu.memory_space<vmem>>, vector<8x256xf32>
    %c0_2 = arith.constant 0 : index
    %c0_3 = arith.constant 0 : index
    %4 = vector.load %arg3[%c0_2, %c0_3] : memref<8x128xbf16, #tpu.memory_space<vmem>>, vector<8x128xbf16>
    %c0_4 = arith.constant 0 : index
    %c0_5 = arith.constant 0 : index
    %5 = vector.load %arg4[%c0_4, %c0_5] : memref<128x256xbf16, #tpu.memory_space<vmem>>, vector<128x256xbf16>
    %cst = arith.constant dense<0.000000e+00> : vector<8x256xf32>
    %6 = tpu.matmul %4, %5, %cst {dimension_numbers = #tpu.dot_dimension_numbers<[1], [0], [0], [1], [0, 0, 1, 1], [], []>} : vector<8x128xbf16>, vector<128x256xbf16>, vector<8x256xf32> -> vector<8x256xf32>
    %7 = arith.addf %3, %6 : vector<8x256xf32>
    %c0_6 = arith.constant 0 : index
    %c0_7 = arith.constant 0 : index
    %8 = vector.load %arg8[%c0_6, %c0_7] : memref<8x256xf32, #tpu.memory_space<vmem>>, vector<8x256xf32>
    tpu.vector_store %arg8[%c0_6, %c0_7], %7 {strides = array<i32>} : memref<8x256xf32, #tpu.memory_space<vmem>>, vector<8x256xf32>,
    %c0_i32_8 = arith.constant 0 : i32
    %9 = arith.cmpi eq, %arg2, %c0_i32_8 : i32
    %10 = arith.extui %9 : i1 to i32
    %c0_i32_9 = arith.constant 0 : i32
    %11 = arith.cmpi ne, %10, %c0_i32_9 : i32
    scf.if %11 {
      %c0_10 = arith.constant 0 : index
      %c0_11 = arith.constant 0 : index
      %12 = vector.load %arg8[%c0_10, %c0_11] : memref<8x256xf32, #tpu.memory_space<vmem>>, vector<8x256xf32>
      %c0_12 = arith.constant 0 : index
      %c0_13 = arith.constant 0 : index
      %13 = vector.load %arg5[%c0_12, %c0_13] : memref<1x256xf32, #tpu.memory_space<vmem>>, vector<1x256xf32>
      %14 = vector.broadcast %13 : vector<1x256xf32> to vector<8x256xf32>
      %15 = arith.mulf %12, %14 : vector<8x256xf32>
      %c0_14 = arith.constant 0 : index
      %c0_15 = arith.constant 0 : index
      %16 = vector.load %arg6[%c0_14, %c0_15] : memref<1x256xf32, #tpu.memory_space<vmem>>, vector<1x256xf32>
      %17 = vector.broadcast %16 : vector<1x256xf32> to vector<8x256xf32>
      %18 = arith.addf %15, %17 : vector<8x256xf32>
      %19 = arith.truncf %18 : vector<8x256xf32> to vector<8x256xbf16>
      %c0_16 = arith.constant 0 : index
      %c0_17 = arith.constant 0 : index
      %20 = vector.load %arg7[%c0_16, %c0_17] : memref<8x256xbf16, #tpu.memory_space<vmem>>, vector<8x256xbf16>
      tpu.vector_store %arg7[%c0_16, %c0_17], %19 {strides = array<i32>} : memref<8x256xbf16, #tpu.memory_space<vmem>>, vector<8x256xbf16>,
    } else {
    }
    return
  }
  func.func @transform_0(%arg0: i32, %arg1: i32, %arg2: i32) -> (i32, i32) {
    %c0_i32 = arith.constant 0 : i32
    return %arg0, %arg2 : i32, i32
  }
  func.func @transform_1(%arg0: i32, %arg1: i32, %arg2: i32) -> (i32, i32) {
    %c0_i32 = arith.constant 0 : i32
    return %arg2, %arg1 : i32, i32
  }
  func.func @transform_2(%arg0: i32, %arg1: i32, %arg2: i32) -> (i32, i32) {
    %c0_i32 = arith.constant 0 : i32
    %c0_i32_0 = arith.constant 0 : i32
    return %c0_i32, %arg1 : i32, i32
  }
  func.func @transform_3(%arg0: i32, %arg1: i32, %arg2: i32) -> (i32, i32) {
    %c0_i32 = arith.constant 0 : i32
    %c0_i32_0 = arith.constant 0 : i32
    return %c0_i32, %arg1 : i32, i32
  }
  func.func @transform_4(%arg0: i32, %arg1: i32, %arg2: i32) -> (i32, i32) {
    %c0_i32 = arith.constant 0 : i32
    return %arg0, %arg1 : i32, i32
  }
}

module attributes {stable_mosaic.version = 11 : i64} {
  func.func @_mm_bn_act_kernel(%arg0: i32, %arg1: i32, %arg2: i32, %arg3: memref<8x768xbf16, #tpu.memory_space<vmem>>, %arg4: memref<768x256xbf16, #tpu.memory_space<vmem>>, %arg5: memref<1x256xf32, #tpu.memory_space<vmem>>, %arg6: memref<1x256xf32, #tpu.memory_space<vmem>>, %arg7: memref<8x256xbf16, #tpu.memory_space<vmem>>, %arg8: memref<8x256xf32, #tpu.memory_space<vmem>>) attributes {dimension_semantics = [#tpu.dimension_semantics<parallel>, #tpu.dimension_semantics<parallel>, #tpu.dimension_semantics<arbitrary>], iteration_bounds = array<i64: 1, 2, 3>, scalar_prefetch = 0 : i64, scratch_operands = 1 : i64, tpu.core_type = #tpu.core_type<tc>, window_params = [{transform_indices = @transform_0, window_bounds = array<i64: 8, 768>}, {transform_indices = @transform_1, window_bounds = array<i64: 768, 256>}, {transform_indices = @transform_2, window_bounds = array<i64: 1, 256>}, {transform_indices = @transform_3, window_bounds = array<i64: 1, 256>}, {transform_indices = @transform_4, window_bounds = array<i64: 8, 256>}]} {
    %c0_i32 = arith.constant 0 : i32
    %0 = arith.cmpi eq, %arg2, %c0_i32 : i32
    %1 = arith.extui %0 : i1 to i32
    %c0_i32_0 = arith.constant 0 : i32
    %2 = arith.cmpi ne, %1, %c0_i32_0 : i32
    scf.if %2 {
      %cst_9 = arith.constant 0.000000e+00 : f32
      %12 = vector.broadcast %cst_9 : f32 to vector<8x256xf32>
      %c0_10 = arith.constant 0 : index
      %c0_11 = arith.constant 0 : index
      %13 = vector.load %arg8[%c0_10, %c0_11] : memref<8x256xf32, #tpu.memory_space<vmem>>, vector<8x256xf32>
      tpu.vector_store %arg8[%c0_10, %c0_11], %12 {strides = array<i32>} : memref<8x256xf32, #tpu.memory_space<vmem>>, vector<8x256xf32>,
    } else {
    }
    %c0 = arith.constant 0 : index
    %c0_1 = arith.constant 0 : index
    %3 = vector.load %arg8[%c0, %c0_1] : memref<8x256xf32, #tpu.memory_space<vmem>>, vector<8x256xf32>
    %c0_2 = arith.constant 0 : index
    %c0_3 = arith.constant 0 : index
    %4 = vector.load %arg3[%c0_2, %c0_3] : memref<8x768xbf16, #tpu.memory_space<vmem>>, vector<8x768xbf16>
    %c0_4 = arith.constant 0 : index
    %c0_5 = arith.constant 0 : index
    %5 = vector.load %arg4[%c0_4, %c0_5] : memref<768x256xbf16, #tpu.memory_space<vmem>>, vector<768x256xbf16>
    %cst = arith.constant dense<0.000000e+00> : vector<8x256xf32>
    %6 = tpu.matmul %4, %5, %cst {dimension_numbers = #tpu.dot_dimension_numbers<[1], [0], [0], [1], [0, 0, 1, 1], [], []>} : vector<8x768xbf16>, vector<768x256xbf16>, vector<8x256xf32> -> vector<8x256xf32>
    %7 = arith.addf %3, %6 : vector<8x256xf32>
    %c0_6 = arith.constant 0 : index
    %c0_7 = arith.constant 0 : index
    %8 = vector.load %arg8[%c0_6, %c0_7] : memref<8x256xf32, #tpu.memory_space<vmem>>, vector<8x256xf32>
    tpu.vector_store %arg8[%c0_6, %c0_7], %7 {strides = array<i32>} : memref<8x256xf32, #tpu.memory_space<vmem>>, vector<8x256xf32>,
    %c2_i32 = arith.constant 2 : i32
    %9 = arith.cmpi eq, %arg2, %c2_i32 : i32
    %10 = arith.extui %9 : i1 to i32
    %c0_i32_8 = arith.constant 0 : i32
    %11 = arith.cmpi ne, %10, %c0_i32_8 : i32
    scf.if %11 {
      %c0_9 = arith.constant 0 : index
      %c0_10 = arith.constant 0 : index
      %12 = vector.load %arg8[%c0_9, %c0_10] : memref<8x256xf32, #tpu.memory_space<vmem>>, vector<8x256xf32>
      %c0_11 = arith.constant 0 : index
      %c0_12 = arith.constant 0 : index
      %13 = vector.load %arg5[%c0_11, %c0_12] : memref<1x256xf32, #tpu.memory_space<vmem>>, vector<1x256xf32>
      %14 = vector.broadcast %13 : vector<1x256xf32> to vector<8x256xf32>
      %15 = arith.mulf %12, %14 : vector<8x256xf32>
      %c0_13 = arith.constant 0 : index
      %c0_14 = arith.constant 0 : index
      %16 = vector.load %arg6[%c0_13, %c0_14] : memref<1x256xf32, #tpu.memory_space<vmem>>, vector<1x256xf32>
      %17 = vector.broadcast %16 : vector<1x256xf32> to vector<8x256xf32>
      %18 = arith.addf %15, %17 : vector<8x256xf32>
      %cst_15 = arith.constant 0.000000e+00 : f32
      %19 = vector.broadcast %cst_15 : f32 to vector<8x256xf32>
      %20 = arith.maximumf %18, %19 : vector<8x256xf32>
      %21 = arith.truncf %20 : vector<8x256xf32> to vector<8x256xbf16>
      %c0_16 = arith.constant 0 : index
      %c0_17 = arith.constant 0 : index
      %22 = vector.load %arg7[%c0_16, %c0_17] : memref<8x256xbf16, #tpu.memory_space<vmem>>, vector<8x256xbf16>
      tpu.vector_store %arg7[%c0_16, %c0_17], %21 {strides = array<i32>} : memref<8x256xbf16, #tpu.memory_space<vmem>>, vector<8x256xbf16>,
    } else {
    }
    return
  }
  func.func @transform_0(%arg0: i32, %arg1: i32, %arg2: i32) -> (i32, i32) {
    %c0_i32 = arith.constant 0 : i32
    return %arg0, %arg2 : i32, i32
  }
  func.func @transform_1(%arg0: i32, %arg1: i32, %arg2: i32) -> (i32, i32) {
    %c0_i32 = arith.constant 0 : i32
    return %arg2, %arg1 : i32, i32
  }
  func.func @transform_2(%arg0: i32, %arg1: i32, %arg2: i32) -> (i32, i32) {
    %c0_i32 = arith.constant 0 : i32
    %c0_i32_0 = arith.constant 0 : i32
    return %c0_i32, %arg1 : i32, i32
  }
  func.func @transform_3(%arg0: i32, %arg1: i32, %arg2: i32) -> (i32, i32) {
    %c0_i32 = arith.constant 0 : i32
    %c0_i32_0 = arith.constant 0 : i32
    return %c0_i32, %arg1 : i32, i32
  }
  func.func @transform_4(%arg0: i32, %arg1: i32, %arg2: i32) -> (i32, i32) {
    %c0_i32 = arith.constant 0 : i32
    return %arg0, %arg1 : i32, i32
  }
}

module attributes {stable_mosaic.version = 11 : i64} {
  func.func @_mm_bn_act_kernel(%arg0: i32, %arg1: i32, %arg2: i32, %arg3: memref<8x256xbf16, #tpu.memory_space<vmem>>, %arg4: memref<256x256xbf16, #tpu.memory_space<vmem>>, %arg5: memref<1x256xf32, #tpu.memory_space<vmem>>, %arg6: memref<1x256xf32, #tpu.memory_space<vmem>>, %arg7: memref<8x256xbf16, #tpu.memory_space<vmem>>, %arg8: memref<8x256xf32, #tpu.memory_space<vmem>>) attributes {dimension_semantics = [#tpu.dimension_semantics<parallel>, #tpu.dimension_semantics<parallel>, #tpu.dimension_semantics<arbitrary>], iteration_bounds = array<i64: 1, 2, 1>, scalar_prefetch = 0 : i64, scratch_operands = 1 : i64, tpu.core_type = #tpu.core_type<tc>, window_params = [{transform_indices = @transform_0, window_bounds = array<i64: 8, 256>}, {transform_indices = @transform_1, window_bounds = array<i64: 256, 256>}, {transform_indices = @transform_2, window_bounds = array<i64: 1, 256>}, {transform_indices = @transform_3, window_bounds = array<i64: 1, 256>}, {transform_indices = @transform_4, window_bounds = array<i64: 8, 256>}]} {
    %c0_i32 = arith.constant 0 : i32
    %0 = arith.cmpi eq, %arg2, %c0_i32 : i32
    %1 = arith.extui %0 : i1 to i32
    %c0_i32_0 = arith.constant 0 : i32
    %2 = arith.cmpi ne, %1, %c0_i32_0 : i32
    scf.if %2 {
      %cst_10 = arith.constant 0.000000e+00 : f32
      %12 = vector.broadcast %cst_10 : f32 to vector<8x256xf32>
      %c0_11 = arith.constant 0 : index
      %c0_12 = arith.constant 0 : index
      %13 = vector.load %arg8[%c0_11, %c0_12] : memref<8x256xf32, #tpu.memory_space<vmem>>, vector<8x256xf32>
      tpu.vector_store %arg8[%c0_11, %c0_12], %12 {strides = array<i32>} : memref<8x256xf32, #tpu.memory_space<vmem>>, vector<8x256xf32>,
    } else {
    }
    %c0 = arith.constant 0 : index
    %c0_1 = arith.constant 0 : index
    %3 = vector.load %arg8[%c0, %c0_1] : memref<8x256xf32, #tpu.memory_space<vmem>>, vector<8x256xf32>
    %c0_2 = arith.constant 0 : index
    %c0_3 = arith.constant 0 : index
    %4 = vector.load %arg3[%c0_2, %c0_3] : memref<8x256xbf16, #tpu.memory_space<vmem>>, vector<8x256xbf16>
    %c0_4 = arith.constant 0 : index
    %c0_5 = arith.constant 0 : index
    %5 = vector.load %arg4[%c0_4, %c0_5] : memref<256x256xbf16, #tpu.memory_space<vmem>>, vector<256x256xbf16>
    %cst = arith.constant dense<0.000000e+00> : vector<8x256xf32>
    %6 = tpu.matmul %4, %5, %cst {dimension_numbers = #tpu.dot_dimension_numbers<[1], [0], [0], [1], [0, 0, 1, 1], [], []>} : vector<8x256xbf16>, vector<256x256xbf16>, vector<8x256xf32> -> vector<8x256xf32>
    %7 = arith.addf %3, %6 : vector<8x256xf32>
    %c0_6 = arith.constant 0 : index
    %c0_7 = arith.constant 0 : index
    %8 = vector.load %arg8[%c0_6, %c0_7] : memref<8x256xf32, #tpu.memory_space<vmem>>, vector<8x256xf32>
    tpu.vector_store %arg8[%c0_6, %c0_7], %7 {strides = array<i32>} : memref<8x256xf32, #tpu.memory_space<vmem>>, vector<8x256xf32>,
    %c0_i32_8 = arith.constant 0 : i32
    %9 = arith.cmpi eq, %arg2, %c0_i32_8 : i32
    %10 = arith.extui %9 : i1 to i32
    %c0_i32_9 = arith.constant 0 : i32
    %11 = arith.cmpi ne, %10, %c0_i32_9 : i32
    scf.if %11 {
      %c0_10 = arith.constant 0 : index
      %c0_11 = arith.constant 0 : index
      %12 = vector.load %arg8[%c0_10, %c0_11] : memref<8x256xf32, #tpu.memory_space<vmem>>, vector<8x256xf32>
      %c0_12 = arith.constant 0 : index
      %c0_13 = arith.constant 0 : index
      %13 = vector.load %arg5[%c0_12, %c0_13] : memref<1x256xf32, #tpu.memory_space<vmem>>, vector<1x256xf32>
      %14 = vector.broadcast %13 : vector<1x256xf32> to vector<8x256xf32>
      %15 = arith.mulf %12, %14 : vector<8x256xf32>
      %c0_14 = arith.constant 0 : index
      %c0_15 = arith.constant 0 : index
      %16 = vector.load %arg6[%c0_14, %c0_15] : memref<1x256xf32, #tpu.memory_space<vmem>>, vector<1x256xf32>
      %17 = vector.broadcast %16 : vector<1x256xf32> to vector<8x256xf32>
      %18 = arith.addf %15, %17 : vector<8x256xf32>
      %19 = arith.truncf %18 : vector<8x256xf32> to vector<8x256xbf16>
      %c0_16 = arith.constant 0 : index
      %c0_17 = arith.constant 0 : index
      %20 = vector.load %arg7[%c0_16, %c0_17] : memref<8x256xbf16, #tpu.memory_space<vmem>>, vector<8x256xbf16>
      tpu.vector_store %arg7[%c0_16, %c0_17], %19 {strides = array<i32>} : memref<8x256xbf16, #tpu.memory_space<vmem>>, vector<8x256xbf16>,
    } else {
    }
    return
  }
  func.func @transform_0(%arg0: i32, %arg1: i32, %arg2: i32) -> (i32, i32) {
    %c0_i32 = arith.constant 0 : i32
    return %arg0, %arg2 : i32, i32
  }
  func.func @transform_1(%arg0: i32, %arg1: i32, %arg2: i32) -> (i32, i32) {
    %c0_i32 = arith.constant 0 : i32
    return %arg2, %arg1 : i32, i32
  }
  func.func @transform_2(%arg0: i32, %arg1: i32, %arg2: i32) -> (i32, i32) {
    %c0_i32 = arith.constant 0 : i32
    %c0_i32_0 = arith.constant 0 : i32
    return %c0_i32, %arg1 : i32, i32
  }
  func.func @transform_3(%arg0: i32, %arg1: i32, %arg2: i32) -> (i32, i32) {
    %c0_i32 = arith.constant 0 : i32
    %c0_i32_0 = arith.constant 0 : i32
    return %c0_i32, %arg1 : i32, i32
  }
  func.func @transform_4(%arg0: i32, %arg1: i32, %arg2: i32) -> (i32, i32) {
    %c0_i32 = arith.constant 0 : i32
    return %arg0, %arg1 : i32, i32
  }
}

module attributes {stable_mosaic.version = 11 : i64} {
  func.func @_mm_bn_act_kernel(%arg0: i32, %arg1: i32, %arg2: i32, %arg3: memref<8x768xbf16, #tpu.memory_space<vmem>>, %arg4: memref<768x256xbf16, #tpu.memory_space<vmem>>, %arg5: memref<1x256xf32, #tpu.memory_space<vmem>>, %arg6: memref<1x256xf32, #tpu.memory_space<vmem>>, %arg7: memref<8x256xbf16, #tpu.memory_space<vmem>>, %arg8: memref<8x256xf32, #tpu.memory_space<vmem>>) attributes {dimension_semantics = [#tpu.dimension_semantics<parallel>, #tpu.dimension_semantics<parallel>, #tpu.dimension_semantics<arbitrary>], iteration_bounds = array<i64: 1, 2, 6>, scalar_prefetch = 0 : i64, scratch_operands = 1 : i64, tpu.core_type = #tpu.core_type<tc>, window_params = [{transform_indices = @transform_0, window_bounds = array<i64: 8, 768>}, {transform_indices = @transform_1, window_bounds = array<i64: 768, 256>}, {transform_indices = @transform_2, window_bounds = array<i64: 1, 256>}, {transform_indices = @transform_3, window_bounds = array<i64: 1, 256>}, {transform_indices = @transform_4, window_bounds = array<i64: 8, 256>}]} {
    %c0_i32 = arith.constant 0 : i32
    %0 = arith.cmpi eq, %arg2, %c0_i32 : i32
    %1 = arith.extui %0 : i1 to i32
    %c0_i32_0 = arith.constant 0 : i32
    %2 = arith.cmpi ne, %1, %c0_i32_0 : i32
    scf.if %2 {
      %cst_9 = arith.constant 0.000000e+00 : f32
      %12 = vector.broadcast %cst_9 : f32 to vector<8x256xf32>
      %c0_10 = arith.constant 0 : index
      %c0_11 = arith.constant 0 : index
      %13 = vector.load %arg8[%c0_10, %c0_11] : memref<8x256xf32, #tpu.memory_space<vmem>>, vector<8x256xf32>
      tpu.vector_store %arg8[%c0_10, %c0_11], %12 {strides = array<i32>} : memref<8x256xf32, #tpu.memory_space<vmem>>, vector<8x256xf32>,
    } else {
    }
    %c0 = arith.constant 0 : index
    %c0_1 = arith.constant 0 : index
    %3 = vector.load %arg8[%c0, %c0_1] : memref<8x256xf32, #tpu.memory_space<vmem>>, vector<8x256xf32>
    %c0_2 = arith.constant 0 : index
    %c0_3 = arith.constant 0 : index
    %4 = vector.load %arg3[%c0_2, %c0_3] : memref<8x768xbf16, #tpu.memory_space<vmem>>, vector<8x768xbf16>
    %c0_4 = arith.constant 0 : index
    %c0_5 = arith.constant 0 : index
    %5 = vector.load %arg4[%c0_4, %c0_5] : memref<768x256xbf16, #tpu.memory_space<vmem>>, vector<768x256xbf16>
    %cst = arith.constant dense<0.000000e+00> : vector<8x256xf32>
    %6 = tpu.matmul %4, %5, %cst {dimension_numbers = #tpu.dot_dimension_numbers<[1], [0], [0], [1], [0, 0, 1, 1], [], []>} : vector<8x768xbf16>, vector<768x256xbf16>, vector<8x256xf32> -> vector<8x256xf32>
    %7 = arith.addf %3, %6 : vector<8x256xf32>
    %c0_6 = arith.constant 0 : index
    %c0_7 = arith.constant 0 : index
    %8 = vector.load %arg8[%c0_6, %c0_7] : memref<8x256xf32, #tpu.memory_space<vmem>>, vector<8x256xf32>
    tpu.vector_store %arg8[%c0_6, %c0_7], %7 {strides = array<i32>} : memref<8x256xf32, #tpu.memory_space<vmem>>, vector<8x256xf32>,
    %c5_i32 = arith.constant 5 : i32
    %9 = arith.cmpi eq, %arg2, %c5_i32 : i32
    %10 = arith.extui %9 : i1 to i32
    %c0_i32_8 = arith.constant 0 : i32
    %11 = arith.cmpi ne, %10, %c0_i32_8 : i32
    scf.if %11 {
      %c0_9 = arith.constant 0 : index
      %c0_10 = arith.constant 0 : index
      %12 = vector.load %arg8[%c0_9, %c0_10] : memref<8x256xf32, #tpu.memory_space<vmem>>, vector<8x256xf32>
      %c0_11 = arith.constant 0 : index
      %c0_12 = arith.constant 0 : index
      %13 = vector.load %arg5[%c0_11, %c0_12] : memref<1x256xf32, #tpu.memory_space<vmem>>, vector<1x256xf32>
      %14 = vector.broadcast %13 : vector<1x256xf32> to vector<8x256xf32>
      %15 = arith.mulf %12, %14 : vector<8x256xf32>
      %c0_13 = arith.constant 0 : index
      %c0_14 = arith.constant 0 : index
      %16 = vector.load %arg6[%c0_13, %c0_14] : memref<1x256xf32, #tpu.memory_space<vmem>>, vector<1x256xf32>
      %17 = vector.broadcast %16 : vector<1x256xf32> to vector<8x256xf32>
      %18 = arith.addf %15, %17 : vector<8x256xf32>
      %cst_15 = arith.constant 0.000000e+00 : f32
      %19 = vector.broadcast %cst_15 : f32 to vector<8x256xf32>
      %20 = arith.maximumf %18, %19 : vector<8x256xf32>
      %21 = arith.truncf %20 : vector<8x256xf32> to vector<8x256xbf16>
      %c0_16 = arith.constant 0 : index
      %c0_17 = arith.constant 0 : index
      %22 = vector.load %arg7[%c0_16, %c0_17] : memref<8x256xbf16, #tpu.memory_space<vmem>>, vector<8x256xbf16>
      tpu.vector_store %arg7[%c0_16, %c0_17], %21 {strides = array<i32>} : memref<8x256xbf16, #tpu.memory_space<vmem>>, vector<8x256xbf16>,
    } else {
    }
    return
  }
  func.func @transform_0(%arg0: i32, %arg1: i32, %arg2: i32) -> (i32, i32) {
    %c0_i32 = arith.constant 0 : i32
    return %arg0, %arg2 : i32, i32
  }
  func.func @transform_1(%arg0: i32, %arg1: i32, %arg2: i32) -> (i32, i32) {
    %c0_i32 = arith.constant 0 : i32
    return %arg2, %arg1 : i32, i32
  }
  func.func @transform_2(%arg0: i32, %arg1: i32, %arg2: i32) -> (i32, i32) {
    %c0_i32 = arith.constant 0 : i32
    %c0_i32_0 = arith.constant 0 : i32
    return %c0_i32, %arg1 : i32, i32
  }
  func.func @transform_3(%arg0: i32, %arg1: i32, %arg2: i32) -> (i32, i32) {
    %c0_i32 = arith.constant 0 : i32
    %c0_i32_0 = arith.constant 0 : i32
    return %c0_i32, %arg1 : i32, i32
  }
  func.func @transform_4(%arg0: i32, %arg1: i32, %arg2: i32) -> (i32, i32) {
    %c0_i32 = arith.constant 0 : i32
    return %arg0, %arg1 : i32, i32
  }
}

module attributes {stable_mosaic.version = 11 : i64} {
  func.func @_mm_bn_res_act_kernel(%arg0: i32, %arg1: i32, %arg2: i32, %arg3: memref<8x768xbf16, #tpu.memory_space<vmem>>, %arg4: memref<768x256xbf16, #tpu.memory_space<vmem>>, %arg5: memref<1x256xf32, #tpu.memory_space<vmem>>, %arg6: memref<1x256xf32, #tpu.memory_space<vmem>>, %arg7: memref<8x256xbf16, #tpu.memory_space<vmem>>, %arg8: memref<8x256xbf16, #tpu.memory_space<vmem>>, %arg9: memref<8x256xf32, #tpu.memory_space<vmem>>) attributes {dimension_semantics = [#tpu.dimension_semantics<parallel>, #tpu.dimension_semantics<parallel>, #tpu.dimension_semantics<arbitrary>], iteration_bounds = array<i64: 1, 2, 6>, scalar_prefetch = 0 : i64, scratch_operands = 1 : i64, tpu.core_type = #tpu.core_type<tc>, window_params = [{transform_indices = @transform_0, window_bounds = array<i64: 8, 768>}, {transform_indices = @transform_1, window_bounds = array<i64: 768, 256>}, {transform_indices = @transform_2, window_bounds = array<i64: 1, 256>}, {transform_indices = @transform_3, window_bounds = array<i64: 1, 256>}, {transform_indices = @transform_4, window_bounds = array<i64: 8, 256>}, {transform_indices = @transform_5, window_bounds = array<i64: 8, 256>}]} {
    %c0_i32 = arith.constant 0 : i32
    %0 = arith.cmpi eq, %arg2, %c0_i32 : i32
    %1 = arith.extui %0 : i1 to i32
    %c0_i32_0 = arith.constant 0 : i32
    %2 = arith.cmpi ne, %1, %c0_i32_0 : i32
    scf.if %2 {
      %cst_9 = arith.constant 0.000000e+00 : f32
      %12 = vector.broadcast %cst_9 : f32 to vector<8x256xf32>
      %c0_10 = arith.constant 0 : index
      %c0_11 = arith.constant 0 : index
      %13 = vector.load %arg9[%c0_10, %c0_11] : memref<8x256xf32, #tpu.memory_space<vmem>>, vector<8x256xf32>
      tpu.vector_store %arg9[%c0_10, %c0_11], %12 {strides = array<i32>} : memref<8x256xf32, #tpu.memory_space<vmem>>, vector<8x256xf32>,
    } else {
    }
    %c0 = arith.constant 0 : index
    %c0_1 = arith.constant 0 : index
    %3 = vector.load %arg9[%c0, %c0_1] : memref<8x256xf32, #tpu.memory_space<vmem>>, vector<8x256xf32>
    %c0_2 = arith.constant 0 : index
    %c0_3 = arith.constant 0 : index
    %4 = vector.load %arg3[%c0_2, %c0_3] : memref<8x768xbf16, #tpu.memory_space<vmem>>, vector<8x768xbf16>
    %c0_4 = arith.constant 0 : index
    %c0_5 = arith.constant 0 : index
    %5 = vector.load %arg4[%c0_4, %c0_5] : memref<768x256xbf16, #tpu.memory_space<vmem>>, vector<768x256xbf16>
    %cst = arith.constant dense<0.000000e+00> : vector<8x256xf32>
    %6 = tpu.matmul %4, %5, %cst {dimension_numbers = #tpu.dot_dimension_numbers<[1], [0], [0], [1], [0, 0, 1, 1], [], []>} : vector<8x768xbf16>, vector<768x256xbf16>, vector<8x256xf32> -> vector<8x256xf32>
    %7 = arith.addf %3, %6 : vector<8x256xf32>
    %c0_6 = arith.constant 0 : index
    %c0_7 = arith.constant 0 : index
    %8 = vector.load %arg9[%c0_6, %c0_7] : memref<8x256xf32, #tpu.memory_space<vmem>>, vector<8x256xf32>
    tpu.vector_store %arg9[%c0_6, %c0_7], %7 {strides = array<i32>} : memref<8x256xf32, #tpu.memory_space<vmem>>, vector<8x256xf32>,
    %c5_i32 = arith.constant 5 : i32
    %9 = arith.cmpi eq, %arg2, %c5_i32 : i32
    %10 = arith.extui %9 : i1 to i32
    %c0_i32_8 = arith.constant 0 : i32
    %11 = arith.cmpi ne, %10, %c0_i32_8 : i32
    scf.if %11 {
      %c0_9 = arith.constant 0 : index
      %c0_10 = arith.constant 0 : index
      %12 = vector.load %arg9[%c0_9, %c0_10] : memref<8x256xf32, #tpu.memory_space<vmem>>, vector<8x256xf32>
      %c0_11 = arith.constant 0 : index
      %c0_12 = arith.constant 0 : index
      %13 = vector.load %arg5[%c0_11, %c0_12] : memref<1x256xf32, #tpu.memory_space<vmem>>, vector<1x256xf32>
      %14 = vector.broadcast %13 : vector<1x256xf32> to vector<8x256xf32>
      %15 = arith.mulf %12, %14 : vector<8x256xf32>
      %c0_13 = arith.constant 0 : index
      %c0_14 = arith.constant 0 : index
      %16 = vector.load %arg6[%c0_13, %c0_14] : memref<1x256xf32, #tpu.memory_space<vmem>>, vector<1x256xf32>
      %17 = vector.broadcast %16 : vector<1x256xf32> to vector<8x256xf32>
      %18 = arith.addf %15, %17 : vector<8x256xf32>
      %c0_15 = arith.constant 0 : index
      %c0_16 = arith.constant 0 : index
      %19 = vector.load %arg7[%c0_15, %c0_16] : memref<8x256xbf16, #tpu.memory_space<vmem>>, vector<8x256xbf16>
      %20 = arith.extf %19 : vector<8x256xbf16> to vector<8x256xf32>
      %21 = arith.addf %18, %20 : vector<8x256xf32>
      %cst_17 = arith.constant 0.000000e+00 : f32
      %22 = vector.broadcast %cst_17 : f32 to vector<8x256xf32>
      %23 = arith.maximumf %21, %22 : vector<8x256xf32>
      %24 = arith.truncf %23 : vector<8x256xf32> to vector<8x256xbf16>
      %c0_18 = arith.constant 0 : index
      %c0_19 = arith.constant 0 : index
      %25 = vector.load %arg8[%c0_18, %c0_19] : memref<8x256xbf16, #tpu.memory_space<vmem>>, vector<8x256xbf16>
      tpu.vector_store %arg8[%c0_18, %c0_19], %24 {strides = array<i32>} : memref<8x256xbf16, #tpu.memory_space<vmem>>, vector<8x256xbf16>,
    } else {
    }
    return
  }
  func.func @transform_0(%arg0: i32, %arg1: i32, %arg2: i32) -> (i32, i32) {
    %c0_i32 = arith.constant 0 : i32
    return %arg0, %arg2 : i32, i32
  }
  func.func @transform_1(%arg0: i32, %arg1: i32, %arg2: i32) -> (i32, i32) {
    %c0_i32 = arith.constant 0 : i32
    return %arg2, %arg1 : i32, i32
  }
  func.func @transform_2(%arg0: i32, %arg1: i32, %arg2: i32) -> (i32, i32) {
    %c0_i32 = arith.constant 0 : i32
    %c0_i32_0 = arith.constant 0 : i32
    return %c0_i32, %arg1 : i32, i32
  }
  func.func @transform_3(%arg0: i32, %arg1: i32, %arg2: i32) -> (i32, i32) {
    %c0_i32 = arith.constant 0 : i32
    %c0_i32_0 = arith.constant 0 : i32
    return %c0_i32, %arg1 : i32, i32
  }
  func.func @transform_4(%arg0: i32, %arg1: i32, %arg2: i32) -> (i32, i32) {
    %c0_i32 = arith.constant 0 : i32
    return %arg0, %arg1 : i32, i32
  }
  func.func @transform_5(%arg0: i32, %arg1: i32, %arg2: i32) -> (i32, i32) {
    %c0_i32 = arith.constant 0 : i32
    return %arg0, %arg1 : i32, i32
  }
}

module attributes {stable_mosaic.version = 11 : i64} {
  func.func @_avgpool_kernel(%arg0: i32, %arg1: memref<1x16x512xbf16, #tpu.memory_space<vmem>>, %arg2: memref<1x1x512xf32, #tpu.memory_space<vmem>>) attributes {dimension_semantics = [#tpu.dimension_semantics<parallel>], iteration_bounds = array<i64: 2>, scalar_prefetch = 0 : i64, scratch_operands = 0 : i64, tpu.core_type = #tpu.core_type<tc>, window_params = [{transform_indices = @transform_0, window_bounds = array<i64: 1, 16, 512>}, {transform_indices = @transform_1, window_bounds = array<i64: 1, 1, 512>}]} {
    %c0 = arith.constant 0 : index
    %c0_0 = arith.constant 0 : index
    %c0_1 = arith.constant 0 : index
    %0 = vector.load %arg1[%c0, %c0_0, %c0_1] : memref<1x16x512xbf16, #tpu.memory_space<vmem>>, vector<1x16x512xbf16>
    %1 = arith.extf %0 : vector<1x16x512xbf16> to vector<1x16x512xf32>
    %cst = arith.constant dense<0.000000e+00> : vector<1x512xf32>
    %2 = vector.multi_reduction <add>, %1, %cst [1] : vector<1x16x512xf32> to vector<1x512xf32>
    %3 = vector.shape_cast %2 : vector<1x512xf32> to vector<1x1x512xf32>
    %cst_2 = arith.constant 1.000000e+00 : f32
    %4 = vector.broadcast %cst_2 : f32 to vector<1x1x512xf32>
    %5 = arith.mulf %3, %4 : vector<1x1x512xf32>
    %c0_3 = arith.constant 0 : index
    %c0_4 = arith.constant 0 : index
    %c0_5 = arith.constant 0 : index
    %6 = vector.load %arg2[%c0_3, %c0_4, %c0_5] : memref<1x1x512xf32, #tpu.memory_space<vmem>>, vector<1x1x512xf32>
    tpu.vector_store %arg2[%c0_3, %c0_4, %c0_5], %5 {strides = array<i32>} : memref<1x1x512xf32, #tpu.memory_space<vmem>>, vector<1x1x512xf32>,
    return
  }
  func.func @transform_0(%arg0: i32) -> (i32, i32, i32) {
    %c0_i32 = arith.constant 0 : i32
    %c0_i32_0 = arith.constant 0 : i32
    %c0_i32_1 = arith.constant 0 : i32
    return %arg0, %c0_i32, %c0_i32_0 : i32, i32, i32
  }
  func.func @transform_1(%arg0: i32) -> (i32, i32, i32) {
    %c0_i32 = arith.constant 0 : i32
    %c0_i32_0 = arith.constant 0 : i32
    %c0_i32_1 = arith.constant 0 : i32
    return %arg0, %c0_i32, %c0_i32_0 : i32, i32, i32
  }
}

module attributes {stable_mosaic.version = 11 : i64} {
  func.func @_mm_bn_act_kernel(%arg0: i32, %arg1: i32, %arg2: i32, %arg3: memref<8x512xbf16, #tpu.memory_space<vmem>>, %arg4: memref<512x256xbf16, #tpu.memory_space<vmem>>, %arg5: memref<1x256xf32, #tpu.memory_space<vmem>>, %arg6: memref<1x256xf32, #tpu.memory_space<vmem>>, %arg7: memref<8x256xbf16, #tpu.memory_space<vmem>>, %arg8: memref<8x256xf32, #tpu.memory_space<vmem>>) attributes {dimension_semantics = [#tpu.dimension_semantics<parallel>, #tpu.dimension_semantics<parallel>, #tpu.dimension_semantics<arbitrary>], iteration_bounds = array<i64: 1, 2, 1>, scalar_prefetch = 0 : i64, scratch_operands = 1 : i64, tpu.core_type = #tpu.core_type<tc>, window_params = [{transform_indices = @transform_0, window_bounds = array<i64: 8, 512>}, {transform_indices = @transform_1, window_bounds = array<i64: 512, 256>}, {transform_indices = @transform_2, window_bounds = array<i64: 1, 256>}, {transform_indices = @transform_3, window_bounds = array<i64: 1, 256>}, {transform_indices = @transform_4, window_bounds = array<i64: 8, 256>}]} {
    %c0_i32 = arith.constant 0 : i32
    %0 = arith.cmpi eq, %arg2, %c0_i32 : i32
    %1 = arith.extui %0 : i1 to i32
    %c0_i32_0 = arith.constant 0 : i32
    %2 = arith.cmpi ne, %1, %c0_i32_0 : i32
    scf.if %2 {
      %cst_10 = arith.constant 0.000000e+00 : f32
      %12 = vector.broadcast %cst_10 : f32 to vector<8x256xf32>
      %c0_11 = arith.constant 0 : index
      %c0_12 = arith.constant 0 : index
      %13 = vector.load %arg8[%c0_11, %c0_12] : memref<8x256xf32, #tpu.memory_space<vmem>>, vector<8x256xf32>
      tpu.vector_store %arg8[%c0_11, %c0_12], %12 {strides = array<i32>} : memref<8x256xf32, #tpu.memory_space<vmem>>, vector<8x256xf32>,
    } else {
    }
    %c0 = arith.constant 0 : index
    %c0_1 = arith.constant 0 : index
    %3 = vector.load %arg8[%c0, %c0_1] : memref<8x256xf32, #tpu.memory_space<vmem>>, vector<8x256xf32>
    %c0_2 = arith.constant 0 : index
    %c0_3 = arith.constant 0 : index
    %4 = vector.load %arg3[%c0_2, %c0_3] : memref<8x512xbf16, #tpu.memory_space<vmem>>, vector<8x512xbf16>
    %c0_4 = arith.constant 0 : index
    %c0_5 = arith.constant 0 : index
    %5 = vector.load %arg4[%c0_4, %c0_5] : memref<512x256xbf16, #tpu.memory_space<vmem>>, vector<512x256xbf16>
    %cst = arith.constant dense<0.000000e+00> : vector<8x256xf32>
    %6 = tpu.matmul %4, %5, %cst {dimension_numbers = #tpu.dot_dimension_numbers<[1], [0], [0], [1], [0, 0, 1, 1], [], []>} : vector<8x512xbf16>, vector<512x256xbf16>, vector<8x256xf32> -> vector<8x256xf32>
    %7 = arith.addf %3, %6 : vector<8x256xf32>
    %c0_6 = arith.constant 0 : index
    %c0_7 = arith.constant 0 : index
    %8 = vector.load %arg8[%c0_6, %c0_7] : memref<8x256xf32, #tpu.memory_space<vmem>>, vector<8x256xf32>
    tpu.vector_store %arg8[%c0_6, %c0_7], %7 {strides = array<i32>} : memref<8x256xf32, #tpu.memory_space<vmem>>, vector<8x256xf32>,
    %c0_i32_8 = arith.constant 0 : i32
    %9 = arith.cmpi eq, %arg2, %c0_i32_8 : i32
    %10 = arith.extui %9 : i1 to i32
    %c0_i32_9 = arith.constant 0 : i32
    %11 = arith.cmpi ne, %10, %c0_i32_9 : i32
    scf.if %11 {
      %c0_10 = arith.constant 0 : index
      %c0_11 = arith.constant 0 : index
      %12 = vector.load %arg8[%c0_10, %c0_11] : memref<8x256xf32, #tpu.memory_space<vmem>>, vector<8x256xf32>
      %c0_12 = arith.constant 0 : index
      %c0_13 = arith.constant 0 : index
      %13 = vector.load %arg5[%c0_12, %c0_13] : memref<1x256xf32, #tpu.memory_space<vmem>>, vector<1x256xf32>
      %14 = vector.broadcast %13 : vector<1x256xf32> to vector<8x256xf32>
      %15 = arith.mulf %12, %14 : vector<8x256xf32>
      %c0_14 = arith.constant 0 : index
      %c0_15 = arith.constant 0 : index
      %16 = vector.load %arg6[%c0_14, %c0_15] : memref<1x256xf32, #tpu.memory_space<vmem>>, vector<1x256xf32>
      %17 = vector.broadcast %16 : vector<1x256xf32> to vector<8x256xf32>
      %18 = arith.addf %15, %17 : vector<8x256xf32>
      %cst_16 = arith.constant 0.000000e+00 : f32
      %19 = vector.broadcast %cst_16 : f32 to vector<8x256xf32>
      %20 = arith.maximumf %18, %19 : vector<8x256xf32>
      %21 = arith.truncf %20 : vector<8x256xf32> to vector<8x256xbf16>
      %c0_17 = arith.constant 0 : index
      %c0_18 = arith.constant 0 : index
      %22 = vector.load %arg7[%c0_17, %c0_18] : memref<8x256xbf16, #tpu.memory_space<vmem>>, vector<8x256xbf16>
      tpu.vector_store %arg7[%c0_17, %c0_18], %21 {strides = array<i32>} : memref<8x256xbf16, #tpu.memory_space<vmem>>, vector<8x256xbf16>,
    } else {
    }
    return
  }
  func.func @transform_0(%arg0: i32, %arg1: i32, %arg2: i32) -> (i32, i32) {
    %c0_i32 = arith.constant 0 : i32
    return %arg0, %arg2 : i32, i32
  }
  func.func @transform_1(%arg0: i32, %arg1: i32, %arg2: i32) -> (i32, i32) {
    %c0_i32 = arith.constant 0 : i32
    return %arg2, %arg1 : i32, i32
  }
  func.func @transform_2(%arg0: i32, %arg1: i32, %arg2: i32) -> (i32, i32) {
    %c0_i32 = arith.constant 0 : i32
    %c0_i32_0 = arith.constant 0 : i32
    return %c0_i32, %arg1 : i32, i32
  }
  func.func @transform_3(%arg0: i32, %arg1: i32, %arg2: i32) -> (i32, i32) {
    %c0_i32 = arith.constant 0 : i32
    %c0_i32_0 = arith.constant 0 : i32
    return %c0_i32, %arg1 : i32, i32
  }
  func.func @transform_4(%arg0: i32, %arg1: i32, %arg2: i32) -> (i32, i32) {
    %c0_i32 = arith.constant 0 : i32
    return %arg0, %arg1 : i32, i32
  }
}

module attributes {stable_mosaic.version = 11 : i64} {
  func.func @_mm_bn_act_kernel(%arg0: i32, %arg1: i32, %arg2: i32, %arg3: memref<8x512xbf16, #tpu.memory_space<vmem>>, %arg4: memref<512x128xbf16, #tpu.memory_space<vmem>>, %arg5: memref<1x128xf32, #tpu.memory_space<vmem>>, %arg6: memref<1x128xf32, #tpu.memory_space<vmem>>, %arg7: memref<8x128xf32, #tpu.memory_space<vmem>>, %arg8: memref<8x128xf32, #tpu.memory_space<vmem>>) attributes {dimension_semantics = [#tpu.dimension_semantics<parallel>, #tpu.dimension_semantics<parallel>, #tpu.dimension_semantics<arbitrary>], iteration_bounds = array<i64: 1, 1, 1>, scalar_prefetch = 0 : i64, scratch_operands = 1 : i64, tpu.core_type = #tpu.core_type<tc>, window_params = [{transform_indices = @transform_0, window_bounds = array<i64: 8, 512>}, {transform_indices = @transform_1, window_bounds = array<i64: 512, 128>}, {transform_indices = @transform_2, window_bounds = array<i64: 1, 128>}, {transform_indices = @transform_3, window_bounds = array<i64: 1, 128>}, {transform_indices = @transform_4, window_bounds = array<i64: 8, 128>}]} {
    %c0_i32 = arith.constant 0 : i32
    %0 = arith.cmpi eq, %arg2, %c0_i32 : i32
    %1 = arith.extui %0 : i1 to i32
    %c0_i32_0 = arith.constant 0 : i32
    %2 = arith.cmpi ne, %1, %c0_i32_0 : i32
    scf.if %2 {
      %cst_10 = arith.constant 0.000000e+00 : f32
      %12 = vector.broadcast %cst_10 : f32 to vector<8x128xf32>
      %c0_11 = arith.constant 0 : index
      %c0_12 = arith.constant 0 : index
      %13 = vector.load %arg8[%c0_11, %c0_12] : memref<8x128xf32, #tpu.memory_space<vmem>>, vector<8x128xf32>
      tpu.vector_store %arg8[%c0_11, %c0_12], %12 {strides = array<i32>} : memref<8x128xf32, #tpu.memory_space<vmem>>, vector<8x128xf32>,
    } else {
    }
    %c0 = arith.constant 0 : index
    %c0_1 = arith.constant 0 : index
    %3 = vector.load %arg8[%c0, %c0_1] : memref<8x128xf32, #tpu.memory_space<vmem>>, vector<8x128xf32>
    %c0_2 = arith.constant 0 : index
    %c0_3 = arith.constant 0 : index
    %4 = vector.load %arg3[%c0_2, %c0_3] : memref<8x512xbf16, #tpu.memory_space<vmem>>, vector<8x512xbf16>
    %c0_4 = arith.constant 0 : index
    %c0_5 = arith.constant 0 : index
    %5 = vector.load %arg4[%c0_4, %c0_5] : memref<512x128xbf16, #tpu.memory_space<vmem>>, vector<512x128xbf16>
    %cst = arith.constant dense<0.000000e+00> : vector<8x128xf32>
    %6 = tpu.matmul %4, %5, %cst {dimension_numbers = #tpu.dot_dimension_numbers<[1], [0], [0], [1], [0, 0, 1, 1], [], []>} : vector<8x512xbf16>, vector<512x128xbf16>, vector<8x128xf32> -> vector<8x128xf32>
    %7 = arith.addf %3, %6 : vector<8x128xf32>
    %c0_6 = arith.constant 0 : index
    %c0_7 = arith.constant 0 : index
    %8 = vector.load %arg8[%c0_6, %c0_7] : memref<8x128xf32, #tpu.memory_space<vmem>>, vector<8x128xf32>
    tpu.vector_store %arg8[%c0_6, %c0_7], %7 {strides = array<i32>} : memref<8x128xf32, #tpu.memory_space<vmem>>, vector<8x128xf32>,
    %c0_i32_8 = arith.constant 0 : i32
    %9 = arith.cmpi eq, %arg2, %c0_i32_8 : i32
    %10 = arith.extui %9 : i1 to i32
    %c0_i32_9 = arith.constant 0 : i32
    %11 = arith.cmpi ne, %10, %c0_i32_9 : i32
    scf.if %11 {
      %c0_10 = arith.constant 0 : index
      %c0_11 = arith.constant 0 : index
      %12 = vector.load %arg8[%c0_10, %c0_11] : memref<8x128xf32, #tpu.memory_space<vmem>>, vector<8x128xf32>
      %c0_12 = arith.constant 0 : index
      %c0_13 = arith.constant 0 : index
      %13 = vector.load %arg5[%c0_12, %c0_13] : memref<1x128xf32, #tpu.memory_space<vmem>>, vector<1x128xf32>
      %14 = vector.broadcast %13 : vector<1x128xf32> to vector<8x128xf32>
      %15 = arith.mulf %12, %14 : vector<8x128xf32>
      %c0_14 = arith.constant 0 : index
      %c0_15 = arith.constant 0 : index
      %16 = vector.load %arg6[%c0_14, %c0_15] : memref<1x128xf32, #tpu.memory_space<vmem>>, vector<1x128xf32>
      %17 = vector.broadcast %16 : vector<1x128xf32> to vector<8x128xf32>
      %18 = arith.addf %15, %17 : vector<8x128xf32>
      %c0_16 = arith.constant 0 : index
      %c0_17 = arith.constant 0 : index
      %19 = vector.load %arg7[%c0_16, %c0_17] : memref<8x128xf32, #tpu.memory_space<vmem>>, vector<8x128xf32>
      tpu.vector_store %arg7[%c0_16, %c0_17], %18 {strides = array<i32>} : memref<8x128xf32, #tpu.memory_space<vmem>>, vector<8x128xf32>,
    } else {
    }
    return
  }
  func.func @transform_0(%arg0: i32, %arg1: i32, %arg2: i32) -> (i32, i32) {
    %c0_i32 = arith.constant 0 : i32
    return %arg0, %arg2 : i32, i32
  }
  func.func @transform_1(%arg0: i32, %arg1: i32, %arg2: i32) -> (i32, i32) {
    %c0_i32 = arith.constant 0 : i32
    return %arg2, %arg1 : i32, i32
  }
  func.func @transform_2(%arg0: i32, %arg1: i32, %arg2: i32) -> (i32, i32) {
    %c0_i32 = arith.constant 0 : i32
    %c0_i32_0 = arith.constant 0 : i32
    return %c0_i32, %arg1 : i32, i32
  }
  func.func @transform_3(%arg0: i32, %arg1: i32, %arg2: i32) -> (i32, i32) {
    %c0_i32 = arith.constant 0 : i32
    %c0_i32_0 = arith.constant 0 : i32
    return %c0_i32, %arg1 : i32, i32
  }
  func.func @transform_4(%arg0: i32, %arg1: i32, %arg2: i32) -> (i32, i32) {
    %c0_i32 = arith.constant 0 : i32
    return %arg0, %arg1 : i32, i32
  }
}

</mosaic_0001>

<bundles_post_ra>
// kernel: simclr_forward.24
= control target key start
LH: loop header
LB: loop body
LE: loop exit
PB: predicated region body
PF: predicated region fallthrough
CT: control target
= control target key end

     0   :  { %s1598_s15 = smov 0   ;;  %s1600_s16 = smov 0   ;;  %s1772_s0 = inlined_call_operand.vmem [shape: bf16[512,128], index: 0, kind: input, shape index: {}]   ;;  %s1773_s1 = inlined_call_operand.vmem [shape: bf16[128,128], index: 1, kind: input, shape index: {}]   ;;  %s1774_s2 = inlined_call_operand.vmem [shape: f32[1,128], index: 2, kind: input, shape index: {}]   ;;  %s1775_s3 = inlined_call_operand.vmem [shape: f32[1,128], index: 3, kind: input, shape index: {}]   ;;  %s1776_s4 = inlined_call_operand.vmem [shape: bf16[512,128], index: 4, kind: output, shape index: {}]  }
   0x1   :  { %s1602_s17 = smov 0  }
   0x2 LB: > { %s33_s18 = sadd.s32 1, %s1567_s16  ;;  %p1221_p0 = scmp.ge.s32.totalorder %s1571_s17, 1  ;;  %s1571_s17 = sphi %s1602_s17, %s14_s17   ;;  %s1567_s16 = sphi %s1600_s16, %s1778_s16   ;;  %s1563_s15 = sphi %s1598_s15, %s1777_s15  }
   0x3   : > { %p35_p1 = scmp.ge.s32.totalorder %s33_s18, 2  ;;  %p221_p2 = scmp.lt.s32.totalorder %s1571_s17, 3 }
   0x5   : > { %s1780_s18 = smov (%p35_p1, %s33_s18), 0  ;;  %p222_p3 = pnand %p1221_p0, %p221_p2 }
   0x6   : > { %s1222_s21 = sshll.u32 (!%p222_p3), %s1563_s15, 5 }
   0x7   : > { %225 = sbr.rel (%p222_p3) target bundleno = 277 (0x115), region = 36  ;;  %p268_p4 = scmp.lt.s32.totalorder (!%p222_p3), %s1222_s21, 63 }
   0xc   : > { %v1525_v0 = vld [vmem:[%s1773_s1 + $0x38] sm:$0xff]   ;;  %v1526_v1 = vld [vmem:[%s1773_s1 + $0x30] sm:$0xff]   ;;  %s1782_s21 = smov (!%p268_p4, %s1222_s21), 63  ;;  %v1527_v2 = vld [vmem:[%s1773_s1 + $0x28] sm:$0xff]  }
   0xd   : > { %1437 = vmatprep.subr.bf16.mxu0 %v1525_v0  ;;  %1485 = vmatprep.subr.bf16.mxu1 %v1525_v0  ;;  %s1223_s26 = sshll.u32 %s1782_s21, 2  ;;  %v1528_v3 = vld [vmem:[%s1773_s1 + $0x20] sm:$0xff]   ;;  %v1529_v6 = vld [vmem:[%s1773_s1 + $0x18] sm:$0xff]   ;;  %v1530_v7 = vld [vmem:[%s1773_s1 + $0x10] sm:$0xff]  }
   0xe   : > { %1438 = vmatpush3.bf16.msra.mxu0 %v1525_v0  ;;  %1493 = vmatpush3.bf16.msra.mxu1 %v1525_v0  ;;  %s1633_s29 = scalar_lea.vmem %s1772_s0, %s1223_s26  ;;  %v1531_v8 = vld [vmem:[%s1773_s1 + $0x8] sm:$0xff]   ;;  %v1532_v9 = vld [vmem:[%s1773_s1] sm:$0xff]   ;;  %s1699_s24 = scalar_lea.vmem %s1776_s4, %s1223_s26 }
   0xf   : > { %1439 = vmatprep.subr.bf16.mxu0 %v1526_v1  ;;  %1486 = vmatprep.subr.bf16.mxu1 %v1526_v1  ;;  %v1533_v4 = vld [vmem:[%s1633_s29] sm:$0xff]   ;;  %v1535_v10 = vld [vmem:[%s1633_s29 + $0x8] sm:$0xff]   ;;  %v1537_v12 = vld [vmem:[%s1633_s29 + $0x10] sm:$0xff]  }
  0x10   : > { %v1534_v5 = vld [vmem:[%s1633_s29 + $0x40] sm:$0xff]   ;;  %1453 = vmatprep.mubr.bf16.mxu0 %v1533_v4  ;;  %v1536_v11 = vld [vmem:[%s1633_s29 + $0x48] sm:$0xff]   ;;  %v1538_v13 = vld [vmem:[%s1633_s29 + $0x50] sm:$0xff]  }
  0x11   : > { %1469 = vmatprep.mubr.bf16.mxu1 %v1534_v5  ;;  %v1539_v14 = vld [vmem:[%s1633_s29 + $0x18] sm:$0xff]   ;;  %v1541_v16 = vld [vmem:[%s1633_s29 + $0x20] sm:$0xff]   ;;  %v1543_v18 = vld [vmem:[%s1633_s29 + $0x28] sm:$0xff]  }
  0x12   : > { %1440 = vmatpush3.bf16.msra.mxu0 %v1526_v1  ;;  %1494 = vmatpush3.bf16.msra.mxu1 %v1526_v1  ;;  %v1540_v15 = vld [vmem:[%s1633_s29 + $0x58] sm:$0xff]   ;;  %v1542_v17 = vld [vmem:[%s1633_s29 + $0x60] sm:$0xff]   ;;  %v1544_v19 = vld [vmem:[%s1633_s29 + $0x68] sm:$0xff]  }
  0x13   : > { %1441 = vmatprep.subr.bf16.mxu0 %v1527_v2  ;;  %1487 = vmatprep.subr.bf16.mxu1 %v1527_v2  ;;  %v1545_v20 = vld [vmem:[%s1633_s29 + $0x30] sm:$0xff]   ;;  %v1547_v22 = vld [vmem:[%s1633_s29 + $0x38] sm:$0xff]   ;;  %v1669_v24 = vld [vmem:[%s1774_s2] ss:$0 sm:$0xff] }
  0x14   : > { %v1546_v21 = vld [vmem:[%s1633_s29 + $0x70] sm:$0xff]   ;;  %v1548_v23 = vld [vmem:[%s1633_s29 + $0x78] sm:$0xff]   ;;  %v1676_v29 = vld [vmem:[%s1775_s3] ss:$0 sm:$0xff] }
  0x16   : > { %1442 = vmatpush3.bf16.msra.mxu0 %v1527_v2  ;;  %1495 = vmatpush3.bf16.msra.mxu1 %v1527_v2 }
  0x17   : > { %1443 = vmatprep.subr.bf16.mxu0 %v1528_v3  ;;  %1488 = vmatprep.subr.bf16.mxu1 %v1528_v3 }
  0x1a   : > { %1444 = vmatpush3.bf16.msra.mxu0 %v1528_v3  ;;  %1496 = vmatpush3.bf16.msra.mxu1 %v1528_v3 }
  0x1b   : > { %1445 = vmatprep.subr.bf16.mxu0 %v1529_v6  ;;  %1489 = vmatprep.subr.bf16.mxu1 %v1529_v6 }
  0x1e   : > { %1446 = vmatpush3.bf16.msra.mxu0 %v1529_v6  ;;  %1497 = vmatpush3.bf16.msra.mxu1 %v1529_v6 }
  0x1f   : > { %1447 = vmatprep.subr.bf16.mxu0 %v1530_v7  ;;  %1490 = vmatprep.subr.bf16.mxu1 %v1530_v7 }
  0x22   : > { %1448 = vmatpush3.bf16.msra.mxu0 %v1530_v7  ;;  %1498 = vmatpush3.bf16.msra.mxu1 %v1530_v7 }
  0x23   : > { %1449 = vmatprep.subr.bf16.mxu0 %v1531_v8  ;;  %1491 = vmatprep.subr.bf16.mxu1 %v1531_v8 }
  0x26   : > { %1450 = vmatpush3.bf16.msra.mxu0 %v1531_v8  ;;  %1499 = vmatpush3.bf16.msra.mxu1 %v1531_v8 }
  0x27   : > { %1451 = vmatprep.subr.bf16.mxu0 %v1532_v9  ;;  %1492 = vmatprep.subr.bf16.mxu1 %v1532_v9 }
  0x2a   : > { %1452 = vmatpush3.bf16.msra.mxu0 %v1532_v9  ;;  %1500 = vmatpush3.bf16.msra.mxu1 %v1532_v9 }
  0x2d   : > { %1454 = vmatmul.mubr.bf16.vlgmr.msra.gmra.mxu0 %v1535_v10  ;;  %1470 = vmatmul.mubr.bf16.vlgmr.msra.gmra.mxu1 %v1536_v11 }
  0x2e   : > { %1457 = vmatprep.mubr.bf16.mxu0 %v1537_v12  ;;  %1473 = vmatprep.mubr.bf16.mxu1 %v1538_v13 }
  0x35   : > { %1458 = vmatmul.mubr.bf16.gmra.mxu0 %v1539_v14  ;;  %1474 = vmatmul.mubr.bf16.gmra.mxu1 %v1540_v15 }
  0x36   : > { %1461 = vmatprep.mubr.bf16.mxu0 %v1541_v16  ;;  %1477 = vmatprep.mubr.bf16.mxu1 %v1542_v17 }
  0x3d   : > { %1462 = vmatmul.mubr.bf16.gmra.mxu0 %v1543_v18  ;;  %1478 = vmatmul.mubr.bf16.gmra.mxu1 %v1544_v19 }
  0x3e   : > { %1465 = vmatprep.mubr.bf16.mxu0 %v1545_v20  ;;  %1481 = vmatprep.mubr.bf16.mxu1 %v1546_v21 }
  0x45   : > { %1466 = vmatmul.mubr.bf16.gmra.mxu0 %v1547_v22  ;;  %1482 = vmatmul.mubr.bf16.gmra.mxu1 %v1548_v23 }
  0xed   : > { %v1455_v25 = vpop.f32.mrf.mxu0  ;;  %v1471_v26 = vpop.f32.mrf.mxu1 }
  0xee   : > { %v830_v27 = vmul.f32 %v1455_v25, %v1669_v24  ;;  %v846_v28 = vmul.f32 %v1471_v26, %v1669_v24 }
  0xef   : > { %v595_v30 = vpop.f32.mrf.mxu0  ;;  %v659_v31 = vpop.f32.mrf.mxu1 }
  0xf0   : > { %v828_v32 = vmul.f32 %v1669_v24, %v595_v30  ;;  %v844_v33 = vmul.f32 %v1669_v24, %v659_v31  ;;  %v869_v36 = vadd.f32 %v1676_v29, %v830_v27  ;;  %v885_v37 = vadd.f32 %v1676_v29, %v846_v28 }
  0xf1   : > { %v1456_v34 = vpop.f32.mrf.mxu0  ;;  %v1472_v35 = vpop.f32.mrf.mxu1 }
  0xf2   : > { %v831_v38 = vmul.f32 %v1456_v34, %v1669_v24  ;;  %v847_v39 = vmul.f32 %v1472_v35, %v1669_v24  ;;  %v867_v42 = vadd.f32 %v1676_v29, %v828_v32  ;;  %v883_v43 = vadd.f32 %v1676_v29, %v844_v33 }
  0xf3   : > { %v598_v40 = vpop.f32.mrf.mxu0  ;;  %v662_v41 = vpop.f32.mrf.mxu1  ;;  %v901_v50 = vmax.f32 %v869_v36, 0.0  ;;  %v917_v51 = vmax.f32 %v885_v37, 0.0 }
  0xf4   : > { %v829_v44 = vmul.f32 %v1669_v24, %v598_v40  ;;  %v845_v45 = vmul.f32 %v1669_v24, %v662_v41  ;;  %v870_v46 = vadd.f32 %v1676_v29, %v831_v38  ;;  %v886_v47 = vadd.f32 %v1676_v29, %v847_v39 }
  0xf5   : > { %v1459_v48 = vpop.f32.mrf.mxu0  ;;  %v1475_v49 = vpop.f32.mrf.mxu1  ;;  %v899_v60 = vmax.f32 %v867_v42, 0.0  ;;  %v915_v61 = vmax.f32 %v883_v43, 0.0 }
  0xf6   : > { %v868_v52 = vadd.f32 %v1676_v29, %v829_v44  ;;  %v884_v53 = vadd.f32 %v1676_v29, %v845_v45  ;;  %v902_v54 = vmax.f32 %v870_v46, 0.0  ;;  %v918_v55 = vmax.f32 %v886_v47, 0.0 }
  0xf7   : > { %v834_v56 = vmul.f32 %v1459_v48, %v1669_v24  ;;  %v850_v57 = vmul.f32 %v1475_v49, %v1669_v24  ;;  %v611_v58 = vpop.f32.mrf.mxu0  ;;  %v675_v59 = vpop.f32.mrf.mxu1 }
  0xf8   : > { %v900_v62 = vmax.f32 %v868_v52, 0.0  ;;  %v916_v63 = vmax.f32 %v884_v53, 0.0  ;;  %v1326_v0 = vpack.c.bf16 %v902_v54, %v901_v50  ;;  %v1366_v1 = vpack.c.bf16 %v918_v55, %v917_v51 }
  0xf9   : > { %v832_v2 = vmul.f32 %v1669_v24, %v611_v58  ;;  %v848_v3 = vmul.f32 %v1669_v24, %v675_v59  ;;  %v1460_v4 = vpop.f32.mrf.mxu0  ;;  %v1476_v5 = vpop.f32.mrf.mxu1  ;;  %v873_v8 = vadd.f32 %v1676_v29, %v834_v56  ;;  %v889_v9 = vadd.f32 %v1676_v29, %v850_v57 }
  0xfa   : > { %v1321_v6 = vpack.c.bf16 %v900_v62, %v899_v60  ;;  %v1361_v7 = vpack.c.bf16 %v916_v63, %v915_v61  ;;  %1398 = vst [vmem:[%s1699_s24 + $0x8] sm:$0xff] %v1326_v0   ;;  %1406 = vst [vmem:[%s1699_s24 + $0x48] sm:$0xff] %v1366_v1   ;;  %v835_v10 = vmul.f32 %v1460_v4, %v1669_v24 }
  0xfb   : > { %v851_v11 = vmul.f32 %v1476_v5, %v1669_v24  ;;  %v614_v12 = vpop.f32.mrf.mxu0  ;;  %v678_v13 = vpop.f32.mrf.mxu1  ;;  %v871_v14 = vadd.f32 %v1676_v29, %v832_v2  ;;  %v887_v15 = vadd.f32 %v1676_v29, %v848_v3  ;;  %v905_v27 = vmax.f32 %v873_v8, 0.0 }
  0xfc   : > { %1322 = vst [vmem:[%s1699_s24] sm:$0xff] %v1321_v6   ;;  %1405 = vst [vmem:[%s1699_s24 + $0x40] sm:$0xff] %v1361_v7   ;;  %v833_v16 = vmul.f32 %v1669_v24, %v614_v12  ;;  %v849_v17 = vmul.f32 %v1669_v24, %v678_v13  ;;  %v874_v18 = vadd.f32 %v1676_v29, %v835_v10  ;;  %v921_v28 = vmax.f32 %v889_v9, 0.0 }
  0xfd   : > { %v890_v19 = vadd.f32 %v1676_v29, %v851_v11  ;;  %v1463_v20 = vpop.f32.mrf.mxu0  ;;  %v1479_v21 = vpop.f32.mrf.mxu1  ;;  %v903_v34 = vmax.f32 %v871_v14, 0.0  ;;  %v919_v35 = vmax.f32 %v887_v15, 0.0 }
  0xfe   : > { %v872_v22 = vadd.f32 %v1676_v29, %v833_v16  ;;  %v888_v23 = vadd.f32 %v1676_v29, %v849_v17  ;;  %v838_v25 = vmul.f32 %v1463_v20, %v1669_v24  ;;  %v854_v26 = vmul.f32 %v1479_v21, %v1669_v24 }
  0xff   : > { %v906_v30 = vmax.f32 %v874_v18, 0.0  ;;  %v922_v31 = vmax.f32 %v890_v19, 0.0  ;;  %v627_v32 = vpop.f32.mrf.mxu0  ;;  %v691_v33 = vpop.f32.mrf.mxu1 }
 0x100   : > { %v904_v36 = vmax.f32 %v872_v22, 0.0  ;;  %v920_v37 = vmax.f32 %v888_v23, 0.0  ;;  %v836_v40 = vmul.f32 %v1669_v24, %v627_v32  ;;  %v852_v41 = vmul.f32 %v1669_v24, %v691_v33 }
 0x101   : > { %v1336_v38 = vpack.c.bf16 %v906_v30, %v905_v27  ;;  %v1376_v39 = vpack.c.bf16 %v922_v31, %v921_v28  ;;  %v1464_v42 = vpop.f32.mrf.mxu0  ;;  %v1480_v43 = vpop.f32.mrf.mxu1  ;;  %v877_v46 = vadd.f32 %v1676_v29, %v838_v25  ;;  %v893_v47 = vadd.f32 %v1676_v29, %v854_v26 }
 0x102   : > { %v1331_v44 = vpack.c.bf16 %v904_v36, %v903_v34  ;;  %v1371_v45 = vpack.c.bf16 %v920_v37, %v919_v35  ;;  %v839_v48 = vmul.f32 %v1464_v42, %v1669_v24  ;;  %v855_v49 = vmul.f32 %v1480_v43, %v1669_v24 }
 0x103   : > { %1400 = vst [vmem:[%s1699_s24 + $0x18] sm:$0xff] %v1336_v38   ;;  %1408 = vst [vmem:[%s1699_s24 + $0x58] sm:$0xff] %v1376_v39   ;;  %v630_v50 = vpop.f32.mrf.mxu0  ;;  %v694_v51 = vpop.f32.mrf.mxu1  ;;  %v875_v52 = vadd.f32 %v1676_v29, %v836_v40  ;;  %v891_v53 = vadd.f32 %v1676_v29, %v852_v41  ;;  %v909_v60 = vmax.f32 %v877_v46, 0.0  ;;  %v925_v61 = vmax.f32 %v893_v47, 0.0 }
 0x104   : > { %1399 = vst [vmem:[%s1699_s24 + $0x10] sm:$0xff] %v1331_v44   ;;  %1407 = vst [vmem:[%s1699_s24 + $0x50] sm:$0xff] %v1371_v45   ;;  %v837_v54 = vmul.f32 %v1669_v24, %v630_v50  ;;  %v853_v55 = vmul.f32 %v1669_v24, %v694_v51  ;;  %v878_v56 = vadd.f32 %v1676_v29, %v839_v48 }
 0x105   : > { %v894_v57 = vadd.f32 %v1676_v29, %v855_v49  ;;  %v1467_v58 = vpop.f32.mrf.mxu0  ;;  %v1483_v59 = vpop.f32.mrf.mxu1  ;;  %v907_v6 = vmax.f32 %v875_v52, 0.0  ;;  %v923_v7 = vmax.f32 %v891_v53, 0.0 }
 0x106   : > { %v876_v62 = vadd.f32 %v1676_v29, %v837_v54  ;;  %v892_v63 = vadd.f32 %v1676_v29, %v853_v55  ;;  %v910_v0 = vmax.f32 %v878_v56, 0.0  ;;  %v842_v2 = vmul.f32 %v1467_v58, %v1669_v24 }
 0x107   : > { %v926_v1 = vmax.f32 %v894_v57, 0.0  ;;  %v858_v3 = vmul.f32 %v1483_v59, %v1669_v24  ;;  %v643_v4 = vpop.f32.mrf.mxu0  ;;  %v707_v5 = vpop.f32.mrf.mxu1 }
 0x108   : > { %v908_v8 = vmax.f32 %v876_v62, 0.0  ;;  %v924_v9 = vmax.f32 %v892_v63, 0.0  ;;  %v1346_v10 = vpack.c.bf16 %v910_v0, %v909_v60  ;;  %v840_v12 = vmul.f32 %v1669_v24, %v643_v4 }
 0x109   : > { %v1386_v11 = vpack.c.bf16 %v926_v1, %v925_v61  ;;  %v856_v13 = vmul.f32 %v1669_v24, %v707_v5  ;;  %v1468_v14 = vpop.f32.mrf.mxu0  ;;  %v1484_v15 = vpop.f32.mrf.mxu1  ;;  %v881_v18 = vadd.f32 %v1676_v29, %v842_v2  ;;  %v897_v19 = vadd.f32 %v1676_v29, %v858_v3 }
 0x10a   : > { %v1341_v16 = vpack.c.bf16 %v908_v8, %v907_v6  ;;  %v1381_v17 = vpack.c.bf16 %v924_v9, %v923_v7  ;;  %1402 = vst [vmem:[%s1699_s24 + $0x28] sm:$0xff] %v1346_v10   ;;  %v843_v20 = vmul.f32 %v1468_v14, %v1669_v24  ;;  %v859_v21 = vmul.f32 %v1484_v15, %v1669_v24 }
 0x10b   : > { %1410 = vst [vmem:[%s1699_s24 + $0x68] sm:$0xff] %v1386_v11   ;;  %v646_v22 = vpop.f32.mrf.mxu0  ;;  %v710_v23 = vpop.f32.mrf.mxu1  ;;  %v879_v25 = vadd.f32 %v1676_v29, %v840_v12  ;;  %v895_v26 = vadd.f32 %v1676_v29, %v856_v13  ;;  %v913_v34 = vmax.f32 %v881_v18, 0.0  ;;  %v929_v35 = vmax.f32 %v897_v19, 0.0 }
 0x10c   : > { %1401 = vst [vmem:[%s1699_s24 + $0x20] sm:$0xff] %v1341_v16   ;;  %1409 = vst [vmem:[%s1699_s24 + $0x60] sm:$0xff] %v1381_v17   ;;  %v841_v27 = vmul.f32 %v1669_v24, %v646_v22  ;;  %v857_v28 = vmul.f32 %v1669_v24, %v710_v23  ;;  %v882_v30 = vadd.f32 %v1676_v29, %v843_v20 }
 0x10d   : > { %v898_v31 = vadd.f32 %v1676_v29, %v859_v21  ;;  %v911_v38 = vmax.f32 %v879_v25, 0.0  ;;  %v927_v39 = vmax.f32 %v895_v26, 0.0 }
 0x10e   : > { %v880_v32 = vadd.f32 %v1676_v29, %v841_v27  ;;  %v896_v33 = vadd.f32 %v1676_v29, %v857_v28  ;;  %v914_v36 = vmax.f32 %v882_v30, 0.0 }
 0x10f   : > { %v930_v37 = vmax.f32 %v898_v31, 0.0 }
 0x110   : > { %v912_v40 = vmax.f32 %v880_v32, 0.0  ;;  %v928_v24 = vmax.f32 %v896_v33, 0.0  ;;  %v1356_v41 = vpack.c.bf16 %v914_v36, %v913_v34 }
 0x111   : > { %v1396_v42 = vpack.c.bf16 %v930_v37, %v929_v35 }
 0x112   : > { %v1351_v43 = vpack.c.bf16 %v912_v40, %v911_v38  ;;  %v1391_v44 = vpack.c.bf16 %v928_v24, %v927_v39  ;;  %1404 = vst [vmem:[%s1699_s24 + $0x38] sm:$0xff] %v1356_v41  }
 0x113   : > { %1412 = vst [vmem:[%s1699_s24 + $0x78] sm:$0xff] %v1396_v42  }
 0x114   : > { %1403 = vst [vmem:[%s1699_s24 + $0x30] sm:$0xff] %v1351_v43   ;;  %1411 = vst [vmem:[%s1699_s24 + $0x70] sm:$0xff] %v1391_v44  }
 0x115 PF: > { %s14_s17 = sadd.s32 1, %s1571_s17   ;;  %s1777_s15 = smov %s1567_s16 }
 0x116   : > { %p11_p5 = scmp.ge.s32.totalorder %s14_s17, 4   ;;  %s1778_s16 = smov %s1780_s18 }
 0x118   :  { %13 = sbr.rel (!%p11_p5) target bundleno = 2 (0x2), region = 83 }

// kernel: simclr_forward.25
= control target key start
LH: loop header
LB: loop body
LE: loop exit
PB: predicated region body
PF: predicated region fallthrough
CT: control target
= control target key end

     0   :  { %vm153_vm0 = vcmask 1043456   ;;  %s1400_s0 = inlined_call_operand.vmem [shape: bf16[9,128,128], index: 0, kind: input, shape index: {}]   ;;  %s1401_s1 = inlined_call_operand.vmem [shape: bf16[128,128], index: 1, kind: output, shape index: {}]  }
   0x1   :  { %v9_v0 = vld [vmem:[%s1400_s0] sm:$0xf]  ;;  %v10_v3 = vld [vmem:[%s1400_s0 + $0x4] sm:$0xf]  ;;  %v11_v39 = vld [vmem:[%s1400_s0 + $0x8] sm:$0xf] }
   0x2   :  { %v25_v1 = vld [vmem:[%s1400_s0 + $0x40] sm:$0xf]  ;;  %v26_v4 = vld [vmem:[%s1400_s0 + $0x44] sm:$0xf]  ;;  %v156_v7 = vsel %vm153_vm0, %v9_v0, 4286644096 }
   0x3   :  { %v41_v2 = vld [vmem:[%s1400_s0 + $0x80] sm:$0xf]  ;;  %v42_v5 = vld [vmem:[%s1400_s0 + $0x84] sm:$0xf]  ;;  %v159_v8 = vsel %vm153_vm0, %v25_v1, 4286644096 }
   0x4   :  { %v57_v6 = vld [vmem:[%s1400_s0 + $0xc0] sm:$0xf]  ;;  %v163_v9 = vsel %vm153_vm0, %v41_v2, 4286644096  ;;  %v161_v11 = vmax.bf16 %v159_v8, %v156_v7  ;;  %v58_v12 = vld [vmem:[%s1400_s0 + $0xc4] sm:$0xf] }
   0x5   :  { %v73_v10 = vld [vmem:[%s1400_s0 + $0x100] sm:$0xf]  ;;  %v167_v14 = vsel %vm153_vm0, %v57_v6, 4286644096  ;;  %v191_v16 = vsel %vm153_vm0, %v10_v3, 4286644096 }
   0x6   :  { %v89_v13 = vld [vmem:[%s1400_s0 + $0x140] sm:$0xf]  ;;  %v165_v15 = vmax.bf16 %v163_v9, %v161_v11  ;;  %v194_v17 = vsel %vm153_vm0, %v26_v4, 4286644096  ;;  %v198_v18 = vsel %vm153_vm0, %v42_v5, 4286644096 }
   0x7   :  { %v74_v19 = vld [vmem:[%s1400_s0 + $0x104] sm:$0xf]  ;;  %v171_v20 = vsel %vm153_vm0, %v73_v10, 4286644096  ;;  %v196_v21 = vmax.bf16 %v194_v17, %v191_v16  ;;  %v105_v23 = vld [vmem:[%s1400_s0 + $0x180] sm:$0xf] }
   0x8   :  { %v90_v22 = vld [vmem:[%s1400_s0 + $0x144] sm:$0xf]  ;;  %v169_v24 = vmax.bf16 %v167_v14, %v165_v15  ;;  %v202_v25 = vsel %vm153_vm0, %v58_v12, 4286644096  ;;  %v175_v27 = vsel %vm153_vm0, %v89_v13, 4286644096 }
   0x9   :  { %v106_v26 = vld [vmem:[%s1400_s0 + $0x184] sm:$0xf]  ;;  %v200_v28 = vmax.bf16 %v198_v18, %v196_v21  ;;  %v121_v29 = vld [vmem:[%s1400_s0 + $0x1c0] sm:$0xf]  ;;  %v206_v32 = vsel %vm153_vm0, %v74_v19, 4286644096 }
   0xa   :  { %v137_v30 = vld [vmem:[%s1400_s0 + $0x200] sm:$0xf]  ;;  %v173_v31 = vmax.bf16 %v171_v20, %v169_v24  ;;  %v122_v33 = vld [vmem:[%s1400_s0 + $0x1c4] sm:$0xf]  ;;  %v179_v34 = vsel %vm153_vm0, %v105_v23, 4286644096 }
   0xb   :  { %v204_v35 = vmax.bf16 %v202_v25, %v200_v28  ;;  %v210_v36 = vsel %vm153_vm0, %v90_v22, 4286644096  ;;  %v138_v37 = vld [vmem:[%s1400_s0 + $0x204] sm:$0xf]  ;;  %v27_v40 = vld [vmem:[%s1400_s0 + $0x48] sm:$0xf] }
   0xc   :  { %v177_v38 = vmax.bf16 %v175_v27, %v173_v31  ;;  %v43_v41 = vld [vmem:[%s1400_s0 + $0x88] sm:$0xf]  ;;  %v183_v42 = vsel %vm153_vm0, %v121_v29, 4286644096  ;;  %v187_v43 = vsel %vm153_vm0, %v137_v30, 4286644096 }
   0xd   :  { %v208_v44 = vmax.bf16 %v206_v32, %v204_v35  ;;  %v214_v45 = vsel %vm153_vm0, %v106_v26, 4286644096  ;;  %v12_v47 = vld [vmem:[%s1400_s0 + $0xc] sm:$0xf]  ;;  %v59_v48 = vld [vmem:[%s1400_s0 + $0xc8] sm:$0xf] }
   0xe   :  { %v181_v46 = vmax.bf16 %v179_v34, %v177_v38  ;;  %v75_v49 = vld [vmem:[%s1400_s0 + $0x108] sm:$0xf]  ;;  %v226_v51 = vsel %vm153_vm0, %v11_v39, 4286644096  ;;  %v229_v52 = vsel %vm153_vm0, %v27_v40, 4286644096 }
   0xf   :  { %v212_v50 = vmax.bf16 %v210_v36, %v208_v44  ;;  %v233_v53 = vsel %vm153_vm0, %v43_v41, 4286644096  ;;  %v218_v55 = vsel %vm153_vm0, %v122_v33, 4286644096  ;;  %v28_v56 = vld [vmem:[%s1400_s0 + $0x4c] sm:$0xf]  ;;  %v231_v58 = vmax.bf16 %v229_v52, %v226_v51 }
  0x10   :  { %v185_v54 = vmax.bf16 %v183_v42, %v181_v46  ;;  %v44_v57 = vld [vmem:[%s1400_s0 + $0x8c] sm:$0xf]  ;;  %v222_v60 = vsel %vm153_vm0, %v138_v37, 4286644096  ;;  %v237_v62 = vsel %vm153_vm0, %v59_v48, 4286644096 }
  0x11   :  { %v216_v59 = vmax.bf16 %v214_v45, %v212_v50  ;;  %v60_v61 = vld [vmem:[%s1400_s0 + $0xcc] sm:$0xf]  ;;  %v91_v63 = vld [vmem:[%s1400_s0 + $0x148] sm:$0xf]  ;;  %v235_v0 = vmax.bf16 %v233_v53, %v231_v58  ;;  %v241_v1 = vsel %vm153_vm0, %v75_v49, 4286644096 }
  0x12   :  { %v261_v2 = vsel %vm153_vm0, %v12_v47, 4286644096  ;;  %v189_v3 = vmax.bf16 %v187_v43, %v185_v54  ;;  %v264_v5 = vsel %vm153_vm0, %v28_v56, 4286644096  ;;  %v268_v6 = vsel %vm153_vm0, %v44_v57, 4286644096 }
  0x13   :  { %v220_v4 = vmax.bf16 %v218_v55, %v216_v59  ;;  %v76_v7 = vld [vmem:[%s1400_s0 + $0x10c] sm:$0xf]  ;;  %v107_v8 = vld [vmem:[%s1400_s0 + $0x188] sm:$0xf]  ;;  %v239_v9 = vmax.bf16 %v237_v62, %v235_v0  ;;  %v266_v10 = vmax.bf16 %v264_v5, %v261_v2  ;;  %v245_v12 = vsel %vm153_vm0, %v91_v63, 4286644096 }
  0x14   :  { %v272_v13 = vsel %vm153_vm0, %v60_v61, 4286644096  ;;  %v92_v14 = vld [vmem:[%s1400_s0 + $0x14c] sm:$0xf]  ;;  %v123_v16 = vld [vmem:[%s1400_s0 + $0x1c8] sm:$0xf] }
  0x15   :  { %v224_v11 = vmax.bf16 %v222_v60, %v220_v4  ;;  %v108_v15 = vld [vmem:[%s1400_s0 + $0x18c] sm:$0xf]  ;;  %v243_v17 = vmax.bf16 %v241_v1, %v239_v9  ;;  %v270_v18 = vmax.bf16 %v268_v6, %v266_v10  ;;  %v139_v20 = vld [vmem:[%s1400_s0 + $0x208] sm:$0xf]  ;;  %v249_v21 = vsel %vm153_vm0, %v107_v8, 4286644096 }
  0x16   :  { %v276_v22 = vsel %vm153_vm0, %v76_v7, 4286644096  ;;  %v124_v23 = vld [vmem:[%s1400_s0 + $0x1cc] sm:$0xf]  ;;  %v13_v26 = vld [vmem:[%s1400_s0 + $0x10] sm:$0xf] }
  0x17   :  { %v775_v19 = vcombine.low %v189_v3, %v224_v11  ;;  %v247_v24 = vmax.bf16 %v245_v12, %v243_v17  ;;  %v274_v25 = vmax.bf16 %v272_v13, %v270_v18  ;;  %v29_v27 = vld [vmem:[%s1400_s0 + $0x50] sm:$0xf]  ;;  %v140_v29 = vld [vmem:[%s1400_s0 + $0x20c] sm:$0xf]  ;;  %v253_v30 = vsel %vm153_vm0, %v123_v16, 4286644096 }
  0x18   :  { %v45_v28 = vld [vmem:[%s1400_s0 + $0x90] sm:$0xf]  ;;  %v280_v31 = vsel %vm153_vm0, %v92_v14, 4286644096  ;;  %v257_v33 = vsel %vm153_vm0, %v139_v20, 4286644096 }
  0x19   :  { %739 = vst [vmem:[%s1401_s1] sm:$0xff] %v775_v19   ;;  %v251_v32 = vmax.bf16 %v249_v21, %v247_v24  ;;  %v278_v34 = vmax.bf16 %v276_v22, %v274_v25  ;;  %v284_v35 = vsel %vm153_vm0, %v108_v15, 4286644096  ;;  %v61_v36 = vld [vmem:[%s1400_s0 + $0xd0] sm:$0xf]  ;;  %v296_v37 = vsel %vm153_vm0, %v13_v26, 4286644096 }
  0x1a   :  { %v299_v38 = vsel %vm153_vm0, %v29_v27, 4286644096  ;;  %v303_v39 = vsel %vm153_vm0, %v45_v28, 4286644096  ;;  %v14_v42 = vld [vmem:[%s1400_s0 + $0x14] sm:$0xf] }
  0x1b   :  { %v255_v40 = vmax.bf16 %v253_v30, %v251_v32  ;;  %v282_v41 = vmax.bf16 %v280_v31, %v278_v34  ;;  %v30_v43 = vld [vmem:[%s1400_s0 + $0x54] sm:$0xf]  ;;  %v77_v44 = vld [vmem:[%s1400_s0 + $0x110] sm:$0xf]  ;;  %v301_v45 = vmax.bf16 %v299_v38, %v296_v37  ;;  %v288_v46 = vsel %vm153_vm0, %v124_v23, 4286644096 }
  0x1c   :  { %v46_v47 = vld [vmem:[%s1400_s0 + $0x94] sm:$0xf]  ;;  %v307_v48 = vsel %vm153_vm0, %v61_v36, 4286644096  ;;  %v292_v50 = vsel %vm153_vm0, %v140_v29, 4286644096 }
  0x1d   :  { %v286_v49 = vmax.bf16 %v284_v35, %v282_v41  ;;  %v62_v51 = vld [vmem:[%s1400_s0 + $0xd4] sm:$0xf]  ;;  %v93_v52 = vld [vmem:[%s1400_s0 + $0x150] sm:$0xf]  ;;  %v305_v53 = vmax.bf16 %v303_v39, %v301_v45  ;;  %v259_v54 = vmax.bf16 %v257_v33, %v255_v40  ;;  %v311_v55 = vsel %vm153_vm0, %v77_v44, 4286644096 }
  0x1e   :  { %v331_v56 = vsel %vm153_vm0, %v14_v42, 4286644096  ;;  %v334_v57 = vsel %vm153_vm0, %v30_v43, 4286644096  ;;  %v78_v59 = vld [vmem:[%s1400_s0 + $0x114] sm:$0xf] }
  0x1f   :  { %v290_v58 = vmax.bf16 %v288_v46, %v286_v49  ;;  %v109_v60 = vld [vmem:[%s1400_s0 + $0x190] sm:$0xf]  ;;  %v309_v61 = vmax.bf16 %v307_v48, %v305_v53  ;;  %v336_v62 = vmax.bf16 %v334_v57, %v331_v56  ;;  %v338_v63 = vsel %vm153_vm0, %v46_v47, 4286644096  ;;  %v94_v3 = vld [vmem:[%s1400_s0 + $0x154] sm:$0xf] }
  0x20   :  { %v315_v0 = vsel %vm153_vm0, %v93_v52, 4286644096  ;;  %v342_v1 = vsel %vm153_vm0, %v62_v51, 4286644096  ;;  %v110_v4 = vld [vmem:[%s1400_s0 + $0x194] sm:$0xf] }
  0x21   :  { %v294_v2 = vmax.bf16 %v292_v50, %v290_v58  ;;  %v125_v5 = vld [vmem:[%s1400_s0 + $0x1d0] sm:$0xf]  ;;  %v313_v6 = vmax.bf16 %v311_v55, %v309_v61  ;;  %v340_v7 = vmax.bf16 %v338_v63, %v336_v62  ;;  %v319_v9 = vsel %vm153_vm0, %v109_v60, 4286644096  ;;  %v126_v12 = vld [vmem:[%s1400_s0 + $0x1d4] sm:$0xf] }
  0x22   :  { %v141_v8 = vld [vmem:[%s1400_s0 + $0x210] sm:$0xf]  ;;  %v346_v10 = vsel %vm153_vm0, %v78_v59, 4286644096  ;;  %v15_v15 = vld [vmem:[%s1400_s0 + $0x18] sm:$0xf] }
  0x23   :  { %v776_v11 = vcombine.low %v259_v54, %v294_v2  ;;  %v317_v13 = vmax.bf16 %v315_v0, %v313_v6  ;;  %v344_v14 = vmax.bf16 %v342_v1, %v340_v7  ;;  %v31_v16 = vld [vmem:[%s1400_s0 + $0x58] sm:$0xf]  ;;  %v142_v18 = vld [vmem:[%s1400_s0 + $0x214] sm:$0xf]  ;;  %v323_v19 = vsel %vm153_vm0, %v125_v5, 4286644096 }
  0x24   :  { %v47_v17 = vld [vmem:[%s1400_s0 + $0x98] sm:$0xf]  ;;  %v350_v20 = vsel %vm153_vm0, %v94_v3, 4286644096  ;;  %v354_v23 = vsel %vm153_vm0, %v110_v4, 4286644096 }
  0x25   :  { %777 = vst [vmem:[%s1401_s1 + $0x8] sm:$0xff] %v776_v11   ;;  %v321_v21 = vmax.bf16 %v319_v9, %v317_v13  ;;  %v348_v22 = vmax.bf16 %v346_v10, %v344_v14  ;;  %v16_v24 = vld [vmem:[%s1400_s0 + $0x1c] sm:$0xf]  ;;  %v63_v25 = vld [vmem:[%s1400_s0 + $0xd8] sm:$0xf] }
  0x26   :  { %v366_v26 = vsel %vm153_vm0, %v15_v15, 4286644096  ;;  %v369_v27 = vsel %vm153_vm0, %v31_v16, 4286644096  ;;  %v373_v28 = vsel %vm153_vm0, %v47_v17, 4286644096 }
  0x27   :  { %v325_v29 = vmax.bf16 %v323_v19, %v321_v21  ;;  %v327_v30 = vsel %vm153_vm0, %v141_v8, 4286644096  ;;  %v352_v31 = vmax.bf16 %v350_v20, %v348_v22  ;;  %v32_v32 = vld [vmem:[%s1400_s0 + $0x5c] sm:$0xf]  ;;  %v79_v33 = vld [vmem:[%s1400_s0 + $0x118] sm:$0xf]  ;;  %v371_v34 = vmax.bf16 %v369_v27, %v366_v26 }
  0x28   :  { %v358_v35 = vsel %vm153_vm0, %v126_v12, 4286644096  ;;  %v48_v36 = vld [vmem:[%s1400_s0 + $0x9c] sm:$0xf]  ;;  %v377_v37 = vsel %vm153_vm0, %v63_v25, 4286644096 }
  0x29   :  { %v356_v38 = vmax.bf16 %v354_v23, %v352_v31  ;;  %v362_v39 = vsel %vm153_vm0, %v142_v18, 4286644096  ;;  %v64_v40 = vld [vmem:[%s1400_s0 + $0xdc] sm:$0xf]  ;;  %v95_v41 = vld [vmem:[%s1400_s0 + $0x158] sm:$0xf]  ;;  %v375_v42 = vmax.bf16 %v373_v28, %v371_v34  ;;  %v329_v43 = vmax.bf16 %v327_v30, %v325_v29 }
  0x2a   :  { %v381_v44 = vsel %vm153_vm0, %v79_v33, 4286644096  ;;  %v401_v45 = vsel %vm153_vm0, %v16_v24, 4286644096  ;;  %v404_v46 = vsel %vm153_vm0, %v32_v32, 4286644096 }
  0x2b   :  { %v360_v47 = vmax.bf16 %v358_v35, %v356_v38  ;;  %v80_v48 = vld [vmem:[%s1400_s0 + $0x11c] sm:$0xf]  ;;  %v111_v49 = vld [vmem:[%s1400_s0 + $0x198] sm:$0xf]  ;;  %v379_v50 = vmax.bf16 %v377_v37, %v375_v42  ;;  %v406_v51 = vmax.bf16 %v404_v46, %v401_v45  ;;  %v408_v52 = vsel %vm153_vm0, %v48_v36, 4286644096 }
  0x2c   :  { %v385_v53 = vsel %vm153_vm0, %v95_v41, 4286644096  ;;  %v412_v54 = vsel %vm153_vm0, %v64_v40, 4286644096  ;;  %v96_v56 = vld [vmem:[%s1400_s0 + $0x15c] sm:$0xf] }
  0x2d   :  { %v364_v55 = vmax.bf16 %v362_v39, %v360_v47  ;;  %v112_v57 = vld [vmem:[%s1400_s0 + $0x19c] sm:$0xf]  ;;  %v127_v58 = vld [vmem:[%s1400_s0 + $0x1d8] sm:$0xf]  ;;  %v383_v59 = vmax.bf16 %v381_v44, %v379_v50  ;;  %v410_v60 = vmax.bf16 %v408_v52, %v406_v51  ;;  %v389_v62 = vsel %vm153_vm0, %v111_v49, 4286644096 }
  0x2e   :  { %v143_v61 = vld [vmem:[%s1400_s0 + $0x218] sm:$0xf]  ;;  %v416_v63 = vsel %vm153_vm0, %v80_v48, 4286644096  ;;  %v128_v1 = vld [vmem:[%s1400_s0 + $0x1dc] sm:$0xf] }
  0x2f   :  { %v778_v0 = vcombine.low %v329_v43, %v364_v55  ;;  %v387_v2 = vmax.bf16 %v385_v53, %v383_v59  ;;  %v414_v3 = vmax.bf16 %v412_v54, %v410_v60  ;;  %v17_v4 = vld [vmem:[%s1400_s0 + $0x20] sm:$0xf]  ;;  %v144_v7 = vld [vmem:[%s1400_s0 + $0x21c] sm:$0xf]  ;;  %v393_v8 = vsel %vm153_vm0, %v127_v58, 4286644096 }
  0x30   :  { %v33_v5 = vld [vmem:[%s1400_s0 + $0x60] sm:$0xf]  ;;  %v420_v9 = vsel %vm153_vm0, %v96_v56, 4286644096  ;;  %v424_v12 = vsel %vm153_vm0, %v112_v57, 4286644096 }
  0x31   :  { %v49_v6 = vld [vmem:[%s1400_s0 + $0xa0] sm:$0xf]  ;;  %779 = vst [vmem:[%s1401_s1 + $0x10] sm:$0xff] %v778_v0   ;;  %v391_v10 = vmax.bf16 %v389_v62, %v387_v2  ;;  %v418_v11 = vmax.bf16 %v416_v63, %v414_v3  ;;  %v18_v13 = vld [vmem:[%s1400_s0 + $0x24] sm:$0xf] }
  0x32   :  { %v65_v14 = vld [vmem:[%s1400_s0 + $0xe0] sm:$0xf]  ;;  %v436_v15 = vsel %vm153_vm0, %v17_v4, 4286644096  ;;  %v439_v16 = vsel %vm153_vm0, %v33_v5, 4286644096 }
  0x33   :  { %v443_v17 = vsel %vm153_vm0, %v49_v6, 4286644096  ;;  %v395_v18 = vmax.bf16 %v393_v8, %v391_v10  ;;  %v397_v19 = vsel %vm153_vm0, %v143_v61, 4286644096  ;;  %v422_v20 = vmax.bf16 %v420_v9, %v418_v11  ;;  %v34_v21 = vld [vmem:[%s1400_s0 + $0x64] sm:$0xf] }
  0x34   :  { %v81_v22 = vld [vmem:[%s1400_s0 + $0x120] sm:$0xf]  ;;  %v441_v23 = vmax.bf16 %v439_v16, %v436_v15  ;;  %v428_v24 = vsel %vm153_vm0, %v128_v1, 4286644096  ;;  %v50_v25 = vld [vmem:[%s1400_s0 + $0xa4] sm:$0xf] }
  0x35   :  { %v447_v26 = vsel %vm153_vm0, %v65_v14, 4286644096  ;;  %v426_v27 = vmax.bf16 %v424_v12, %v422_v20  ;;  %v432_v28 = vsel %vm153_vm0, %v144_v7, 4286644096  ;;  %v66_v29 = vld [vmem:[%s1400_s0 + $0xe4] sm:$0xf]  ;;  %v399_v32 = vmax.bf16 %v397_v19, %v395_v18 }
  0x36   :  { %v97_v30 = vld [vmem:[%s1400_s0 + $0x160] sm:$0xf]  ;;  %v445_v31 = vmax.bf16 %v443_v17, %v441_v23  ;;  %v451_v33 = vsel %vm153_vm0, %v81_v22, 4286644096  ;;  %v471_v34 = vsel %vm153_vm0, %v18_v13, 4286644096 }
  0x37   :  { %v474_v35 = vsel %vm153_vm0, %v34_v21, 4286644096  ;;  %v430_v36 = vmax.bf16 %v428_v24, %v426_v27  ;;  %v82_v37 = vld [vmem:[%s1400_s0 + $0x124] sm:$0xf]  ;;  %v113_v38 = vld [vmem:[%s1400_s0 + $0x1a0] sm:$0xf] }
  0x38   :  { %v449_v39 = vmax.bf16 %v447_v26, %v445_v31  ;;  %v476_v40 = vmax.bf16 %v474_v35, %v471_v34  ;;  %v478_v41 = vsel %vm153_vm0, %v50_v25, 4286644096  ;;  %v455_v42 = vsel %vm153_vm0, %v97_v30, 4286644096  ;;  %v98_v45 = vld [vmem:[%s1400_s0 + $0x164] sm:$0xf] }
  0x39   :  { %v482_v43 = vsel %vm153_vm0, %v66_v29, 4286644096  ;;  %v434_v44 = vmax.bf16 %v432_v28, %v430_v36  ;;  %v114_v46 = vld [vmem:[%s1400_s0 + $0x1a4] sm:$0xf]  ;;  %v129_v47 = vld [vmem:[%s1400_s0 + $0x1e0] sm:$0xf] }
  0x3a   :  { %v453_v48 = vmax.bf16 %v451_v33, %v449_v39  ;;  %v480_v49 = vmax.bf16 %v478_v41, %v476_v40  ;;  %v145_v50 = vld [vmem:[%s1400_s0 + $0x220] sm:$0xf]  ;;  %v459_v51 = vsel %vm153_vm0, %v113_v38, 4286644096  ;;  %v486_v52 = vsel %vm153_vm0, %v82_v37, 4286644096 }
  0x3b   :  { %v780_v53 = vcombine.low %v399_v32, %v434_v44  ;;  %v130_v54 = vld [vmem:[%s1400_s0 + $0x1e4] sm:$0xf]  ;;  %v19_v57 = vld [vmem:[%s1400_s0 + $0x28] sm:$0xf]  ;;  %v463_v61 = vsel %vm153_vm0, %v129_v47, 4286644096 }
  0x3c   :  { %v457_v55 = vmax.bf16 %v455_v42, %v453_v48  ;;  %v484_v56 = vmax.bf16 %v482_v43, %v480_v49  ;;  %v35_v58 = vld [vmem:[%s1400_s0 + $0x68] sm:$0xf]  ;;  %v146_v60 = vld [vmem:[%s1400_s0 + $0x224] sm:$0xf]  ;;  %v490_v62 = vsel %vm153_vm0, %v98_v45, 4286644096 }
  0x3d   :  { %v51_v59 = vld [vmem:[%s1400_s0 + $0xa8] sm:$0xf]  ;;  %781 = vst [vmem:[%s1401_s1 + $0x18] sm:$0xff] %v780_v53   ;;  %v494_v1 = vsel %vm153_vm0, %v114_v46, 4286644096 }
  0x3e   :  { %v461_v63 = vmax.bf16 %v459_v51, %v457_v55  ;;  %v488_v0 = vmax.bf16 %v486_v52, %v484_v56  ;;  %v20_v2 = vld [vmem:[%s1400_s0 + $0x2c] sm:$0xf]  ;;  %v67_v3 = vld [vmem:[%s1400_s0 + $0xe8] sm:$0xf]  ;;  %v506_v4 = vsel %vm153_vm0, %v19_v57, 4286644096 }
  0x3f   :  { %v509_v5 = vsel %vm153_vm0, %v35_v58, 4286644096  ;;  %v513_v6 = vsel %vm153_vm0, %v51_v59, 4286644096  ;;  %v467_v8 = vsel %vm153_vm0, %v145_v50, 4286644096 }
  0x40   :  { %v465_v7 = vmax.bf16 %v463_v61, %v461_v63  ;;  %v492_v9 = vmax.bf16 %v490_v62, %v488_v0  ;;  %v36_v10 = vld [vmem:[%s1400_s0 + $0x6c] sm:$0xf]  ;;  %v83_v11 = vld [vmem:[%s1400_s0 + $0x128] sm:$0xf]  ;;  %v511_v12 = vmax.bf16 %v509_v5, %v506_v4  ;;  %v498_v13 = vsel %vm153_vm0, %v130_v54, 4286644096 }
  0x41   :  { %v52_v14 = vld [vmem:[%s1400_s0 + $0xac] sm:$0xf]  ;;  %v517_v15 = vsel %vm153_vm0, %v67_v3, 4286644096  ;;  %v502_v17 = vsel %vm153_vm0, %v146_v60, 4286644096 }
  0x42   :  { %v496_v16 = vmax.bf16 %v494_v1, %v492_v9  ;;  %v68_v18 = vld [vmem:[%s1400_s0 + $0xec] sm:$0xf]  ;;  %v99_v19 = vld [vmem:[%s1400_s0 + $0x168] sm:$0xf]  ;;  %v515_v20 = vmax.bf16 %v513_v6, %v511_v12  ;;  %v469_v21 = vmax.bf16 %v467_v8, %v465_v7  ;;  %v521_v22 = vsel %vm153_vm0, %v83_v11, 4286644096 }
  0x43   :  { %v541_v23 = vsel %vm153_vm0, %v20_v2, 4286644096  ;;  %v544_v24 = vsel %vm153_vm0, %v36_v10, 4286644096  ;;  %v84_v26 = vld [vmem:[%s1400_s0 + $0x12c] sm:$0xf] }
  0x44   :  { %v500_v25 = vmax.bf16 %v498_v13, %v496_v16  ;;  %v115_v27 = vld [vmem:[%s1400_s0 + $0x1a8] sm:$0xf]  ;;  %v519_v28 = vmax.bf16 %v517_v15, %v515_v20  ;;  %v546_v29 = vmax.bf16 %v544_v24, %v541_v23  ;;  %v548_v30 = vsel %vm153_vm0, %v52_v14, 4286644096  ;;  %v100_v34 = vld [vmem:[%s1400_s0 + $0x16c] sm:$0xf] }
  0x45   :  { %v525_v31 = vsel %vm153_vm0, %v99_v19, 4286644096  ;;  %v552_v32 = vsel %vm153_vm0, %v68_v18, 4286644096  ;;  %v116_v35 = vld [vmem:[%s1400_s0 + $0x1ac] sm:$0xf] }
  0x46   :  { %v504_v33 = vmax.bf16 %v502_v17, %v500_v25  ;;  %v131_v36 = vld [vmem:[%s1400_s0 + $0x1e8] sm:$0xf]  ;;  %v523_v37 = vmax.bf16 %v521_v22, %v519_v28  ;;  %v550_v38 = vmax.bf16 %v548_v30, %v546_v29  ;;  %v529_v40 = vsel %vm153_vm0, %v115_v27, 4286644096  ;;  %v132_v43 = vld [vmem:[%s1400_s0 + $0x1ec] sm:$0xf] }
  0x47   :  { %v147_v39 = vld [vmem:[%s1400_s0 + $0x228] sm:$0xf]  ;;  %v556_v41 = vsel %vm153_vm0, %v84_v26, 4286644096  ;;  %v21_v46 = vld [vmem:[%s1400_s0 + $0x30] sm:$0xf] }
  0x48   :  { %v782_v42 = vcombine.low %v469_v21, %v504_v33  ;;  %v527_v44 = vmax.bf16 %v525_v31, %v523_v37  ;;  %v554_v45 = vmax.bf16 %v552_v32, %v550_v38  ;;  %v37_v47 = vld [vmem:[%s1400_s0 + $0x70] sm:$0xf]  ;;  %v148_v49 = vld [vmem:[%s1400_s0 + $0x22c] sm:$0xf]  ;;  %v533_v50 = vsel %vm153_vm0, %v131_v36, 4286644096 }
  0x49   :  { %v53_v48 = vld [vmem:[%s1400_s0 + $0xb0] sm:$0xf]  ;;  %v560_v51 = vsel %vm153_vm0, %v100_v34, 4286644096  ;;  %v564_v54 = vsel %vm153_vm0, %v116_v35, 4286644096 }
  0x4a   :  { %783 = vst [vmem:[%s1401_s1 + $0x20] sm:$0xff] %v782_v42   ;;  %v531_v52 = vmax.bf16 %v529_v40, %v527_v44  ;;  %v558_v53 = vmax.bf16 %v556_v41, %v554_v45  ;;  %v22_v55 = vld [vmem:[%s1400_s0 + $0x34] sm:$0xf]  ;;  %v69_v56 = vld [vmem:[%s1400_s0 + $0xf0] sm:$0xf] }
  0x4b   :  { %v576_v57 = vsel %vm153_vm0, %v21_v46, 4286644096  ;;  %v579_v58 = vsel %vm153_vm0, %v37_v47, 4286644096  ;;  %v583_v59 = vsel %vm153_vm0, %v53_v48, 4286644096 }
  0x4c   :  { %v535_v60 = vmax.bf16 %v533_v50, %v531_v52  ;;  %v537_v61 = vsel %vm153_vm0, %v147_v39, 4286644096  ;;  %v562_v62 = vmax.bf16 %v560_v51, %v558_v53  ;;  %v38_v63 = vld [vmem:[%s1400_s0 + $0x74] sm:$0xf]  ;;  %v85_v0 = vld [vmem:[%s1400_s0 + $0x130] sm:$0xf]  ;;  %v581_v1 = vmax.bf16 %v579_v58, %v576_v57 }
  0x4d   :  { %v568_v2 = vsel %vm153_vm0, %v132_v43, 4286644096  ;;  %v54_v3 = vld [vmem:[%s1400_s0 + $0xb4] sm:$0xf]  ;;  %v587_v4 = vsel %vm153_vm0, %v69_v56, 4286644096 }
  0x4e   :  { %v566_v5 = vmax.bf16 %v564_v54, %v562_v62  ;;  %v572_v6 = vsel %vm153_vm0, %v148_v49, 4286644096  ;;  %v70_v7 = vld [vmem:[%s1400_s0 + $0xf4] sm:$0xf]  ;;  %v101_v8 = vld [vmem:[%s1400_s0 + $0x170] sm:$0xf]  ;;  %v585_v9 = vmax.bf16 %v583_v59, %v581_v1  ;;  %v539_v10 = vmax.bf16 %v537_v61, %v535_v60 }
  0x4f   :  { %v591_v11 = vsel %vm153_vm0, %v85_v0, 4286644096  ;;  %v611_v12 = vsel %vm153_vm0, %v22_v55, 4286644096  ;;  %v614_v13 = vsel %vm153_vm0, %v38_v63, 4286644096 }
  0x50   :  { %v570_v14 = vmax.bf16 %v568_v2, %v566_v5  ;;  %v86_v15 = vld [vmem:[%s1400_s0 + $0x134] sm:$0xf]  ;;  %v117_v16 = vld [vmem:[%s1400_s0 + $0x1b0] sm:$0xf]  ;;  %v589_v17 = vmax.bf16 %v587_v4, %v585_v9  ;;  %v616_v18 = vmax.bf16 %v614_v13, %v611_v12  ;;  %v618_v19 = vsel %vm153_vm0, %v54_v3, 4286644096 }
  0x51   :  { %v595_v20 = vsel %vm153_vm0, %v101_v8, 4286644096  ;;  %v622_v21 = vsel %vm153_vm0, %v70_v7, 4286644096  ;;  %v102_v23 = vld [vmem:[%s1400_s0 + $0x174] sm:$0xf] }
  0x52   :  { %v574_v22 = vmax.bf16 %v572_v6, %v570_v14  ;;  %v118_v24 = vld [vmem:[%s1400_s0 + $0x1b4] sm:$0xf]  ;;  %v133_v25 = vld [vmem:[%s1400_s0 + $0x1f0] sm:$0xf]  ;;  %v593_v26 = vmax.bf16 %v591_v11, %v589_v17  ;;  %v620_v27 = vmax.bf16 %v618_v19, %v616_v18  ;;  %v599_v29 = vsel %vm153_vm0, %v117_v16, 4286644096 }
  0x53   :  { %v149_v28 = vld [vmem:[%s1400_s0 + $0x230] sm:$0xf]  ;;  %v626_v30 = vsel %vm153_vm0, %v86_v15, 4286644096  ;;  %v134_v32 = vld [vmem:[%s1400_s0 + $0x1f4] sm:$0xf] }
  0x54   :  { %v784_v31 = vcombine.low %v539_v10, %v574_v22  ;;  %v597_v33 = vmax.bf16 %v595_v20, %v593_v26  ;;  %v624_v34 = vmax.bf16 %v622_v21, %v620_v27  ;;  %v23_v35 = vld [vmem:[%s1400_s0 + $0x38] sm:$0xf]  ;;  %v150_v38 = vld [vmem:[%s1400_s0 + $0x234] sm:$0xf]  ;;  %v603_v39 = vsel %vm153_vm0, %v133_v25, 4286644096 }
  0x55   :  { %v39_v36 = vld [vmem:[%s1400_s0 + $0x78] sm:$0xf]  ;;  %v630_v40 = vsel %vm153_vm0, %v102_v23, 4286644096  ;;  %v634_v43 = vsel %vm153_vm0, %v118_v24, 4286644096 }
  0x56   :  { %v55_v37 = vld [vmem:[%s1400_s0 + $0xb8] sm:$0xf]  ;;  %785 = vst [vmem:[%s1401_s1 + $0x28] sm:$0xff] %v784_v31   ;;  %v601_v41 = vmax.bf16 %v599_v29, %v597_v33  ;;  %v628_v42 = vmax.bf16 %v626_v30, %v624_v34  ;;  %v24_v44 = vld [vmem:[%s1400_s0 + $0x3c] sm:$0xf] }
  0x57   :  { %v71_v45 = vld [vmem:[%s1400_s0 + $0xf8] sm:$0xf]  ;;  %v646_v46 = vsel %vm153_vm0, %v23_v35, 4286644096  ;;  %v649_v47 = vsel %vm153_vm0, %v39_v36, 4286644096 }
  0x58   :  { %v653_v48 = vsel %vm153_vm0, %v55_v37, 4286644096  ;;  %v605_v49 = vmax.bf16 %v603_v39, %v601_v41  ;;  %v607_v50 = vsel %vm153_vm0, %v149_v28, 4286644096  ;;  %v632_v51 = vmax.bf16 %v630_v40, %v628_v42  ;;  %v40_v52 = vld [vmem:[%s1400_s0 + $0x7c] sm:$0xf] }
  0x59   :  { %v87_v53 = vld [vmem:[%s1400_s0 + $0x138] sm:$0xf]  ;;  %v651_v54 = vmax.bf16 %v649_v47, %v646_v46  ;;  %v638_v55 = vsel %vm153_vm0, %v134_v32, 4286644096  ;;  %v56_v56 = vld [vmem:[%s1400_s0 + $0xbc] sm:$0xf] }
  0x5a   :  { %v657_v57 = vsel %vm153_vm0, %v71_v45, 4286644096  ;;  %v636_v58 = vmax.bf16 %v634_v43, %v632_v51  ;;  %v642_v59 = vsel %vm153_vm0, %v150_v38, 4286644096  ;;  %v72_v60 = vld [vmem:[%s1400_s0 + $0xfc] sm:$0xf]  ;;  %v609_v63 = vmax.bf16 %v607_v50, %v605_v49 }
  0x5b   :  { %v103_v61 = vld [vmem:[%s1400_s0 + $0x178] sm:$0xf]  ;;  %v655_v62 = vmax.bf16 %v653_v48, %v651_v54  ;;  %v661_v0 = vsel %vm153_vm0, %v87_v53, 4286644096  ;;  %v681_v1 = vsel %vm153_vm0, %v24_v44, 4286644096 }
  0x5c   :  { %v684_v2 = vsel %vm153_vm0, %v40_v52, 4286644096  ;;  %v640_v3 = vmax.bf16 %v638_v55, %v636_v58  ;;  %v88_v4 = vld [vmem:[%s1400_s0 + $0x13c] sm:$0xf]  ;;  %v119_v5 = vld [vmem:[%s1400_s0 + $0x1b8] sm:$0xf] }
  0x5d   :  { %v659_v6 = vmax.bf16 %v657_v57, %v655_v62  ;;  %v686_v7 = vmax.bf16 %v684_v2, %v681_v1  ;;  %v688_v8 = vsel %vm153_vm0, %v56_v56, 4286644096  ;;  %v665_v9 = vsel %vm153_vm0, %v103_v61, 4286644096  ;;  %v104_v12 = vld [vmem:[%s1400_s0 + $0x17c] sm:$0xf] }
  0x5e   :  { %v692_v10 = vsel %vm153_vm0, %v72_v60, 4286644096  ;;  %v644_v11 = vmax.bf16 %v642_v59, %v640_v3  ;;  %v135_v13 = vld [vmem:[%s1400_s0 + $0x1f8] sm:$0xf]  ;;  %v669_v16 = vsel %vm153_vm0, %v119_v5, 4286644096 }
  0x5f   :  { %v663_v14 = vmax.bf16 %v661_v0, %v659_v6  ;;  %v690_v15 = vmax.bf16 %v688_v8, %v686_v7  ;;  %v696_v17 = vsel %vm153_vm0, %v88_v4, 4286644096  ;;  %v120_v19 = vld [vmem:[%s1400_s0 + $0x1bc] sm:$0xf]  ;;  %v673_v22 = vsel %vm153_vm0, %v135_v13, 4286644096 }
  0x60   :  { %v786_v18 = vcombine.low %v609_v63, %v644_v11  ;;  %v700_v23 = vsel %vm153_vm0, %v104_v12, 4286644096  ;;  %v136_v24 = vld [vmem:[%s1400_s0 + $0x1fc] sm:$0xf]  ;;  %v151_v25 = vld [vmem:[%s1400_s0 + $0x238] sm:$0xf] }
  0x61   :  { %v667_v20 = vmax.bf16 %v665_v9, %v663_v14  ;;  %v694_v21 = vmax.bf16 %v692_v10, %v690_v15  ;;  %v704_v28 = vsel %vm153_vm0, %v120_v19, 4286644096  ;;  %v152_v29 = vld [vmem:[%s1400_s0 + $0x23c] sm:$0xf]  ;;  %v677_v32 = vsel %vm153_vm0, %v151_v25, 4286644096 }
  0x62   :  { %787 = vst [vmem:[%s1401_s1 + $0x30] sm:$0xff] %v786_v18   ;;  %v708_v33 = vsel %vm153_vm0, %v136_v24, 4286644096  ;;  %v712_v35 = vsel %vm153_vm0, %v152_v29, 4286644096 }
  0x63   :  { %v671_v26 = vmax.bf16 %v669_v16, %v667_v20  ;;  %v698_v27 = vmax.bf16 %v696_v17, %v694_v21 }
  0x65   :  { %v675_v30 = vmax.bf16 %v673_v22, %v671_v26  ;;  %v702_v31 = vmax.bf16 %v700_v23, %v698_v27 }
  0x67   :  { %v706_v34 = vmax.bf16 %v704_v28, %v702_v31  ;;  %v679_v36 = vmax.bf16 %v677_v32, %v675_v30 }
  0x69   :  { %v710_v37 = vmax.bf16 %v708_v33, %v706_v34 }
  0x6b   :  { %v714_v38 = vmax.bf16 %v712_v35, %v710_v37 }
  0x6d   :  { %v788_v39 = vcombine.low %v679_v36, %v714_v38 }
  0x6f   :  { %789 = vst [vmem:[%s1401_s1 + $0x38] sm:$0xff] %v788_v39  }

// kernel: simclr_forward.27
= control target key start
LH: loop header
LB: loop body
LE: loop exit
PB: predicated region body
PF: predicated region fallthrough
CT: control target
= control target key end

     0   :  { %s2172_s1 = inlined_call_operand.vmem [shape: bf16[640,128], index: 1, kind: input, shape index: {}]   ;;  %s2173_s0 = inlined_call_operand.vmem [shape: bf16[128,640], index: 0, kind: input, shape index: {}]   ;;  %s2174_s4 = inlined_call_operand.vmem [shape: bf16[128,128], index: 4, kind: input, shape index: {}]   ;;  %s2175_s2 = inlined_call_operand.vmem [shape: f32[1,128], index: 2, kind: input, shape index: {}]   ;;  %s2176_s3 = inlined_call_operand.vmem [shape: f32[1,128], index: 3, kind: input, shape index: {}]   ;;  %s2177_s5 = inlined_call_operand.vmem [shape: bf16[128,128], index: 5, kind: output, shape index: {}]  }
   0x1   :  { %v1561_v0 = vld [vmem:[%s2172_s1 + $0x78] sm:$0xff]   ;;  %v1565_v4 = vld [vmem:[%s2172_s1 + $0x70] sm:$0xff]   ;;  %v1569_v8 = vld [vmem:[%s2172_s1 + $0x68] sm:$0xff]  }
   0x2   :  { %v1562_v1 = vld [vmem:[%s2172_s1 + $0xf8] sm:$0xff]   ;;  %1369 = vmatprep.subr.bf16.mxu0 %v1561_v0  ;;  %v1566_v5 = vld [vmem:[%s2172_s1 + $0xf0] sm:$0xff]   ;;  %v1570_v9 = vld [vmem:[%s2172_s1 + $0xe8] sm:$0xff]  }
   0x3   :  { %v1563_v2 = vld [vmem:[%s2172_s1 + $0x38] sm:$0xff]   ;;  %1433 = vmatprep.subr.bf16.mxu1 %v1562_v1  ;;  %v1567_v6 = vld [vmem:[%s2172_s1 + $0x30] sm:$0xff]   ;;  %v1571_v10 = vld [vmem:[%s2172_s1 + $0x28] sm:$0xff]  }
   0x4   :  { %v1564_v3 = vld [vmem:[%s2172_s1 + $0xb8] sm:$0xff]   ;;  %1370 = vmatpush3.bf16.msra.mxu0 %v1563_v2  ;;  %v1568_v7 = vld [vmem:[%s2172_s1 + $0xb0] sm:$0xff]   ;;  %v1572_v11 = vld [vmem:[%s2172_s1 + $0xa8] sm:$0xff]  }
   0x5   :  { %1434 = vmatpush3.bf16.msra.mxu1 %v1564_v3  ;;  %1371 = vmatprep.subr.bf16.mxu0 %v1565_v4  ;;  %v1573_v12 = vld [vmem:[%s2172_s1 + $0x60] sm:$0xff]   ;;  %v1577_v16 = vld [vmem:[%s2172_s1 + $0x58] sm:$0xff]   ;;  %v1581_v20 = vld [vmem:[%s2172_s1 + $0x50] sm:$0xff]  }
   0x6   :  { %1435 = vmatprep.subr.bf16.mxu1 %v1566_v5  ;;  %v1574_v13 = vld [vmem:[%s2172_s1 + $0xe0] sm:$0xff]   ;;  %v1578_v17 = vld [vmem:[%s2172_s1 + $0xd8] sm:$0xff]   ;;  %v1582_v21 = vld [vmem:[%s2172_s1 + $0xd0] sm:$0xff]  }
   0x7   :  { %v1575_v14 = vld [vmem:[%s2172_s1 + $0x20] sm:$0xff]   ;;  %v1579_v18 = vld [vmem:[%s2172_s1 + $0x18] sm:$0xff]   ;;  %v1583_v22 = vld [vmem:[%s2172_s1 + $0x10] sm:$0xff]  }
   0x8   :  { %1372 = vmatpush3.bf16.msra.mxu0 %v1567_v6  ;;  %v1576_v15 = vld [vmem:[%s2172_s1 + $0xa0] sm:$0xff]   ;;  %v1580_v19 = vld [vmem:[%s2172_s1 + $0x98] sm:$0xff]   ;;  %v1584_v23 = vld [vmem:[%s2172_s1 + $0x90] sm:$0xff]  }
   0x9   :  { %1436 = vmatpush3.bf16.msra.mxu1 %v1568_v7  ;;  %1373 = vmatprep.subr.bf16.mxu0 %v1569_v8  ;;  %v1585_v24 = vld [vmem:[%s2172_s1 + $0x48] sm:$0xff]   ;;  %v1589_v28 = vld [vmem:[%s2172_s1 + $0x40] sm:$0xff]   ;;  %v1599_v36 = vld [vmem:[%s2172_s1 + $0x138] sm:$0xff]  }
   0xa   :  { %1437 = vmatprep.subr.bf16.mxu1 %v1570_v9  ;;  %v1586_v25 = vld [vmem:[%s2172_s1 + $0xc8] sm:$0xff]   ;;  %v1590_v29 = vld [vmem:[%s2172_s1 + $0xc0] sm:$0xff]   ;;  %v1606_v39 = vld [vmem:[%s2172_s1 + $0x130] sm:$0xff]  }
   0xb   :  { %v1587_v26 = vld [vmem:[%s2172_s1 + $0x8] sm:$0xff]   ;;  %v1591_v30 = vld [vmem:[%s2172_s1] sm:$0xff]   ;;  %v1609_v43 = vld [vmem:[%s2173_s0 + $0x5c] ss:$20 sps:$4 sm:$0xff]  }
   0xc   :  { %1374 = vmatpush3.bf16.msra.mxu0 %v1571_v10  ;;  %v1588_v27 = vld [vmem:[%s2172_s1 + $0x88] sm:$0xff]   ;;  %v1592_v31 = vld [vmem:[%s2172_s1 + $0x80] sm:$0xff]   ;;  %v1614_v48 = vld [vmem:[%s2173_s0 + $0x7c] ss:$20 sps:$4 sm:$0xff]  }
   0xd   :  { %1438 = vmatpush3.bf16.msra.mxu1 %v1572_v11  ;;  %1375 = vmatprep.subr.bf16.mxu0 %v1573_v12  ;;  %v1593_v32 = vld [vmem:[%s2173_s0] ss:$20 sps:$4 sm:$0xff]   ;;  %v1595_v33 = vld [vmem:[%s2173_s0 + $0x4] ss:$20 sps:$4 sm:$0xff]   ;;  %v1596_v34 = vld [vmem:[%s2173_s0 + $0x8] ss:$20 sps:$4 sm:$0xff]  }
   0xe   :  { %1439 = vmatprep.subr.bf16.mxu1 %v1574_v13  ;;  %v1598_v35 = vld [vmem:[%s2173_s0 + $0xc] ss:$20 sps:$4 sm:$0xff]   ;;  %665 = vmatprep.mubr.bf16.mxu0 %v1595_v33  ;;  %v1602_v38 = vld [vmem:[%s2173_s0 + $0x34] ss:$20 sps:$4 sm:$0xff]   ;;  %v1605_v41 = vld [vmem:[%s2173_s0 + $0x30] ss:$20 sps:$4 sm:$0xff]  }
   0xf   :  { %762 = vmatprep.mubr.bf16.mxu1 %v1598_v35  ;;  %v1600_v37 = vld [vmem:[%s2173_s0 + $0x2c] ss:$20 sps:$4 sm:$0xff]   ;;  %v1604_v40 = vld [vmem:[%s2173_s0 + $0x28] ss:$20 sps:$4 sm:$0xff]   ;;  %v1611_v46 = vld [vmem:[%s2173_s0 + $0x50] ss:$20 sps:$4 sm:$0xff]  }
  0x10   :  { %1376 = vmatpush3.bf16.msra.mxu0 %v1575_v14  ;;  %v1607_v42 = vld [vmem:[%s2173_s0 + $0x54] ss:$20 sps:$4 sm:$0xff]   ;;  %v1620_v45 = vld [vmem:[%s2172_s1 + $0x120] sm:$0xff]   ;;  %v1612_v47 = vld [vmem:[%s2173_s0 + $0x58] ss:$20 sps:$4 sm:$0xff]  }
  0x11   :  { %1440 = vmatpush3.bf16.msra.mxu1 %v1576_v15  ;;  %1377 = vmatprep.subr.bf16.mxu0 %v1577_v16  ;;  %v1613_v44 = vld [vmem:[%s2172_s1 + $0x128] sm:$0xff]   ;;  %v1616_v49 = vld [vmem:[%s2173_s0 + $0x84] ss:$20 sps:$4 sm:$0xff]   ;;  %v1634_v51 = vld [vmem:[%s2172_s1 + $0x110] sm:$0xff]  }
  0x12   :  { %1441 = vmatprep.subr.bf16.mxu1 %v1578_v17  ;;  %v1627_v50 = vld [vmem:[%s2172_s1 + $0x118] sm:$0xff]   ;;  %v1619_v53 = vld [vmem:[%s2173_s0 + $0x80] ss:$20 sps:$4 sm:$0xff]   ;;  %v1641_v55 = vld [vmem:[%s2172_s1 + $0x108] sm:$0xff]  }
  0x13   :  { %v1618_v52 = vld [vmem:[%s2173_s0 + $0x78] ss:$20 sps:$4 sm:$0xff]   ;;  %v1648_v57 = vld [vmem:[%s2172_s1 + $0x100] sm:$0xff]   ;;  %v1626_v59 = vld [vmem:[%s2173_s0 + $0xa8] ss:$20 sps:$4 sm:$0xff]  }
  0x14   :  { %1378 = vmatpush3.bf16.msra.mxu0 %v1579_v18  ;;  %v1621_v54 = vld [vmem:[%s2173_s0 + $0xa4] ss:$20 sps:$4 sm:$0xff]   ;;  %v1623_v56 = vld [vmem:[%s2173_s0 + $0xac] ss:$20 sps:$4 sm:$0xff]   ;;  %v1630_v61 = vld [vmem:[%s2173_s0 + $0xd4] ss:$20 sps:$4 sm:$0xff]  }
  0x15   :  { %1442 = vmatpush3.bf16.msra.mxu1 %v1580_v19  ;;  %1379 = vmatprep.subr.bf16.mxu0 %v1581_v20  ;;  %v1625_v58 = vld [vmem:[%s2173_s0 + $0xa0] ss:$20 sps:$4 sm:$0xff]   ;;  %v1632_v62 = vld [vmem:[%s2173_s0 + $0xc8] ss:$20 sps:$4 sm:$0xff]   ;;  %v1633_v63 = vld [vmem:[%s2173_s0 + $0xd0] ss:$20 sps:$4 sm:$0xff]  }
  0x16   :  { %1443 = vmatprep.subr.bf16.mxu1 %v1582_v21  ;;  %v1628_v60 = vld [vmem:[%s2173_s0 + $0xcc] ss:$20 sps:$4 sm:$0xff]   ;;  %v1635_v0 = vld [vmem:[%s2173_s0 + $0xf4] ss:$20 sps:$4 sm:$0xff]   ;;  %v1637_v1 = vld [vmem:[%s2173_s0 + $0xfc] ss:$20 sps:$4 sm:$0xff]  }
  0x17   :  { %v1639_v2 = vld [vmem:[%s2173_s0 + $0xf0] ss:$20 sps:$4 sm:$0xff]   ;;  %v1640_v3 = vld [vmem:[%s2173_s0 + $0xf8] ss:$20 sps:$4 sm:$0xff]   ;;  %v1647_v7 = vld [vmem:[%s2173_s0 + $0x120] ss:$20 sps:$4 sm:$0xff]  }
  0x18   :  { %1380 = vmatpush3.bf16.msra.mxu0 %v1583_v22  ;;  %v1642_v4 = vld [vmem:[%s2173_s0 + $0x11c] ss:$20 sps:$4 sm:$0xff]   ;;  %v1644_v5 = vld [vmem:[%s2173_s0 + $0x124] ss:$20 sps:$4 sm:$0xff]   ;;  %v1653_v12 = vld [vmem:[%s2173_s0 + $0x60] ss:$20 sps:$4 sm:$0xff]  }
  0x19   :  { %1444 = vmatpush3.bf16.msra.mxu1 %v1584_v23  ;;  %1381 = vmatprep.subr.bf16.mxu0 %v1585_v24  ;;  %v1646_v6 = vld [vmem:[%s2173_s0 + $0x118] ss:$20 sps:$4 sm:$0xff]   ;;  %v1649_v8 = vld [vmem:[%s2173_s0 + $0x10] ss:$20 sps:$4 sm:$0xff]   ;;  %v1654_v13 = vld [vmem:[%s2173_s0 + $0x100] ss:$20 sps:$4 sm:$0xff]  }
  0x1a   :  { %1445 = vmatprep.subr.bf16.mxu1 %v1586_v25  ;;  %v1650_v9 = vld [vmem:[%s2173_s0 + $0xb0] ss:$20 sps:$4 sm:$0xff]   ;;  %v1651_v10 = vld [vmem:[%s2173_s0 + $0x38] ss:$20 sps:$4 sm:$0xff]   ;;  %v1655_v14 = vld [vmem:[%s2173_s0 + $0x88] ss:$20 sps:$4 sm:$0xff]  }
  0x1b   :  { %v1652_v11 = vld [vmem:[%s2173_s0 + $0xd8] ss:$20 sps:$4 sm:$0xff]   ;;  %v1656_v15 = vld [vmem:[%s2173_s0 + $0x128] ss:$20 sps:$4 sm:$0xff]  }
  0x1c   :  { %1382 = vmatpush3.bf16.msra.mxu0 %v1587_v26 }
  0x1d   :  { %1446 = vmatpush3.bf16.msra.mxu1 %v1588_v27  ;;  %1383 = vmatprep.subr.bf16.mxu0 %v1589_v28 }
  0x1e   :  { %1447 = vmatprep.subr.bf16.mxu1 %v1590_v29 }
  0x20   :  { %1384 = vmatpush3.bf16.msra.mxu0 %v1591_v30 }
  0x21   :  { %1448 = vmatpush3.bf16.msra.mxu1 %v1592_v31  ;;  %1513 = vmatprep.subr.bf16.mxu0 %v1599_v36 }
  0x22   :  { %1545 = vmatprep.subr.bf16.mxu1 %v1599_v36 }
  0x23   :  { %666 = vmatmul.mubr.bf16.vlgmr.msra.gmra.mxu0 %v1593_v32 }
  0x24   :  { %763 = vmatmul.mubr.bf16.vlgmr.msra.gmra.mxu1 %v1596_v34  ;;  %1514 = vmatpush3.bf16.msra.mxu0 %v1599_v36 }
  0x25   :  { %1553 = vmatpush3.bf16.msra.mxu1 %v1599_v36  ;;  %673 = vmatprep.mubr.bf16.mxu0 %v1600_v37 }
  0x26   :  { %770 = vmatprep.mubr.bf16.mxu1 %v1602_v38  ;;  %1515 = vmatprep.subr.bf16.mxu0 %v1606_v39 }
  0x27   :  { %1546 = vmatprep.subr.bf16.mxu1 %v1606_v39 }
  0x28   :  { %1516 = vmatpush3.bf16.msra.mxu0 %v1606_v39 }
  0x29   :  { %1554 = vmatpush3.bf16.msra.mxu1 %v1606_v39  ;;  %1517 = vmatprep.subr.bf16.mxu0 %v1613_v44 }
  0x2a   :  { %1547 = vmatprep.subr.bf16.mxu1 %v1613_v44 }
  0x2b   :  { %674 = vmatmul.mubr.bf16.gmra.mxu0 %v1604_v40 }
  0x2c   :  { %771 = vmatmul.mubr.bf16.gmra.mxu1 %v1605_v41  ;;  %681 = vmatprep.mubr.bf16.mxu0 %v1607_v42 }
  0x2d   :  { %778 = vmatprep.mubr.bf16.mxu1 %v1609_v43  ;;  %1518 = vmatpush3.bf16.msra.mxu0 %v1613_v44 }
  0x2e   :  { %1555 = vmatpush3.bf16.msra.mxu1 %v1613_v44  ;;  %1519 = vmatprep.subr.bf16.mxu0 %v1620_v45 }
  0x2f   :  { %1548 = vmatprep.subr.bf16.mxu1 %v1620_v45 }
  0x31   :  { %1520 = vmatpush3.bf16.msra.mxu0 %v1620_v45 }
  0x32   :  { %1556 = vmatpush3.bf16.msra.mxu1 %v1620_v45  ;;  %1521 = vmatprep.subr.bf16.mxu0 %v1627_v50 }
  0x33   :  { %682 = vmatmul.mubr.bf16.gmra.mxu0 %v1611_v46  ;;  %1549 = vmatprep.subr.bf16.mxu1 %v1627_v50 }
  0x34   :  { %779 = vmatmul.mubr.bf16.gmra.mxu1 %v1612_v47  ;;  %689 = vmatprep.mubr.bf16.mxu0 %v1614_v48 }
  0x35   :  { %786 = vmatprep.mubr.bf16.mxu1 %v1616_v49  ;;  %1522 = vmatpush3.bf16.msra.mxu0 %v1627_v50 }
  0x36   :  { %1557 = vmatpush3.bf16.msra.mxu1 %v1627_v50  ;;  %1523 = vmatprep.subr.bf16.mxu0 %v1634_v51 }
  0x37   :  { %1550 = vmatprep.subr.bf16.mxu1 %v1634_v51 }
  0x39   :  { %1524 = vmatpush3.bf16.msra.mxu0 %v1634_v51 }
  0x3a   :  { %1558 = vmatpush3.bf16.msra.mxu1 %v1634_v51  ;;  %1525 = vmatprep.subr.bf16.mxu0 %v1641_v55 }
  0x3b   :  { %690 = vmatmul.mubr.bf16.gmra.mxu0 %v1618_v52  ;;  %1551 = vmatprep.subr.bf16.mxu1 %v1641_v55 }
  0x3c   :  { %787 = vmatmul.mubr.bf16.gmra.mxu1 %v1619_v53  ;;  %697 = vmatprep.mubr.bf16.mxu0 %v1621_v54 }
  0x3d   :  { %794 = vmatprep.mubr.bf16.mxu1 %v1623_v56  ;;  %1526 = vmatpush3.bf16.msra.mxu0 %v1641_v55 }
  0x3e   :  { %1559 = vmatpush3.bf16.msra.mxu1 %v1641_v55  ;;  %1527 = vmatprep.subr.bf16.mxu0 %v1648_v57 }
  0x3f   :  { %1552 = vmatprep.subr.bf16.mxu1 %v1648_v57 }
  0x41   :  { %1528 = vmatpush3.bf16.msra.mxu0 %v1648_v57 }
  0x42   :  { %1560 = vmatpush3.bf16.msra.mxu1 %v1648_v57 }
  0x43   :  { %698 = vmatmul.mubr.bf16.gmra.mxu0 %v1625_v58 }
  0x44   :  { %795 = vmatmul.mubr.bf16.gmra.mxu1 %v1626_v59  ;;  %705 = vmatprep.mubr.bf16.mxu0 %v1628_v60 }
  0x45   :  { %802 = vmatprep.mubr.bf16.mxu1 %v1630_v61 }
  0x4b   :  { %706 = vmatmul.mubr.bf16.gmra.mxu0 %v1632_v62 }
  0x4c   :  { %803 = vmatmul.mubr.bf16.gmra.mxu1 %v1633_v63  ;;  %713 = vmatprep.mubr.bf16.mxu0 %v1635_v0 }
  0x4d   :  { %810 = vmatprep.mubr.bf16.mxu1 %v1637_v1 }
  0x53   :  { %714 = vmatmul.mubr.bf16.gmra.mxu0 %v1639_v2 }
  0x54   :  { %811 = vmatmul.mubr.bf16.gmra.mxu1 %v1640_v3  ;;  %721 = vmatprep.mubr.bf16.mxu0 %v1642_v4 }
  0x55   :  { %818 = vmatprep.mubr.bf16.mxu1 %v1644_v5 }
  0x5b   :  { %722 = vmatmul.mubr.bf16.gmra.mxu0 %v1646_v6 }
  0x5c   :  { %819 = vmatmul.mubr.bf16.gmra.mxu1 %v1647_v7  ;;  %1529 = vmatprep.mubr.bf16.mxu0 %v1649_v8  ;;  %v1976_v7 = vld [vmem:[%s2174_s4 + $0x8] sm:$0xff]  }
  0x5d   :  { %1537 = vmatprep.mubr.bf16.mxu1 %v1650_v9  ;;  %v1983_v9 = vld [vmem:[%s2174_s4 + $0x28] sm:$0xff]  }
  0x63   :  { %1530 = vmatmul.mubr.bf16.vlgmr.msra.gmra.mxu0 %v1651_v10  ;;  %v1988_v10 = vld [vmem:[%s2174_s4] sm:$0xff]  }
  0x64   :  { %1538 = vmatmul.mubr.bf16.vlgmr.msra.gmra.mxu1 %v1652_v11  ;;  %1533 = vmatprep.mubr.bf16.mxu0 %v1653_v12  ;;  %v1993_v11 = vld [vmem:[%s2174_s4 + $0x20] sm:$0xff]  }
  0x65   :  { %1541 = vmatprep.mubr.bf16.mxu1 %v1654_v13  ;;  %v2000_v13 = vld [vmem:[%s2174_s4 + $0x18] sm:$0xff]  }
  0x6b   :  { %1534 = vmatmul.mubr.bf16.gmra.mxu0 %v1655_v14 }
  0x6c   :  { %1542 = vmatmul.mubr.bf16.gmra.mxu1 %v1656_v15 }
  0xe3   :  { %v1385_v16 = vpop.f32.mrf.mxu0 }
  0xe4   :  { %v1449_v17 = vpop.f32.mrf.mxu1 }
  0xe5   :  { %v1386_v18 = vpop.f32.mrf.mxu0 }
  0xe6   :  { %v1387_v19 = vadd.f32 %v1386_v18, %v1385_v16  ;;  %v1450_v20 = vpop.f32.mrf.mxu1  ;;  %v2008_v16 = vld [vmem:[%s2174_s4 + $0x38] sm:$0xff]  }
  0xe7   :  { %v1451_v21 = vadd.f32 %v1450_v20, %v1449_v17  ;;  %v1927_v22 = vpop.f32.mrf.mxu0  ;;  %v2013_v17 = vld [vmem:[%s2174_s4 + $0x10] sm:$0xff]  }
  0xe8   :  { %v1929_v23 = vpop.f32.mrf.mxu1  ;;  %2185 = vst [vmem:[#allocation8_spill] sm:$0xff] %v2013_v17 }
  0xe9   :  { %v1931_v24 = vpop.f32.mrf.mxu0  ;;  %v1933_v25 = vadd.f32 %v1451_v21, %v1387_v19 }
  0xea   :  { %v1935_v26 = vpop.f32.mrf.mxu1 }
  0xeb   :  { %2180 = vst [vmem:[#allocation3_spill] sm:$0xff] %v1933_v25  ;;  %v1937_v27 = vpop.f32.mrf.mxu0  ;;  %v1454_v19 = vadd.f32 %v1935_v26, %v1929_v23 }
  0xec   :  { %v1939_v28 = vpop.f32.mrf.mxu1 }
  0xed   :  { %v1941_v29 = vpop.f32.mrf.mxu0 }
  0xee   :  { %v1943_v30 = vpop.f32.mrf.mxu1  ;;  %v1393_v25 = vadd.f32 %v1941_v29, %v1937_v27 }
  0xef   :  { %v1945_v31 = vpop.f32.mrf.mxu0 }
  0xf0   :  { %v1947_v32 = vpop.f32.mrf.mxu1 }
  0xf1   :  { %v1949_v33 = vpop.f32.mrf.mxu0 }
  0xf2   :  { %v1951_v34 = vpop.f32.mrf.mxu1 }
  0xf3   :  { %v1953_v35 = vpop.f32.mrf.mxu0 }
  0xf4   :  { %v1955_v36 = vpop.f32.mrf.mxu1 }
  0xf5   :  { %v1957_v37 = vpop.f32.mrf.mxu0 }
  0xf6   :  { %v1959_v38 = vpop.f32.mrf.mxu1  ;;  %v1399_v23 = vadd.f32 %v1957_v37, %v1953_v35 }
  0xf7   :  { %v1961_v39 = vpop.f32.mrf.mxu0  ;;  %v1463_v26 = vadd.f32 %v1959_v38, %v1955_v36 }
  0xf8   :  { %v1963_v40 = vpop.f32.mrf.mxu1 }
  0xf9   :  { %v1965_v41 = vpop.f32.mrf.mxu0 }
  0xfa   :  { %v1967_v42 = vpop.f32.mrf.mxu1 }
  0xfb   :  { %2181 = vst [vmem:[#allocation4_spill] sm:$0xff] %v1967_v42  ;;  %v1403_v43 = vpop.f32.mrf.mxu0  ;;  %v1396_v42 = vadd.f32 %v1949_v33, %v1945_v31  ;;  %v2046_v31 = vld [vmem:[%s2174_s4 + $0x30] sm:$0xff]  }
  0xfc   :  { %v1467_v44 = vpop.f32.mrf.mxu1 }
  0xfd   :  { %v1404_v45 = vpop.f32.mrf.mxu0 }
  0xfe   :  { %v1468_v46 = vpop.f32.mrf.mxu1  ;;  %v1405_v15 = vadd.f32 %v1404_v45, %v1403_v43 }
  0xff   :  { %v1406_v47 = vpop.f32.mrf.mxu0  ;;  %v1469_v21 = vadd.f32 %v1468_v46, %v1467_v44 }
 0x100   :  { %v1470_v48 = vpop.f32.mrf.mxu1 }
 0x101   :  { %v1407_v49 = vpop.f32.mrf.mxu0 }
 0x102   :  { %v1471_v50 = vpop.f32.mrf.mxu1  ;;  %v1408_v27 = vadd.f32 %v1407_v49, %v1406_v47 }
 0x103   :  { %v1969_v51 = vpop.f32.mrf.mxu0  ;;  %v1472_v29 = vadd.f32 %v1471_v50, %v1470_v48  ;;  %v1309_v50 = vunpack.c.l.bf16 %v2046_v31 }
 0x104   :  { %v1971_v52 = vpop.f32.mrf.mxu1 }
 0x105   :  { %v1410_v53 = vpop.f32.mrf.mxu0 }
 0x106   :  { %v1474_v54 = vpop.f32.mrf.mxu1 }
 0x107   :  { %v1412_v55 = vpop.f32.mrf.mxu0  ;;  %v1475_v33 = vadd.f32 %v1474_v54, %v1971_v52  ;;  %v2062_v54 = vld [vmem:[%s2175_s2] ss:$0 sm:$0xff] }
 0x108   :  { %v1476_v56 = vpop.f32.mrf.mxu1 }
 0x109   :  { %v1413_v57 = vpop.f32.mrf.mxu0 }
 0x10a   :  { %v1477_v58 = vpop.f32.mrf.mxu1 }
 0x10b   :  { %v1415_v59 = vpop.f32.mrf.mxu0  ;;  %v1478_v35 = vadd.f32 %v1477_v58, %v1476_v56  ;;  %v789_v58 = vadd.f32 %v1469_v21, %v1405_v15 }
 0x10c   :  { %v1479_v60 = vpop.f32.mrf.mxu1 }
 0x10d   :  { %v1416_v61 = vpop.f32.mrf.mxu0 }
 0x10e   :  { %v1480_v62 = vpop.f32.mrf.mxu1  ;;  %v1417_v17 = vadd.f32 %v1416_v61, %v1415_v59  ;;  %v2053_v59 = vadd.f32 %v1965_v41, %v1961_v39  ;;  %v2071_v39 = vld [vmem:[%s2176_s3] ss:$0 sm:$0xff] }
 0x10f   :  { %v1418_v63 = vpop.f32.mrf.mxu0 }
 0x110   :  { %v1482_v0 = vpop.f32.mrf.mxu1 }
 0x111   :  { %v1419_v1 = vpop.f32.mrf.mxu0 }
 0x112   :  { %v1483_v2 = vpop.f32.mrf.mxu1  ;;  %v1420_v37 = vadd.f32 %v1419_v1, %v1418_v63 }
 0x113   :  { %v1421_v3 = vpop.f32.mrf.mxu0  ;;  %v1484_v38 = vadd.f32 %v1483_v2, %v1482_v0 }
 0x114   :  { %v1485_v4 = vpop.f32.mrf.mxu1 }
 0x115   :  { %v1422_v5 = vpop.f32.mrf.mxu0  ;;  %v808_v61 = vadd.f32 %v1484_v38, %v1420_v37 }
 0x116   :  { %v1486_v6 = vpop.f32.mrf.mxu1  ;;  %v1423_v43 = vadd.f32 %v1422_v5, %v1421_v3  ;;  %v2190_v5 = vld [vmem:[#allocation3_spill] sm:$0xff] }
 0x117   :  { %v1978_v8 = vpop.f32.mrf.mxu0  ;;  %v1487_v44 = vadd.f32 %v1486_v6, %v1485_v4 }
 0x118   :  { %2182 = vst [vmem:[#allocation5_spill] sm:$0xff] %v1978_v8  ;;  %v1995_v12 = vpop.f32.mrf.mxu1 }
 0x119   :  { %2183 = vst [vmem:[#allocation6_spill] sm:$0xff] %v1995_v12  ;;  %v2002_v14 = vpop.f32.mrf.mxu0  ;;  %v813_v63 = vadd.f32 %v1487_v44, %v1423_v43  ;;  %v2194_v43 = vunpack.c.l.bf16 %v1983_v9 }
 0x11a   :  { %2184 = vst [vmem:[#allocation7_spill] sm:$0xff] %v2002_v14  ;;  %v2015_v18 = vpop.f32.mrf.mxu1  ;;  %v1457_v14 = vadd.f32 %v1943_v30, %v1939_v28  ;;  %v1481_v28 = vadd.f32 %v1480_v62, %v1479_v60  ;;  %v2066_v60 = vadd.f32 %v1472_v29, %v1408_v27 }
 0x11b   :  { %2186 = vst [vmem:[#allocation9_spill] sm:$0xff] %v2015_v18  ;;  %v1427_v12 = vpop.f32.mrf.mxu0  ;;  %v1390_v18 = vadd.f32 %v1931_v24, %v1927_v22  ;;  %v1460_v22 = vadd.f32 %v1951_v34, %v1947_v32  ;;  %v1411_v32 = vadd.f32 %v1410_v53, %v1969_v51  ;;  %v1414_v34 = vadd.f32 %v1413_v57, %v1412_v55  ;;  %v2187_v51 = vld [vmem:[#allocation4_spill] sm:$0xff] }
 0x11c   :  { %v1491_v20 = vpop.f32.mrf.mxu1  ;;  %v773_v47 = vadd.f32 %v1457_v14, %v1393_v25  ;;  %v2057_v52 = vadd.f32 %v2187_v51, %v1963_v40  ;;  %v805_v55 = vadd.f32 %v1481_v28, %v1417_v17  ;;  %v2064_v25 = vadd.f32 %v1463_v26, %v1399_v23 }
 0x11d   :  { %v1428_v24 = vpop.f32.mrf.mxu0  ;;  %v776_v48 = vadd.f32 %v1460_v22, %v1396_v42  ;;  %v768_v49 = vadd.f32 %v1454_v19, %v1390_v18  ;;  %v797_v57 = vadd.f32 %v1475_v33, %v1411_v32  ;;  %v800_v62 = vadd.f32 %v1478_v35, %v1414_v34 }
 0x11e   :  { %v1492_v8 = vpop.f32.mrf.mxu1  ;;  %v1429_v3 = vadd.f32 %v1428_v24, %v1427_v12  ;;  %v2193_v33 = vunpack.c.l.bf16 %v1976_v7 }
 0x11f   :  { %v1430_v30 = vpop.f32.mrf.mxu0  ;;  %v2188_v0 = vld [vmem:[#allocation5_spill] sm:$0xff]  ;;  %v1493_v15 = vadd.f32 %v1492_v8, %v1491_v20 }
 0x120   :  { %v1494_v36 = vpop.f32.mrf.mxu1  ;;  %v2191_v28 = vld [vmem:[#allocation6_spill] sm:$0xff] }
 0x121   :  { %v1431_v45 = vpop.f32.mrf.mxu0  ;;  %v2189_v1 = vld [vmem:[#allocation7_spill] sm:$0xff] }
 0x122   :  { %v1495_v46 = vpop.f32.mrf.mxu1  ;;  %v2075_v2 = vadd.f32 %v2189_v1, %v2188_v0  ;;  %v1432_v17 = vadd.f32 %v1431_v45, %v1430_v30  ;;  %v2192_v12 = vld [vmem:[#allocation9_spill] sm:$0xff] }
 0x123   :  { %v1531_v53 = vpop.f32.mrf.mxu0  ;;  %v1496_v22 = vadd.f32 %v1495_v46, %v1494_v36  ;;  %v2084_v24 = vadd.f32 %v2192_v12, %v2191_v28  ;;  %v2200_v12 = vunpack.c.h.bf16 %v1993_v11 }
 0x124   :  { %v870_v42 = vadd.f32 %v1531_v53, %v773_v47  ;;  %v1539_v56 = vpop.f32.mrf.mxu1 }
 0x125   :  { %v902_v40 = vadd.f32 %v1539_v56, %v805_v55  ;;  %v861_v41 = vpop.f32.mrf.mxu0  ;;  %v821_v55 = vadd.f32 %v1493_v15, %v1429_v3  ;;  %v824_v56 = vadd.f32 %v1496_v22, %v1432_v17  ;;  %v2197_v3 = vunpack.c.l.bf16 %v1993_v11 }
 0x126   :  { %v984_v4 = vmul.f32 %v2062_v54, %v870_v42  ;;  %v862_v6 = vadd.f32 %v861_v41, %v2190_v5  ;;  %v893_v14 = vpop.f32.mrf.mxu1  ;;  %v2198_v17 = vunpack.c.h.bf16 %v1983_v9 }
 0x127   :  { %v992_v18 = vmul.f32 %v2062_v54, %v902_v40  ;;  %v894_v19 = vadd.f32 %v893_v14, %v797_v57  ;;  %v1532_v21 = vpop.f32.mrf.mxu0 }
 0x128   :  { %v1007_v23 = vadd.f32 %v2071_v39, %v984_v4  ;;  %v982_v26 = vmul.f32 %v2062_v54, %v862_v6  ;;  %v873_v27 = vadd.f32 %v1532_v21, %v776_v48  ;;  %v1540_v29 = vpop.f32.mrf.mxu1 }
 0x129   :  { %v1015_v32 = vadd.f32 %v2071_v39, %v992_v18  ;;  %v990_v8 = vmul.f32 %v2062_v54, %v894_v19  ;;  %v905_v20 = vadd.f32 %v1540_v29, %v808_v61  ;;  %v864_v30 = vpop.f32.mrf.mxu0 }
 0x12a   :  { %v1055_v34 = vadd.f32 %v2193_v33, %v1007_v23  ;;  %v1005_v35 = vadd.f32 %v2071_v39, %v982_v26  ;;  %v985_v36 = vmul.f32 %v2062_v54, %v873_v27  ;;  %v865_v37 = vadd.f32 %v864_v30, %v768_v49  ;;  %v896_v38 = vpop.f32.mrf.mxu1 }
 0x12b   :  { %v1063_v44 = vadd.f32 %v2194_v43, %v1015_v32  ;;  %v1013_v45 = vadd.f32 %v2071_v39, %v990_v8  ;;  %v993_v46 = vmul.f32 %v2062_v54, %v905_v20  ;;  %v897_v47 = vadd.f32 %v896_v38, %v800_v62  ;;  %v1535_v48 = vpop.f32.mrf.mxu0 }
 0x12c   :  { %v1008_v51 = vadd.f32 %v2071_v39, %v985_v36  ;;  %v983_v53 = vmul.f32 %v2062_v54, %v865_v37  ;;  %v1543_v42 = vpop.f32.mrf.mxu1  ;;  %v1071_v57 = vmax.f32 %v1055_v34, 0.0  ;;  %v2195_v49 = vunpack.c.l.bf16 %v1988_v10 }
 0x12d   :  { %v1016_v41 = vadd.f32 %v2071_v39, %v993_v46  ;;  %v991_v61 = vmul.f32 %v2062_v54, %v897_v47  ;;  %v877_v0 = vpop.f32.mrf.mxu0  ;;  %v1079_v1 = vmax.f32 %v1063_v44, 0.0  ;;  %v2196_v62 = vunpack.c.h.bf16 %v1976_v7 }
 0x12e   :  { %v1053_v40 = vadd.f32 %v2195_v49, %v1005_v35  ;;  %v1006_v5 = vadd.f32 %v2071_v39, %v983_v53  ;;  %v886_v6 = vadd.f32 %v1535_v48, %v789_v58  ;;  %v909_v14 = vpop.f32.mrf.mxu1  ;;  %v1061_v15 = vadd.f32 %v2197_v3, %v1013_v45 }
 0x12f   :  { %v1056_v4 = vadd.f32 %v2196_v62, %v1008_v51  ;;  %v1064_v18 = vadd.f32 %v2198_v17, %v1016_v41  ;;  %v1014_v19 = vadd.f32 %v2071_v39, %v991_v61  ;;  %v918_v21 = vadd.f32 %v1543_v42, %v821_v55  ;;  %v1536_v22 = vpop.f32.mrf.mxu0 }
 0x130   :  { %v2199_v26 = vunpack.c.h.bf16 %v1988_v10  ;;  %v988_v7 = vmul.f32 %v2062_v54, %v886_v6  ;;  %v878_v29 = vadd.f32 %v877_v0, %v2064_v25  ;;  %v1544_v58 = vpop.f32.mrf.mxu1  ;;  %v910_v8 = vadd.f32 %v909_v14, %v813_v63 }
 0x131   :  { %v1072_v23 = vmax.f32 %v1056_v4, 0.0  ;;  %v1080_v28 = vmax.f32 %v1064_v18, 0.0  ;;  %v1062_v32 = vadd.f32 %v2200_v12, %v1014_v19  ;;  %v996_v9 = vmul.f32 %v2062_v54, %v918_v21  ;;  %v880_v38 = vpop.f32.mrf.mxu0 }
 0x132   :  { %v1054_v27 = vadd.f32 %v2199_v26, %v1006_v5  ;;  %v1069_v20 = vmax.f32 %v1053_v40, 0.0  ;;  %v986_v34 = vmul.f32 %v2062_v54, %v878_v29  ;;  %v1077_v35 = vmax.f32 %v1061_v15, 0.0  ;;  %v912_v44 = vpop.f32.mrf.mxu1  ;;  %v2202_v40 = vld [vmem:[#allocation8_spill] sm:$0xff] }
 0x133   :  { %v1323_v30 = vpack.c.bf16 %v1072_v23, %v1071_v57  ;;  %v1343_v10 = vpack.c.bf16 %v1080_v28, %v1079_v1  ;;  %v1078_v36 = vmax.f32 %v1062_v32, 0.0  ;;  %v994_v37 = vmul.f32 %v2062_v54, %v910_v8 }
 0x134   :  { %v1070_v33 = vmax.f32 %v1054_v27, 0.0  ;;  %v1011_v25 = vadd.f32 %v2071_v39, %v988_v7  ;;  %v889_v63 = vadd.f32 %v1536_v22, %v2066_v60  ;;  %v784_v43 = vadd.f32 %v2057_v52, %v2053_v59 }
 0x135   :  { %1362 = vst [vmem:[%s2177_s5 + $0x8] sm:$0xff] %v1323_v30   ;;  %1366 = vst [vmem:[%s2177_s5 + $0x28] sm:$0xff] %v1343_v10   ;;  %v1338_v45 = vpack.c.bf16 %v1078_v36, %v1077_v35  ;;  %v1019_v46 = vadd.f32 %v2071_v39, %v996_v9  ;;  %v921_v47 = vadd.f32 %v1544_v58, %v824_v56  ;;  %v1298_v52 = vunpack.c.h.bf16 %v2000_v13 }
 0x136   :  { %v1318_v11 = vpack.c.bf16 %v1070_v33, %v1069_v20  ;;  %v816_v48 = vadd.f32 %v2084_v24, %v2075_v2  ;;  %v1009_v60 = vadd.f32 %v2071_v39, %v986_v34  ;;  %v989_v59 = vmul.f32 %v2062_v54, %v889_v63 }
 0x137   :  { %v881_v51 = vadd.f32 %v880_v38, %v784_v43  ;;  %1365 = vst [vmem:[%s2177_s5 + $0x20] sm:$0xff] %v1338_v45   ;;  %v1017_v53 = vadd.f32 %v2071_v39, %v994_v37  ;;  %v997_v55 = vmul.f32 %v2062_v54, %v921_v47  ;;  %v1314_v2 = vunpack.c.h.bf16 %v2008_v16 }
 0x138   :  { %1319 = vst [vmem:[%s2177_s5] sm:$0xff] %v1318_v11   ;;  %v913_v24 = vadd.f32 %v912_v44, %v816_v48  ;;  %v2201_v42 = vunpack.c.l.bf16 %v2000_v13  ;;  %v1012_v57 = vadd.f32 %v2071_v39, %v989_v59  ;;  %v1294_v41 = vunpack.c.h.bf16 %v2202_v40 }
 0x139   :  { %v987_v49 = vmul.f32 %v2062_v54, %v881_v51  ;;  %v2203_v61 = vunpack.c.l.bf16 %v2008_v16  ;;  %v1020_v1 = vadd.f32 %v2071_v39, %v997_v55  ;;  %v1310_v4 = vunpack.c.h.bf16 %v2046_v31 }
 0x13a   :  { %v1059_v56 = vadd.f32 %v2201_v42, %v1011_v25  ;;  %v995_v62 = vmul.f32 %v2062_v54, %v913_v24  ;;  %v2204_v5 = vunpack.c.l.bf16 %v2202_v40  ;;  %v1060_v13 = vadd.f32 %v1298_v52, %v1012_v57 }
 0x13b   :  { %v1067_v0 = vadd.f32 %v2203_v61, %v1019_v46  ;;  %v1010_v14 = vadd.f32 %v2071_v39, %v987_v49  ;;  %v1065_v3 = vadd.f32 %v1309_v50, %v1017_v53  ;;  %v1068_v15 = vadd.f32 %v1314_v2, %v1020_v1 }
 0x13c   :  { %v1057_v6 = vadd.f32 %v2204_v5, %v1009_v60  ;;  %v1018_v17 = vadd.f32 %v2071_v39, %v995_v62  ;;  %v1075_v16 = vmax.f32 %v1059_v56, 0.0  ;;  %v1076_v18 = vmax.f32 %v1060_v13, 0.0 }
 0x13d   :  { %v1058_v19 = vadd.f32 %v1294_v41, %v1010_v14  ;;  %v1083_v21 = vmax.f32 %v1067_v0, 0.0  ;;  %v1084_v22 = vmax.f32 %v1068_v15, 0.0  ;;  %v1081_v7 = vmax.f32 %v1065_v3, 0.0 }
 0x13e   :  { %v1066_v54 = vadd.f32 %v1310_v4, %v1018_v17  ;;  %v1073_v23 = vmax.f32 %v1057_v6, 0.0  ;;  %v1333_v26 = vpack.c.bf16 %v1076_v18, %v1075_v16 }
 0x13f   :  { %v1074_v27 = vmax.f32 %v1058_v19, 0.0  ;;  %v1353_v29 = vpack.c.bf16 %v1084_v22, %v1083_v21 }
 0x140   :  { %v1082_v58 = vmax.f32 %v1066_v54, 0.0  ;;  %1364 = vst [vmem:[%s2177_s5 + $0x18] sm:$0xff] %v1333_v26  }
 0x141   :  { %v1328_v31 = vpack.c.bf16 %v1074_v27, %v1073_v23  ;;  %1368 = vst [vmem:[%s2177_s5 + $0x38] sm:$0xff] %v1353_v29  }
 0x142   :  { %v1348_v50 = vpack.c.bf16 %v1082_v58, %v1081_v7 }
 0x143   :  { %1363 = vst [vmem:[%s2177_s5 + $0x10] sm:$0xff] %v1328_v31  }
 0x144   :  { %1367 = vst [vmem:[%s2177_s5 + $0x30] sm:$0xff] %v1348_v50  }

// kernel: simclr_forward.26
= control target key start
LH: loop header
LB: loop body
LE: loop exit
PB: predicated region body
PF: predicated region fallthrough
CT: control target
= control target key end

     0   :  { %s1919_s1 = inlined_call_operand.vmem [shape: bf16[640,128], index: 1, kind: input, shape index: {}]   ;;  %s1920_s0 = inlined_call_operand.vmem [shape: bf16[128,640], index: 0, kind: input, shape index: {}]   ;;  %s1921_s2 = inlined_call_operand.vmem [shape: f32[1,128], index: 2, kind: input, shape index: {}]   ;;  %s1922_s3 = inlined_call_operand.vmem [shape: f32[1,128], index: 3, kind: input, shape index: {}]   ;;  %s1923_s4 = inlined_call_operand.vmem [shape: bf16[128,128], index: 4, kind: output, shape index: {}]  }
   0x1   :  { %v1471_v0 = vld [vmem:[%s1919_s1 + $0x78] sm:$0xff]   ;;  %v1475_v4 = vld [vmem:[%s1919_s1 + $0x70] sm:$0xff]   ;;  %v1479_v8 = vld [vmem:[%s1919_s1 + $0x68] sm:$0xff]  }
   0x2   :  { %v1472_v1 = vld [vmem:[%s1919_s1 + $0xf8] sm:$0xff]   ;;  %1279 = vmatprep.subr.bf16.mxu0 %v1471_v0  ;;  %v1476_v5 = vld [vmem:[%s1919_s1 + $0xf0] sm:$0xff]   ;;  %v1480_v9 = vld [vmem:[%s1919_s1 + $0xe8] sm:$0xff]  }
   0x3   :  { %v1473_v2 = vld [vmem:[%s1919_s1 + $0x38] sm:$0xff]   ;;  %1343 = vmatprep.subr.bf16.mxu1 %v1472_v1  ;;  %v1477_v6 = vld [vmem:[%s1919_s1 + $0x30] sm:$0xff]   ;;  %v1481_v10 = vld [vmem:[%s1919_s1 + $0x28] sm:$0xff]  }
   0x4   :  { %v1474_v3 = vld [vmem:[%s1919_s1 + $0xb8] sm:$0xff]   ;;  %1280 = vmatpush3.bf16.msra.mxu0 %v1473_v2  ;;  %v1478_v7 = vld [vmem:[%s1919_s1 + $0xb0] sm:$0xff]   ;;  %v1482_v11 = vld [vmem:[%s1919_s1 + $0xa8] sm:$0xff]  }
   0x5   :  { %1344 = vmatpush3.bf16.msra.mxu1 %v1474_v3  ;;  %1281 = vmatprep.subr.bf16.mxu0 %v1475_v4  ;;  %v1483_v12 = vld [vmem:[%s1919_s1 + $0x60] sm:$0xff]   ;;  %v1487_v16 = vld [vmem:[%s1919_s1 + $0x58] sm:$0xff]   ;;  %v1491_v20 = vld [vmem:[%s1919_s1 + $0x50] sm:$0xff]  }
   0x6   :  { %1345 = vmatprep.subr.bf16.mxu1 %v1476_v5  ;;  %v1484_v13 = vld [vmem:[%s1919_s1 + $0xe0] sm:$0xff]   ;;  %v1488_v17 = vld [vmem:[%s1919_s1 + $0xd8] sm:$0xff]   ;;  %v1492_v21 = vld [vmem:[%s1919_s1 + $0xd0] sm:$0xff]  }
   0x7   :  { %v1485_v14 = vld [vmem:[%s1919_s1 + $0x20] sm:$0xff]   ;;  %v1489_v18 = vld [vmem:[%s1919_s1 + $0x18] sm:$0xff]   ;;  %v1493_v22 = vld [vmem:[%s1919_s1 + $0x10] sm:$0xff]  }
   0x8   :  { %1282 = vmatpush3.bf16.msra.mxu0 %v1477_v6  ;;  %v1486_v15 = vld [vmem:[%s1919_s1 + $0xa0] sm:$0xff]   ;;  %v1490_v19 = vld [vmem:[%s1919_s1 + $0x98] sm:$0xff]   ;;  %v1494_v23 = vld [vmem:[%s1919_s1 + $0x90] sm:$0xff]  }
   0x9   :  { %1346 = vmatpush3.bf16.msra.mxu1 %v1478_v7  ;;  %1283 = vmatprep.subr.bf16.mxu0 %v1479_v8  ;;  %v1495_v24 = vld [vmem:[%s1919_s1 + $0x48] sm:$0xff]   ;;  %v1499_v28 = vld [vmem:[%s1919_s1 + $0x40] sm:$0xff]   ;;  %v1509_v36 = vld [vmem:[%s1919_s1 + $0x138] sm:$0xff]  }
   0xa   :  { %1347 = vmatprep.subr.bf16.mxu1 %v1480_v9  ;;  %v1496_v25 = vld [vmem:[%s1919_s1 + $0xc8] sm:$0xff]   ;;  %v1500_v29 = vld [vmem:[%s1919_s1 + $0xc0] sm:$0xff]   ;;  %v1516_v39 = vld [vmem:[%s1919_s1 + $0x130] sm:$0xff]  }
   0xb   :  { %v1497_v26 = vld [vmem:[%s1919_s1 + $0x8] sm:$0xff]   ;;  %v1501_v30 = vld [vmem:[%s1919_s1] sm:$0xff]   ;;  %v1519_v43 = vld [vmem:[%s1920_s0 + $0x5c] ss:$20 sps:$4 sm:$0xff]  }
   0xc   :  { %1284 = vmatpush3.bf16.msra.mxu0 %v1481_v10  ;;  %v1498_v27 = vld [vmem:[%s1919_s1 + $0x88] sm:$0xff]   ;;  %v1502_v31 = vld [vmem:[%s1919_s1 + $0x80] sm:$0xff]   ;;  %v1524_v48 = vld [vmem:[%s1920_s0 + $0x7c] ss:$20 sps:$4 sm:$0xff]  }
   0xd   :  { %1348 = vmatpush3.bf16.msra.mxu1 %v1482_v11  ;;  %1285 = vmatprep.subr.bf16.mxu0 %v1483_v12  ;;  %v1503_v32 = vld [vmem:[%s1920_s0] ss:$20 sps:$4 sm:$0xff]   ;;  %v1505_v33 = vld [vmem:[%s1920_s0 + $0x4] ss:$20 sps:$4 sm:$0xff]   ;;  %v1506_v34 = vld [vmem:[%s1920_s0 + $0x8] ss:$20 sps:$4 sm:$0xff]  }
   0xe   :  { %1349 = vmatprep.subr.bf16.mxu1 %v1484_v13  ;;  %v1508_v35 = vld [vmem:[%s1920_s0 + $0xc] ss:$20 sps:$4 sm:$0xff]   ;;  %662 = vmatprep.mubr.bf16.mxu0 %v1505_v33  ;;  %v1512_v38 = vld [vmem:[%s1920_s0 + $0x34] ss:$20 sps:$4 sm:$0xff]   ;;  %v1515_v41 = vld [vmem:[%s1920_s0 + $0x30] ss:$20 sps:$4 sm:$0xff]  }
   0xf   :  { %759 = vmatprep.mubr.bf16.mxu1 %v1508_v35  ;;  %v1510_v37 = vld [vmem:[%s1920_s0 + $0x2c] ss:$20 sps:$4 sm:$0xff]   ;;  %v1514_v40 = vld [vmem:[%s1920_s0 + $0x28] ss:$20 sps:$4 sm:$0xff]   ;;  %v1521_v46 = vld [vmem:[%s1920_s0 + $0x50] ss:$20 sps:$4 sm:$0xff]  }
  0x10   :  { %1286 = vmatpush3.bf16.msra.mxu0 %v1485_v14  ;;  %v1517_v42 = vld [vmem:[%s1920_s0 + $0x54] ss:$20 sps:$4 sm:$0xff]   ;;  %v1530_v45 = vld [vmem:[%s1919_s1 + $0x120] sm:$0xff]   ;;  %v1522_v47 = vld [vmem:[%s1920_s0 + $0x58] ss:$20 sps:$4 sm:$0xff]  }
  0x11   :  { %1350 = vmatpush3.bf16.msra.mxu1 %v1486_v15  ;;  %1287 = vmatprep.subr.bf16.mxu0 %v1487_v16  ;;  %v1523_v44 = vld [vmem:[%s1919_s1 + $0x128] sm:$0xff]   ;;  %v1526_v49 = vld [vmem:[%s1920_s0 + $0x84] ss:$20 sps:$4 sm:$0xff]   ;;  %v1544_v51 = vld [vmem:[%s1919_s1 + $0x110] sm:$0xff]  }
  0x12   :  { %1351 = vmatprep.subr.bf16.mxu1 %v1488_v17  ;;  %v1537_v50 = vld [vmem:[%s1919_s1 + $0x118] sm:$0xff]   ;;  %v1529_v53 = vld [vmem:[%s1920_s0 + $0x80] ss:$20 sps:$4 sm:$0xff]   ;;  %v1551_v55 = vld [vmem:[%s1919_s1 + $0x108] sm:$0xff]  }
  0x13   :  { %v1528_v52 = vld [vmem:[%s1920_s0 + $0x78] ss:$20 sps:$4 sm:$0xff]   ;;  %v1558_v57 = vld [vmem:[%s1919_s1 + $0x100] sm:$0xff]   ;;  %v1536_v59 = vld [vmem:[%s1920_s0 + $0xa8] ss:$20 sps:$4 sm:$0xff]  }
  0x14   :  { %1288 = vmatpush3.bf16.msra.mxu0 %v1489_v18  ;;  %v1531_v54 = vld [vmem:[%s1920_s0 + $0xa4] ss:$20 sps:$4 sm:$0xff]   ;;  %v1533_v56 = vld [vmem:[%s1920_s0 + $0xac] ss:$20 sps:$4 sm:$0xff]   ;;  %v1540_v61 = vld [vmem:[%s1920_s0 + $0xd4] ss:$20 sps:$4 sm:$0xff]  }
  0x15   :  { %1352 = vmatpush3.bf16.msra.mxu1 %v1490_v19  ;;  %1289 = vmatprep.subr.bf16.mxu0 %v1491_v20  ;;  %v1535_v58 = vld [vmem:[%s1920_s0 + $0xa0] ss:$20 sps:$4 sm:$0xff]   ;;  %v1542_v62 = vld [vmem:[%s1920_s0 + $0xc8] ss:$20 sps:$4 sm:$0xff]   ;;  %v1543_v63 = vld [vmem:[%s1920_s0 + $0xd0] ss:$20 sps:$4 sm:$0xff]  }
  0x16   :  { %1353 = vmatprep.subr.bf16.mxu1 %v1492_v21  ;;  %v1538_v60 = vld [vmem:[%s1920_s0 + $0xcc] ss:$20 sps:$4 sm:$0xff]   ;;  %v1545_v0 = vld [vmem:[%s1920_s0 + $0xf4] ss:$20 sps:$4 sm:$0xff]   ;;  %v1547_v1 = vld [vmem:[%s1920_s0 + $0xfc] ss:$20 sps:$4 sm:$0xff]  }
  0x17   :  { %v1549_v2 = vld [vmem:[%s1920_s0 + $0xf0] ss:$20 sps:$4 sm:$0xff]   ;;  %v1550_v3 = vld [vmem:[%s1920_s0 + $0xf8] ss:$20 sps:$4 sm:$0xff]   ;;  %v1557_v7 = vld [vmem:[%s1920_s0 + $0x120] ss:$20 sps:$4 sm:$0xff]  }
  0x18   :  { %1290 = vmatpush3.bf16.msra.mxu0 %v1493_v22  ;;  %v1552_v4 = vld [vmem:[%s1920_s0 + $0x11c] ss:$20 sps:$4 sm:$0xff]   ;;  %v1554_v5 = vld [vmem:[%s1920_s0 + $0x124] ss:$20 sps:$4 sm:$0xff]   ;;  %v1563_v12 = vld [vmem:[%s1920_s0 + $0x60] ss:$20 sps:$4 sm:$0xff]  }
  0x19   :  { %1354 = vmatpush3.bf16.msra.mxu1 %v1494_v23  ;;  %1291 = vmatprep.subr.bf16.mxu0 %v1495_v24  ;;  %v1556_v6 = vld [vmem:[%s1920_s0 + $0x118] ss:$20 sps:$4 sm:$0xff]   ;;  %v1559_v8 = vld [vmem:[%s1920_s0 + $0x10] ss:$20 sps:$4 sm:$0xff]   ;;  %v1564_v13 = vld [vmem:[%s1920_s0 + $0x100] ss:$20 sps:$4 sm:$0xff]  }
  0x1a   :  { %1355 = vmatprep.subr.bf16.mxu1 %v1496_v25  ;;  %v1560_v9 = vld [vmem:[%s1920_s0 + $0xb0] ss:$20 sps:$4 sm:$0xff]   ;;  %v1561_v10 = vld [vmem:[%s1920_s0 + $0x38] ss:$20 sps:$4 sm:$0xff]   ;;  %v1565_v14 = vld [vmem:[%s1920_s0 + $0x88] ss:$20 sps:$4 sm:$0xff]  }
  0x1b   :  { %v1562_v11 = vld [vmem:[%s1920_s0 + $0xd8] ss:$20 sps:$4 sm:$0xff]   ;;  %v1566_v15 = vld [vmem:[%s1920_s0 + $0x128] ss:$20 sps:$4 sm:$0xff]  }
  0x1c   :  { %1292 = vmatpush3.bf16.msra.mxu0 %v1497_v26 }
  0x1d   :  { %1356 = vmatpush3.bf16.msra.mxu1 %v1498_v27  ;;  %1293 = vmatprep.subr.bf16.mxu0 %v1499_v28 }
  0x1e   :  { %1357 = vmatprep.subr.bf16.mxu1 %v1500_v29 }
  0x20   :  { %1294 = vmatpush3.bf16.msra.mxu0 %v1501_v30 }
  0x21   :  { %1358 = vmatpush3.bf16.msra.mxu1 %v1502_v31  ;;  %1423 = vmatprep.subr.bf16.mxu0 %v1509_v36 }
  0x22   :  { %1455 = vmatprep.subr.bf16.mxu1 %v1509_v36 }
  0x23   :  { %663 = vmatmul.mubr.bf16.vlgmr.msra.gmra.mxu0 %v1503_v32 }
  0x24   :  { %760 = vmatmul.mubr.bf16.vlgmr.msra.gmra.mxu1 %v1506_v34  ;;  %1424 = vmatpush3.bf16.msra.mxu0 %v1509_v36 }
  0x25   :  { %1463 = vmatpush3.bf16.msra.mxu1 %v1509_v36  ;;  %670 = vmatprep.mubr.bf16.mxu0 %v1510_v37 }
  0x26   :  { %767 = vmatprep.mubr.bf16.mxu1 %v1512_v38  ;;  %1425 = vmatprep.subr.bf16.mxu0 %v1516_v39 }
  0x27   :  { %1456 = vmatprep.subr.bf16.mxu1 %v1516_v39 }
  0x28   :  { %1426 = vmatpush3.bf16.msra.mxu0 %v1516_v39 }
  0x29   :  { %1464 = vmatpush3.bf16.msra.mxu1 %v1516_v39  ;;  %1427 = vmatprep.subr.bf16.mxu0 %v1523_v44 }
  0x2a   :  { %1457 = vmatprep.subr.bf16.mxu1 %v1523_v44 }
  0x2b   :  { %671 = vmatmul.mubr.bf16.gmra.mxu0 %v1514_v40 }
  0x2c   :  { %768 = vmatmul.mubr.bf16.gmra.mxu1 %v1515_v41  ;;  %678 = vmatprep.mubr.bf16.mxu0 %v1517_v42 }
  0x2d   :  { %775 = vmatprep.mubr.bf16.mxu1 %v1519_v43  ;;  %1428 = vmatpush3.bf16.msra.mxu0 %v1523_v44 }
  0x2e   :  { %1465 = vmatpush3.bf16.msra.mxu1 %v1523_v44  ;;  %1429 = vmatprep.subr.bf16.mxu0 %v1530_v45 }
  0x2f   :  { %1458 = vmatprep.subr.bf16.mxu1 %v1530_v45 }
  0x31   :  { %1430 = vmatpush3.bf16.msra.mxu0 %v1530_v45 }
  0x32   :  { %1466 = vmatpush3.bf16.msra.mxu1 %v1530_v45  ;;  %1431 = vmatprep.subr.bf16.mxu0 %v1537_v50 }
  0x33   :  { %679 = vmatmul.mubr.bf16.gmra.mxu0 %v1521_v46  ;;  %1459 = vmatprep.subr.bf16.mxu1 %v1537_v50 }
  0x34   :  { %776 = vmatmul.mubr.bf16.gmra.mxu1 %v1522_v47  ;;  %686 = vmatprep.mubr.bf16.mxu0 %v1524_v48 }
  0x35   :  { %783 = vmatprep.mubr.bf16.mxu1 %v1526_v49  ;;  %1432 = vmatpush3.bf16.msra.mxu0 %v1537_v50 }
  0x36   :  { %1467 = vmatpush3.bf16.msra.mxu1 %v1537_v50  ;;  %1433 = vmatprep.subr.bf16.mxu0 %v1544_v51 }
  0x37   :  { %1460 = vmatprep.subr.bf16.mxu1 %v1544_v51 }
  0x39   :  { %1434 = vmatpush3.bf16.msra.mxu0 %v1544_v51 }
  0x3a   :  { %1468 = vmatpush3.bf16.msra.mxu1 %v1544_v51  ;;  %1435 = vmatprep.subr.bf16.mxu0 %v1551_v55 }
  0x3b   :  { %687 = vmatmul.mubr.bf16.gmra.mxu0 %v1528_v52  ;;  %1461 = vmatprep.subr.bf16.mxu1 %v1551_v55 }
  0x3c   :  { %784 = vmatmul.mubr.bf16.gmra.mxu1 %v1529_v53  ;;  %694 = vmatprep.mubr.bf16.mxu0 %v1531_v54 }
  0x3d   :  { %791 = vmatprep.mubr.bf16.mxu1 %v1533_v56  ;;  %1436 = vmatpush3.bf16.msra.mxu0 %v1551_v55 }
  0x3e   :  { %1469 = vmatpush3.bf16.msra.mxu1 %v1551_v55  ;;  %1437 = vmatprep.subr.bf16.mxu0 %v1558_v57 }
  0x3f   :  { %1462 = vmatprep.subr.bf16.mxu1 %v1558_v57 }
  0x41   :  { %1438 = vmatpush3.bf16.msra.mxu0 %v1558_v57 }
  0x42   :  { %1470 = vmatpush3.bf16.msra.mxu1 %v1558_v57 }
  0x43   :  { %695 = vmatmul.mubr.bf16.gmra.mxu0 %v1535_v58 }
  0x44   :  { %792 = vmatmul.mubr.bf16.gmra.mxu1 %v1536_v59  ;;  %702 = vmatprep.mubr.bf16.mxu0 %v1538_v60 }
  0x45   :  { %799 = vmatprep.mubr.bf16.mxu1 %v1540_v61 }
  0x4b   :  { %703 = vmatmul.mubr.bf16.gmra.mxu0 %v1542_v62 }
  0x4c   :  { %800 = vmatmul.mubr.bf16.gmra.mxu1 %v1543_v63  ;;  %710 = vmatprep.mubr.bf16.mxu0 %v1545_v0 }
  0x4d   :  { %807 = vmatprep.mubr.bf16.mxu1 %v1547_v1 }
  0x53   :  { %711 = vmatmul.mubr.bf16.gmra.mxu0 %v1549_v2 }
  0x54   :  { %808 = vmatmul.mubr.bf16.gmra.mxu1 %v1550_v3  ;;  %718 = vmatprep.mubr.bf16.mxu0 %v1552_v4 }
  0x55   :  { %815 = vmatprep.mubr.bf16.mxu1 %v1554_v5 }
  0x5b   :  { %719 = vmatmul.mubr.bf16.gmra.mxu0 %v1556_v6 }
  0x5c   :  { %816 = vmatmul.mubr.bf16.gmra.mxu1 %v1557_v7  ;;  %1439 = vmatprep.mubr.bf16.mxu0 %v1559_v8 }
  0x5d   :  { %1447 = vmatprep.mubr.bf16.mxu1 %v1560_v9 }
  0x63   :  { %1440 = vmatmul.mubr.bf16.vlgmr.msra.gmra.mxu0 %v1561_v10 }
  0x64   :  { %1448 = vmatmul.mubr.bf16.vlgmr.msra.gmra.mxu1 %v1562_v11  ;;  %1443 = vmatprep.mubr.bf16.mxu0 %v1563_v12 }
  0x65   :  { %1451 = vmatprep.mubr.bf16.mxu1 %v1564_v13 }
  0x6b   :  { %1444 = vmatmul.mubr.bf16.gmra.mxu0 %v1565_v14 }
  0x6c   :  { %1452 = vmatmul.mubr.bf16.gmra.mxu1 %v1566_v15 }
  0xe3   :  { %v1295_v16 = vpop.f32.mrf.mxu0 }
  0xe4   :  { %v1359_v17 = vpop.f32.mrf.mxu1 }
  0xe5   :  { %v1296_v18 = vpop.f32.mrf.mxu0 }
  0xe6   :  { %v1297_v19 = vadd.f32 %v1296_v18, %v1295_v16  ;;  %v1360_v20 = vpop.f32.mrf.mxu1 }
  0xe7   :  { %v1361_v21 = vadd.f32 %v1360_v20, %v1359_v17  ;;  %v1298_v22 = vpop.f32.mrf.mxu0 }
  0xe8   :  { %v1362_v23 = vpop.f32.mrf.mxu1 }
  0xe9   :  { %v1299_v24 = vpop.f32.mrf.mxu0  ;;  %v1832_v25 = vadd.f32 %v1361_v21, %v1297_v19 }
  0xea   :  { %v1363_v26 = vpop.f32.mrf.mxu1  ;;  %v1300_v12 = vadd.f32 %v1299_v24, %v1298_v22 }
  0xeb   :  { %1924 = vst [vmem:[#allocation3_spill] sm:$0xff] %v1832_v25  ;;  %v1301_v27 = vpop.f32.mrf.mxu0  ;;  %v1364_v13 = vadd.f32 %v1363_v26, %v1362_v23 }
  0xec   :  { %v1365_v28 = vpop.f32.mrf.mxu1 }
  0xed   :  { %v1302_v29 = vpop.f32.mrf.mxu0 }
  0xee   :  { %v1366_v30 = vpop.f32.mrf.mxu1  ;;  %v1303_v15 = vadd.f32 %v1302_v29, %v1301_v27 }
  0xef   :  { %v1304_v31 = vpop.f32.mrf.mxu0  ;;  %v1367_v16 = vadd.f32 %v1366_v30, %v1365_v28 }
  0xf0   :  { %v1368_v32 = vpop.f32.mrf.mxu1 }
  0xf1   :  { %v1305_v33 = vpop.f32.mrf.mxu0 }
  0xf2   :  { %v1369_v34 = vpop.f32.mrf.mxu1  ;;  %v1306_v17 = vadd.f32 %v1305_v33, %v1304_v31 }
  0xf3   :  { %v1307_v35 = vpop.f32.mrf.mxu0  ;;  %v1370_v18 = vadd.f32 %v1369_v34, %v1368_v32 }
  0xf4   :  { %v1371_v36 = vpop.f32.mrf.mxu1 }
  0xf5   :  { %v1308_v37 = vpop.f32.mrf.mxu0 }
  0xf6   :  { %v1372_v38 = vpop.f32.mrf.mxu1  ;;  %v1309_v20 = vadd.f32 %v1308_v37, %v1307_v35 }
  0xf7   :  { %v1310_v39 = vpop.f32.mrf.mxu0  ;;  %v1373_v21 = vadd.f32 %v1372_v38, %v1371_v36  ;;  %v770_v36 = vadd.f32 %v1367_v16, %v1303_v15  ;;  %v773_v38 = vadd.f32 %v1370_v18, %v1306_v17 }
  0xf8   :  { %v1374_v40 = vpop.f32.mrf.mxu1 }
  0xf9   :  { %v1311_v41 = vpop.f32.mrf.mxu0 }
  0xfa   :  { %v1375_v42 = vpop.f32.mrf.mxu1  ;;  %v1312_v25 = vadd.f32 %v1311_v41, %v1310_v39  ;;  %v765_v39 = vadd.f32 %v1364_v13, %v1300_v12  ;;  %v1845_v41 = vld [vmem:[%s1921_s2] ss:$0 sm:$0xff] }
  0xfb   :  { %v1313_v43 = vpop.f32.mrf.mxu0 }
  0xfc   :  { %v1377_v44 = vpop.f32.mrf.mxu1 }
  0xfd   :  { %v1314_v45 = vpop.f32.mrf.mxu0 }
  0xfe   :  { %v1378_v46 = vpop.f32.mrf.mxu1 }
  0xff   :  { %v1316_v47 = vpop.f32.mrf.mxu0 }
 0x100   :  { %v1380_v48 = vpop.f32.mrf.mxu1 }
 0x101   :  { %v1317_v49 = vpop.f32.mrf.mxu0 }
 0x102   :  { %v1381_v50 = vpop.f32.mrf.mxu1  ;;  %v1318_v26 = vadd.f32 %v1317_v49, %v1316_v47 }
 0x103   :  { %v1319_v51 = vpop.f32.mrf.mxu0  ;;  %v1382_v27 = vadd.f32 %v1381_v50, %v1380_v48 }
 0x104   :  { %v1383_v52 = vpop.f32.mrf.mxu1 }
 0x105   :  { %v1320_v53 = vpop.f32.mrf.mxu0  ;;  %v1849_v50 = vadd.f32 %v1382_v27, %v1318_v26 }
 0x106   :  { %v1384_v54 = vpop.f32.mrf.mxu1  ;;  %v1321_v29 = vadd.f32 %v1320_v53, %v1319_v51 }
 0x107   :  { %v1322_v55 = vpop.f32.mrf.mxu0  ;;  %v1385_v28 = vadd.f32 %v1384_v54, %v1383_v52 }
 0x108   :  { %v1386_v56 = vpop.f32.mrf.mxu1 }
 0x109   :  { %v1323_v57 = vpop.f32.mrf.mxu0  ;;  %v794_v53 = vadd.f32 %v1385_v28, %v1321_v29 }
 0x10a   :  { %v1387_v58 = vpop.f32.mrf.mxu1  ;;  %v1324_v31 = vadd.f32 %v1323_v57, %v1322_v55 }
 0x10b   :  { %v1325_v59 = vpop.f32.mrf.mxu0  ;;  %v1388_v33 = vadd.f32 %v1387_v58, %v1386_v56 }
 0x10c   :  { %v1389_v60 = vpop.f32.mrf.mxu1 }
 0x10d   :  { %v1326_v61 = vpop.f32.mrf.mxu0  ;;  %v797_v55 = vadd.f32 %v1388_v33, %v1324_v31 }
 0x10e   :  { %v1390_v62 = vpop.f32.mrf.mxu1  ;;  %v1327_v22 = vadd.f32 %v1326_v61, %v1325_v59  ;;  %v1929_v59 = vld [vmem:[#allocation3_spill] sm:$0xff] }
 0x10f   :  { %v1328_v63 = vpop.f32.mrf.mxu0  ;;  %v1391_v24 = vadd.f32 %v1390_v62, %v1389_v60 }
 0x110   :  { %v1392_v0 = vpop.f32.mrf.mxu1 }
 0x111   :  { %v1329_v1 = vpop.f32.mrf.mxu0 }
 0x112   :  { %v1393_v2 = vpop.f32.mrf.mxu1  ;;  %v1330_v32 = vadd.f32 %v1329_v1, %v1328_v63 }
 0x113   :  { %v1331_v3 = vpop.f32.mrf.mxu0  ;;  %v1394_v34 = vadd.f32 %v1393_v2, %v1392_v0 }
 0x114   :  { %v1395_v4 = vpop.f32.mrf.mxu1 }
 0x115   :  { %v1332_v5 = vpop.f32.mrf.mxu0  ;;  %v805_v54 = vadd.f32 %v1394_v34, %v1330_v32 }
 0x116   :  { %v1396_v6 = vpop.f32.mrf.mxu1 }
 0x117   :  { %v1834_v7 = vpop.f32.mrf.mxu0  ;;  %v1397_v47 = vadd.f32 %v1396_v6, %v1395_v4 }
 0x118   :  { %1925 = vst [vmem:[#allocation4_spill] sm:$0xff] %v1834_v7  ;;  %v1836_v8 = vpop.f32.mrf.mxu1  ;;  %v1376_v7 = vadd.f32 %v1375_v42, %v1374_v40  ;;  %v802_v42 = vadd.f32 %v1391_v24, %v1327_v22 }
 0x119   :  { %1926 = vst [vmem:[#allocation5_spill] sm:$0xff] %v1836_v8  ;;  %v1838_v9 = vpop.f32.mrf.mxu0 }
 0x11a   :  { %1927 = vst [vmem:[#allocation6_spill] sm:$0xff] %v1838_v9  ;;  %v1840_v10 = vpop.f32.mrf.mxu1  ;;  %v1315_v9 = vadd.f32 %v1314_v45, %v1313_v43  ;;  %v1847_v45 = vadd.f32 %v1376_v7, %v1312_v25  ;;  %v1855_v25 = vld [vmem:[%s1922_s3] ss:$0 sm:$0xff] }
 0x11b   :  { %1928 = vst [vmem:[#allocation7_spill] sm:$0xff] %v1840_v10  ;;  %v1337_v11 = vpop.f32.mrf.mxu0  ;;  %v1379_v10 = vadd.f32 %v1378_v46, %v1377_v44  ;;  %v778_v44 = vadd.f32 %v1373_v21, %v1309_v20  ;;  %v1333_v46 = vadd.f32 %v1332_v5, %v1331_v3 }
 0x11c   :  { %v1401_v14 = vpop.f32.mrf.mxu1 }
 0x11d   :  { %v1338_v19 = vpop.f32.mrf.mxu0  ;;  %v786_v43 = vadd.f32 %v1379_v10, %v1315_v9  ;;  %v810_v9 = vadd.f32 %v1397_v47, %v1333_v46 }
 0x11e   :  { %v1402_v8 = vpop.f32.mrf.mxu1  ;;  %v1339_v56 = vadd.f32 %v1338_v19, %v1337_v11 }
 0x11f   :  { %v1340_v23 = vpop.f32.mrf.mxu0  ;;  %v1403_v57 = vadd.f32 %v1402_v8, %v1401_v14  ;;  %v1930_v3 = vld [vmem:[#allocation4_spill] sm:$0xff] }
 0x120   :  { %v1404_v30 = vpop.f32.mrf.mxu1  ;;  %v1932_v10 = vld [vmem:[#allocation5_spill] sm:$0xff] }
 0x121   :  { %v1341_v35 = vpop.f32.mrf.mxu0  ;;  %v1931_v4 = vld [vmem:[#allocation6_spill] sm:$0xff]  ;;  %v818_v21 = vadd.f32 %v1403_v57, %v1339_v56 }
 0x122   :  { %v1405_v37 = vpop.f32.mrf.mxu1  ;;  %v1342_v62 = vadd.f32 %v1341_v35, %v1340_v23  ;;  %v1336_v5 = vadd.f32 %v1931_v4, %v1930_v3  ;;  %v1933_v11 = vld [vmem:[#allocation7_spill] sm:$0xff] }
 0x123   :  { %v1441_v40 = vpop.f32.mrf.mxu0  ;;  %v1406_v63 = vadd.f32 %v1405_v37, %v1404_v30  ;;  %v1400_v12 = vadd.f32 %v1933_v11, %v1932_v10 }
 0x124   :  { %v867_v48 = vadd.f32 %v1441_v40, %v770_v36  ;;  %v1449_v49 = vpop.f32.mrf.mxu1 }
 0x125   :  { %v899_v51 = vadd.f32 %v1449_v49, %v802_v42  ;;  %v858_v52 = vpop.f32.mrf.mxu0  ;;  %v821_v27 = vadd.f32 %v1406_v63, %v1342_v62 }
 0x126   :  { %v981_v58 = vmul.f32 %v1845_v41, %v867_v48  ;;  %v859_v60 = vadd.f32 %v858_v52, %v1929_v59  ;;  %v890_v61 = vpop.f32.mrf.mxu1 }
 0x127   :  { %v989_v0 = vmul.f32 %v1845_v41, %v899_v51  ;;  %v891_v1 = vadd.f32 %v890_v61, %v794_v53  ;;  %v1442_v2 = vpop.f32.mrf.mxu0 }
 0x128   :  { %v979_v6 = vmul.f32 %v1845_v41, %v859_v60  ;;  %v870_v7 = vadd.f32 %v1442_v2, %v773_v38  ;;  %v1450_v8 = vpop.f32.mrf.mxu1  ;;  %v1004_v13 = vadd.f32 %v1855_v25, %v981_v58 }
 0x129   :  { %v987_v14 = vmul.f32 %v1845_v41, %v891_v1  ;;  %v902_v15 = vadd.f32 %v1450_v8, %v805_v54  ;;  %v861_v16 = vpop.f32.mrf.mxu0  ;;  %v1012_v17 = vadd.f32 %v1855_v25, %v989_v0  ;;  %v813_v0 = vadd.f32 %v1400_v12, %v1336_v5 }
 0x12a   :  { %v982_v18 = vmul.f32 %v1845_v41, %v870_v7  ;;  %v862_v19 = vadd.f32 %v861_v16, %v765_v39  ;;  %v893_v20 = vpop.f32.mrf.mxu1  ;;  %v1002_v22 = vadd.f32 %v1855_v25, %v979_v6  ;;  %v1020_v32 = vmax.f32 %v1004_v13, 0.0 }
 0x12b   :  { %v990_v24 = vmul.f32 %v1845_v41, %v902_v15  ;;  %v894_v23 = vadd.f32 %v893_v20, %v797_v55  ;;  %v1445_v26 = vpop.f32.mrf.mxu0  ;;  %v1010_v29 = vadd.f32 %v1855_v25, %v987_v14  ;;  %v1028_v38 = vmax.f32 %v1012_v17, 0.0 }
 0x12c   :  { %v1005_v28 = vadd.f32 %v1855_v25, %v982_v18  ;;  %v980_v30 = vmul.f32 %v1845_v41, %v862_v19  ;;  %v883_v31 = vadd.f32 %v1445_v26, %v786_v43  ;;  %v1453_v33 = vpop.f32.mrf.mxu1  ;;  %v1018_v47 = vmax.f32 %v1002_v22, 0.0 }
 0x12d   :  { %v1013_v34 = vadd.f32 %v1855_v25, %v990_v24  ;;  %v988_v35 = vmul.f32 %v1845_v41, %v894_v23  ;;  %v915_v37 = vadd.f32 %v1453_v33, %v818_v21  ;;  %v874_v36 = vpop.f32.mrf.mxu0  ;;  %v1026_v52 = vmax.f32 %v1010_v29, 0.0 }
 0x12e   :  { %v1021_v39 = vmax.f32 %v1005_v28, 0.0  ;;  %v1003_v40 = vadd.f32 %v1855_v25, %v980_v30  ;;  %v875_v42 = vadd.f32 %v874_v36, %v778_v44  ;;  %v906_v46 = vpop.f32.mrf.mxu1  ;;  %v985_v55 = vmul.f32 %v1845_v41, %v883_v31 }
 0x12f   :  { %v1029_v48 = vmax.f32 %v1013_v34, 0.0  ;;  %v1011_v49 = vadd.f32 %v1855_v25, %v988_v35  ;;  %v907_v51 = vadd.f32 %v906_v46, %v810_v9  ;;  %v1446_v43 = vpop.f32.mrf.mxu0  ;;  %v993_v59 = vmul.f32 %v1845_v41, %v915_v37 }
 0x130   :  { %v1240_v53 = vpack.c.bf16 %v1021_v39, %v1020_v32  ;;  %v1019_v54 = vmax.f32 %v1003_v40, 0.0  ;;  %v1454_v56 = vpop.f32.mrf.mxu1  ;;  %v983_v60 = vmul.f32 %v1845_v41, %v875_v42  ;;  %v886_v63 = vadd.f32 %v1446_v43, %v1849_v50 }
 0x131   :  { %v1260_v57 = vpack.c.bf16 %v1029_v48, %v1028_v38  ;;  %v1027_v58 = vmax.f32 %v1011_v49, 0.0  ;;  %v877_v44 = vpop.f32.mrf.mxu0  ;;  %v991_v62 = vmul.f32 %v1845_v41, %v907_v51  ;;  %v918_v3 = vadd.f32 %v1454_v56, %v821_v27 }
 0x132   :  { %1272 = vst [vmem:[%s1923_s4 + $0x8] sm:$0xff] %v1240_v53   ;;  %v1235_v61 = vpack.c.bf16 %v1019_v54, %v1018_v47  ;;  %v909_v1 = vpop.f32.mrf.mxu1  ;;  %v1008_v4 = vadd.f32 %v1855_v25, %v985_v55  ;;  %v986_v6 = vmul.f32 %v1845_v41, %v886_v63  ;;  %v878_v7 = vadd.f32 %v877_v44, %v1847_v45 }
 0x133   :  { %1276 = vst [vmem:[%s1923_s4 + $0x28] sm:$0xff] %v1260_v57   ;;  %v1255_v2 = vpack.c.bf16 %v1027_v58, %v1026_v52  ;;  %v910_v8 = vadd.f32 %v909_v1, %v813_v0  ;;  %v1016_v50 = vadd.f32 %v1855_v25, %v993_v59  ;;  %v1006_v5 = vadd.f32 %v1855_v25, %v983_v60 }
 0x134   :  { %1236 = vst [vmem:[%s1923_s4] sm:$0xff] %v1235_v61   ;;  %v994_v9 = vmul.f32 %v1845_v41, %v918_v3  ;;  %v1014_v10 = vadd.f32 %v1855_v25, %v991_v62  ;;  %v1009_v11 = vadd.f32 %v1855_v25, %v986_v6  ;;  %v984_v12 = vmul.f32 %v1845_v41, %v878_v7 }
 0x135   :  { %1275 = vst [vmem:[%s1923_s4 + $0x20] sm:$0xff] %v1255_v2   ;;  %v992_v13 = vmul.f32 %v1845_v41, %v910_v8  ;;  %v1024_v14 = vmax.f32 %v1008_v4, 0.0  ;;  %v1032_v18 = vmax.f32 %v1016_v50, 0.0  ;;  %v1022_v19 = vmax.f32 %v1006_v5, 0.0 }
 0x136   :  { %v1017_v45 = vadd.f32 %v1855_v25, %v994_v9  ;;  %v1025_v15 = vmax.f32 %v1009_v11, 0.0  ;;  %v1007_v16 = vadd.f32 %v1855_v25, %v984_v12  ;;  %v1030_v21 = vmax.f32 %v1014_v10, 0.0 }
 0x137   :  { %v1015_v17 = vadd.f32 %v1855_v25, %v992_v13 }
 0x138   :  { %v1033_v20 = vmax.f32 %v1017_v45, 0.0  ;;  %v1250_v22 = vpack.c.bf16 %v1025_v15, %v1024_v14  ;;  %v1023_v24 = vmax.f32 %v1007_v16, 0.0 }
 0x139   :  { %v1031_v23 = vmax.f32 %v1015_v17, 0.0 }
 0x13a   :  { %v1270_v26 = vpack.c.bf16 %v1033_v20, %v1032_v18  ;;  %1274 = vst [vmem:[%s1923_s4 + $0x18] sm:$0xff] %v1250_v22   ;;  %v1245_v41 = vpack.c.bf16 %v1023_v24, %v1022_v19 }
 0x13b   :  { %v1265_v27 = vpack.c.bf16 %v1031_v23, %v1030_v21 }
 0x13c   :  { %1278 = vst [vmem:[%s1923_s4 + $0x38] sm:$0xff] %v1270_v26   ;;  %1273 = vst [vmem:[%s1923_s4 + $0x10] sm:$0xff] %v1245_v41  }
 0x13d   :  { %1277 = vst [vmem:[%s1923_s4 + $0x30] sm:$0xff] %v1265_v27  }

// kernel: simclr_forward.30
= control target key start
LH: loop header
LB: loop body
LE: loop exit
PB: predicated region body
PF: predicated region fallthrough
CT: control target
= control target key end

     0   :  { %s1024_s1 = inlined_call_operand.vmem [shape: bf16[640,128], index: 1, kind: input, shape index: {}]   ;;  %s1025_s0 = inlined_call_operand.vmem [shape: bf16[32,640], index: 0, kind: input, shape index: {}]   ;;  %s1026_s2 = inlined_call_operand.vmem [shape: f32[1,128], index: 2, kind: input, shape index: {}]   ;;  %s1027_s3 = inlined_call_operand.vmem [shape: f32[1,128], index: 3, kind: input, shape index: {}]   ;;  %s1028_s4 = inlined_call_operand.vmem [shape: bf16[32,128], index: 4, kind: output, shape index: {}]  }
   0x1   :  { %v783_v0 = vld [vmem:[%s1024_s1 + $0x78] sm:$0xff]   ;;  %v787_v4 = vld [vmem:[%s1024_s1 + $0x70] sm:$0xff]   ;;  %v791_v8 = vld [vmem:[%s1024_s1 + $0x68] sm:$0xff]  }
   0x2   :  { %v784_v1 = vld [vmem:[%s1024_s1 + $0xf8] sm:$0xff]   ;;  %697 = vmatprep.subr.bf16.mxu0 %v783_v0  ;;  %v788_v5 = vld [vmem:[%s1024_s1 + $0xf0] sm:$0xff]   ;;  %v792_v9 = vld [vmem:[%s1024_s1 + $0xe8] sm:$0xff]  }
   0x3   :  { %v785_v2 = vld [vmem:[%s1024_s1 + $0x38] sm:$0xff]   ;;  %725 = vmatprep.subr.bf16.mxu1 %v784_v1  ;;  %v789_v6 = vld [vmem:[%s1024_s1 + $0x30] sm:$0xff]   ;;  %v793_v10 = vld [vmem:[%s1024_s1 + $0x28] sm:$0xff]  }
   0x4   :  { %v786_v3 = vld [vmem:[%s1024_s1 + $0xb8] sm:$0xff]   ;;  %698 = vmatpush3.bf16.msra.mxu0 %v785_v2  ;;  %v790_v7 = vld [vmem:[%s1024_s1 + $0xb0] sm:$0xff]   ;;  %v794_v11 = vld [vmem:[%s1024_s1 + $0xa8] sm:$0xff]  }
   0x5   :  { %726 = vmatpush3.bf16.msra.mxu1 %v786_v3  ;;  %699 = vmatprep.subr.bf16.mxu0 %v787_v4  ;;  %v795_v12 = vld [vmem:[%s1024_s1 + $0x60] sm:$0xff]   ;;  %v799_v16 = vld [vmem:[%s1024_s1 + $0x58] sm:$0xff]   ;;  %v803_v20 = vld [vmem:[%s1024_s1 + $0x50] sm:$0xff]  }
   0x6   :  { %727 = vmatprep.subr.bf16.mxu1 %v788_v5  ;;  %v796_v13 = vld [vmem:[%s1024_s1 + $0xe0] sm:$0xff]   ;;  %v800_v17 = vld [vmem:[%s1024_s1 + $0xd8] sm:$0xff]   ;;  %v804_v21 = vld [vmem:[%s1024_s1 + $0xd0] sm:$0xff]  }
   0x7   :  { %v797_v14 = vld [vmem:[%s1024_s1 + $0x20] sm:$0xff]   ;;  %v801_v18 = vld [vmem:[%s1024_s1 + $0x18] sm:$0xff]   ;;  %v805_v22 = vld [vmem:[%s1024_s1 + $0x10] sm:$0xff]  }
   0x8   :  { %700 = vmatpush3.bf16.msra.mxu0 %v789_v6  ;;  %v798_v15 = vld [vmem:[%s1024_s1 + $0xa0] sm:$0xff]   ;;  %v802_v19 = vld [vmem:[%s1024_s1 + $0x98] sm:$0xff]   ;;  %v806_v23 = vld [vmem:[%s1024_s1 + $0x90] sm:$0xff]  }
   0x9   :  { %728 = vmatpush3.bf16.msra.mxu1 %v790_v7  ;;  %701 = vmatprep.subr.bf16.mxu0 %v791_v8  ;;  %v807_v24 = vld [vmem:[%s1024_s1 + $0x48] sm:$0xff]   ;;  %v811_v28 = vld [vmem:[%s1024_s1 + $0x40] sm:$0xff]   ;;  %v821_v36 = vld [vmem:[%s1024_s1 + $0x138] sm:$0xff]  }
   0xa   :  { %729 = vmatprep.subr.bf16.mxu1 %v792_v9  ;;  %v808_v25 = vld [vmem:[%s1024_s1 + $0xc8] sm:$0xff]   ;;  %v812_v29 = vld [vmem:[%s1024_s1 + $0xc0] sm:$0xff]   ;;  %v822_v37 = vld [vmem:[%s1024_s1 + $0x130] sm:$0xff]  }
   0xb   :  { %v809_v26 = vld [vmem:[%s1024_s1 + $0x8] sm:$0xff]   ;;  %v813_v30 = vld [vmem:[%s1024_s1] sm:$0xff]   ;;  %v825_v45 = vld [vmem:[%s1024_s1 + $0x118] sm:$0xff]  }
   0xc   :  { %702 = vmatpush3.bf16.msra.mxu0 %v793_v10  ;;  %v810_v27 = vld [vmem:[%s1024_s1 + $0x88] sm:$0xff]   ;;  %v814_v31 = vld [vmem:[%s1024_s1 + $0x80] sm:$0xff]   ;;  %v832_v46 = vld [vmem:[%s1024_s1 + $0x110] sm:$0xff]  }
   0xd   :  { %730 = vmatpush3.bf16.msra.mxu1 %v794_v11  ;;  %703 = vmatprep.subr.bf16.mxu0 %v795_v12  ;;  %v815_v32 = vld [vmem:[%s1025_s0] ss:$20 sps:$4 sm:$0xff]   ;;  %v817_v33 = vld [vmem:[%s1025_s0 + $0x4] ss:$20 sps:$4 sm:$0xff]   ;;  %v818_v34 = vld [vmem:[%s1025_s0 + $0x8] ss:$20 sps:$4 sm:$0xff]  }
   0xe   :  { %731 = vmatprep.subr.bf16.mxu1 %v796_v13  ;;  %v820_v35 = vld [vmem:[%s1025_s0 + $0xc] ss:$20 sps:$4 sm:$0xff]   ;;  %446 = vmatprep.mubr.bf16.mxu0 %v817_v33  ;;  %v828_v40 = vld [vmem:[%s1025_s0 + $0x34] ss:$20 sps:$4 sm:$0xff]   ;;  %v831_v42 = vld [vmem:[%s1025_s0 + $0x30] ss:$20 sps:$4 sm:$0xff]  }
   0xf   :  { %495 = vmatprep.mubr.bf16.mxu1 %v820_v35  ;;  %v823_v38 = vld [vmem:[%s1024_s1 + $0x128] sm:$0xff]   ;;  %v824_v43 = vld [vmem:[%s1024_s1 + $0x120] sm:$0xff]  }
  0x10   :  { %704 = vmatpush3.bf16.msra.mxu0 %v797_v14  ;;  %v826_v39 = vld [vmem:[%s1025_s0 + $0x2c] ss:$20 sps:$4 sm:$0xff]   ;;  %v830_v41 = vld [vmem:[%s1025_s0 + $0x28] ss:$20 sps:$4 sm:$0xff]   ;;  %v835_v44 = vld [vmem:[%s1025_s0 + $0x10] ss:$20 sps:$4 sm:$0xff]  }
  0x11   :  { %732 = vmatpush3.bf16.msra.mxu1 %v798_v15  ;;  %705 = vmatprep.subr.bf16.mxu0 %v799_v16  ;;  %v833_v47 = vld [vmem:[%s1024_s1 + $0x108] sm:$0xff]   ;;  %v834_v48 = vld [vmem:[%s1024_s1 + $0x100] sm:$0xff]  }
  0x12   :  { %733 = vmatprep.subr.bf16.mxu1 %v800_v17  ;;  %v836_v49 = vld [vmem:[%s1025_s0 + $0x38] ss:$20 sps:$4 sm:$0xff]   ;;  %v676_v10 = vld [vmem:[%s1026_s2] ss:$0 sm:$0xff] }
  0x14   :  { %706 = vmatpush3.bf16.msra.mxu0 %v801_v18 }
  0x15   :  { %734 = vmatpush3.bf16.msra.mxu1 %v802_v19  ;;  %707 = vmatprep.subr.bf16.mxu0 %v803_v20  ;;  %v677_v19 = vld [vmem:[%s1027_s3] ss:$0 sm:$0xff] }
  0x16   :  { %735 = vmatprep.subr.bf16.mxu1 %v804_v21 }
  0x18   :  { %708 = vmatpush3.bf16.msra.mxu0 %v805_v22 }
  0x19   :  { %736 = vmatpush3.bf16.msra.mxu1 %v806_v23  ;;  %709 = vmatprep.subr.bf16.mxu0 %v807_v24 }
  0x1a   :  { %737 = vmatprep.subr.bf16.mxu1 %v808_v25 }
  0x1c   :  { %710 = vmatpush3.bf16.msra.mxu0 %v809_v26 }
  0x1d   :  { %738 = vmatpush3.bf16.msra.mxu1 %v810_v27  ;;  %711 = vmatprep.subr.bf16.mxu0 %v811_v28 }
  0x1e   :  { %739 = vmatprep.subr.bf16.mxu1 %v812_v29 }
  0x20   :  { %712 = vmatpush3.bf16.msra.mxu0 %v813_v30 }
  0x21   :  { %740 = vmatpush3.bf16.msra.mxu1 %v814_v31  ;;  %763 = vmatprep.subr.bf16.mxu0 %v821_v36 }
  0x23   :  { %447 = vmatmul.mubr.bf16.vlgmr.msra.gmra.mxu0 %v815_v32 }
  0x24   :  { %496 = vmatmul.mubr.bf16.vlgmr.msra.gmra.mxu1 %v818_v34  ;;  %764 = vmatpush3.bf16.msra.mxu0 %v821_v36 }
  0x25   :  { %765 = vmatprep.subr.bf16.mxu0 %v822_v37  ;;  %454 = vmatprep.mubr.bf16.mxu0 %v826_v39 }
  0x26   :  { %503 = vmatprep.mubr.bf16.mxu1 %v828_v40 }
  0x28   :  { %766 = vmatpush3.bf16.msra.mxu0 %v822_v37 }
  0x29   :  { %767 = vmatprep.subr.bf16.mxu0 %v823_v38 }
  0x2b   :  { %455 = vmatmul.mubr.bf16.gmra.mxu0 %v830_v41 }
  0x2c   :  { %504 = vmatmul.mubr.bf16.gmra.mxu1 %v831_v42  ;;  %768 = vmatpush3.bf16.msra.mxu0 %v823_v38 }
  0x2d   :  { %769 = vmatprep.subr.bf16.mxu0 %v824_v43  ;;  %779 = vmatprep.mubr.bf16.mxu0 %v835_v44 }
  0x30   :  { %770 = vmatpush3.bf16.msra.mxu0 %v824_v43 }
  0x31   :  { %771 = vmatprep.subr.bf16.mxu0 %v825_v45 }
  0x34   :  { %772 = vmatpush3.bf16.msra.mxu0 %v825_v45 }
  0x35   :  { %773 = vmatprep.subr.bf16.mxu0 %v832_v46 }
  0x38   :  { %774 = vmatpush3.bf16.msra.mxu0 %v832_v46 }
  0x39   :  { %775 = vmatprep.subr.bf16.mxu0 %v833_v47 }
  0x3c   :  { %776 = vmatpush3.bf16.msra.mxu0 %v833_v47 }
  0x3d   :  { %777 = vmatprep.subr.bf16.mxu0 %v834_v48 }
  0x40   :  { %778 = vmatpush3.bf16.msra.mxu0 %v834_v48 }
  0x43   :  { %780 = vmatmul.mubr.bf16.vlgmr.msra.gmra.mxu0 %v836_v49 }
  0xe3   :  { %v713_v50 = vpop.f32.mrf.mxu0 }
  0xe4   :  { %v741_v51 = vpop.f32.mrf.mxu1 }
  0xe5   :  { %v714_v52 = vpop.f32.mrf.mxu0 }
  0xe6   :  { %v742_v53 = vpop.f32.mrf.mxu1  ;;  %v715_v4 = vadd.f32 %v714_v52, %v713_v50 }
  0xe7   :  { %v716_v54 = vpop.f32.mrf.mxu0  ;;  %v743_v5 = vadd.f32 %v742_v53, %v741_v51 }
  0xe8   :  { %v744_v55 = vpop.f32.mrf.mxu1 }
  0xe9   :  { %v717_v56 = vpop.f32.mrf.mxu0  ;;  %v498_v14 = vadd.f32 %v743_v5, %v715_v4 }
  0xea   :  { %v745_v57 = vpop.f32.mrf.mxu1  ;;  %v718_v11 = vadd.f32 %v717_v56, %v716_v54 }
  0xeb   :  { %v719_v58 = vpop.f32.mrf.mxu0  ;;  %v746_v12 = vadd.f32 %v745_v57, %v744_v55 }
  0xec   :  { %v747_v59 = vpop.f32.mrf.mxu1 }
  0xed   :  { %v720_v60 = vpop.f32.mrf.mxu0  ;;  %v501_v23 = vadd.f32 %v746_v12, %v718_v11 }
  0xee   :  { %v748_v61 = vpop.f32.mrf.mxu1  ;;  %v721_v0 = vadd.f32 %v720_v60, %v719_v58 }
  0xef   :  { %v722_v62 = vpop.f32.mrf.mxu0  ;;  %v749_v1 = vadd.f32 %v748_v61, %v747_v59 }
  0xf0   :  { %v750_v63 = vpop.f32.mrf.mxu1 }
  0xf1   :  { %v723_v2 = vpop.f32.mrf.mxu0  ;;  %v506_v8 = vadd.f32 %v749_v1, %v721_v0 }
  0xf2   :  { %v751_v3 = vpop.f32.mrf.mxu1  ;;  %v724_v6 = vadd.f32 %v723_v2, %v722_v62 }
  0xf3   :  { %v752_v7 = vadd.f32 %v751_v3, %v750_v63 }
  0xf5   :  { %v509_v18 = vadd.f32 %v752_v7, %v724_v6 }
 0x103   :  { %v781_v9 = vpop.f32.mrf.mxu0 }
 0x104   :  { %v555_v13 = vadd.f32 %v781_v9, %v506_v8 }
 0x105   :  { %v546_v15 = vpop.f32.mrf.mxu0 }
 0x106   :  { %v585_v16 = vmul.f32 %v676_v10, %v555_v13  ;;  %v547_v17 = vadd.f32 %v546_v15, %v498_v14 }
 0x107   :  { %v782_v20 = vpop.f32.mrf.mxu0 }
 0x108   :  { %v583_v21 = vmul.f32 %v676_v10, %v547_v17  ;;  %v558_v22 = vadd.f32 %v782_v20, %v509_v18  ;;  %v596_v25 = vadd.f32 %v677_v19, %v585_v16 }
 0x109   :  { %v549_v24 = vpop.f32.mrf.mxu0 }
 0x10a   :  { %v586_v26 = vmul.f32 %v676_v10, %v558_v22  ;;  %v550_v27 = vadd.f32 %v549_v24, %v501_v23  ;;  %v594_v28 = vadd.f32 %v677_v19, %v583_v21  ;;  %v600_v31 = vmax.f32 %v596_v25, 0.0 }
 0x10c   :  { %v597_v29 = vadd.f32 %v677_v19, %v586_v26  ;;  %v584_v30 = vmul.f32 %v676_v10, %v550_v27  ;;  %v598_v34 = vmax.f32 %v594_v28, 0.0 }
 0x10e   :  { %v601_v32 = vmax.f32 %v597_v29, 0.0  ;;  %v595_v33 = vadd.f32 %v677_v19, %v584_v30 }
 0x110   :  { %v694_v35 = vpack.c.bf16 %v601_v32, %v600_v31  ;;  %v599_v36 = vmax.f32 %v595_v33, 0.0 }
 0x112   :  { %696 = vst [vmem:[%s1028_s4 + $0x8] sm:$0xff] %v694_v35   ;;  %v689_v37 = vpack.c.bf16 %v599_v36, %v598_v34 }
 0x114   :  { %690 = vst [vmem:[%s1028_s4] sm:$0xff] %v689_v37  }

// kernel: simclr_forward.32
= control target key start
LH: loop header
LB: loop body
LE: loop exit
PB: predicated region body
PF: predicated region fallthrough
CT: control target
= control target key end

     0   :  { %s1248_s18 = smov 0   ;;  %s1250_s19 = smov 0   ;;  %s1367_s0 = inlined_call_operand.vmem [shape: bf16[32,1152], index: 0, kind: input, shape index: {}]   ;;  %s1368_s1 = inlined_call_operand.vmem [shape: bf16[1152,128], index: 1, kind: input, shape index: {}]   ;;  %s1369_s2 = inlined_call_operand.vmem [shape: f32[1,128], index: 2, kind: input, shape index: {}]   ;;  %s1370_s3 = inlined_call_operand.vmem [shape: f32[1,128], index: 3, kind: input, shape index: {}]   ;;  %s1371_s4 = inlined_call_operand.vmem [shape: bf16[32,128], index: 4, kind: input, shape index: {}]   ;;  %s1372_s5 = inlined_call_operand.vmem [shape: bf16[32,128], index: 5, kind: output, shape index: {}]  }
   0x1   :  { %s1252_s20 = smov 0   ;;  %s1254_s21 = smov 0  }
   0x2   :  { %s1256_s22 = smov 0  }
   0x3 LB: > { %s27_s23 = sadd.s32 1, %s1211_s21  ;;  %p50_p1 = scmp.ne.s32.totalorder %s1203_s19, %s1199_s18  ;;  %s1215_s22 = sphi %s1256_s22, %s15_s22   ;;  %s1211_s21 = sphi %s1254_s21, %s1376_s21   ;;  %s1207_s20 = sphi %s1252_s20, %s1375_s20   ;;  %s1203_s19 = sphi %s1250_s19, %s1374_s19   ;;  %s1199_s18 = sphi %s1248_s18, %s1373_s18  }
   0x4   : > { %p28_p0 = scmp.ge.s32.totalorder %s27_s23, 3  ;;  %p51_p2 = scmp.eq.s32.totalorder %s1215_s22, 0 }
   0x5   : > { %s43_s25 = sadd.s32 1, %s1203_s19  ;;  %p965_p5 = scmp.ge.s32.totalorder %s1215_s22, 3 }
   0x6   : > { %s1378_s23 = smov (%p28_p0, %s27_s23), 0  ;;  %p52_p3 = por %p51_p2, %p50_p1 }
   0x7   : > { %s39_s24 = ssub.s32 %s1211_s21, %s1378_s23  ;;  %236 = sbr.rel (%p965_p5) target bundleno = 21 (0x15), region = 28 }
   0x8   : > { %p41_p4 = scmp.eq.s32.totalorder %s39_s24, 0 }
   0xa   : > { %s1283_s26 = scalar_select %p41_p4, %s1203_s19, %s43_s25  }
   0xc   : > { %239 = sbr.rel (!%p52_p3) target bundleno = 21 (0x15), region = 32  ;;  %s241_s27 = sand.u32 (%p52_p3), 1, %s1203_s19  }
   0xd   : > { %s1019_s28 = smul.u32 (%p52_p3), 12, %s1211_s21 }
   0xe   : > { %s1102_s29 = smul.u32 (%p52_p3), 48, %s241_s27 }
   0xf   : > { %s249_s7 = scalar_lea.vmem (%p52_p3), %s1367_s0, %s1019_s28 }
  0x10   : > { %v264_v0 = vld [vmem:[%s249_s7] sm:$0xff] (%p52_p3)  ;;  %v268_v2 = vld [vmem:[%s249_s7 + $0x48] sm:$0xff] (%p52_p3)  ;;  %s243_s8 = scalar_lea.vmem (%p52_p3), [#allocation3], %s1102_s29  ;;  %v971_v6 = vld [vmem:[%s249_s7 + $0x50] sm:$0xf] (%p52_p3) }
  0x11   : > { %v266_v1 = vld [vmem:[%s249_s7 + $0x24] sm:$0xff]  ;;  %265 = vst [vmem:[%s243_s8] sm:$0xff] %v264_v0  ;;  %269 = vst [vmem:[%s243_s8 + $0x18] sm:$0xff] %v268_v2  ;;  %v270_v3 = vld [vmem:[%s249_s7 + $0x6c] sm:$0xff] }
  0x12   : > { %267 = vst [vmem:[%s243_s8 + $0xc] sm:$0xff] %v266_v1  ;;  %v967_v4 = vld [vmem:[%s249_s7 + $0x8] sm:$0xf]  ;;  %v969_v5 = vld [vmem:[%s249_s7 + $0x2c] sm:$0xf]  ;;  %271 = vst [vmem:[%s243_s8 + $0x24] sm:$0xff] %v270_v3 }
  0x13   : > { %968 = vst [vmem:[%s243_s8 + $0x8] sm:$0xf] %v967_v4  ;;  %970 = vst [vmem:[%s243_s8 + $0x14] sm:$0xf] %v969_v5  ;;  %v973_v7 = vld [vmem:[%s249_s7 + $0x74] sm:$0xf] }
  0x14   : > { %972 = vst [vmem:[%s243_s8 + $0x20] sm:$0xf] %v971_v6  ;;  %974 = vst [vmem:[%s243_s8 + $0x2c] sm:$0xf] %v973_v7 }
  0x15 PF: > { %p975_p6 = scmp.ge.s32.totalorder %s1215_s22, 1  ;;  %p304_p7 = scmp.lt.s32.totalorder %s1215_s22, 4 }
  0x17   : > { %p305_p8 = pnand %p975_p6, %p304_p7 }
  0x18   : > { %s311_s9 = sand.u32 (!%p305_p8), 1, %s1199_s18   ;;  %s365_s10 = smul.u32 (!%p305_p8), 48, %s1207_s20 }
  0x19   : > { %308 = sbr.rel (%p305_p8) target bundleno = 303 (0x12f), region = 62  ;;  %p977_p10 = scmp.ne.s32.totalorder (!%p305_p8), %s1207_s20, 0 }
  0x1a   : > { %s1103_s11 = smul.u32 (!%p305_p8), 48, %s311_s9  ;;  %p366_p9 = scmp.lt.s32.totalorder (!%p305_p8), %s365_s10, 143 }
  0x1c   : > { %s1300_s16 = scalar_lea.vmem (!%p305_p8), [#allocation3], %s1103_s11 }
  0x1e   : > { %s1380_s10 = smov (!%p366_p9, %s365_s10), 143  ;;  %402 = sbr.rel (%p977_p10) target bundleno = 38 (0x26), region = 70 }
  0x1f   : > { %s976_s12 = sshll.u32 %s1380_s10, 2 }
  0x20   : > { %s1298_s15 = scalar_lea.vmem %s1368_s1, %s976_s12 }
  0x23   : > { %v1217_v8 = vmov 0.0  }
  0x24   : > { %403 = vst [vmem:[#allocation2 + $0x10] sm:$0xff] %v1217_v8  ;;  %404 = vst [vmem:[#allocation2] sm:$0xff] %v1217_v8 }
  0x25   : > { %405 = vst [vmem:[#allocation2 + $0x18] sm:$0xff] %v1217_v8  ;;  %406 = vst [vmem:[#allocation2 + $0x8] sm:$0xff] %v1217_v8 }
  0x26 PF: > { %v1145_v9 = vld [vmem:[%s1298_s15 + $0x78] sm:$0xff]   ;;  %v1148_v12 = vld [vmem:[%s1298_s15 + $0x70] sm:$0xff]   ;;  %v1151_v15 = vld [vmem:[%s1298_s15 + $0x68] sm:$0xff]   ;;  %p1008_p11 = scmp.ne.s32.totalorder %s1207_s20, 2 }
  0x27   : > { %v1146_v10 = vld [vmem:[%s1298_s15 + $0x38] sm:$0xff]   ;;  %1044 = vmatprep.subr.bf16.mxu0 %v1145_v9  ;;  %v1149_v13 = vld [vmem:[%s1298_s15 + $0x30] sm:$0xff]   ;;  %v1152_v16 = vld [vmem:[%s1298_s15 + $0x28] sm:$0xff]  }
  0x28   : > { %v1147_v11 = vld [vmem:[%s1298_s15 + $0xb8] sm:$0xff]   ;;  %1045 = vmatpush3.bf16.msra.mxu0 %v1146_v10  ;;  %v1150_v14 = vld [vmem:[%s1298_s15 + $0xb0] sm:$0xff]   ;;  %v1153_v17 = vld [vmem:[%s1298_s15 + $0xa8] sm:$0xff]  }
  0x29   : > { %1082 = vmatprep.subr.bf16.mxu1 %v1147_v11  ;;  %1046 = vmatprep.subr.bf16.mxu0 %v1148_v12  ;;  %v1154_v18 = vld [vmem:[%s1298_s15 + $0x60] sm:$0xff]   ;;  %v1157_v21 = vld [vmem:[%s1298_s15 + $0x58] sm:$0xff]   ;;  %v1160_v24 = vld [vmem:[%s1298_s15 + $0x50] sm:$0xff]  }
  0x2a   : > { %1083 = vmatpush3.bf16.msra.mxu1 %v1147_v11  ;;  %v1155_v19 = vld [vmem:[%s1298_s15 + $0x20] sm:$0xff]   ;;  %v1159_v22 = vld [vmem:[%s1298_s15 + $0x98] sm:$0xff]   ;;  %v1162_v25 = vld [vmem:[%s1298_s15 + $0x90] sm:$0xff]  }
  0x2b   : > { %1084 = vmatprep.subr.bf16.mxu1 %v1150_v14  ;;  %v1156_v20 = vld [vmem:[%s1298_s15 + $0xa0] sm:$0xff]   ;;  %v1158_v23 = vld [vmem:[%s1298_s15 + $0x18] sm:$0xff]   ;;  %v1161_v26 = vld [vmem:[%s1298_s15 + $0x10] sm:$0xff]  }
  0x2c   : > { %1047 = vmatpush3.bf16.msra.mxu0 %v1149_v13  ;;  %v1163_v27 = vld [vmem:[%s1298_s15 + $0x48] sm:$0xff]   ;;  %v1166_v30 = vld [vmem:[%s1298_s15 + $0x40] sm:$0xff]   ;;  %v407_v44 = vld [vmem:[#allocation2 + $0x10] sm:$0xff] }
  0x2d   : > { %1048 = vmatprep.subr.bf16.mxu0 %v1151_v15  ;;  %v1164_v28 = vld [vmem:[%s1298_s15 + $0x8] sm:$0xff]   ;;  %v1168_v31 = vld [vmem:[%s1298_s15 + $0x80] sm:$0xff]   ;;  %v409_v58 = vld [vmem:[#allocation2 + $0x18] sm:$0xff] }
  0x2e   : > { %1085 = vmatpush3.bf16.msra.mxu1 %v1150_v14  ;;  %v1165_v29 = vld [vmem:[%s1298_s15 + $0x88] sm:$0xff]   ;;  %v1171_v32 = vld [vmem:[%s1300_s16 + $0x4] ss:$12 sps:$4 sm:$0xff]  }
  0x2f   : > { %1086 = vmatprep.subr.bf16.mxu1 %v1153_v17  ;;  %v1172_v33 = vld [vmem:[%s1300_s16 + $0x8] ss:$12 sps:$4 sm:$0xff]   ;;  %675 = vmatprep.mubr.bf16.mxu0 %v1171_v32  ;;  %v1169_v35 = vld [vmem:[%s1300_s16] ss:$12 sps:$4 sm:$0xff]   ;;  %v1176_v38 = vld [vmem:[%s1300_s16 + $0x18] ss:$12 sps:$4 sm:$0xff]  }
  0x30   : > { %1049 = vmatpush3.bf16.msra.mxu0 %v1152_v16  ;;  %v1167_v34 = vld [vmem:[%s1298_s15] sm:$0xff]   ;;  %1098 = vmatprep.mubr.bf16.mxu1 %v1172_v33  ;;  %v1174_v36 = vld [vmem:[%s1300_s16 + $0x1c] ss:$12 sps:$4 sm:$0xff]  }
  0x31   : > { %1050 = vmatprep.subr.bf16.mxu0 %v1154_v18  ;;  %v1173_v37 = vld [vmem:[%s1300_s16 + $0x20] ss:$12 sps:$4 sm:$0xff]  }
  0x32   : > { %1087 = vmatpush3.bf16.msra.mxu1 %v1153_v17  ;;  %v408_v52 = vld [vmem:[#allocation2] sm:$0xff]  ;;  %v410_v0 = vld [vmem:[#allocation2 + $0x8] sm:$0xff] }
  0x33   : > { %1088 = vmatprep.subr.bf16.mxu1 %v1156_v20 }
  0x34   : > { %1051 = vmatpush3.bf16.msra.mxu0 %v1155_v19 }
  0x35   : > { %1052 = vmatprep.subr.bf16.mxu0 %v1157_v21 }
  0x36   : > { %1089 = vmatpush3.bf16.msra.mxu1 %v1156_v20 }
  0x37   : > { %1090 = vmatprep.subr.bf16.mxu1 %v1159_v22 }
  0x38   : > { %1053 = vmatpush3.bf16.msra.mxu0 %v1158_v23 }
  0x39   : > { %1054 = vmatprep.subr.bf16.mxu0 %v1160_v24 }
  0x3a   : > { %1091 = vmatpush3.bf16.msra.mxu1 %v1159_v22 }
  0x3b   : > { %1092 = vmatprep.subr.bf16.mxu1 %v1162_v25 }
  0x3c   : > { %1055 = vmatpush3.bf16.msra.mxu0 %v1161_v26 }
  0x3d   : > { %1056 = vmatprep.subr.bf16.mxu0 %v1163_v27 }
  0x3e   : > { %1093 = vmatpush3.bf16.msra.mxu1 %v1162_v25 }
  0x3f   : > { %1094 = vmatprep.subr.bf16.mxu1 %v1165_v29 }
  0x40   : > { %1057 = vmatpush3.bf16.msra.mxu0 %v1164_v28 }
  0x41   : > { %1058 = vmatprep.subr.bf16.mxu0 %v1166_v30 }
  0x42   : > { %1095 = vmatpush3.bf16.msra.mxu1 %v1165_v29 }
  0x43   : > { %1096 = vmatprep.subr.bf16.mxu1 %v1168_v31 }
  0x44   : > { %1059 = vmatpush3.bf16.msra.mxu0 %v1167_v34 }
  0x46   : > { %1097 = vmatpush3.bf16.msra.mxu1 %v1168_v31 }
  0x47   : > { %676 = vmatmul.mubr.bf16.vlgmr.msra.gmra.mxu0 %v1169_v35 }
  0x48   : > { %683 = vmatprep.mubr.bf16.mxu0 %v1174_v36 }
  0x49   : > { %1099 = vmatmul.mubr.bf16.vlgmr.msra.gmra.mxu1 %v1173_v37 }
  0x4f   : > { %684 = vmatmul.mubr.bf16.gmra.mxu0 %v1176_v38 }
 0x107   : > { %v1060_v39 = vpop.f32.mrf.mxu0 }
 0x109   : > { %v1061_v40 = vpop.f32.mrf.mxu0  ;;  %v1100_v41 = vpop.f32.mrf.mxu1 }
 0x10a   : > { %v1062_v42 = vadd.f32 %v1061_v40, %v1060_v39 }
 0x10b   : > { %v1063_v43 = vpop.f32.mrf.mxu0  ;;  %v726_v45 = vpop.f32.mrf.mxu1 }
 0x10c   : > { %v727_v46 = vadd.f32 %v1062_v42, %v726_v45 }
 0x10d   : > { %v1064_v47 = vpop.f32.mrf.mxu0  ;;  %v1101_v48 = vpop.f32.mrf.mxu1 }
 0x10e   : > { %v741_v49 = vadd.f32 %v727_v46, %v407_v44  ;;  %v1065_v50 = vadd.f32 %v1064_v47, %v1063_v43 }
 0x10f   : > { %v1066_v51 = vpop.f32.mrf.mxu0  ;;  %v729_v53 = vpop.f32.mrf.mxu1 }
 0x110   : > { %745 = vst [vmem:[#allocation2 + $0x10] sm:$0xff] %v741_v49  ;;  %v730_v54 = vadd.f32 %v1065_v50, %v729_v53 }
 0x111   : > { %v1067_v55 = vpop.f32.mrf.mxu0 }
 0x112   : > { %v742_v56 = vadd.f32 %v730_v54, %v408_v52  ;;  %v1068_v57 = vadd.f32 %v1067_v55, %v1066_v51 }
 0x113   : > { %v1069_v59 = vpop.f32.mrf.mxu0 }
 0x114   : > { %746 = vst [vmem:[#allocation2] sm:$0xff] %v742_v56  ;;  %v735_v60 = vadd.f32 %v1100_v41, %v1068_v57 }
 0x115   : > { %v1070_v61 = vpop.f32.mrf.mxu0 }
 0x116   : > { %v743_v62 = vadd.f32 %v735_v60, %v409_v58  ;;  %v1071_v63 = vadd.f32 %v1070_v61, %v1069_v59 }
 0x118   : > { %747 = vst [vmem:[#allocation2 + $0x18] sm:$0xff] %v743_v62  ;;  %v738_v1 = vadd.f32 %v1101_v48, %v1071_v63  ;;  %752 = sbr.rel (%p1008_p11) target bundleno = 303 (0x12f), region = 74 }
 0x11a   : > { %v744_v2 = vadd.f32 %v738_v1, %v410_v0 }
 0x11c   : > { %748 = vst [vmem:[#allocation2 + $0x8] sm:$0xff] %v744_v2 }
 0x11d   : > { %v753_v3 = vld [vmem:[#allocation2 + $0x10] sm:$0xff]  ;;  %v754_v4 = vld [vmem:[#allocation2] sm:$0xff]  ;;  %v1042_v15 = vld [vmem:[%s1371_s4 + $0x8] sm:$0xff]  }
 0x11e   : > { %v1009_v5 = vld [vmem:[%s1369_s2] ss:$0 sm:$0xff]  ;;  %v1030_v19 = vunpack.c.l.bf16 %v1042_v15  ;;  %v1031_v21 = vunpack.c.h.bf16 %v1042_v15 }
 0x11f   : > { %v764_v6 = vmul.f32 %v1009_v5, %v753_v3  ;;  %v765_v7 = vmul.f32 %v1009_v5, %v754_v4  ;;  %v1010_v8 = vld [vmem:[%s1370_s3] ss:$0 sm:$0xff]  ;;  %v755_v10 = vld [vmem:[#allocation2 + $0x18] sm:$0xff] }
 0x120   : > { %v1025_v9 = vld [vmem:[%s1371_s4] sm:$0xff]   ;;  %v766_v14 = vmul.f32 %v1009_v5, %v755_v10 }
 0x121   : > { %v1026_v11 = vunpack.c.l.bf16 %v1025_v9  ;;  %v1027_v12 = vunpack.c.h.bf16 %v1025_v9  ;;  %v775_v16 = vadd.f32 %v1010_v8, %v764_v6  ;;  %v776_v17 = vadd.f32 %v1010_v8, %v765_v7 }
 0x122   : > { %v777_v20 = vadd.f32 %v1010_v8, %v766_v14 }
 0x123   : > { %v756_v13 = vld [vmem:[#allocation2 + $0x8] sm:$0xff]  ;;  %v787_v22 = vadd.f32 %v1026_v11, %v775_v16  ;;  %v788_v23 = vadd.f32 %v1027_v12, %v776_v17 }
 0x124   : > { %v767_v18 = vmul.f32 %v1009_v5, %v756_v13  ;;  %v789_v25 = vadd.f32 %v1030_v19, %v777_v20 }
 0x125   : > { %v791_v26 = vmax.f32 %v787_v22, 0.0  ;;  %v792_v27 = vmax.f32 %v788_v23, 0.0 }
 0x126   : > { %v778_v24 = vadd.f32 %v1010_v8, %v767_v18  ;;  %v793_v29 = vmax.f32 %v789_v25, 0.0 }
 0x127   : > { %v1035_v30 = vpack.c.bf16 %v792_v27, %v791_v26 }
 0x128   : > { %v790_v28 = vadd.f32 %v1031_v21, %v778_v24 }
 0x129   : > { %1036 = vst [vmem:[%s1372_s5] sm:$0xff] %v1035_v30  }
 0x12a   : > { %v794_v31 = vmax.f32 %v790_v28, 0.0 }
 0x12c   : > { %v1040_v32 = vpack.c.bf16 %v794_v31, %v793_v29 }
 0x12e   : > { %1043 = vst [vmem:[%s1372_s5 + $0x8] sm:$0xff] %v1040_v32  }
 0x12f PF: > { %s15_s22 = sadd.s32 1, %s1215_s22   ;;  %s1373_s18 = smov %s1203_s19 }
 0x130   : > { %p12_p12 = scmp.ge.s32.totalorder %s15_s22, 5   ;;  %s1374_s19 = smov %s1283_s26 }
 0x131   : > { %s1375_s20 = smov %s1211_s21  ;;  %s1376_s21 = smov %s1378_s23 }
 0x132   :  { %14 = sbr.rel (!%p12_p12) target bundleno = 3 (0x3), region = 127 }

// kernel: simclr_forward.31
= control target key start
LH: loop header
LB: loop body
LE: loop exit
PB: predicated region body
PF: predicated region fallthrough
CT: control target
= control target key end

     0   :  { %s358_s1 = inlined_call_operand.vmem [shape: bf16[128,128], index: 1, kind: input, shape index: {}]   ;;  %s359_s0 = inlined_call_operand.vmem [shape: bf16[32,128], index: 0, kind: input, shape index: {}]   ;;  %s360_s2 = inlined_call_operand.vmem [shape: f32[1,128], index: 2, kind: input, shape index: {}]   ;;  %s361_s3 = inlined_call_operand.vmem [shape: f32[1,128], index: 3, kind: input, shape index: {}]   ;;  %s362_s4 = inlined_call_operand.vmem [shape: bf16[32,128], index: 4, kind: output, shape index: {}]  }
   0x1   :  { %v281_v0 = vld [vmem:[%s358_s1 + $0x38] sm:$0xff]   ;;  %v282_v1 = vld [vmem:[%s358_s1 + $0x30] sm:$0xff]   ;;  %v283_v2 = vld [vmem:[%s358_s1 + $0x28] sm:$0xff]  }
   0x2   :  { %261 = vmatprep.subr.bf16.mxu0 %v281_v0  ;;  %v284_v3 = vld [vmem:[%s358_s1 + $0x20] sm:$0xff]   ;;  %v285_v5 = vld [vmem:[%s358_s1 + $0x18] sm:$0xff]   ;;  %v286_v6 = vld [vmem:[%s358_s1 + $0x10] sm:$0xff]  }
   0x3   :  { %262 = vmatpush3.bf16.msra.mxu0 %v281_v0  ;;  %v289_v4 = vld [vmem:[%s359_s0] sm:$0xff]   ;;  %v287_v7 = vld [vmem:[%s358_s1 + $0x8] sm:$0xff]  }
   0x4   :  { %263 = vmatprep.subr.bf16.mxu0 %v282_v1  ;;  %277 = vmatprep.mubr.bf16.mxu0 %v289_v4  ;;  %v288_v8 = vld [vmem:[%s358_s1] sm:$0xff]   ;;  %v290_v9 = vld [vmem:[%s359_s0 + $0x8] sm:$0xff]  }
   0x5   :  { %v230_v11 = vld [vmem:[%s360_s2] ss:$0 sm:$0xff] }
   0x6   :  { %v231_v14 = vld [vmem:[%s361_s3] ss:$0 sm:$0xff] }
   0x7   :  { %264 = vmatpush3.bf16.msra.mxu0 %v282_v1 }
   0x8   :  { %265 = vmatprep.subr.bf16.mxu0 %v283_v2 }
   0xb   :  { %266 = vmatpush3.bf16.msra.mxu0 %v283_v2 }
   0xc   :  { %267 = vmatprep.subr.bf16.mxu0 %v284_v3 }
   0xf   :  { %268 = vmatpush3.bf16.msra.mxu0 %v284_v3 }
  0x10   :  { %269 = vmatprep.subr.bf16.mxu0 %v285_v5 }
  0x13   :  { %270 = vmatpush3.bf16.msra.mxu0 %v285_v5 }
  0x14   :  { %271 = vmatprep.subr.bf16.mxu0 %v286_v6 }
  0x17   :  { %272 = vmatpush3.bf16.msra.mxu0 %v286_v6 }
  0x18   :  { %273 = vmatprep.subr.bf16.mxu0 %v287_v7 }
  0x1b   :  { %274 = vmatpush3.bf16.msra.mxu0 %v287_v7 }
  0x1c   :  { %275 = vmatprep.subr.bf16.mxu0 %v288_v8 }
  0x1f   :  { %276 = vmatpush3.bf16.msra.mxu0 %v288_v8 }
  0x22   :  { %278 = vmatmul.mubr.bf16.vlgmr.msra.gmra.mxu0 %v290_v9 }
  0xe2   :  { %v279_v10 = vpop.f32.mrf.mxu0 }
  0xe3   :  { %v183_v13 = vmul.f32 %v279_v10, %v230_v11 }
  0xe4   :  { %v144_v12 = vpop.f32.mrf.mxu0 }
  0xe5   :  { %v181_v16 = vmul.f32 %v230_v11, %v144_v12  ;;  %v194_v19 = vadd.f32 %v231_v14, %v183_v13 }
  0xe6   :  { %v280_v15 = vpop.f32.mrf.mxu0 }
  0xe7   :  { %v184_v17 = vmul.f32 %v280_v15, %v230_v11  ;;  %v192_v22 = vadd.f32 %v231_v14, %v181_v16 }
  0xe8   :  { %v147_v18 = vpop.f32.mrf.mxu0 }
  0xe9   :  { %v195_v20 = vadd.f32 %v231_v14, %v184_v17  ;;  %v182_v21 = vmul.f32 %v230_v11, %v147_v18 }
  0xeb   :  { %v248_v23 = vpack.c.bf16 %v195_v20, %v194_v19  ;;  %v193_v24 = vadd.f32 %v231_v14, %v182_v21 }
  0xed   :  { %250 = vst [vmem:[%s362_s4 + $0x8] sm:$0xff] %v248_v23   ;;  %v243_v25 = vpack.c.bf16 %v193_v24, %v192_v22 }
  0xef   :  { %244 = vst [vmem:[%s362_s4] sm:$0xff] %v243_v25  }

// kernel: simclr_forward.33
= control target key start
LH: loop header
LB: loop body
LE: loop exit
PB: predicated region body
PF: predicated region fallthrough
CT: control target
= control target key end

     0   :  { %s1143_s15 = smov 0   ;;  %s1145_s16 = smov 0   ;;  %s1256_s0 = inlined_call_operand.vmem [shape: bf16[32,1152], index: 0, kind: input, shape index: {}]   ;;  %s1257_s1 = inlined_call_operand.vmem [shape: bf16[1152,128], index: 1, kind: input, shape index: {}]   ;;  %s1258_s2 = inlined_call_operand.vmem [shape: f32[1,128], index: 2, kind: input, shape index: {}]   ;;  %s1259_s3 = inlined_call_operand.vmem [shape: f32[1,128], index: 3, kind: input, shape index: {}]   ;;  %s1260_s4 = inlined_call_operand.vmem [shape: bf16[32,128], index: 4, kind: output, shape index: {}]  }
   0x1   :  { %s1147_s17 = smov 0   ;;  %s1149_s18 = smov 0  }
   0x2   :  { %s1151_s19 = smov 0  }
   0x3 LB: > { %s26_s20 = sadd.s32 1, %s1111_s18  ;;  %p49_p1 = scmp.ne.s32.totalorder %s1103_s16, %s1099_s15  ;;  %s1115_s19 = sphi %s1151_s19, %s14_s19   ;;  %s1111_s18 = sphi %s1149_s18, %s1264_s18   ;;  %s1107_s17 = sphi %s1147_s17, %s1263_s17   ;;  %s1103_s16 = sphi %s1145_s16, %s1262_s16   ;;  %s1099_s15 = sphi %s1143_s15, %s1261_s15  }
   0x4   : > { %p27_p0 = scmp.ge.s32.totalorder %s26_s20, 3  ;;  %p50_p2 = scmp.eq.s32.totalorder %s1115_s19, 0 }
   0x5   : > { %s42_s22 = sadd.s32 1, %s1103_s16  ;;  %p874_p5 = scmp.ge.s32.totalorder %s1115_s19, 3 }
   0x6   : > { %s1266_s20 = smov (%p27_p0, %s26_s20), 0  ;;  %p51_p3 = por %p50_p2, %p49_p1 }
   0x7   : > { %s38_s21 = ssub.s32 %s1111_s18, %s1266_s20  ;;  %195 = sbr.rel (%p874_p5) target bundleno = 21 (0x15), region = 24 }
   0x8   : > { %p40_p4 = scmp.eq.s32.totalorder %s38_s21, 0 }
   0xa   : > { %s1178_s23 = scalar_select %p40_p4, %s1103_s16, %s42_s22  }
   0xc   : > { %198 = sbr.rel (!%p51_p3) target bundleno = 21 (0x15), region = 28  ;;  %s200_s24 = sand.u32 (%p51_p3), 1, %s1103_s16  }
   0xd   : > { %s928_s25 = smul.u32 (%p51_p3), 12, %s1111_s18 }
   0xe   : > { %s1002_s26 = smul.u32 (%p51_p3), 48, %s200_s24 }
   0xf   : > { %s208_s29 = scalar_lea.vmem (%p51_p3), %s1256_s0, %s928_s25 }
  0x10   : > { %v223_v0 = vld [vmem:[%s208_s29] sm:$0xff] (%p51_p3)  ;;  %v227_v2 = vld [vmem:[%s208_s29 + $0x48] sm:$0xff] (%p51_p3)  ;;  %s202_s30 = scalar_lea.vmem (%p51_p3), [#allocation3], %s1002_s26  ;;  %v880_v6 = vld [vmem:[%s208_s29 + $0x50] sm:$0xf] (%p51_p3) }
  0x11   : > { %v225_v1 = vld [vmem:[%s208_s29 + $0x24] sm:$0xff]  ;;  %224 = vst [vmem:[%s202_s30] sm:$0xff] %v223_v0  ;;  %228 = vst [vmem:[%s202_s30 + $0x18] sm:$0xff] %v227_v2  ;;  %v229_v3 = vld [vmem:[%s208_s29 + $0x6c] sm:$0xff] }
  0x12   : > { %226 = vst [vmem:[%s202_s30 + $0xc] sm:$0xff] %v225_v1  ;;  %v876_v4 = vld [vmem:[%s208_s29 + $0x8] sm:$0xf]  ;;  %v878_v5 = vld [vmem:[%s208_s29 + $0x2c] sm:$0xf]  ;;  %230 = vst [vmem:[%s202_s30 + $0x24] sm:$0xff] %v229_v3 }
  0x13   : > { %877 = vst [vmem:[%s202_s30 + $0x8] sm:$0xf] %v876_v4  ;;  %879 = vst [vmem:[%s202_s30 + $0x14] sm:$0xf] %v878_v5  ;;  %v882_v7 = vld [vmem:[%s208_s29 + $0x74] sm:$0xf] }
  0x14   : > { %881 = vst [vmem:[%s202_s30 + $0x20] sm:$0xf] %v880_v6  ;;  %883 = vst [vmem:[%s202_s30 + $0x2c] sm:$0xf] %v882_v7 }
  0x15 PF: > { %p884_p6 = scmp.ge.s32.totalorder %s1115_s19, 1  ;;  %p263_p7 = scmp.lt.s32.totalorder %s1115_s19, 4 }
  0x17   : > { %p264_p8 = pnand %p884_p6, %p263_p7 }
  0x18   : > { %s270_s5 = sand.u32 (!%p264_p8), 1, %s1099_s15   ;;  %s314_s6 = smul.u32 (!%p264_p8), 48, %s1107_s17 }
  0x19   : > { %267 = sbr.rel (%p264_p8) target bundleno = 301 (0x12d), region = 58  ;;  %p886_p10 = scmp.ne.s32.totalorder (!%p264_p8), %s1107_s17, 0 }
  0x1a   : > { %s1003_s7 = smul.u32 (!%p264_p8), 48, %s270_s5  ;;  %p315_p9 = scmp.lt.s32.totalorder (!%p264_p8), %s314_s6, 143 }
  0x1c   : > { %s1195_s12 = scalar_lea.vmem (!%p264_p8), [#allocation3], %s1003_s7 }
  0x1e   : > { %s1268_s6 = smov (!%p315_p9, %s314_s6), 143  ;;  %342 = sbr.rel (%p886_p10) target bundleno = 38 (0x26), region = 66 }
  0x1f   : > { %s885_s8 = sshll.u32 %s1268_s6, 2 }
  0x20   : > { %s1193_s11 = scalar_lea.vmem %s1257_s1, %s885_s8 }
  0x23   : > { %v1117_v8 = vmov 0.0  }
  0x24   : > { %343 = vst [vmem:[#allocation2 + $0x10] sm:$0xff] %v1117_v8  ;;  %344 = vst [vmem:[#allocation2] sm:$0xff] %v1117_v8 }
  0x25   : > { %345 = vst [vmem:[#allocation2 + $0x18] sm:$0xff] %v1117_v8  ;;  %346 = vst [vmem:[#allocation2 + $0x8] sm:$0xff] %v1117_v8 }
  0x26 PF: > { %v1045_v9 = vld [vmem:[%s1193_s11 + $0x78] sm:$0xff]   ;;  %v1048_v12 = vld [vmem:[%s1193_s11 + $0x70] sm:$0xff]   ;;  %v1051_v15 = vld [vmem:[%s1193_s11 + $0x68] sm:$0xff]   ;;  %p917_p11 = scmp.ne.s32.totalorder %s1107_s17, 2 }
  0x27   : > { %v1046_v10 = vld [vmem:[%s1193_s11 + $0x38] sm:$0xff]   ;;  %944 = vmatprep.subr.bf16.mxu0 %v1045_v9  ;;  %v1049_v13 = vld [vmem:[%s1193_s11 + $0x30] sm:$0xff]   ;;  %v1052_v16 = vld [vmem:[%s1193_s11 + $0x28] sm:$0xff]  }
  0x28   : > { %v1047_v11 = vld [vmem:[%s1193_s11 + $0xb8] sm:$0xff]   ;;  %945 = vmatpush3.bf16.msra.mxu0 %v1046_v10  ;;  %v1050_v14 = vld [vmem:[%s1193_s11 + $0xb0] sm:$0xff]   ;;  %v1053_v17 = vld [vmem:[%s1193_s11 + $0xa8] sm:$0xff]  }
  0x29   : > { %982 = vmatprep.subr.bf16.mxu1 %v1047_v11  ;;  %946 = vmatprep.subr.bf16.mxu0 %v1048_v12  ;;  %v1054_v18 = vld [vmem:[%s1193_s11 + $0x60] sm:$0xff]   ;;  %v1057_v21 = vld [vmem:[%s1193_s11 + $0x58] sm:$0xff]   ;;  %v1060_v24 = vld [vmem:[%s1193_s11 + $0x50] sm:$0xff]  }
  0x2a   : > { %983 = vmatpush3.bf16.msra.mxu1 %v1047_v11  ;;  %v1055_v19 = vld [vmem:[%s1193_s11 + $0x20] sm:$0xff]   ;;  %v1059_v22 = vld [vmem:[%s1193_s11 + $0x98] sm:$0xff]   ;;  %v1062_v25 = vld [vmem:[%s1193_s11 + $0x90] sm:$0xff]  }
  0x2b   : > { %984 = vmatprep.subr.bf16.mxu1 %v1050_v14  ;;  %v1056_v20 = vld [vmem:[%s1193_s11 + $0xa0] sm:$0xff]   ;;  %v1058_v23 = vld [vmem:[%s1193_s11 + $0x18] sm:$0xff]   ;;  %v1061_v26 = vld [vmem:[%s1193_s11 + $0x10] sm:$0xff]  }
  0x2c   : > { %947 = vmatpush3.bf16.msra.mxu0 %v1049_v13  ;;  %v1063_v27 = vld [vmem:[%s1193_s11 + $0x48] sm:$0xff]   ;;  %v1066_v30 = vld [vmem:[%s1193_s11 + $0x40] sm:$0xff]   ;;  %v347_v44 = vld [vmem:[#allocation2 + $0x10] sm:$0xff] }
  0x2d   : > { %948 = vmatprep.subr.bf16.mxu0 %v1051_v15  ;;  %v1064_v28 = vld [vmem:[%s1193_s11 + $0x8] sm:$0xff]   ;;  %v1068_v31 = vld [vmem:[%s1193_s11 + $0x80] sm:$0xff]   ;;  %v349_v58 = vld [vmem:[#allocation2 + $0x18] sm:$0xff] }
  0x2e   : > { %985 = vmatpush3.bf16.msra.mxu1 %v1050_v14  ;;  %v1065_v29 = vld [vmem:[%s1193_s11 + $0x88] sm:$0xff]   ;;  %v1071_v32 = vld [vmem:[%s1195_s12 + $0x4] ss:$12 sps:$4 sm:$0xff]  }
  0x2f   : > { %986 = vmatprep.subr.bf16.mxu1 %v1053_v17  ;;  %v1072_v33 = vld [vmem:[%s1195_s12 + $0x8] ss:$12 sps:$4 sm:$0xff]   ;;  %615 = vmatprep.mubr.bf16.mxu0 %v1071_v32  ;;  %v1069_v35 = vld [vmem:[%s1195_s12] ss:$12 sps:$4 sm:$0xff]   ;;  %v1076_v38 = vld [vmem:[%s1195_s12 + $0x18] ss:$12 sps:$4 sm:$0xff]  }
  0x30   : > { %949 = vmatpush3.bf16.msra.mxu0 %v1052_v16  ;;  %v1067_v34 = vld [vmem:[%s1193_s11] sm:$0xff]   ;;  %998 = vmatprep.mubr.bf16.mxu1 %v1072_v33  ;;  %v1074_v36 = vld [vmem:[%s1195_s12 + $0x1c] ss:$12 sps:$4 sm:$0xff]  }
  0x31   : > { %950 = vmatprep.subr.bf16.mxu0 %v1054_v18  ;;  %v1073_v37 = vld [vmem:[%s1195_s12 + $0x20] ss:$12 sps:$4 sm:$0xff]  }
  0x32   : > { %987 = vmatpush3.bf16.msra.mxu1 %v1053_v17  ;;  %v348_v52 = vld [vmem:[#allocation2] sm:$0xff]  ;;  %v350_v0 = vld [vmem:[#allocation2 + $0x8] sm:$0xff] }
  0x33   : > { %988 = vmatprep.subr.bf16.mxu1 %v1056_v20 }
  0x34   : > { %951 = vmatpush3.bf16.msra.mxu0 %v1055_v19 }
  0x35   : > { %952 = vmatprep.subr.bf16.mxu0 %v1057_v21 }
  0x36   : > { %989 = vmatpush3.bf16.msra.mxu1 %v1056_v20 }
  0x37   : > { %990 = vmatprep.subr.bf16.mxu1 %v1059_v22 }
  0x38   : > { %953 = vmatpush3.bf16.msra.mxu0 %v1058_v23 }
  0x39   : > { %954 = vmatprep.subr.bf16.mxu0 %v1060_v24 }
  0x3a   : > { %991 = vmatpush3.bf16.msra.mxu1 %v1059_v22 }
  0x3b   : > { %992 = vmatprep.subr.bf16.mxu1 %v1062_v25 }
  0x3c   : > { %955 = vmatpush3.bf16.msra.mxu0 %v1061_v26 }
  0x3d   : > { %956 = vmatprep.subr.bf16.mxu0 %v1063_v27 }
  0x3e   : > { %993 = vmatpush3.bf16.msra.mxu1 %v1062_v25 }
  0x3f   : > { %994 = vmatprep.subr.bf16.mxu1 %v1065_v29 }
  0x40   : > { %957 = vmatpush3.bf16.msra.mxu0 %v1064_v28 }
  0x41   : > { %958 = vmatprep.subr.bf16.mxu0 %v1066_v30 }
  0x42   : > { %995 = vmatpush3.bf16.msra.mxu1 %v1065_v29 }
  0x43   : > { %996 = vmatprep.subr.bf16.mxu1 %v1068_v31 }
  0x44   : > { %959 = vmatpush3.bf16.msra.mxu0 %v1067_v34 }
  0x46   : > { %997 = vmatpush3.bf16.msra.mxu1 %v1068_v31 }
  0x47   : > { %616 = vmatmul.mubr.bf16.vlgmr.msra.gmra.mxu0 %v1069_v35 }
  0x48   : > { %623 = vmatprep.mubr.bf16.mxu0 %v1074_v36 }
  0x49   : > { %999 = vmatmul.mubr.bf16.vlgmr.msra.gmra.mxu1 %v1073_v37 }
  0x4f   : > { %624 = vmatmul.mubr.bf16.gmra.mxu0 %v1076_v38 }
 0x107   : > { %v960_v39 = vpop.f32.mrf.mxu0 }
 0x109   : > { %v961_v40 = vpop.f32.mrf.mxu0  ;;  %v1000_v41 = vpop.f32.mrf.mxu1 }
 0x10a   : > { %v962_v42 = vadd.f32 %v961_v40, %v960_v39 }
 0x10b   : > { %v963_v43 = vpop.f32.mrf.mxu0  ;;  %v666_v45 = vpop.f32.mrf.mxu1 }
 0x10c   : > { %v667_v46 = vadd.f32 %v962_v42, %v666_v45 }
 0x10d   : > { %v964_v47 = vpop.f32.mrf.mxu0  ;;  %v1001_v48 = vpop.f32.mrf.mxu1 }
 0x10e   : > { %v681_v49 = vadd.f32 %v667_v46, %v347_v44  ;;  %v965_v50 = vadd.f32 %v964_v47, %v963_v43 }
 0x10f   : > { %v966_v51 = vpop.f32.mrf.mxu0  ;;  %v669_v53 = vpop.f32.mrf.mxu1 }
 0x110   : > { %685 = vst [vmem:[#allocation2 + $0x10] sm:$0xff] %v681_v49  ;;  %v670_v54 = vadd.f32 %v965_v50, %v669_v53 }
 0x111   : > { %v967_v55 = vpop.f32.mrf.mxu0 }
 0x112   : > { %v682_v56 = vadd.f32 %v670_v54, %v348_v52  ;;  %v968_v57 = vadd.f32 %v967_v55, %v966_v51 }
 0x113   : > { %v969_v59 = vpop.f32.mrf.mxu0 }
 0x114   : > { %686 = vst [vmem:[#allocation2] sm:$0xff] %v682_v56  ;;  %v675_v60 = vadd.f32 %v1000_v41, %v968_v57 }
 0x115   : > { %v970_v61 = vpop.f32.mrf.mxu0 }
 0x116   : > { %v683_v62 = vadd.f32 %v675_v60, %v349_v58  ;;  %v971_v63 = vadd.f32 %v970_v61, %v969_v59 }
 0x118   : > { %687 = vst [vmem:[#allocation2 + $0x18] sm:$0xff] %v683_v62  ;;  %v678_v1 = vadd.f32 %v1001_v48, %v971_v63  ;;  %692 = sbr.rel (%p917_p11) target bundleno = 301 (0x12d), region = 70 }
 0x11a   : > { %v684_v2 = vadd.f32 %v678_v1, %v350_v0 }
 0x11c   : > { %688 = vst [vmem:[#allocation2 + $0x8] sm:$0xff] %v684_v2 }
 0x11d   : > { %v693_v3 = vld [vmem:[#allocation2 + $0x10] sm:$0xff]  ;;  %v694_v4 = vld [vmem:[#allocation2] sm:$0xff] }
 0x11e   : > { %v918_v5 = vld [vmem:[%s1258_s2] ss:$0 sm:$0xff] }
 0x11f   : > { %v704_v6 = vmul.f32 %v918_v5, %v693_v3  ;;  %v705_v7 = vmul.f32 %v918_v5, %v694_v4  ;;  %v919_v8 = vld [vmem:[%s1259_s3] ss:$0 sm:$0xff]  ;;  %v695_v9 = vld [vmem:[#allocation2 + $0x18] sm:$0xff] }
 0x120   : > { %v706_v11 = vmul.f32 %v918_v5, %v695_v9 }
 0x121   : > { %v715_v13 = vadd.f32 %v919_v8, %v704_v6  ;;  %v716_v14 = vadd.f32 %v919_v8, %v705_v7 }
 0x122   : > { %v717_v15 = vadd.f32 %v919_v8, %v706_v11 }
 0x123   : > { %v696_v10 = vld [vmem:[#allocation2 + $0x8] sm:$0xff]  ;;  %v719_v17 = vmax.f32 %v715_v13, 0.0  ;;  %v720_v18 = vmax.f32 %v716_v14, 0.0 }
 0x124   : > { %v707_v12 = vmul.f32 %v918_v5, %v696_v10  ;;  %v721_v19 = vmax.f32 %v717_v15, 0.0 }
 0x125   : > { %v936_v21 = vpack.c.bf16 %v720_v18, %v719_v17 }
 0x126   : > { %v718_v16 = vadd.f32 %v919_v8, %v707_v12 }
 0x127   : > { %937 = vst [vmem:[%s1260_s4] sm:$0xff] %v936_v21  }
 0x128   : > { %v722_v20 = vmax.f32 %v718_v16, 0.0 }
 0x12a   : > { %v941_v22 = vpack.c.bf16 %v722_v20, %v721_v19 }
 0x12c   : > { %943 = vst [vmem:[%s1260_s4 + $0x8] sm:$0xff] %v941_v22  }
 0x12d PF: > { %s14_s19 = sadd.s32 1, %s1115_s19   ;;  %s1261_s15 = smov %s1103_s16 }
 0x12e   : > { %p11_p12 = scmp.ge.s32.totalorder %s14_s19, 5   ;;  %s1262_s16 = smov %s1178_s23 }
 0x12f   : > { %s1263_s17 = smov %s1111_s18  ;;  %s1264_s18 = smov %s1266_s20 }
 0x130   :  { %13 = sbr.rel (!%p11_p12) target bundleno = 3 (0x3), region = 120 }

// kernel: simclr_forward.35
= control target key start
LH: loop header
LB: loop body
LE: loop exit
PB: predicated region body
PF: predicated region fallthrough
CT: control target
= control target key end

     0   :  { %s1114_s15 = smov 0   ;;  %s1116_s16 = smov 0   ;;  %s1216_s0 = inlined_call_operand.vmem [shape: bf16[8,1152], index: 0, kind: input, shape index: {}]   ;;  %s1217_s1 = inlined_call_operand.vmem [shape: bf16[1152,256], index: 1, kind: input, shape index: {}]   ;;  %s1218_s2 = inlined_call_operand.vmem [shape: f32[1,256], index: 2, kind: input, shape index: {}]   ;;  %s1219_s3 = inlined_call_operand.vmem [shape: f32[1,256], index: 3, kind: input, shape index: {}]   ;;  %s1220_s4 = inlined_call_operand.vmem [shape: bf16[8,256], index: 4, kind: output, shape index: {}]  }
   0x1   :  { %s1118_s17 = smov 0  }
   0x2 LB: > { %s26_s18 = sadd.s32 1, %s1081_s16  ;;  %p898_p0 = scmp.ge.s32.totalorder %s1085_s17, 1  ;;  %s1085_s17 = sphi %s1118_s17, %s14_s17   ;;  %s1081_s16 = sphi %s1116_s16, %s1222_s16   ;;  %s1077_s15 = sphi %s1114_s15, %s1221_s15  }
   0x3   : > { %p27_p1 = scmp.ge.s32.totalorder %s26_s18, 3  ;;  %p229_p2 = scmp.lt.s32.totalorder %s1085_s17, 4 }
   0x5   : > { %s1224_s18 = smov (%p27_p1, %s26_s18), 0  ;;  %p230_p3 = pnand %p898_p0, %p229_p2 }
   0x6   : > { %s281_s19 = smul.u32 (!%p230_p3), 3, %s1077_s15  ;;  %p902_p6 = scmp.ne.s32.totalorder (!%p230_p3), %s1077_s15, 0 }
   0x7   : > { %233 = sbr.rel (%p230_p3) target bundleno = 304 (0x130), region = 36 }
   0x8   : > { %s291_s20 = smul.u32 (!%p230_p3), 48, %s1077_s15  ;;  %p284_p4 = scmp.lt.s32.totalorder (!%p230_p3), %s281_s19, 8 }
   0xa   : > { %p293_p5 = scmp.lt.s32.totalorder (!%p230_p3), %s291_s20, 143 }
   0xc   : > { %s1226_s19 = smov (!%p284_p4, %s281_s19), 8  ;;  %s1228_s20 = smov (!%p293_p5, %s291_s20), 143 }
   0xd   : > { %s899_s21 = sshll.u32 %s1226_s19, 2  ;;  %s960_s25 = sshll.u32 %s1228_s20, 3 }
   0xe   : > { %s1139_s24 = scalar_lea.vmem %s1216_s0, %s899_s21  ;;  %s1144_s28 = scalar_lea.vmem %s1217_s1, %s960_s25 }
   0xf   : > { %327 = sbr.rel (%p902_p6) target bundleno = 22 (0x16), region = 40 }
  0x14   : > { %v1087_v0 = vmov 0.0  }
  0x15   : > { %328 = vst [vmem:[#allocation2] sm:$0xff] %v1087_v0  ;;  %329 = vst [vmem:[#allocation2 + $0x8] sm:$0xff] %v1087_v0 }
  0x16 PF: > { %v988_v1 = vld [vmem:[%s1144_s28 + $0x74] ss:$8 sps:$4 sm:$0xff]   ;;  %v990_v2 = vld [vmem:[%s1144_s28 + $0x70] ss:$8 sps:$4 sm:$0xff]   ;;  %v1088_v3 = vmov 0   ;;  %v332_v34 = vld [vmem:[%s1139_s24] sm:$0xff] }
  0x17   : > { %706 = vmatprep.mubr.bf16.mxu1 %v1088_v3  ;;  %633 = vmatprep.subr.bf16.mxu0 %v988_v1  ;;  %v991_v4 = vld [vmem:[%s1144_s28 + $0x64] ss:$8 sps:$4 sm:$0xff]   ;;  %v993_v5 = vld [vmem:[%s1144_s28 + $0x60] ss:$8 sps:$4 sm:$0xff]   ;;  %v994_v6 = vld [vmem:[%s1144_s28 + $0x54] ss:$8 sps:$4 sm:$0xff]   ;;  %v904_v36 = vcombine.high %v332_v34, %v332_v34  ;;  %v903_v53 = vcombine.low %v332_v34, %v332_v34 }
  0x18   : > { %634 = vmatpush1.bf16.msra.mxu0 %v990_v2  ;;  %v996_v7 = vld [vmem:[%s1144_s28 + $0x50] ss:$8 sps:$4 sm:$0xff]   ;;  %v997_v8 = vld [vmem:[%s1144_s28 + $0x44] ss:$8 sps:$4 sm:$0xff]   ;;  %v1009_v9 = vld [vmem:[%s1144_s28 + $0x174] ss:$8 sps:$4 sm:$0xff]  }
  0x19   : > { %635 = vmatprep.subr.bf16.mxu0 %v991_v4  ;;  %v1011_v10 = vld [vmem:[%s1144_s28 + $0x170] ss:$8 sps:$4 sm:$0xff]   ;;  %v999_v11 = vld [vmem:[%s1144_s28 + $0x40] ss:$8 sps:$4 sm:$0xff]   ;;  %v1000_v12 = vld [vmem:[%s1144_s28 + $0x34] ss:$8 sps:$4 sm:$0xff]   ;;  %674 = vmatprep.subr.bf16.mxu1 %v1009_v9 }
  0x1a   : > { %v1015_v13 = vld [vmem:[%s1144_s28 + $0x164] ss:$8 sps:$4 sm:$0xff]   ;;  %675 = vmatpush1.bf16.msra.mxu1 %v1011_v10  ;;  %v1017_v14 = vld [vmem:[%s1144_s28 + $0x160] ss:$8 sps:$4 sm:$0xff]   ;;  %v1002_v15 = vld [vmem:[%s1144_s28 + $0x30] ss:$8 sps:$4 sm:$0xff]   ;;  %665 = vmatprep.mubr.bf16.mxu0 %v904_v36 }
  0x1b   : > { %676 = vmatprep.subr.bf16.mxu1 %v1015_v13  ;;  %v1021_v16 = vld [vmem:[%s1144_s28 + $0x154] ss:$8 sps:$4 sm:$0xff]   ;;  %v1003_v17 = vld [vmem:[%s1144_s28 + $0x24] ss:$8 sps:$4 sm:$0xff]   ;;  %v1023_v18 = vld [vmem:[%s1144_s28 + $0x150] ss:$8 sps:$4 sm:$0xff]  }
  0x1c   : > { %636 = vmatpush1.bf16.msra.mxu0 %v993_v5  ;;  %v1027_v19 = vld [vmem:[%s1144_s28 + $0x144] ss:$8 sps:$4 sm:$0xff]   ;;  %v1005_v20 = vld [vmem:[%s1144_s28 + $0x20] ss:$8 sps:$4 sm:$0xff]   ;;  %v1006_v21 = vld [vmem:[%s1144_s28 + $0x14] ss:$8 sps:$4 sm:$0xff]  }
  0x1d   : > { %637 = vmatprep.subr.bf16.mxu0 %v994_v6  ;;  %v1029_v22 = vld [vmem:[%s1144_s28 + $0x140] ss:$8 sps:$4 sm:$0xff]   ;;  %v1033_v23 = vld [vmem:[%s1144_s28 + $0x134] ss:$8 sps:$4 sm:$0xff]   ;;  %v1008_v24 = vld [vmem:[%s1144_s28 + $0x10] ss:$8 sps:$4 sm:$0xff]  }
  0x1e   : > { %677 = vmatpush1.bf16.msra.mxu1 %v1017_v14  ;;  %v1012_v25 = vld [vmem:[%s1144_s28 + $0x4] ss:$8 sps:$4 sm:$0xff]   ;;  %v1035_v26 = vld [vmem:[%s1144_s28 + $0x130] ss:$8 sps:$4 sm:$0xff]   ;;  %v1014_v28 = vld [vmem:[%s1144_s28] ss:$8 sps:$4 sm:$0xff]  }
  0x1f   : > { %678 = vmatprep.subr.bf16.mxu1 %v1021_v16  ;;  %v1039_v27 = vld [vmem:[%s1144_s28 + $0x124] ss:$8 sps:$4 sm:$0xff]   ;;  %v1018_v29 = vld [vmem:[%s1144_s28 + $0xf4] ss:$8 sps:$4 sm:$0xff]   ;;  %v1041_v30 = vld [vmem:[%s1144_s28 + $0x120] ss:$8 sps:$4 sm:$0xff]  }
  0x20   : > { %638 = vmatpush1.bf16.msra.mxu0 %v996_v7  ;;  %v1045_v31 = vld [vmem:[%s1144_s28 + $0x114] ss:$8 sps:$4 sm:$0xff]   ;;  %v1020_v32 = vld [vmem:[%s1144_s28 + $0xf0] ss:$8 sps:$4 sm:$0xff]   ;;  %v1024_v33 = vld [vmem:[%s1144_s28 + $0xe4] ss:$8 sps:$4 sm:$0xff]  }
  0x21   : > { %639 = vmatprep.subr.bf16.mxu0 %v997_v8  ;;  %v1047_v35 = vld [vmem:[%s1144_s28 + $0x110] ss:$8 sps:$4 sm:$0xff]   ;;  %v1051_v37 = vld [vmem:[%s1144_s28 + $0x104] ss:$8 sps:$4 sm:$0xff]   ;;  %v1026_v38 = vld [vmem:[%s1144_s28 + $0xe0] ss:$8 sps:$4 sm:$0xff]  }
  0x22   : > { %679 = vmatpush1.bf16.msra.mxu1 %v1023_v18  ;;  %v1030_v39 = vld [vmem:[%s1144_s28 + $0xd4] ss:$8 sps:$4 sm:$0xff]   ;;  %v1053_v40 = vld [vmem:[%s1144_s28 + $0x100] ss:$8 sps:$4 sm:$0xff]   ;;  %v1032_v41 = vld [vmem:[%s1144_s28 + $0xd0] ss:$8 sps:$4 sm:$0xff]  }
  0x23   : > { %680 = vmatprep.subr.bf16.mxu1 %v1027_v19  ;;  %v1036_v42 = vld [vmem:[%s1144_s28 + $0xc4] ss:$8 sps:$4 sm:$0xff]   ;;  %v1057_v43 = vld [vmem:[%s1139_s24 + $0x8] ss:$0 sps:$4 sm:$0xff]   ;;  %v1042_v45 = vld [vmem:[%s1144_s28 + $0xb4] ss:$8 sps:$4 sm:$0xff]  }
  0x24   : > { %640 = vmatpush1.bf16.msra.mxu0 %v999_v11  ;;  %v1038_v44 = vld [vmem:[%s1144_s28 + $0xc0] ss:$8 sps:$4 sm:$0xff]   ;;  %v1044_v46 = vld [vmem:[%s1144_s28 + $0xb0] ss:$8 sps:$4 sm:$0xff]   ;;  %v1048_v47 = vld [vmem:[%s1144_s28 + $0xa4] ss:$8 sps:$4 sm:$0xff]  }
  0x25   : > { %641 = vmatprep.subr.bf16.mxu0 %v1000_v12  ;;  %v1050_v48 = vld [vmem:[%s1144_s28 + $0xa0] ss:$8 sps:$4 sm:$0xff]   ;;  %v1054_v49 = vld [vmem:[%s1144_s28 + $0x94] ss:$8 sps:$4 sm:$0xff]   ;;  %v1056_v50 = vld [vmem:[%s1144_s28 + $0x90] ss:$8 sps:$4 sm:$0xff]  }
  0x26   : > { %681 = vmatpush1.bf16.msra.mxu1 %v1029_v22  ;;  %v1058_v51 = vld [vmem:[%s1144_s28 + $0x84] ss:$8 sps:$4 sm:$0xff]   ;;  %v1060_v52 = vld [vmem:[%s1144_s28 + $0x80] ss:$8 sps:$4 sm:$0xff]   ;;  %p954_p7 = scmp.ne.s32.totalorder %s1077_s15, 2 }
  0x27   : > { %682 = vmatprep.subr.bf16.mxu1 %v1033_v23  ;;  %v330_v58 = vld [vmem:[#allocation2] sm:$0xff]  ;;  %v331_v61 = vld [vmem:[#allocation2 + $0x8] sm:$0xff] }
  0x28   : > { %642 = vmatpush1.bf16.msra.mxu0 %v1002_v15 }
  0x29   : > { %643 = vmatprep.subr.bf16.mxu0 %v1003_v17 }
  0x2a   : > { %683 = vmatpush1.bf16.msra.mxu1 %v1035_v26 }
  0x2b   : > { %684 = vmatprep.subr.bf16.mxu1 %v1039_v27 }
  0x2c   : > { %644 = vmatpush1.bf16.msra.mxu0 %v1005_v20 }
  0x2d   : > { %645 = vmatprep.subr.bf16.mxu0 %v1006_v21 }
  0x2e   : > { %685 = vmatpush1.bf16.msra.mxu1 %v1041_v30 }
  0x2f   : > { %686 = vmatprep.subr.bf16.mxu1 %v1045_v31 }
  0x30   : > { %646 = vmatpush1.bf16.msra.mxu0 %v1008_v24 }
  0x31   : > { %647 = vmatprep.subr.bf16.mxu0 %v1012_v25 }
  0x32   : > { %687 = vmatpush1.bf16.msra.mxu1 %v1047_v35 }
  0x33   : > { %688 = vmatprep.subr.bf16.mxu1 %v1051_v37 }
  0x34   : > { %648 = vmatpush1.bf16.msra.mxu0 %v1014_v28 }
  0x35   : > { %649 = vmatprep.subr.bf16.mxu0 %v1018_v29 }
  0x36   : > { %689 = vmatpush1.bf16.msra.mxu1 %v1053_v40 }
  0x38   : > { %650 = vmatpush2.bf16.msra.mxu0 %v1020_v32 }
  0x39   : > { %651 = vmatprep.subr.bf16.mxu0 %v1024_v33  ;;  %707 = vmatmul.mubr.bf16.vlgmr.msra.gmra.mxu1 %v1057_v43 }
  0x3c   : > { %652 = vmatpush2.bf16.msra.mxu0 %v1026_v38 }
  0x3d   : > { %653 = vmatprep.subr.bf16.mxu0 %v1030_v39 }
  0x40   : > { %654 = vmatpush2.bf16.msra.mxu0 %v1032_v41 }
  0x41   : > { %655 = vmatprep.subr.bf16.mxu0 %v1036_v42 }
  0x44   : > { %656 = vmatpush2.bf16.msra.mxu0 %v1038_v44 }
  0x45   : > { %657 = vmatprep.subr.bf16.mxu0 %v1042_v45 }
  0x48   : > { %658 = vmatpush2.bf16.msra.mxu0 %v1044_v46 }
  0x49   : > { %659 = vmatprep.subr.bf16.mxu0 %v1048_v47 }
  0x4c   : > { %660 = vmatpush2.bf16.msra.mxu0 %v1050_v48 }
  0x4d   : > { %661 = vmatprep.subr.bf16.mxu0 %v1054_v49 }
  0x50   : > { %662 = vmatpush2.bf16.msra.mxu0 %v1056_v50 }
  0x51   : > { %663 = vmatprep.subr.bf16.mxu0 %v1058_v51 }
  0x54   : > { %664 = vmatpush2.bf16.msra.mxu0 %v1060_v52 }
  0x57   : > { %666 = vmatmul.mubr.bf16.vlgmr.msra.gmra.mxu0 %v903_v53 }
  0xf9   : > { %v708_v54 = vpop.f32.mrf.mxu1 }
  0xfb   : > { %v710_v55 = vpop.f32.mrf.mxu1 }
  0xfd   : > { %v712_v56 = vpop.f32.mrf.mxu1 }
  0xff   : > { %v713_v57 = vpop.f32.mrf.mxu1 }
 0x117   : > { %v667_v59 = vpop.f32.mrf.mxu0 }
 0x118   : > { %v709_v60 = vadd.f32 %v708_v54, %v667_v59 }
 0x119   : > { %v669_v62 = vpop.f32.mrf.mxu0 }
 0x11a   : > { %v715_v63 = vadd.f32 %v709_v60, %v330_v58  ;;  %v711_v0 = vadd.f32 %v710_v55, %v669_v62  ;;  %722 = sbr.rel (%p954_p7) target bundleno = 304 (0x130), region = 44 }
 0x11b   : > { %v671_v1 = vpop.f32.mrf.mxu0 }
 0x11c   : > { %717 = vst [vmem:[#allocation2] sm:$0xff] %v715_v63  ;;  %v716_v2 = vadd.f32 %v711_v0, %v331_v61 }
 0x11d   : > { %v672_v3 = vpop.f32.mrf.mxu0 }
 0x11e   : > { %718 = vst [vmem:[#allocation2 + $0x8] sm:$0xff] %v716_v2 }
 0x11f   : > { %v727_v4 = vlaneseq  ;;  %v725_v6 = vld [vmem:[%s1218_s2] sm:$0x3] }
 0x120   : > { %v739_v7 = vld [vmem:[%s1219_s3] sm:$0x3] }
 0x121   : > { %v728_v5 = vshrl.u32 %v727_v4, 7 }
 0x123   : > { %v729_v8 = vsub.s32 0, %v728_v5  ;;  %v733_v9 = vsub.s32 1, %v728_v5  ;;  %v723_v10 = vld [vmem:[#allocation2] sm:$0xff] }
 0x125   : > { %v724_v11 = vld [vmem:[#allocation2 + $0x8] sm:$0xff]  ;;  %v730_v12 = vrot.slane %v725_v6, %v729_v8  ;;  %v734_v13 = vrot.slane %v725_v6, %v733_v9  ;;  %v744_v14 = vrot.slane %v739_v7, %v729_v8  ;;  %v748_v15 = vrot.slane %v739_v7, %v733_v9 }
 0x127   : > { %v737_v16 = vmul.f32 %v730_v12, %v723_v10  ;;  %v738_v17 = vmul.f32 %v734_v13, %v724_v11 }
 0x129   : > { %v751_v18 = vadd.f32 %v744_v14, %v737_v16  ;;  %v752_v19 = vadd.f32 %v748_v15, %v738_v17 }
 0x12b   : > { %v753_v20 = vmax.f32 %v751_v18, 0.0  ;;  %v754_v21 = vmax.f32 %v752_v19, 0.0 }
 0x12d   : > { %v961_v22 = vpack.c.bf16 %v754_v21, %v753_v20 }
 0x12f   : > { %763 = vst [vmem:[%s1220_s4] sm:$0xff] %v961_v22 }
 0x130 PF: > { %s14_s17 = sadd.s32 1, %s1085_s17   ;;  %s1221_s15 = smov %s1081_s16 }
 0x131   : > { %p11_p8 = scmp.ge.s32.totalorder %s14_s17, 5   ;;  %s1222_s16 = smov %s1224_s18 }
 0x133   :  { %13 = sbr.rel (!%p11_p8) target bundleno = 2 (0x2), region = 83 }

// kernel: simclr_forward.36
= control target key start
LH: loop header
LB: loop body
LE: loop exit
PB: predicated region body
PF: predicated region fallthrough
CT: control target
= control target key end

     0   :  { %v257_v1 = vmov 0   ;;  %v175_v18 = vlaneseq  ;;  %s343_s1 = inlined_call_operand.vmem [shape: bf16[128,256], index: 1, kind: input, shape index: {}]   ;;  %s344_s0 = inlined_call_operand.vmem [shape: bf16[8,128], index: 0, kind: input, shape index: {}]   ;;  %s345_s2 = inlined_call_operand.vmem [shape: f32[1,256], index: 2, kind: input, shape index: {}]   ;;  %s346_s3 = inlined_call_operand.vmem [shape: f32[1,256], index: 3, kind: input, shape index: {}]   ;;  %s347_s4 = inlined_call_operand.vmem [shape: bf16[8,256], index: 4, kind: output, shape index: {}]  }
   0x1   :  { %v233_v0 = vld [vmem:[%s343_s1 + $0x74] ss:$8 sps:$4 sm:$0xff]   ;;  %155 = vmatprep.mubr.bf16.mxu0 %v257_v1  ;;  %v235_v2 = vld [vmem:[%s343_s1 + $0x70] ss:$8 sps:$4 sm:$0xff]   ;;  %v236_v3 = vld [vmem:[%s343_s1 + $0x64] ss:$8 sps:$4 sm:$0xff]  }
   0x2   :  { %123 = vmatprep.subr.bf16.mxu0 %v233_v0  ;;  %v238_v4 = vld [vmem:[%s343_s1 + $0x60] ss:$8 sps:$4 sm:$0xff]   ;;  %v239_v5 = vld [vmem:[%s343_s1 + $0x54] ss:$8 sps:$4 sm:$0xff]   ;;  %v241_v6 = vld [vmem:[%s343_s1 + $0x50] ss:$8 sps:$4 sm:$0xff]  }
   0x3   :  { %124 = vmatpush1.bf16.msra.mxu0 %v235_v2  ;;  %v242_v7 = vld [vmem:[%s343_s1 + $0x44] ss:$8 sps:$4 sm:$0xff]   ;;  %v244_v8 = vld [vmem:[%s343_s1 + $0x40] ss:$8 sps:$4 sm:$0xff]   ;;  %v245_v9 = vld [vmem:[%s343_s1 + $0x34] ss:$8 sps:$4 sm:$0xff]  }
   0x4   :  { %125 = vmatprep.subr.bf16.mxu0 %v236_v3  ;;  %v247_v10 = vld [vmem:[%s343_s1 + $0x30] ss:$8 sps:$4 sm:$0xff]   ;;  %v248_v11 = vld [vmem:[%s343_s1 + $0x24] ss:$8 sps:$4 sm:$0xff]   ;;  %v250_v12 = vld [vmem:[%s343_s1 + $0x20] ss:$8 sps:$4 sm:$0xff]  }
   0x5   :  { %v251_v13 = vld [vmem:[%s343_s1 + $0x14] ss:$8 sps:$4 sm:$0xff]   ;;  %v253_v14 = vld [vmem:[%s343_s1 + $0x10] ss:$8 sps:$4 sm:$0xff]   ;;  %v254_v15 = vld [vmem:[%s343_s1 + $0x4] ss:$8 sps:$4 sm:$0xff]  }
   0x6   :  { %v256_v16 = vld [vmem:[%s343_s1] ss:$8 sps:$4 sm:$0xff]   ;;  %v176_v19 = vshrl.u32 %v175_v18, 7 }
   0x7   :  { %126 = vmatpush1.bf16.msra.mxu0 %v238_v4  ;;  %v26_v17 = vld [vmem:[%s344_s0] sm:$0xf] }
   0x8   :  { %127 = vmatprep.subr.bf16.mxu0 %v239_v5  ;;  %v177_v20 = vsub.s32 0, %v176_v19  ;;  %v173_v21 = vld [vmem:[%s345_s2] sm:$0x3]  ;;  %v181_v22 = vsub.s32 1, %v176_v19 }
   0x9   :  { %v187_v24 = vld [vmem:[%s346_s3] sm:$0x3] }
   0xa   :  { %v178_v23 = vrot.slane %v173_v21, %v177_v20  ;;  %v182_v25 = vrot.slane %v173_v21, %v181_v22  ;;  %v192_v28 = vrot.slane %v187_v24, %v177_v20  ;;  %v196_v29 = vrot.slane %v187_v24, %v181_v22 }
   0xb   :  { %128 = vmatpush1.bf16.msra.mxu0 %v241_v6 }
   0xc   :  { %129 = vmatprep.subr.bf16.mxu0 %v242_v7 }
   0xf   :  { %130 = vmatpush1.bf16.msra.mxu0 %v244_v8 }
  0x10   :  { %131 = vmatprep.subr.bf16.mxu0 %v245_v9 }
  0x13   :  { %132 = vmatpush1.bf16.msra.mxu0 %v247_v10 }
  0x14   :  { %133 = vmatprep.subr.bf16.mxu0 %v248_v11 }
  0x17   :  { %134 = vmatpush1.bf16.msra.mxu0 %v250_v12 }
  0x18   :  { %135 = vmatprep.subr.bf16.mxu0 %v251_v13 }
  0x1b   :  { %136 = vmatpush1.bf16.msra.mxu0 %v253_v14 }
  0x1c   :  { %137 = vmatprep.subr.bf16.mxu0 %v254_v15 }
  0x1f   :  { %138 = vmatpush1.bf16.msra.mxu0 %v256_v16 }
  0x22   :  { %156 = vmatmul.mubr.bf16.vlgmr.msra.gmra.mxu0 %v26_v17 }
  0xe2   :  { %v157_v26 = vpop.f32.mrf.mxu0 }
  0xe3   :  { %v185_v27 = vmul.f32 %v178_v23, %v157_v26 }
  0xe4   :  { %v159_v30 = vpop.f32.mrf.mxu0 }
  0xe5   :  { %v186_v31 = vmul.f32 %v182_v25, %v159_v30  ;;  %v199_v33 = vadd.f32 %v192_v28, %v185_v27 }
  0xe6   :  { %v161_v32 = vpop.f32.mrf.mxu0 }
  0xe7   :  { %v200_v34 = vadd.f32 %v196_v29, %v186_v31 }
  0xe8   :  { %v162_v35 = vpop.f32.mrf.mxu0 }
  0xe9   :  { %v231_v36 = vpack.c.bf16 %v200_v34, %v199_v33 }
  0xeb   :  { %209 = vst [vmem:[%s347_s4] sm:$0xff] %v231_v36 }

// kernel: simclr_forward.37
= control target key start
LH: loop header
LB: loop body
LE: loop exit
PB: predicated region body
PF: predicated region fallthrough
CT: control target
= control target key end

     0   :  { %s1672_s18 = smov 0   ;;  %s1674_s19 = smov 0   ;;  %s1832_s0 = inlined_call_operand.vmem [shape: bf16[8,2304], index: 0, kind: input, shape index: {}]   ;;  %s1833_s1 = inlined_call_operand.vmem [shape: bf16[2304,256], index: 1, kind: input, shape index: {}]   ;;  %s1834_s2 = inlined_call_operand.vmem [shape: f32[1,256], index: 2, kind: input, shape index: {}]   ;;  %s1835_s3 = inlined_call_operand.vmem [shape: f32[1,256], index: 3, kind: input, shape index: {}]   ;;  %s1836_s4 = inlined_call_operand.vmem [shape: bf16[8,256], index: 4, kind: input, shape index: {}]   ;;  %s1837_s5 = inlined_call_operand.vmem [shape: bf16[8,256], index: 5, kind: output, shape index: {}]  }
   0x1   :  { %s1676_s20 = smov 0  }
   0x2 LB: > { %s27_s21 = sadd.s32 1, %s1635_s19  ;;  %p1327_p0 = scmp.ge.s32.totalorder %s1639_s20, 1  ;;  %s1639_s20 = sphi %s1676_s20, %s15_s20   ;;  %s1635_s19 = sphi %s1674_s19, %s1839_s19   ;;  %s1631_s18 = sphi %s1672_s18, %s1838_s18  }
   0x3   : > { %p28_p1 = scmp.ge.s32.totalorder %s27_s21, 3  ;;  %p271_p2 = scmp.lt.s32.totalorder %s1639_s20, 4 }
   0x5   : > { %s1841_s21 = smov (%p28_p1, %s27_s21), 0  ;;  %p272_p3 = pnand %p1327_p0, %p271_p2 }
   0x6   : > { %s334_s22 = smul.u32 (!%p272_p3), 6, %s1631_s18  ;;  %p1331_p6 = scmp.ne.s32.totalorder (!%p272_p3), %s1631_s18, 0 }
   0x7   : > { %275 = sbr.rel (%p272_p3) target bundleno = 370 (0x172), region = 40 }
   0x8   : > { %s344_s23 = smul.u32 (!%p272_p3), 96, %s1631_s18  ;;  %p337_p4 = scmp.lt.s32.totalorder (!%p272_p3), %s334_s22, 17 }
   0xa   : > { %p346_p5 = scmp.lt.s32.totalorder (!%p272_p3), %s344_s23, 287 }
   0xc   : > { %s1843_s22 = smov (!%p337_p4, %s334_s22), 17  ;;  %s1845_s23 = smov (!%p346_p5, %s344_s23), 287 }
   0xd   : > { %s1328_s24 = sshll.u32 %s1843_s22, 2  ;;  %s1440_s28 = sshll.u32 %s1845_s23, 3 }
   0xe   : > { %s1697_s27 = scalar_lea.vmem %s1832_s0, %s1328_s24  ;;  %s1702_s6 = scalar_lea.vmem %s1833_s1, %s1440_s28 }
   0xf   : > { %389 = sbr.rel (%p1331_p6) target bundleno = 22 (0x16), region = 44 }
  0x14   : > { %v1641_v0 = vmov 0.0  }
  0x15   : > { %390 = vst [vmem:[#allocation2] sm:$0xff] %v1641_v0  ;;  %391 = vst [vmem:[#allocation2 + $0x8] sm:$0xff] %v1641_v0 }
  0x16 PF: > { %v1467_v1 = vld [vmem:[%s1702_s6 + $0x74] ss:$8 sps:$4 sm:$0xff]   ;;  %v1471_v3 = vld [vmem:[%s1702_s6 + $0x70] ss:$8 sps:$4 sm:$0xff]   ;;  %v1473_v5 = vld [vmem:[%s1702_s6 + $0x64] ss:$8 sps:$4 sm:$0xff]  }
  0x17   : > { %v1469_v2 = vld [vmem:[%s1702_s6 + $0x174] ss:$8 sps:$4 sm:$0xff]   ;;  %994 = vmatprep.subr.bf16.mxu0 %v1467_v1  ;;  %v1472_v4 = vld [vmem:[%s1702_s6 + $0x170] ss:$8 sps:$4 sm:$0xff]   ;;  %v1475_v6 = vld [vmem:[%s1702_s6 + $0x164] ss:$8 sps:$4 sm:$0xff]  }
  0x18   : > { %1035 = vmatprep.subr.bf16.mxu1 %v1469_v2  ;;  %995 = vmatpush1.bf16.msra.mxu0 %v1471_v3  ;;  %v1477_v7 = vld [vmem:[%s1702_s6 + $0x60] ss:$8 sps:$4 sm:$0xff]   ;;  %v1479_v9 = vld [vmem:[%s1702_s6 + $0x54] ss:$8 sps:$4 sm:$0xff]   ;;  %v1483_v11 = vld [vmem:[%s1702_s6 + $0x50] ss:$8 sps:$4 sm:$0xff]  }
  0x19   : > { %1036 = vmatpush1.bf16.msra.mxu1 %v1472_v4  ;;  %996 = vmatprep.subr.bf16.mxu0 %v1473_v5  ;;  %v1478_v8 = vld [vmem:[%s1702_s6 + $0x160] ss:$8 sps:$4 sm:$0xff]   ;;  %v1481_v10 = vld [vmem:[%s1702_s6 + $0x154] ss:$8 sps:$4 sm:$0xff]   ;;  %v1484_v12 = vld [vmem:[%s1702_s6 + $0x150] ss:$8 sps:$4 sm:$0xff]  }
  0x1a   : > { %1037 = vmatprep.subr.bf16.mxu1 %v1475_v6  ;;  %v1485_v13 = vld [vmem:[%s1702_s6 + $0x44] ss:$8 sps:$4 sm:$0xff]   ;;  %v1489_v15 = vld [vmem:[%s1702_s6 + $0x40] ss:$8 sps:$4 sm:$0xff]   ;;  %v1491_v17 = vld [vmem:[%s1702_s6 + $0x34] ss:$8 sps:$4 sm:$0xff]  }
  0x1b   : > { %v1487_v14 = vld [vmem:[%s1702_s6 + $0x144] ss:$8 sps:$4 sm:$0xff]   ;;  %v1490_v16 = vld [vmem:[%s1702_s6 + $0x140] ss:$8 sps:$4 sm:$0xff]   ;;  %v1493_v18 = vld [vmem:[%s1702_s6 + $0x134] ss:$8 sps:$4 sm:$0xff]  }
  0x1c   : > { %997 = vmatpush1.bf16.msra.mxu0 %v1477_v7  ;;  %v1495_v19 = vld [vmem:[%s1702_s6 + $0x30] ss:$8 sps:$4 sm:$0xff]   ;;  %v1497_v21 = vld [vmem:[%s1702_s6 + $0x24] ss:$8 sps:$4 sm:$0xff]   ;;  %v1501_v23 = vld [vmem:[%s1702_s6 + $0x20] ss:$8 sps:$4 sm:$0xff]  }
  0x1d   : > { %1038 = vmatpush1.bf16.msra.mxu1 %v1478_v8  ;;  %998 = vmatprep.subr.bf16.mxu0 %v1479_v9  ;;  %v1496_v20 = vld [vmem:[%s1702_s6 + $0x130] ss:$8 sps:$4 sm:$0xff]   ;;  %v1499_v22 = vld [vmem:[%s1702_s6 + $0x124] ss:$8 sps:$4 sm:$0xff]   ;;  %v1502_v24 = vld [vmem:[%s1702_s6 + $0x120] ss:$8 sps:$4 sm:$0xff]  }
  0x1e   : > { %1039 = vmatprep.subr.bf16.mxu1 %v1481_v10  ;;  %v1503_v25 = vld [vmem:[%s1702_s6 + $0x14] ss:$8 sps:$4 sm:$0xff]   ;;  %v1507_v27 = vld [vmem:[%s1702_s6 + $0x10] ss:$8 sps:$4 sm:$0xff]   ;;  %v1509_v29 = vld [vmem:[%s1702_s6 + $0x4] ss:$8 sps:$4 sm:$0xff]  }
  0x1f   : > { %v1505_v26 = vld [vmem:[%s1702_s6 + $0x114] ss:$8 sps:$4 sm:$0xff]   ;;  %v1508_v28 = vld [vmem:[%s1702_s6 + $0x110] ss:$8 sps:$4 sm:$0xff]   ;;  %v1511_v30 = vld [vmem:[%s1702_s6 + $0x104] ss:$8 sps:$4 sm:$0xff]  }
  0x20   : > { %999 = vmatpush1.bf16.msra.mxu0 %v1483_v11  ;;  %v1513_v31 = vld [vmem:[%s1702_s6] ss:$8 sps:$4 sm:$0xff]   ;;  %v1515_v33 = vld [vmem:[%s1702_s6 + $0xf4] ss:$8 sps:$4 sm:$0xff]   ;;  %v1519_v35 = vld [vmem:[%s1702_s6 + $0xf0] ss:$8 sps:$4 sm:$0xff]  }
  0x21   : > { %1040 = vmatpush1.bf16.msra.mxu1 %v1484_v12  ;;  %1000 = vmatprep.subr.bf16.mxu0 %v1485_v13  ;;  %v1514_v32 = vld [vmem:[%s1702_s6 + $0x100] ss:$8 sps:$4 sm:$0xff]   ;;  %v1517_v34 = vld [vmem:[%s1702_s6 + $0x1f4] ss:$8 sps:$4 sm:$0xff]   ;;  %v1520_v36 = vld [vmem:[%s1702_s6 + $0x1f0] ss:$8 sps:$4 sm:$0xff]  }
  0x22   : > { %1041 = vmatprep.subr.bf16.mxu1 %v1487_v14  ;;  %v1521_v37 = vld [vmem:[%s1702_s6 + $0xe4] ss:$8 sps:$4 sm:$0xff]   ;;  %v1525_v39 = vld [vmem:[%s1702_s6 + $0xe0] ss:$8 sps:$4 sm:$0xff]   ;;  %v1527_v41 = vld [vmem:[%s1702_s6 + $0xd4] ss:$8 sps:$4 sm:$0xff]  }
  0x23   : > { %v1523_v38 = vld [vmem:[%s1702_s6 + $0x1e4] ss:$8 sps:$4 sm:$0xff]   ;;  %v1526_v40 = vld [vmem:[%s1702_s6 + $0x1e0] ss:$8 sps:$4 sm:$0xff]   ;;  %v1529_v42 = vld [vmem:[%s1702_s6 + $0x1d4] ss:$8 sps:$4 sm:$0xff]  }
  0x24   : > { %1001 = vmatpush1.bf16.msra.mxu0 %v1489_v15  ;;  %v1531_v43 = vld [vmem:[%s1702_s6 + $0xd0] ss:$8 sps:$4 sm:$0xff]   ;;  %v1533_v45 = vld [vmem:[%s1702_s6 + $0xc4] ss:$8 sps:$4 sm:$0xff]   ;;  %v1537_v50 = vld [vmem:[%s1702_s6 + $0xc0] ss:$8 sps:$4 sm:$0xff]  }
  0x25   : > { %1042 = vmatpush1.bf16.msra.mxu1 %v1490_v16  ;;  %1002 = vmatprep.subr.bf16.mxu0 %v1491_v17  ;;  %v1532_v44 = vld [vmem:[%s1702_s6 + $0x1d0] ss:$8 sps:$4 sm:$0xff]   ;;  %v1535_v46 = vld [vmem:[%s1702_s6 + $0x1c4] ss:$8 sps:$4 sm:$0xff]   ;;  %v1538_v51 = vld [vmem:[%s1702_s6 + $0x1c0] ss:$8 sps:$4 sm:$0xff]  }
  0x26   : > { %1043 = vmatprep.subr.bf16.mxu1 %v1493_v18  ;;  %v394_v47 = vld [vmem:[%s1697_s27] sm:$0xff]  ;;  %v395_v49 = vld [vmem:[%s1697_s27 + $0x8] sm:$0xff]  ;;  %v1539_v53 = vld [vmem:[%s1702_s6 + $0xb4] ss:$8 sps:$4 sm:$0xff]   ;;  %p1434_p7 = scmp.ne.s32.totalorder %s1631_s18, 2 }
  0x27   : > { %v1333_v48 = vcombine.high %v394_v47, %v394_v47  ;;  %v1335_v52 = vcombine.high %v395_v49, %v395_v49  ;;  %v1541_v54 = vld [vmem:[%s1702_s6 + $0x1b4] ss:$8 sps:$4 sm:$0xff]   ;;  %v1543_v55 = vld [vmem:[%s1702_s6 + $0xb0] ss:$8 sps:$4 sm:$0xff]   ;;  %v1545_v57 = vld [vmem:[%s1702_s6 + $0xa4] ss:$8 sps:$4 sm:$0xff]   ;;  %v1332_v6 = vcombine.low %v394_v47, %v394_v47  ;;  %v1334_v7 = vcombine.low %v395_v49, %v395_v49 }
  0x28   : > { %1003 = vmatpush1.bf16.msra.mxu0 %v1495_v19  ;;  %v1544_v56 = vld [vmem:[%s1702_s6 + $0x1b0] ss:$8 sps:$4 sm:$0xff]   ;;  %v1547_v58 = vld [vmem:[%s1702_s6 + $0x1a4] ss:$8 sps:$4 sm:$0xff]   ;;  %v1549_v59 = vld [vmem:[%s1702_s6 + $0xa0] ss:$8 sps:$4 sm:$0xff]  }
  0x29   : > { %1044 = vmatpush1.bf16.msra.mxu1 %v1496_v20  ;;  %1004 = vmatprep.subr.bf16.mxu0 %v1497_v21  ;;  %v1550_v60 = vld [vmem:[%s1702_s6 + $0x1a0] ss:$8 sps:$4 sm:$0xff]   ;;  %v1551_v61 = vld [vmem:[%s1702_s6 + $0x94] ss:$8 sps:$4 sm:$0xff]   ;;  %v1555_v63 = vld [vmem:[%s1702_s6 + $0x90] ss:$8 sps:$4 sm:$0xff]  }
  0x2a   : > { %1045 = vmatprep.subr.bf16.mxu1 %v1499_v22  ;;  %1026 = vmatprep.mubr.bf16.mxu0 %v1333_v48  ;;  %v1553_v62 = vld [vmem:[%s1702_s6 + $0x194] ss:$8 sps:$4 sm:$0xff]   ;;  %v1556_v0 = vld [vmem:[%s1702_s6 + $0x190] ss:$8 sps:$4 sm:$0xff]   ;;  %v1557_v1 = vld [vmem:[%s1702_s6 + $0x84] ss:$8 sps:$4 sm:$0xff]  }
  0x2b   : > { %1067 = vmatprep.mubr.bf16.mxu1 %v1335_v52  ;;  %v1559_v2 = vld [vmem:[%s1702_s6 + $0x184] ss:$8 sps:$4 sm:$0xff]   ;;  %v1561_v3 = vld [vmem:[%s1702_s6 + $0x80] ss:$8 sps:$4 sm:$0xff]   ;;  %v1569_v5 = vld [vmem:[%s1702_s6 + $0x274] ss:$8 sps:$4 sm:$0xff]  }
  0x2c   : > { %1005 = vmatpush1.bf16.msra.mxu0 %v1501_v23  ;;  %v1562_v4 = vld [vmem:[%s1702_s6 + $0x180] ss:$8 sps:$4 sm:$0xff]   ;;  %v1567_v8 = vld [vmem:[%s1702_s6 + $0x270] ss:$8 sps:$4 sm:$0xff]   ;;  %v1572_v10 = vld [vmem:[%s1702_s6 + $0x264] ss:$8 sps:$4 sm:$0xff]  }
  0x2d   : > { %1046 = vmatpush1.bf16.msra.mxu1 %v1502_v24  ;;  %1006 = vmatprep.subr.bf16.mxu0 %v1503_v25  ;;  %v1774_v9 = vld [vmem:[%s1697_s27 + $0x10] sm:$0xff]  ;;  %v1570_v12 = vld [vmem:[%s1702_s6 + $0x260] ss:$8 sps:$4 sm:$0xff]   ;;  %v1578_v15 = vld [vmem:[%s1702_s6 + $0x244] ss:$8 sps:$4 sm:$0xff]  }
  0x2e   : > { %1047 = vmatprep.subr.bf16.mxu1 %v1505_v26  ;;  %v1337_v11 = vcombine.high %v1774_v9, %v1774_v9  ;;  %v1575_v13 = vld [vmem:[%s1702_s6 + $0x254] ss:$8 sps:$4 sm:$0xff]   ;;  %v1573_v14 = vld [vmem:[%s1702_s6 + $0x250] ss:$8 sps:$4 sm:$0xff]   ;;  %v1576_v16 = vld [vmem:[%s1702_s6 + $0x240] ss:$8 sps:$4 sm:$0xff]  }
  0x2f   : > { %v1581_v17 = vld [vmem:[%s1702_s6 + $0x234] ss:$8 sps:$4 sm:$0xff]   ;;  %v1579_v18 = vld [vmem:[%s1702_s6 + $0x230] ss:$8 sps:$4 sm:$0xff]   ;;  %v1584_v19 = vld [vmem:[%s1702_s6 + $0x224] ss:$8 sps:$4 sm:$0xff]  }
  0x30   : > { %1007 = vmatpush1.bf16.msra.mxu0 %v1507_v27  ;;  %v1582_v20 = vld [vmem:[%s1702_s6 + $0x220] ss:$8 sps:$4 sm:$0xff]   ;;  %v1587_v21 = vld [vmem:[%s1702_s6 + $0x214] ss:$8 sps:$4 sm:$0xff]   ;;  %v1585_v22 = vld [vmem:[%s1702_s6 + $0x210] ss:$8 sps:$4 sm:$0xff]  }
  0x31   : > { %1048 = vmatpush1.bf16.msra.mxu1 %v1508_v28  ;;  %1008 = vmatprep.subr.bf16.mxu0 %v1509_v29  ;;  %v1590_v23 = vld [vmem:[%s1702_s6 + $0x204] ss:$8 sps:$4 sm:$0xff]   ;;  %v1588_v24 = vld [vmem:[%s1702_s6 + $0x200] ss:$8 sps:$4 sm:$0xff]   ;;  %v1593_v25 = vld [vmem:[%s1702_s6 + $0x2f4] ss:$8 sps:$4 sm:$0xff]  }
  0x32   : > { %1049 = vmatprep.subr.bf16.mxu1 %v1511_v30  ;;  %v1591_v26 = vld [vmem:[%s1702_s6 + $0x2f0] ss:$8 sps:$4 sm:$0xff]   ;;  %v1596_v27 = vld [vmem:[%s1702_s6 + $0x2e4] ss:$8 sps:$4 sm:$0xff]   ;;  %v1594_v28 = vld [vmem:[%s1702_s6 + $0x2e0] ss:$8 sps:$4 sm:$0xff]  }
  0x33   : > { %v1599_v29 = vld [vmem:[%s1702_s6 + $0x2d4] ss:$8 sps:$4 sm:$0xff]   ;;  %v1597_v30 = vld [vmem:[%s1702_s6 + $0x2d0] ss:$8 sps:$4 sm:$0xff]  }
  0x34   : > { %1009 = vmatpush1.bf16.msra.mxu0 %v1513_v31  ;;  %v1602_v31 = vld [vmem:[%s1702_s6 + $0x2c4] ss:$8 sps:$4 sm:$0xff]  }
  0x35   : > { %1050 = vmatpush1.bf16.msra.mxu1 %v1514_v32  ;;  %1010 = vmatprep.subr.bf16.mxu0 %v1515_v33  ;;  %v1600_v32 = vld [vmem:[%s1702_s6 + $0x2c0] ss:$8 sps:$4 sm:$0xff]   ;;  %v1605_v33 = vld [vmem:[%s1702_s6 + $0x2b4] ss:$8 sps:$4 sm:$0xff]  }
  0x36   : > { %1051 = vmatprep.subr.bf16.mxu1 %v1517_v34  ;;  %v1603_v34 = vld [vmem:[%s1702_s6 + $0x2b0] ss:$8 sps:$4 sm:$0xff]  }
  0x38   : > { %1011 = vmatpush2.bf16.msra.mxu0 %v1519_v35  ;;  %v1608_v35 = vld [vmem:[%s1702_s6 + $0x2a4] ss:$8 sps:$4 sm:$0xff]  }
  0x39   : > { %1052 = vmatpush2.bf16.msra.mxu1 %v1520_v36  ;;  %1012 = vmatprep.subr.bf16.mxu0 %v1521_v37  ;;  %v1606_v36 = vld [vmem:[%s1702_s6 + $0x2a0] ss:$8 sps:$4 sm:$0xff]   ;;  %v1611_v37 = vld [vmem:[%s1702_s6 + $0x294] ss:$8 sps:$4 sm:$0xff]  }
  0x3a   : > { %1053 = vmatprep.subr.bf16.mxu1 %v1523_v38  ;;  %v1609_v38 = vld [vmem:[%s1702_s6 + $0x290] ss:$8 sps:$4 sm:$0xff]  }
  0x3c   : > { %1013 = vmatpush2.bf16.msra.mxu0 %v1525_v39  ;;  %v1614_v39 = vld [vmem:[%s1702_s6 + $0x284] ss:$8 sps:$4 sm:$0xff]  }
  0x3d   : > { %1054 = vmatpush2.bf16.msra.mxu1 %v1526_v40  ;;  %1014 = vmatprep.subr.bf16.mxu0 %v1527_v41  ;;  %v1612_v40 = vld [vmem:[%s1702_s6 + $0x280] ss:$8 sps:$4 sm:$0xff]   ;;  %v1336_v41 = vcombine.low %v1774_v9, %v1774_v9 }
  0x3e   : > { %1055 = vmatprep.subr.bf16.mxu1 %v1529_v42 }
  0x40   : > { %1015 = vmatpush2.bf16.msra.mxu0 %v1531_v43 }
  0x41   : > { %1056 = vmatpush2.bf16.msra.mxu1 %v1532_v44  ;;  %1016 = vmatprep.subr.bf16.mxu0 %v1533_v45 }
  0x42   : > { %1057 = vmatprep.subr.bf16.mxu1 %v1535_v46 }
  0x44   : > { %1017 = vmatpush2.bf16.msra.mxu0 %v1537_v50 }
  0x45   : > { %1058 = vmatpush2.bf16.msra.mxu1 %v1538_v51  ;;  %1018 = vmatprep.subr.bf16.mxu0 %v1539_v53  ;;  %v392_v51 = vld [vmem:[#allocation2] sm:$0xff] }
  0x46   : > { %1059 = vmatprep.subr.bf16.mxu1 %v1541_v54 }
  0x48   : > { %1019 = vmatpush2.bf16.msra.mxu0 %v1543_v55  ;;  %v393_v55 = vld [vmem:[#allocation2 + $0x8] sm:$0xff] }
  0x49   : > { %1060 = vmatpush2.bf16.msra.mxu1 %v1544_v56  ;;  %1020 = vmatprep.subr.bf16.mxu0 %v1545_v57 }
  0x4a   : > { %1061 = vmatprep.subr.bf16.mxu1 %v1547_v58 }
  0x4c   : > { %1021 = vmatpush2.bf16.msra.mxu0 %v1549_v59 }
  0x4d   : > { %1062 = vmatpush2.bf16.msra.mxu1 %v1550_v60  ;;  %1022 = vmatprep.subr.bf16.mxu0 %v1551_v61 }
  0x4e   : > { %1063 = vmatprep.subr.bf16.mxu1 %v1553_v62 }
  0x50   : > { %1023 = vmatpush2.bf16.msra.mxu0 %v1555_v63 }
  0x51   : > { %1064 = vmatpush2.bf16.msra.mxu1 %v1556_v0  ;;  %1024 = vmatprep.subr.bf16.mxu0 %v1557_v1 }
  0x52   : > { %1065 = vmatprep.subr.bf16.mxu1 %v1559_v2 }
  0x54   : > { %1025 = vmatpush2.bf16.msra.mxu0 %v1561_v3 }
  0x55   : > { %1066 = vmatpush2.bf16.msra.mxu1 %v1562_v4  ;;  %1076 = vmatprep.subr.bf16.mxu0 %v1569_v5 }
  0x57   : > { %1027 = vmatmul.mubr.bf16.vlgmr.msra.gmra.mxu0 %v1332_v6 }
  0x58   : > { %1068 = vmatmul.mubr.bf16.vlgmr.msra.gmra.mxu1 %v1334_v7  ;;  %1077 = vmatpush1.bf16.msra.mxu0 %v1567_v8 }
  0x59   : > { %1108 = vmatprep.mubr.bf16.mxu0 %v1337_v11  ;;  %1078 = vmatprep.subr.bf16.mxu0 %v1572_v10 }
  0x5c   : > { %1079 = vmatpush1.bf16.msra.mxu0 %v1570_v12 }
  0x5d   : > { %1080 = vmatprep.subr.bf16.mxu0 %v1575_v13 }
  0x60   : > { %1081 = vmatpush1.bf16.msra.mxu0 %v1573_v14 }
  0x61   : > { %1082 = vmatprep.subr.bf16.mxu0 %v1578_v15 }
  0x64   : > { %1083 = vmatpush1.bf16.msra.mxu0 %v1576_v16 }
  0x65   : > { %1084 = vmatprep.subr.bf16.mxu0 %v1581_v17 }
  0x68   : > { %1085 = vmatpush1.bf16.msra.mxu0 %v1579_v18 }
  0x69   : > { %1086 = vmatprep.subr.bf16.mxu0 %v1584_v19 }
  0x6c   : > { %1087 = vmatpush1.bf16.msra.mxu0 %v1582_v20 }
  0x6d   : > { %1088 = vmatprep.subr.bf16.mxu0 %v1587_v21 }
  0x70   : > { %1089 = vmatpush1.bf16.msra.mxu0 %v1585_v22 }
  0x71   : > { %1090 = vmatprep.subr.bf16.mxu0 %v1590_v23 }
  0x74   : > { %1091 = vmatpush1.bf16.msra.mxu0 %v1588_v24 }
  0x75   : > { %1092 = vmatprep.subr.bf16.mxu0 %v1593_v25 }
  0x78   : > { %1093 = vmatpush2.bf16.msra.mxu0 %v1591_v26 }
  0x79   : > { %1094 = vmatprep.subr.bf16.mxu0 %v1596_v27 }
  0x7c   : > { %1095 = vmatpush2.bf16.msra.mxu0 %v1594_v28 }
  0x7d   : > { %1096 = vmatprep.subr.bf16.mxu0 %v1599_v29 }
  0x80   : > { %1097 = vmatpush2.bf16.msra.mxu0 %v1597_v30 }
  0x81   : > { %1098 = vmatprep.subr.bf16.mxu0 %v1602_v31 }
  0x84   : > { %1099 = vmatpush2.bf16.msra.mxu0 %v1600_v32 }
  0x85   : > { %1100 = vmatprep.subr.bf16.mxu0 %v1605_v33 }
  0x88   : > { %1101 = vmatpush2.bf16.msra.mxu0 %v1603_v34 }
  0x89   : > { %1102 = vmatprep.subr.bf16.mxu0 %v1608_v35 }
  0x8c   : > { %1103 = vmatpush2.bf16.msra.mxu0 %v1606_v36 }
  0x8d   : > { %1104 = vmatprep.subr.bf16.mxu0 %v1611_v37 }
  0x90   : > { %1105 = vmatpush2.bf16.msra.mxu0 %v1609_v38 }
  0x91   : > { %1106 = vmatprep.subr.bf16.mxu0 %v1614_v39 }
  0x94   : > { %1107 = vmatpush2.bf16.msra.mxu0 %v1612_v40 }
  0x97   : > { %1109 = vmatmul.mubr.bf16.vlgmr.msra.gmra.mxu0 %v1336_v41 }
 0x117   : > { %v1028_v42 = vpop.f32.mrf.mxu0 }
 0x118   : > { %v1069_v43 = vpop.f32.mrf.mxu1 }
 0x119   : > { %v1030_v44 = vpop.f32.mrf.mxu0  ;;  %v1070_v50 = vadd.f32 %v1069_v43, %v1028_v42 }
 0x11a   : > { %v1071_v45 = vpop.f32.mrf.mxu1 }
 0x11b   : > { %v1032_v46 = vpop.f32.mrf.mxu0  ;;  %v1072_v53 = vadd.f32 %v1071_v45, %v1030_v44 }
 0x11c   : > { %v1073_v47 = vpop.f32.mrf.mxu1 }
 0x11d   : > { %v1033_v48 = vpop.f32.mrf.mxu0 }
 0x11e   : > { %v1074_v49 = vpop.f32.mrf.mxu1 }
 0x157   : > { %v1110_v52 = vpop.f32.mrf.mxu0 }
 0x158   : > { %v1111_v54 = vadd.f32 %v1110_v52, %v1070_v50 }
 0x159   : > { %v1112_v56 = vpop.f32.mrf.mxu0 }
 0x15a   : > { %v1117_v57 = vadd.f32 %v1111_v54, %v392_v51  ;;  %v1113_v58 = vadd.f32 %v1112_v56, %v1072_v53  ;;  %1124 = sbr.rel (%p1434_p7) target bundleno = 370 (0x172), region = 48 }
 0x15b   : > { %v1114_v59 = vpop.f32.mrf.mxu0 }
 0x15c   : > { %1119 = vst [vmem:[#allocation2] sm:$0xff] %v1117_v57  ;;  %v1118_v60 = vadd.f32 %v1113_v58, %v393_v55 }
 0x15d   : > { %v1115_v61 = vpop.f32.mrf.mxu0 }
 0x15e   : > { %1120 = vst [vmem:[#allocation2 + $0x8] sm:$0xff] %v1118_v60 }
 0x15f   : > { %v1129_v62 = vlaneseq  ;;  %v1127_v0 = vld [vmem:[%s1834_s2] sm:$0x3] }
 0x160   : > { %v1141_v1 = vld [vmem:[%s1835_s3] sm:$0x3] }
 0x161   : > { %v1130_v63 = vshrl.u32 %v1129_v62, 7  ;;  %v1155_v6 = vld [vmem:[%s1836_s4] sm:$0xff] }
 0x162   : > { %v1156_v13 = vunpack.c.l.bf16 %v1155_v6  ;;  %v1157_v14 = vunpack.c.h.bf16 %v1155_v6 }
 0x163   : > { %v1131_v2 = vsub.s32 0, %v1130_v63  ;;  %v1135_v3 = vsub.s32 1, %v1130_v63  ;;  %v1125_v4 = vld [vmem:[#allocation2] sm:$0xff] }
 0x165   : > { %v1126_v5 = vld [vmem:[#allocation2 + $0x8] sm:$0xff]  ;;  %v1132_v7 = vrot.slane %v1127_v0, %v1131_v2  ;;  %v1136_v8 = vrot.slane %v1127_v0, %v1135_v3  ;;  %v1146_v9 = vrot.slane %v1141_v1, %v1131_v2  ;;  %v1150_v10 = vrot.slane %v1141_v1, %v1135_v3 }
 0x167   : > { %v1139_v11 = vmul.f32 %v1132_v7, %v1125_v4  ;;  %v1140_v12 = vmul.f32 %v1136_v8, %v1126_v5 }
 0x169   : > { %v1153_v15 = vadd.f32 %v1146_v9, %v1139_v11  ;;  %v1154_v16 = vadd.f32 %v1150_v10, %v1140_v12 }
 0x16b   : > { %v1158_v17 = vadd.f32 %v1156_v13, %v1153_v15  ;;  %v1159_v18 = vadd.f32 %v1157_v14, %v1154_v16 }
 0x16d   : > { %v1160_v19 = vmax.f32 %v1158_v17, 0.0  ;;  %v1161_v20 = vmax.f32 %v1159_v18, 0.0 }
 0x16f   : > { %v1441_v21 = vpack.c.bf16 %v1161_v20, %v1160_v19 }
 0x171   : > { %1170 = vst [vmem:[%s1837_s5] sm:$0xff] %v1441_v21 }
 0x172 PF: > { %s15_s20 = sadd.s32 1, %s1639_s20   ;;  %s1838_s18 = smov %s1635_s19 }
 0x173   : > { %p12_p8 = scmp.ge.s32.totalorder %s15_s20, 5   ;;  %s1839_s19 = smov %s1841_s21 }
 0x175   :  { %14 = sbr.rel (!%p12_p8) target bundleno = 2 (0x2), region = 90 }

// kernel: simclr_forward.38
= control target key start
LH: loop header
LB: loop body
LE: loop exit
PB: predicated region body
PF: predicated region fallthrough
CT: control target
= control target key end

     0   :  { %s1577_s15 = smov 0   ;;  %s1579_s16 = smov 0   ;;  %s1734_s0 = inlined_call_operand.vmem [shape: bf16[8,2304], index: 0, kind: input, shape index: {}]   ;;  %s1735_s1 = inlined_call_operand.vmem [shape: bf16[2304,256], index: 1, kind: input, shape index: {}]   ;;  %s1736_s2 = inlined_call_operand.vmem [shape: f32[1,256], index: 2, kind: input, shape index: {}]   ;;  %s1737_s3 = inlined_call_operand.vmem [shape: f32[1,256], index: 3, kind: input, shape index: {}]   ;;  %s1738_s4 = inlined_call_operand.vmem [shape: bf16[8,256], index: 4, kind: output, shape index: {}]  }
   0x1   :  { %s1581_s17 = smov 0  }
   0x2 LB: > { %s26_s18 = sadd.s32 1, %s1545_s16  ;;  %p1237_p0 = scmp.ge.s32.totalorder %s1549_s17, 1  ;;  %s1549_s17 = sphi %s1581_s17, %s14_s17   ;;  %s1545_s16 = sphi %s1579_s16, %s1740_s16   ;;  %s1541_s15 = sphi %s1577_s15, %s1739_s15  }
   0x3   : > { %p27_p1 = scmp.ge.s32.totalorder %s26_s18, 3  ;;  %p229_p2 = scmp.lt.s32.totalorder %s1549_s17, 4 }
   0x5   : > { %s1742_s18 = smov (%p27_p1, %s26_s18), 0  ;;  %p230_p3 = pnand %p1237_p0, %p229_p2 }
   0x6   : > { %s281_s19 = smul.u32 (!%p230_p3), 6, %s1541_s15  ;;  %p1241_p6 = scmp.ne.s32.totalorder (!%p230_p3), %s1541_s15, 0 }
   0x7   : > { %233 = sbr.rel (%p230_p3) target bundleno = 368 (0x170), region = 36 }
   0x8   : > { %s291_s20 = smul.u32 (!%p230_p3), 96, %s1541_s15  ;;  %p284_p4 = scmp.lt.s32.totalorder (!%p230_p3), %s281_s19, 17 }
   0xa   : > { %p293_p5 = scmp.lt.s32.totalorder (!%p230_p3), %s291_s20, 287 }
   0xc   : > { %s1744_s19 = smov (!%p284_p4, %s281_s19), 17  ;;  %s1746_s20 = smov (!%p293_p5, %s291_s20), 287 }
   0xd   : > { %s1238_s21 = sshll.u32 %s1744_s19, 2  ;;  %s1350_s25 = sshll.u32 %s1746_s20, 3 }
   0xe   : > { %s1602_s24 = scalar_lea.vmem %s1734_s0, %s1238_s21  ;;  %s1607_s28 = scalar_lea.vmem %s1735_s1, %s1350_s25 }
   0xf   : > { %326 = sbr.rel (%p1241_p6) target bundleno = 22 (0x16), region = 40 }
  0x14   : > { %v1551_v0 = vmov 0.0  }
  0x15   : > { %327 = vst [vmem:[#allocation2] sm:$0xff] %v1551_v0  ;;  %328 = vst [vmem:[#allocation2 + $0x8] sm:$0xff] %v1551_v0 }
  0x16 PF: > { %v1377_v1 = vld [vmem:[%s1607_s28 + $0x74] ss:$8 sps:$4 sm:$0xff]   ;;  %v1381_v3 = vld [vmem:[%s1607_s28 + $0x70] ss:$8 sps:$4 sm:$0xff]   ;;  %v1383_v5 = vld [vmem:[%s1607_s28 + $0x64] ss:$8 sps:$4 sm:$0xff]  }
  0x17   : > { %v1379_v2 = vld [vmem:[%s1607_s28 + $0x174] ss:$8 sps:$4 sm:$0xff]   ;;  %931 = vmatprep.subr.bf16.mxu0 %v1377_v1  ;;  %v1382_v4 = vld [vmem:[%s1607_s28 + $0x170] ss:$8 sps:$4 sm:$0xff]   ;;  %v1385_v6 = vld [vmem:[%s1607_s28 + $0x164] ss:$8 sps:$4 sm:$0xff]  }
  0x18   : > { %972 = vmatprep.subr.bf16.mxu1 %v1379_v2  ;;  %932 = vmatpush1.bf16.msra.mxu0 %v1381_v3  ;;  %v1387_v7 = vld [vmem:[%s1607_s28 + $0x60] ss:$8 sps:$4 sm:$0xff]   ;;  %v1389_v9 = vld [vmem:[%s1607_s28 + $0x54] ss:$8 sps:$4 sm:$0xff]   ;;  %v1393_v11 = vld [vmem:[%s1607_s28 + $0x50] ss:$8 sps:$4 sm:$0xff]  }
  0x19   : > { %973 = vmatpush1.bf16.msra.mxu1 %v1382_v4  ;;  %933 = vmatprep.subr.bf16.mxu0 %v1383_v5  ;;  %v1388_v8 = vld [vmem:[%s1607_s28 + $0x160] ss:$8 sps:$4 sm:$0xff]   ;;  %v1391_v10 = vld [vmem:[%s1607_s28 + $0x154] ss:$8 sps:$4 sm:$0xff]   ;;  %v1394_v12 = vld [vmem:[%s1607_s28 + $0x150] ss:$8 sps:$4 sm:$0xff]  }
  0x1a   : > { %974 = vmatprep.subr.bf16.mxu1 %v1385_v6  ;;  %v1395_v13 = vld [vmem:[%s1607_s28 + $0x44] ss:$8 sps:$4 sm:$0xff]   ;;  %v1399_v15 = vld [vmem:[%s1607_s28 + $0x40] ss:$8 sps:$4 sm:$0xff]   ;;  %v1401_v17 = vld [vmem:[%s1607_s28 + $0x34] ss:$8 sps:$4 sm:$0xff]  }
  0x1b   : > { %v1397_v14 = vld [vmem:[%s1607_s28 + $0x144] ss:$8 sps:$4 sm:$0xff]   ;;  %v1400_v16 = vld [vmem:[%s1607_s28 + $0x140] ss:$8 sps:$4 sm:$0xff]   ;;  %v1403_v18 = vld [vmem:[%s1607_s28 + $0x134] ss:$8 sps:$4 sm:$0xff]  }
  0x1c   : > { %934 = vmatpush1.bf16.msra.mxu0 %v1387_v7  ;;  %v1405_v19 = vld [vmem:[%s1607_s28 + $0x30] ss:$8 sps:$4 sm:$0xff]   ;;  %v1407_v21 = vld [vmem:[%s1607_s28 + $0x24] ss:$8 sps:$4 sm:$0xff]   ;;  %v1411_v23 = vld [vmem:[%s1607_s28 + $0x20] ss:$8 sps:$4 sm:$0xff]  }
  0x1d   : > { %975 = vmatpush1.bf16.msra.mxu1 %v1388_v8  ;;  %935 = vmatprep.subr.bf16.mxu0 %v1389_v9  ;;  %v1406_v20 = vld [vmem:[%s1607_s28 + $0x130] ss:$8 sps:$4 sm:$0xff]   ;;  %v1409_v22 = vld [vmem:[%s1607_s28 + $0x124] ss:$8 sps:$4 sm:$0xff]   ;;  %v1412_v24 = vld [vmem:[%s1607_s28 + $0x120] ss:$8 sps:$4 sm:$0xff]  }
  0x1e   : > { %976 = vmatprep.subr.bf16.mxu1 %v1391_v10  ;;  %v1413_v25 = vld [vmem:[%s1607_s28 + $0x14] ss:$8 sps:$4 sm:$0xff]   ;;  %v1417_v27 = vld [vmem:[%s1607_s28 + $0x10] ss:$8 sps:$4 sm:$0xff]   ;;  %v1419_v29 = vld [vmem:[%s1607_s28 + $0x4] ss:$8 sps:$4 sm:$0xff]  }
  0x1f   : > { %v1415_v26 = vld [vmem:[%s1607_s28 + $0x114] ss:$8 sps:$4 sm:$0xff]   ;;  %v1418_v28 = vld [vmem:[%s1607_s28 + $0x110] ss:$8 sps:$4 sm:$0xff]   ;;  %v1421_v30 = vld [vmem:[%s1607_s28 + $0x104] ss:$8 sps:$4 sm:$0xff]  }
  0x20   : > { %936 = vmatpush1.bf16.msra.mxu0 %v1393_v11  ;;  %v1423_v31 = vld [vmem:[%s1607_s28] ss:$8 sps:$4 sm:$0xff]   ;;  %v1425_v33 = vld [vmem:[%s1607_s28 + $0xf4] ss:$8 sps:$4 sm:$0xff]   ;;  %v1429_v35 = vld [vmem:[%s1607_s28 + $0xf0] ss:$8 sps:$4 sm:$0xff]  }
  0x21   : > { %977 = vmatpush1.bf16.msra.mxu1 %v1394_v12  ;;  %937 = vmatprep.subr.bf16.mxu0 %v1395_v13  ;;  %v1424_v32 = vld [vmem:[%s1607_s28 + $0x100] ss:$8 sps:$4 sm:$0xff]   ;;  %v1427_v34 = vld [vmem:[%s1607_s28 + $0x1f4] ss:$8 sps:$4 sm:$0xff]   ;;  %v1430_v36 = vld [vmem:[%s1607_s28 + $0x1f0] ss:$8 sps:$4 sm:$0xff]  }
  0x22   : > { %978 = vmatprep.subr.bf16.mxu1 %v1397_v14  ;;  %v1431_v37 = vld [vmem:[%s1607_s28 + $0xe4] ss:$8 sps:$4 sm:$0xff]   ;;  %v1435_v39 = vld [vmem:[%s1607_s28 + $0xe0] ss:$8 sps:$4 sm:$0xff]   ;;  %v1437_v41 = vld [vmem:[%s1607_s28 + $0xd4] ss:$8 sps:$4 sm:$0xff]  }
  0x23   : > { %v1433_v38 = vld [vmem:[%s1607_s28 + $0x1e4] ss:$8 sps:$4 sm:$0xff]   ;;  %v1436_v40 = vld [vmem:[%s1607_s28 + $0x1e0] ss:$8 sps:$4 sm:$0xff]   ;;  %v1439_v42 = vld [vmem:[%s1607_s28 + $0x1d4] ss:$8 sps:$4 sm:$0xff]  }
  0x24   : > { %938 = vmatpush1.bf16.msra.mxu0 %v1399_v15  ;;  %v1441_v43 = vld [vmem:[%s1607_s28 + $0xd0] ss:$8 sps:$4 sm:$0xff]   ;;  %v1443_v45 = vld [vmem:[%s1607_s28 + $0xc4] ss:$8 sps:$4 sm:$0xff]   ;;  %v1447_v50 = vld [vmem:[%s1607_s28 + $0xc0] ss:$8 sps:$4 sm:$0xff]  }
  0x25   : > { %979 = vmatpush1.bf16.msra.mxu1 %v1400_v16  ;;  %939 = vmatprep.subr.bf16.mxu0 %v1401_v17  ;;  %v1442_v44 = vld [vmem:[%s1607_s28 + $0x1d0] ss:$8 sps:$4 sm:$0xff]   ;;  %v1445_v46 = vld [vmem:[%s1607_s28 + $0x1c4] ss:$8 sps:$4 sm:$0xff]   ;;  %v1448_v51 = vld [vmem:[%s1607_s28 + $0x1c0] ss:$8 sps:$4 sm:$0xff]  }
  0x26   : > { %980 = vmatprep.subr.bf16.mxu1 %v1403_v18  ;;  %v331_v47 = vld [vmem:[%s1602_s24] sm:$0xff]  ;;  %v332_v49 = vld [vmem:[%s1602_s24 + $0x8] sm:$0xff]  ;;  %v1449_v53 = vld [vmem:[%s1607_s28 + $0xb4] ss:$8 sps:$4 sm:$0xff]   ;;  %p1344_p7 = scmp.ne.s32.totalorder %s1541_s15, 2 }
  0x27   : > { %v1243_v48 = vcombine.high %v331_v47, %v331_v47  ;;  %v1245_v52 = vcombine.high %v332_v49, %v332_v49  ;;  %v1451_v54 = vld [vmem:[%s1607_s28 + $0x1b4] ss:$8 sps:$4 sm:$0xff]   ;;  %v1453_v55 = vld [vmem:[%s1607_s28 + $0xb0] ss:$8 sps:$4 sm:$0xff]   ;;  %v1455_v57 = vld [vmem:[%s1607_s28 + $0xa4] ss:$8 sps:$4 sm:$0xff]   ;;  %v1242_v6 = vcombine.low %v331_v47, %v331_v47  ;;  %v1244_v7 = vcombine.low %v332_v49, %v332_v49 }
  0x28   : > { %940 = vmatpush1.bf16.msra.mxu0 %v1405_v19  ;;  %v1454_v56 = vld [vmem:[%s1607_s28 + $0x1b0] ss:$8 sps:$4 sm:$0xff]   ;;  %v1457_v58 = vld [vmem:[%s1607_s28 + $0x1a4] ss:$8 sps:$4 sm:$0xff]   ;;  %v1459_v59 = vld [vmem:[%s1607_s28 + $0xa0] ss:$8 sps:$4 sm:$0xff]  }
  0x29   : > { %981 = vmatpush1.bf16.msra.mxu1 %v1406_v20  ;;  %941 = vmatprep.subr.bf16.mxu0 %v1407_v21  ;;  %v1460_v60 = vld [vmem:[%s1607_s28 + $0x1a0] ss:$8 sps:$4 sm:$0xff]   ;;  %v1461_v61 = vld [vmem:[%s1607_s28 + $0x94] ss:$8 sps:$4 sm:$0xff]   ;;  %v1465_v63 = vld [vmem:[%s1607_s28 + $0x90] ss:$8 sps:$4 sm:$0xff]  }
  0x2a   : > { %982 = vmatprep.subr.bf16.mxu1 %v1409_v22  ;;  %963 = vmatprep.mubr.bf16.mxu0 %v1243_v48  ;;  %v1463_v62 = vld [vmem:[%s1607_s28 + $0x194] ss:$8 sps:$4 sm:$0xff]   ;;  %v1466_v0 = vld [vmem:[%s1607_s28 + $0x190] ss:$8 sps:$4 sm:$0xff]   ;;  %v1467_v1 = vld [vmem:[%s1607_s28 + $0x84] ss:$8 sps:$4 sm:$0xff]  }
  0x2b   : > { %1004 = vmatprep.mubr.bf16.mxu1 %v1245_v52  ;;  %v1469_v2 = vld [vmem:[%s1607_s28 + $0x184] ss:$8 sps:$4 sm:$0xff]   ;;  %v1471_v3 = vld [vmem:[%s1607_s28 + $0x80] ss:$8 sps:$4 sm:$0xff]   ;;  %v1479_v5 = vld [vmem:[%s1607_s28 + $0x274] ss:$8 sps:$4 sm:$0xff]  }
  0x2c   : > { %942 = vmatpush1.bf16.msra.mxu0 %v1411_v23  ;;  %v1472_v4 = vld [vmem:[%s1607_s28 + $0x180] ss:$8 sps:$4 sm:$0xff]   ;;  %v1477_v8 = vld [vmem:[%s1607_s28 + $0x270] ss:$8 sps:$4 sm:$0xff]   ;;  %v1482_v10 = vld [vmem:[%s1607_s28 + $0x264] ss:$8 sps:$4 sm:$0xff]  }
  0x2d   : > { %983 = vmatpush1.bf16.msra.mxu1 %v1412_v24  ;;  %943 = vmatprep.subr.bf16.mxu0 %v1413_v25  ;;  %v1679_v9 = vld [vmem:[%s1602_s24 + $0x10] sm:$0xff]  ;;  %v1480_v12 = vld [vmem:[%s1607_s28 + $0x260] ss:$8 sps:$4 sm:$0xff]   ;;  %v1488_v15 = vld [vmem:[%s1607_s28 + $0x244] ss:$8 sps:$4 sm:$0xff]  }
  0x2e   : > { %984 = vmatprep.subr.bf16.mxu1 %v1415_v26  ;;  %v1247_v11 = vcombine.high %v1679_v9, %v1679_v9  ;;  %v1485_v13 = vld [vmem:[%s1607_s28 + $0x254] ss:$8 sps:$4 sm:$0xff]   ;;  %v1483_v14 = vld [vmem:[%s1607_s28 + $0x250] ss:$8 sps:$4 sm:$0xff]   ;;  %v1486_v16 = vld [vmem:[%s1607_s28 + $0x240] ss:$8 sps:$4 sm:$0xff]  }
  0x2f   : > { %v1491_v17 = vld [vmem:[%s1607_s28 + $0x234] ss:$8 sps:$4 sm:$0xff]   ;;  %v1489_v18 = vld [vmem:[%s1607_s28 + $0x230] ss:$8 sps:$4 sm:$0xff]   ;;  %v1494_v19 = vld [vmem:[%s1607_s28 + $0x224] ss:$8 sps:$4 sm:$0xff]  }
  0x30   : > { %944 = vmatpush1.bf16.msra.mxu0 %v1417_v27  ;;  %v1492_v20 = vld [vmem:[%s1607_s28 + $0x220] ss:$8 sps:$4 sm:$0xff]   ;;  %v1497_v21 = vld [vmem:[%s1607_s28 + $0x214] ss:$8 sps:$4 sm:$0xff]   ;;  %v1495_v22 = vld [vmem:[%s1607_s28 + $0x210] ss:$8 sps:$4 sm:$0xff]  }
  0x31   : > { %985 = vmatpush1.bf16.msra.mxu1 %v1418_v28  ;;  %945 = vmatprep.subr.bf16.mxu0 %v1419_v29  ;;  %v1500_v23 = vld [vmem:[%s1607_s28 + $0x204] ss:$8 sps:$4 sm:$0xff]   ;;  %v1498_v24 = vld [vmem:[%s1607_s28 + $0x200] ss:$8 sps:$4 sm:$0xff]   ;;  %v1503_v25 = vld [vmem:[%s1607_s28 + $0x2f4] ss:$8 sps:$4 sm:$0xff]  }
  0x32   : > { %986 = vmatprep.subr.bf16.mxu1 %v1421_v30  ;;  %v1501_v26 = vld [vmem:[%s1607_s28 + $0x2f0] ss:$8 sps:$4 sm:$0xff]   ;;  %v1506_v27 = vld [vmem:[%s1607_s28 + $0x2e4] ss:$8 sps:$4 sm:$0xff]   ;;  %v1504_v28 = vld [vmem:[%s1607_s28 + $0x2e0] ss:$8 sps:$4 sm:$0xff]  }
  0x33   : > { %v1509_v29 = vld [vmem:[%s1607_s28 + $0x2d4] ss:$8 sps:$4 sm:$0xff]   ;;  %v1507_v30 = vld [vmem:[%s1607_s28 + $0x2d0] ss:$8 sps:$4 sm:$0xff]  }
  0x34   : > { %946 = vmatpush1.bf16.msra.mxu0 %v1423_v31  ;;  %v1512_v31 = vld [vmem:[%s1607_s28 + $0x2c4] ss:$8 sps:$4 sm:$0xff]  }
  0x35   : > { %987 = vmatpush1.bf16.msra.mxu1 %v1424_v32  ;;  %947 = vmatprep.subr.bf16.mxu0 %v1425_v33  ;;  %v1510_v32 = vld [vmem:[%s1607_s28 + $0x2c0] ss:$8 sps:$4 sm:$0xff]   ;;  %v1515_v33 = vld [vmem:[%s1607_s28 + $0x2b4] ss:$8 sps:$4 sm:$0xff]  }
  0x36   : > { %988 = vmatprep.subr.bf16.mxu1 %v1427_v34  ;;  %v1513_v34 = vld [vmem:[%s1607_s28 + $0x2b0] ss:$8 sps:$4 sm:$0xff]  }
  0x38   : > { %948 = vmatpush2.bf16.msra.mxu0 %v1429_v35  ;;  %v1518_v35 = vld [vmem:[%s1607_s28 + $0x2a4] ss:$8 sps:$4 sm:$0xff]  }
  0x39   : > { %989 = vmatpush2.bf16.msra.mxu1 %v1430_v36  ;;  %949 = vmatprep.subr.bf16.mxu0 %v1431_v37  ;;  %v1516_v36 = vld [vmem:[%s1607_s28 + $0x2a0] ss:$8 sps:$4 sm:$0xff]   ;;  %v1521_v37 = vld [vmem:[%s1607_s28 + $0x294] ss:$8 sps:$4 sm:$0xff]  }
  0x3a   : > { %990 = vmatprep.subr.bf16.mxu1 %v1433_v38  ;;  %v1519_v38 = vld [vmem:[%s1607_s28 + $0x290] ss:$8 sps:$4 sm:$0xff]  }
  0x3c   : > { %950 = vmatpush2.bf16.msra.mxu0 %v1435_v39  ;;  %v1524_v39 = vld [vmem:[%s1607_s28 + $0x284] ss:$8 sps:$4 sm:$0xff]  }
  0x3d   : > { %991 = vmatpush2.bf16.msra.mxu1 %v1436_v40  ;;  %951 = vmatprep.subr.bf16.mxu0 %v1437_v41  ;;  %v1522_v40 = vld [vmem:[%s1607_s28 + $0x280] ss:$8 sps:$4 sm:$0xff]   ;;  %v1246_v41 = vcombine.low %v1679_v9, %v1679_v9 }
  0x3e   : > { %992 = vmatprep.subr.bf16.mxu1 %v1439_v42 }
  0x40   : > { %952 = vmatpush2.bf16.msra.mxu0 %v1441_v43 }
  0x41   : > { %993 = vmatpush2.bf16.msra.mxu1 %v1442_v44  ;;  %953 = vmatprep.subr.bf16.mxu0 %v1443_v45 }
  0x42   : > { %994 = vmatprep.subr.bf16.mxu1 %v1445_v46 }
  0x44   : > { %954 = vmatpush2.bf16.msra.mxu0 %v1447_v50 }
  0x45   : > { %995 = vmatpush2.bf16.msra.mxu1 %v1448_v51  ;;  %955 = vmatprep.subr.bf16.mxu0 %v1449_v53  ;;  %v329_v51 = vld [vmem:[#allocation2] sm:$0xff] }
  0x46   : > { %996 = vmatprep.subr.bf16.mxu1 %v1451_v54 }
  0x48   : > { %956 = vmatpush2.bf16.msra.mxu0 %v1453_v55  ;;  %v330_v55 = vld [vmem:[#allocation2 + $0x8] sm:$0xff] }
  0x49   : > { %997 = vmatpush2.bf16.msra.mxu1 %v1454_v56  ;;  %957 = vmatprep.subr.bf16.mxu0 %v1455_v57 }
  0x4a   : > { %998 = vmatprep.subr.bf16.mxu1 %v1457_v58 }
  0x4c   : > { %958 = vmatpush2.bf16.msra.mxu0 %v1459_v59 }
  0x4d   : > { %999 = vmatpush2.bf16.msra.mxu1 %v1460_v60  ;;  %959 = vmatprep.subr.bf16.mxu0 %v1461_v61 }
  0x4e   : > { %1000 = vmatprep.subr.bf16.mxu1 %v1463_v62 }
  0x50   : > { %960 = vmatpush2.bf16.msra.mxu0 %v1465_v63 }
  0x51   : > { %1001 = vmatpush2.bf16.msra.mxu1 %v1466_v0  ;;  %961 = vmatprep.subr.bf16.mxu0 %v1467_v1 }
  0x52   : > { %1002 = vmatprep.subr.bf16.mxu1 %v1469_v2 }
  0x54   : > { %962 = vmatpush2.bf16.msra.mxu0 %v1471_v3 }
  0x55   : > { %1003 = vmatpush2.bf16.msra.mxu1 %v1472_v4  ;;  %1013 = vmatprep.subr.bf16.mxu0 %v1479_v5 }
  0x57   : > { %964 = vmatmul.mubr.bf16.vlgmr.msra.gmra.mxu0 %v1242_v6 }
  0x58   : > { %1005 = vmatmul.mubr.bf16.vlgmr.msra.gmra.mxu1 %v1244_v7  ;;  %1014 = vmatpush1.bf16.msra.mxu0 %v1477_v8 }
  0x59   : > { %1045 = vmatprep.mubr.bf16.mxu0 %v1247_v11  ;;  %1015 = vmatprep.subr.bf16.mxu0 %v1482_v10 }
  0x5c   : > { %1016 = vmatpush1.bf16.msra.mxu0 %v1480_v12 }
  0x5d   : > { %1017 = vmatprep.subr.bf16.mxu0 %v1485_v13 }
  0x60   : > { %1018 = vmatpush1.bf16.msra.mxu0 %v1483_v14 }
  0x61   : > { %1019 = vmatprep.subr.bf16.mxu0 %v1488_v15 }
  0x64   : > { %1020 = vmatpush1.bf16.msra.mxu0 %v1486_v16 }
  0x65   : > { %1021 = vmatprep.subr.bf16.mxu0 %v1491_v17 }
  0x68   : > { %1022 = vmatpush1.bf16.msra.mxu0 %v1489_v18 }
  0x69   : > { %1023 = vmatprep.subr.bf16.mxu0 %v1494_v19 }
  0x6c   : > { %1024 = vmatpush1.bf16.msra.mxu0 %v1492_v20 }
  0x6d   : > { %1025 = vmatprep.subr.bf16.mxu0 %v1497_v21 }
  0x70   : > { %1026 = vmatpush1.bf16.msra.mxu0 %v1495_v22 }
  0x71   : > { %1027 = vmatprep.subr.bf16.mxu0 %v1500_v23 }
  0x74   : > { %1028 = vmatpush1.bf16.msra.mxu0 %v1498_v24 }
  0x75   : > { %1029 = vmatprep.subr.bf16.mxu0 %v1503_v25 }
  0x78   : > { %1030 = vmatpush2.bf16.msra.mxu0 %v1501_v26 }
  0x79   : > { %1031 = vmatprep.subr.bf16.mxu0 %v1506_v27 }
  0x7c   : > { %1032 = vmatpush2.bf16.msra.mxu0 %v1504_v28 }
  0x7d   : > { %1033 = vmatprep.subr.bf16.mxu0 %v1509_v29 }
  0x80   : > { %1034 = vmatpush2.bf16.msra.mxu0 %v1507_v30 }
  0x81   : > { %1035 = vmatprep.subr.bf16.mxu0 %v1512_v31 }
  0x84   : > { %1036 = vmatpush2.bf16.msra.mxu0 %v1510_v32 }
  0x85   : > { %1037 = vmatprep.subr.bf16.mxu0 %v1515_v33 }
  0x88   : > { %1038 = vmatpush2.bf16.msra.mxu0 %v1513_v34 }
  0x89   : > { %1039 = vmatprep.subr.bf16.mxu0 %v1518_v35 }
  0x8c   : > { %1040 = vmatpush2.bf16.msra.mxu0 %v1516_v36 }
  0x8d   : > { %1041 = vmatprep.subr.bf16.mxu0 %v1521_v37 }
  0x90   : > { %1042 = vmatpush2.bf16.msra.mxu0 %v1519_v38 }
  0x91   : > { %1043 = vmatprep.subr.bf16.mxu0 %v1524_v39 }
  0x94   : > { %1044 = vmatpush2.bf16.msra.mxu0 %v1522_v40 }
  0x97   : > { %1046 = vmatmul.mubr.bf16.vlgmr.msra.gmra.mxu0 %v1246_v41 }
 0x117   : > { %v965_v42 = vpop.f32.mrf.mxu0 }
 0x118   : > { %v1006_v43 = vpop.f32.mrf.mxu1 }
 0x119   : > { %v967_v44 = vpop.f32.mrf.mxu0  ;;  %v1007_v50 = vadd.f32 %v1006_v43, %v965_v42 }
 0x11a   : > { %v1008_v45 = vpop.f32.mrf.mxu1 }
 0x11b   : > { %v969_v46 = vpop.f32.mrf.mxu0  ;;  %v1009_v53 = vadd.f32 %v1008_v45, %v967_v44 }
 0x11c   : > { %v1010_v47 = vpop.f32.mrf.mxu1 }
 0x11d   : > { %v970_v48 = vpop.f32.mrf.mxu0 }
 0x11e   : > { %v1011_v49 = vpop.f32.mrf.mxu1 }
 0x157   : > { %v1047_v52 = vpop.f32.mrf.mxu0 }
 0x158   : > { %v1048_v54 = vadd.f32 %v1047_v52, %v1007_v50 }
 0x159   : > { %v1049_v56 = vpop.f32.mrf.mxu0 }
 0x15a   : > { %v1054_v57 = vadd.f32 %v1048_v54, %v329_v51  ;;  %v1050_v58 = vadd.f32 %v1049_v56, %v1009_v53  ;;  %1061 = sbr.rel (%p1344_p7) target bundleno = 368 (0x170), region = 44 }
 0x15b   : > { %v1051_v59 = vpop.f32.mrf.mxu0 }
 0x15c   : > { %1056 = vst [vmem:[#allocation2] sm:$0xff] %v1054_v57  ;;  %v1055_v60 = vadd.f32 %v1050_v58, %v330_v55 }
 0x15d   : > { %v1052_v61 = vpop.f32.mrf.mxu0 }
 0x15e   : > { %1057 = vst [vmem:[#allocation2 + $0x8] sm:$0xff] %v1055_v60 }
 0x15f   : > { %v1066_v62 = vlaneseq  ;;  %v1064_v0 = vld [vmem:[%s1736_s2] sm:$0x3] }
 0x160   : > { %v1078_v1 = vld [vmem:[%s1737_s3] sm:$0x3] }
 0x161   : > { %v1067_v63 = vshrl.u32 %v1066_v62, 7 }
 0x163   : > { %v1068_v2 = vsub.s32 0, %v1067_v63  ;;  %v1072_v3 = vsub.s32 1, %v1067_v63  ;;  %v1062_v4 = vld [vmem:[#allocation2] sm:$0xff] }
 0x165   : > { %v1063_v5 = vld [vmem:[#allocation2 + $0x8] sm:$0xff]  ;;  %v1069_v6 = vrot.slane %v1064_v0, %v1068_v2  ;;  %v1073_v7 = vrot.slane %v1064_v0, %v1072_v3  ;;  %v1083_v8 = vrot.slane %v1078_v1, %v1068_v2  ;;  %v1087_v9 = vrot.slane %v1078_v1, %v1072_v3 }
 0x167   : > { %v1076_v10 = vmul.f32 %v1069_v6, %v1062_v4  ;;  %v1077_v11 = vmul.f32 %v1073_v7, %v1063_v5 }
 0x169   : > { %v1090_v12 = vadd.f32 %v1083_v8, %v1076_v10  ;;  %v1091_v13 = vadd.f32 %v1087_v9, %v1077_v11 }
 0x16b   : > { %v1092_v14 = vmax.f32 %v1090_v12, 0.0  ;;  %v1093_v15 = vmax.f32 %v1091_v13, 0.0 }
 0x16d   : > { %v1351_v16 = vpack.c.bf16 %v1093_v15, %v1092_v14 }
 0x16f   : > { %1102 = vst [vmem:[%s1738_s4] sm:$0xff] %v1351_v16 }
 0x170 PF: > { %s14_s17 = sadd.s32 1, %s1549_s17   ;;  %s1739_s15 = smov %s1545_s16 }
 0x171   : > { %p11_p8 = scmp.ge.s32.totalorder %s14_s17, 5   ;;  %s1740_s16 = smov %s1742_s18 }
 0x173   :  { %13 = sbr.rel (!%p11_p8) target bundleno = 2 (0x2), region = 83 }

// kernel: simclr_forward.41
= control target key start
LH: loop header
LB: loop body
LE: loop exit
PB: predicated region body
PF: predicated region fallthrough
CT: control target
= control target key end

     0   :  { %s1104_s15 = smov 0   ;;  %s1106_s16 = smov 0   ;;  %s1286_s0 = inlined_call_operand.vmem [shape: bf16[8,256], index: 0, kind: input, shape index: {}]   ;;  %s1287_s1 = inlined_call_operand.vmem [shape: bf16[256,512], index: 1, kind: input, shape index: {}]   ;;  %s1288_s2 = inlined_call_operand.vmem [shape: f32[1,512], index: 2, kind: input, shape index: {}]   ;;  %s1289_s3 = inlined_call_operand.vmem [shape: f32[1,512], index: 3, kind: input, shape index: {}]   ;;  %s1290_s4 = inlined_call_operand.vmem [shape: bf16[8,512], index: 4, kind: output, shape index: {}]  }
   0x1   :  { %s1108_s17 = smov 0   ;;  %s1110_s18 = smov 0  }
   0x2   :  { %s1112_s19 = smov 0  }
   0x3 LB: > { %s29_s20 = sadd.s32 1, %s1073_s18  ;;  %p77_p1 = scmp.ne.s32.totalorder %s1065_s16, %s1061_s15  ;;  %s1077_s19 = sphi %s1112_s19, %s14_s19   ;;  %s1073_s18 = sphi %s1110_s18, %s1294_s18   ;;  %s1069_s17 = sphi %s1108_s17, %s1293_s17   ;;  %s1065_s16 = sphi %s1106_s16, %s1292_s16   ;;  %s1061_s15 = sphi %s1104_s15, %s1291_s15  }
   0x4   : > { %p31_p0 = scmp.ge.s32.totalorder %s29_s20, 2  ;;  %p78_p2 = scmp.eq.s32.totalorder %s1077_s19, 0 }
   0x5   : > { %s70_s22 = sadd.s32 1, %s1065_s16  ;;  %p900_p5 = scmp.ge.s32.totalorder %s1077_s19, 2 }
   0x6   : > { %s1296_s20 = smov (%p31_p0, %s29_s20), 0  ;;  %p79_p3 = por %p78_p2, %p77_p1 }
   0x7   : > { %s66_s21 = ssub.s32 %s1073_s18, %s1296_s20  ;;  %196 = sbr.rel (%p900_p5) target bundleno = 32 (0x20), region = 20 }
   0x8   : > { %p68_p4 = scmp.eq.s32.totalorder %s66_s21, 0 }
   0xa   : > { %s1139_s23 = scalar_select %p68_p4, %s1065_s16, %s70_s22  }
   0xc   : > { %199 = sbr.rel (!%p79_p3) target bundleno = 32 (0x20), region = 24  ;;  %s201_s24 = sand.u32 (%p79_p3), 1, %s1065_s16  }
   0xd   : > { %s947_s25 = sshll.u32 (%p79_p3), %s1073_s18, 3  ;;  %s901_s26 = sshll.u32 (%p79_p3), %s201_s24, 8 }
   0xe   : > { %s1147_s29 = scalar_lea.vmem (%p79_p3), %s1287_s1, %s947_s25  ;;  %s1152_s30 = scalar_lea.vmem (%p79_p3), [#allocation3], %s901_s26 }
   0xf   : > { %v300_v0 = vld [vmem:[%s1147_s29] sm:$0xff] (%p79_p3)  ;;  %v302_v1 = vld [vmem:[%s1147_s29 + $0x10] sm:$0xff] (%p79_p3) }
  0x10   : > { %v304_v2 = vld [vmem:[%s1147_s29 + $0x20] sm:$0xff] (%p79_p3)  ;;  %301 = vst [vmem:[%s1152_s30] sm:$0xff] (%p79_p3), %v300_v0  ;;  %303 = vst [vmem:[%s1152_s30 + $0x8] sm:$0xff] (%p79_p3), %v302_v1  ;;  %v306_v3 = vld [vmem:[%s1147_s29 + $0x30] sm:$0xff] (%p79_p3) }
  0x11   : > { %305 = vst [vmem:[%s1152_s30 + $0x10] sm:$0xff] %v304_v2  ;;  %v308_v4 = vld [vmem:[%s1147_s29 + $0x40] sm:$0xff]  ;;  %v310_v5 = vld [vmem:[%s1147_s29 + $0x50] sm:$0xff]  ;;  %307 = vst [vmem:[%s1152_s30 + $0x18] sm:$0xff] %v306_v3 }
  0x12   : > { %309 = vst [vmem:[%s1152_s30 + $0x20] sm:$0xff] %v308_v4  ;;  %311 = vst [vmem:[%s1152_s30 + $0x28] sm:$0xff] %v310_v5  ;;  %v312_v6 = vld [vmem:[%s1147_s29 + $0x60] sm:$0xff]  ;;  %v314_v7 = vld [vmem:[%s1147_s29 + $0x70] sm:$0xff] }
  0x13   : > { %v316_v8 = vld [vmem:[%s1147_s29 + $0x80] sm:$0xff]  ;;  %313 = vst [vmem:[%s1152_s30 + $0x30] sm:$0xff] %v312_v6  ;;  %315 = vst [vmem:[%s1152_s30 + $0x38] sm:$0xff] %v314_v7  ;;  %v318_v9 = vld [vmem:[%s1147_s29 + $0x90] sm:$0xff] }
  0x14   : > { %317 = vst [vmem:[%s1152_s30 + $0x40] sm:$0xff] %v316_v8  ;;  %v320_v10 = vld [vmem:[%s1147_s29 + $0xa0] sm:$0xff]  ;;  %v322_v11 = vld [vmem:[%s1147_s29 + $0xb0] sm:$0xff]  ;;  %319 = vst [vmem:[%s1152_s30 + $0x48] sm:$0xff] %v318_v9 }
  0x15   : > { %321 = vst [vmem:[%s1152_s30 + $0x50] sm:$0xff] %v320_v10  ;;  %323 = vst [vmem:[%s1152_s30 + $0x58] sm:$0xff] %v322_v11  ;;  %v324_v12 = vld [vmem:[%s1147_s29 + $0xc0] sm:$0xff]  ;;  %v326_v13 = vld [vmem:[%s1147_s29 + $0xd0] sm:$0xff] }
  0x16   : > { %v328_v14 = vld [vmem:[%s1147_s29 + $0xe0] sm:$0xff]  ;;  %325 = vst [vmem:[%s1152_s30 + $0x60] sm:$0xff] %v324_v12  ;;  %327 = vst [vmem:[%s1152_s30 + $0x68] sm:$0xff] %v326_v13  ;;  %v330_v15 = vld [vmem:[%s1147_s29 + $0xf0] sm:$0xff] }
  0x17   : > { %329 = vst [vmem:[%s1152_s30 + $0x70] sm:$0xff] %v328_v14  ;;  %v332_v16 = vld [vmem:[%s1147_s29 + $0x100] sm:$0xff]  ;;  %v334_v17 = vld [vmem:[%s1147_s29 + $0x110] sm:$0xff]  ;;  %331 = vst [vmem:[%s1152_s30 + $0x78] sm:$0xff] %v330_v15 }
  0x18   : > { %333 = vst [vmem:[%s1152_s30 + $0x80] sm:$0xff] %v332_v16  ;;  %335 = vst [vmem:[%s1152_s30 + $0x88] sm:$0xff] %v334_v17  ;;  %v336_v18 = vld [vmem:[%s1147_s29 + $0x120] sm:$0xff]  ;;  %v338_v19 = vld [vmem:[%s1147_s29 + $0x130] sm:$0xff] }
  0x19   : > { %v340_v20 = vld [vmem:[%s1147_s29 + $0x140] sm:$0xff]  ;;  %337 = vst [vmem:[%s1152_s30 + $0x90] sm:$0xff] %v336_v18  ;;  %339 = vst [vmem:[%s1152_s30 + $0x98] sm:$0xff] %v338_v19  ;;  %v342_v21 = vld [vmem:[%s1147_s29 + $0x150] sm:$0xff] }
  0x1a   : > { %341 = vst [vmem:[%s1152_s30 + $0xa0] sm:$0xff] %v340_v20  ;;  %v344_v22 = vld [vmem:[%s1147_s29 + $0x160] sm:$0xff]  ;;  %v346_v23 = vld [vmem:[%s1147_s29 + $0x170] sm:$0xff]  ;;  %343 = vst [vmem:[%s1152_s30 + $0xa8] sm:$0xff] %v342_v21 }
  0x1b   : > { %345 = vst [vmem:[%s1152_s30 + $0xb0] sm:$0xff] %v344_v22  ;;  %347 = vst [vmem:[%s1152_s30 + $0xb8] sm:$0xff] %v346_v23  ;;  %v348_v24 = vld [vmem:[%s1147_s29 + $0x180] sm:$0xff]  ;;  %v350_v25 = vld [vmem:[%s1147_s29 + $0x190] sm:$0xff] }
  0x1c   : > { %v352_v26 = vld [vmem:[%s1147_s29 + $0x1a0] sm:$0xff]  ;;  %349 = vst [vmem:[%s1152_s30 + $0xc0] sm:$0xff] %v348_v24  ;;  %351 = vst [vmem:[%s1152_s30 + $0xc8] sm:$0xff] %v350_v25  ;;  %v354_v27 = vld [vmem:[%s1147_s29 + $0x1b0] sm:$0xff] }
  0x1d   : > { %353 = vst [vmem:[%s1152_s30 + $0xd0] sm:$0xff] %v352_v26  ;;  %v356_v28 = vld [vmem:[%s1147_s29 + $0x1c0] sm:$0xff]  ;;  %v358_v29 = vld [vmem:[%s1147_s29 + $0x1d0] sm:$0xff]  ;;  %355 = vst [vmem:[%s1152_s30 + $0xd8] sm:$0xff] %v354_v27 }
  0x1e   : > { %357 = vst [vmem:[%s1152_s30 + $0xe0] sm:$0xff] %v356_v28  ;;  %359 = vst [vmem:[%s1152_s30 + $0xe8] sm:$0xff] %v358_v29  ;;  %v360_v30 = vld [vmem:[%s1147_s29 + $0x1e0] sm:$0xff]  ;;  %v362_v31 = vld [vmem:[%s1147_s29 + $0x1f0] sm:$0xff] }
  0x1f   : > { %361 = vst [vmem:[%s1152_s30 + $0xf0] sm:$0xff] %v360_v30  ;;  %363 = vst [vmem:[%s1152_s30 + $0xf8] sm:$0xff] %v362_v31 }
  0x20 PF: > { %p904_p6 = scmp.ge.s32.totalorder %s1077_s19, 1  ;;  %p384_p7 = scmp.lt.s32.totalorder %s1077_s19, 3 }
  0x22   : > { %p385_p8 = pnand %p904_p6, %p384_p7 }
  0x23   : > { %s391_s5 = sand.u32 (!%p385_p8), 1, %s1061_s15   ;;  %s906_s10 = sshll.u32 (!%p385_p8), %s1069_s17, 1 }
  0x24   : > { %388 = sbr.rel (%p385_p8) target bundleno = 308 (0x134), region = 70  ;;  %s905_s8 = sshll.u32 (!%p385_p8), %s391_s5, 8 }
  0x25   : > { %s1225_s9 = scalar_lea.vmem (!%p385_p8), [#allocation3], %s905_s8  ;;  %p450_p9 = scmp.lt.s32.totalorder (!%p385_p8), %s906_s10, 3 }
  0x29   : > { %v1221_v32 = vld [vmem:[%s1286_s0] sm:$0xff]  ;;  %v989_v34 = vld [vmem:[%s1225_s9 + $0x74] ss:$8 sps:$4 sm:$0xff]   ;;  %v991_v35 = vld [vmem:[%s1225_s9 + $0x70] ss:$8 sps:$4 sm:$0xff]   ;;  %v729_v3 = vlaneseq  ;;  %s1298_s10 = smov (!%p450_p9, %s906_s10), 3 }
  0x2a   : > { %v911_v33 = vcombine.high %v1221_v32, %v1221_v32  ;;  %677 = vmatprep.subr.bf16.mxu0 %v989_v34  ;;  %v992_v36 = vld [vmem:[%s1225_s9 + $0x64] ss:$8 sps:$4 sm:$0xff]   ;;  %v994_v37 = vld [vmem:[%s1225_s9 + $0x60] ss:$8 sps:$4 sm:$0xff]   ;;  %v995_v38 = vld [vmem:[%s1225_s9 + $0x54] ss:$8 sps:$4 sm:$0xff]   ;;  %v910_v2 = vcombine.low %v1221_v32, %v1221_v32  ;;  %s452_s13 = scalar_lea.vmem %s1288_s2, %s1298_s10  ;;  %s457_s21 = scalar_lea.vmem %s1289_s3, %s1298_s10 }
  0x2b   : > { %678 = vmatpush1.bf16.msra.mxu0 %v991_v35  ;;  %v997_v39 = vld [vmem:[%s1225_s9 + $0x50] ss:$8 sps:$4 sm:$0xff]   ;;  %v998_v40 = vld [vmem:[%s1225_s9 + $0x44] ss:$8 sps:$4 sm:$0xff]   ;;  %v1000_v41 = vld [vmem:[%s1225_s9 + $0x40] ss:$8 sps:$4 sm:$0xff]  }
  0x2c   : > { %709 = vmatprep.mubr.bf16.mxu0 %v911_v33  ;;  %679 = vmatprep.subr.bf16.mxu0 %v992_v36  ;;  %v1001_v42 = vld [vmem:[%s1225_s9 + $0x34] ss:$8 sps:$4 sm:$0xff]   ;;  %v1003_v43 = vld [vmem:[%s1225_s9 + $0x30] ss:$8 sps:$4 sm:$0xff]   ;;  %v1004_v44 = vld [vmem:[%s1225_s9 + $0x24] ss:$8 sps:$4 sm:$0xff]  }
  0x2d   : > { %v1006_v45 = vld [vmem:[%s1225_s9 + $0x20] ss:$8 sps:$4 sm:$0xff]   ;;  %v1007_v46 = vld [vmem:[%s1225_s9 + $0x14] ss:$8 sps:$4 sm:$0xff]   ;;  %v1009_v47 = vld [vmem:[%s1225_s9 + $0x10] ss:$8 sps:$4 sm:$0xff]  }
  0x2e   : > { %v1010_v48 = vld [vmem:[%s1225_s9 + $0x4] ss:$8 sps:$4 sm:$0xff]   ;;  %v1012_v49 = vld [vmem:[%s1225_s9] ss:$8 sps:$4 sm:$0xff]   ;;  %v1013_v50 = vld [vmem:[%s1225_s9 + $0xf4] ss:$8 sps:$4 sm:$0xff]  }
  0x2f   : > { %680 = vmatpush1.bf16.msra.mxu0 %v994_v37  ;;  %v1015_v51 = vld [vmem:[%s1225_s9 + $0xf0] ss:$8 sps:$4 sm:$0xff]   ;;  %v1016_v52 = vld [vmem:[%s1225_s9 + $0xe4] ss:$8 sps:$4 sm:$0xff]   ;;  %v1018_v53 = vld [vmem:[%s1225_s9 + $0xe0] ss:$8 sps:$4 sm:$0xff]  }
  0x30   : > { %681 = vmatprep.subr.bf16.mxu0 %v995_v38  ;;  %v1019_v54 = vld [vmem:[%s1225_s9 + $0xd4] ss:$8 sps:$4 sm:$0xff]   ;;  %v1021_v55 = vld [vmem:[%s1225_s9 + $0xd0] ss:$8 sps:$4 sm:$0xff]   ;;  %v1022_v56 = vld [vmem:[%s1225_s9 + $0xc4] ss:$8 sps:$4 sm:$0xff]  }
  0x31   : > { %v1024_v57 = vld [vmem:[%s1225_s9 + $0xc0] ss:$8 sps:$4 sm:$0xff]   ;;  %v1025_v58 = vld [vmem:[%s1225_s9 + $0xb4] ss:$8 sps:$4 sm:$0xff]   ;;  %v1027_v59 = vld [vmem:[%s1225_s9 + $0xb0] ss:$8 sps:$4 sm:$0xff]  }
  0x32   : > { %v1028_v60 = vld [vmem:[%s1225_s9 + $0xa4] ss:$8 sps:$4 sm:$0xff]   ;;  %v1030_v61 = vld [vmem:[%s1225_s9 + $0xa0] ss:$8 sps:$4 sm:$0xff]   ;;  %v1031_v62 = vld [vmem:[%s1225_s9 + $0x94] ss:$8 sps:$4 sm:$0xff]  }
  0x33   : > { %682 = vmatpush1.bf16.msra.mxu0 %v997_v39  ;;  %v1033_v63 = vld [vmem:[%s1225_s9 + $0x90] ss:$8 sps:$4 sm:$0xff]   ;;  %v1034_v0 = vld [vmem:[%s1225_s9 + $0x84] ss:$8 sps:$4 sm:$0xff]   ;;  %v1036_v1 = vld [vmem:[%s1225_s9 + $0x80] ss:$8 sps:$4 sm:$0xff]  }
  0x34   : > { %683 = vmatprep.subr.bf16.mxu0 %v998_v40  ;;  %v730_v4 = vshrl.u32 %v729_v3, 7  ;;  %v727_v6 = vld [vmem:[%s452_s13] sm:$0x3]  ;;  %s909_s17 = sshll.u32 %s1298_s10, 2 }
  0x35   : > { %v741_v9 = vld [vmem:[%s457_s21] sm:$0x3]  ;;  %s467_s25 = scalar_lea.vmem %s1290_s4, %s909_s17 }
  0x36   : > { %v731_v5 = vsub.s32 0, %v730_v4  ;;  %v735_v7 = vsub.s32 1, %v730_v4 }
  0x37   : > { %684 = vmatpush1.bf16.msra.mxu0 %v1000_v41 }
  0x38   : > { %685 = vmatprep.subr.bf16.mxu0 %v1001_v42  ;;  %v732_v8 = vrot.slane %v727_v6, %v731_v5  ;;  %v736_v10 = vrot.slane %v727_v6, %v735_v7  ;;  %v746_v13 = vrot.slane %v741_v9, %v731_v5  ;;  %v750_v14 = vrot.slane %v741_v9, %v735_v7 }
  0x3b   : > { %686 = vmatpush1.bf16.msra.mxu0 %v1003_v43 }
  0x3c   : > { %687 = vmatprep.subr.bf16.mxu0 %v1004_v44 }
  0x3f   : > { %688 = vmatpush1.bf16.msra.mxu0 %v1006_v45 }
  0x40   : > { %689 = vmatprep.subr.bf16.mxu0 %v1007_v46 }
  0x43   : > { %690 = vmatpush1.bf16.msra.mxu0 %v1009_v47 }
  0x44   : > { %691 = vmatprep.subr.bf16.mxu0 %v1010_v48 }
  0x47   : > { %692 = vmatpush1.bf16.msra.mxu0 %v1012_v49 }
  0x48   : > { %693 = vmatprep.subr.bf16.mxu0 %v1013_v50 }
  0x4b   : > { %694 = vmatpush2.bf16.msra.mxu0 %v1015_v51 }
  0x4c   : > { %695 = vmatprep.subr.bf16.mxu0 %v1016_v52 }
  0x4f   : > { %696 = vmatpush2.bf16.msra.mxu0 %v1018_v53 }
  0x50   : > { %697 = vmatprep.subr.bf16.mxu0 %v1019_v54 }
  0x53   : > { %698 = vmatpush2.bf16.msra.mxu0 %v1021_v55 }
  0x54   : > { %699 = vmatprep.subr.bf16.mxu0 %v1022_v56 }
  0x57   : > { %700 = vmatpush2.bf16.msra.mxu0 %v1024_v57 }
  0x58   : > { %701 = vmatprep.subr.bf16.mxu0 %v1025_v58 }
  0x5b   : > { %702 = vmatpush2.bf16.msra.mxu0 %v1027_v59 }
  0x5c   : > { %703 = vmatprep.subr.bf16.mxu0 %v1028_v60 }
  0x5f   : > { %704 = vmatpush2.bf16.msra.mxu0 %v1030_v61 }
  0x60   : > { %705 = vmatprep.subr.bf16.mxu0 %v1031_v62 }
  0x63   : > { %706 = vmatpush2.bf16.msra.mxu0 %v1033_v63 }
  0x64   : > { %707 = vmatprep.subr.bf16.mxu0 %v1034_v0 }
  0x67   : > { %708 = vmatpush2.bf16.msra.mxu0 %v1036_v1 }
  0x6a   : > { %710 = vmatmul.mubr.bf16.vlgmr.msra.gmra.mxu0 %v910_v2 }
 0x12a   : > { %v711_v11 = vpop.f32.mrf.mxu0 }
 0x12b   : > { %v739_v12 = vmul.f32 %v732_v8, %v711_v11 }
 0x12c   : > { %v713_v15 = vpop.f32.mrf.mxu0 }
 0x12d   : > { %v740_v16 = vmul.f32 %v736_v10, %v713_v15  ;;  %v753_v18 = vadd.f32 %v746_v13, %v739_v12 }
 0x12e   : > { %v715_v17 = vpop.f32.mrf.mxu0 }
 0x12f   : > { %v754_v19 = vadd.f32 %v750_v14, %v740_v16 }
 0x130   : > { %v716_v20 = vpop.f32.mrf.mxu0 }
 0x131   : > { %v948_v21 = vpack.c.bf16 %v754_v19, %v753_v18 }
 0x133   : > { %763 = vst [vmem:[%s467_s25] sm:$0xff] %v948_v21 }
 0x134 PF: > { %s14_s19 = sadd.s32 1, %s1077_s19   ;;  %s1291_s15 = smov %s1065_s16 }
 0x135   : > { %p11_p10 = scmp.ge.s32.totalorder %s14_s19, 4   ;;  %s1292_s16 = smov %s1139_s23 }
 0x136   : > { %s1293_s17 = smov %s1073_s18  ;;  %s1294_s18 = smov %s1296_s20 }
 0x137   :  { %13 = sbr.rel (!%p11_p10) target bundleno = 3 (0x3), region = 126 }

// kernel: simclr_forward.40
= control target key start
LH: loop header
LB: loop body
LE: loop exit
PB: predicated region body
PF: predicated region fallthrough
CT: control target
= control target key end

     0   :  { %s2050_s15 = smov 0   ;;  %s2052_s16 = smov 0   ;;  %s2473_s0 = inlined_call_operand.vmem [shape: bf16[8,2304], index: 0, kind: input, shape index: {}]   ;;  %s2474_s1 = inlined_call_operand.vmem [shape: bf16[2304,512], index: 1, kind: input, shape index: {}]   ;;  %s2475_s2 = inlined_call_operand.vmem [shape: f32[1,512], index: 2, kind: input, shape index: {}]   ;;  %s2476_s3 = inlined_call_operand.vmem [shape: f32[1,512], index: 3, kind: input, shape index: {}]   ;;  %s2477_s4 = inlined_call_operand.vmem [shape: bf16[8,512], index: 4, kind: output, shape index: {}]  }
   0x1   :  { %s2054_s17 = smov 0   ;;  %s2056_s18 = smov 0  }
   0x2   :  { %s2058_s19 = smov 0   ;;  %s2060_s20 = smov 0  }
   0x3   :  { %s2062_s21 = smov 0  }
   0x4 LB: > { %s26_s22 = sadd.s32 1, %s2014_s19  ;;  %s29_s23 = sadd.s32 1, %s2018_s20  ;;  %s2022_s21 = sphi %s2062_s21, %s14_s21   ;;  %s2018_s20 = sphi %s2060_s20, %s2483_s20   ;;  %s2014_s19 = sphi %s2058_s19, %s2482_s19   ;;  %s2010_s18 = sphi %s2056_s18, %s2481_s18   ;;  %s2006_s17 = sphi %s2054_s17, %s2480_s17   ;;  %s2002_s16 = sphi %s2052_s16, %s2479_s16   ;;  %s1998_s15 = sphi %s2050_s15, %s2478_s15  }
   0x5   : > { %p27_p0 = scmp.ge.s32.totalorder %s26_s22, 3  ;;  %p77_p1 = scmp.ne.s32.totalorder %s2002_s16, %s1998_s15 }
   0x6   : > { %p78_p2 = scmp.eq.s32.totalorder %s2022_s21, 0  ;;  %s70_s27 = sadd.s32 1, %s2002_s16 }
   0x7   : > { %s2485_s22 = smov (%p27_p0, %s26_s22), 0  ;;  %s2487_s23 = smov (!%p27_p0, %s29_s23), %s2018_s20 }
   0x8   : > { %p79_p3 = por %p78_p2, %p77_p1  ;;  %p31_p4 = scmp.ge.s32.totalorder %s2487_s23, 2 }
   0x9   : > { %s65_s24 = ssub.s32 %s2014_s19, %s2485_s22  ;;  %p1640_p6 = scmp.ge.s32.totalorder %s2022_s21, 6 }
   0xa   : > { %s2489_s23 = smov (%p31_p4, %s2487_s23), 0 }
   0xb   : > { %s66_s25 = ssub.s32 %s2018_s20, %s2489_s23  ;;  %183 = sbr.rel (%p1640_p6) target bundleno = 72 (0x48), region = 16 }
   0xc   : > { %s67_s26 = sor.u32 %s66_s25, %s65_s24 }
   0xd   : > { %p68_p5 = scmp.eq.s32.totalorder %s67_s26, 0 }
   0xf   : > { %s2101_s28 = scalar_select %p68_p5, %s2002_s16, %s70_s27  }
  0x10   : > { %199 = sbr.rel (!%p79_p3) target bundleno = 72 (0x48), region = 24  ;;  %s201_s29 = sand.u32 (%p79_p3), 1, %s2002_s16  }
  0x11   : > { %s1759_s30 = smul.u32 (%p79_p3), 768, %s201_s29  ;;  %s1641_s5 = sshll.u32 (%p79_p3), %s2018_s20, 1 }
  0x12   : > { %s1757_s6 = smul.u32 (%p79_p3), 384, %s2014_s19 }
  0x13   : > { %s2115_s12 = scalar_lea.vmem (%p79_p3), [#allocation3], %s1759_s30 }
  0x14   : > { %s207_s7 = sadd.s32 (%p79_p3), %s1757_s6, %s1641_s5 }
  0x15   : > { %s1643_s8 = sshll.u32 %s207_s7, 2 }
  0x16   : > { %s2110_s11 = scalar_lea.vmem %s2474_s1, %s1643_s8 }
  0x17   : > { %v428_v0 = vld [vmem:[%s2110_s11] sm:$0xff]  ;;  %v430_v1 = vld [vmem:[%s2110_s11 + $0x10] sm:$0xff] }
  0x18   : > { %v432_v2 = vld [vmem:[%s2110_s11 + $0x20] sm:$0xff]  ;;  %429 = vst [vmem:[%s2115_s12] sm:$0xff] %v428_v0  ;;  %431 = vst [vmem:[%s2115_s12 + $0x8] sm:$0xff] %v430_v1  ;;  %v434_v3 = vld [vmem:[%s2110_s11 + $0x30] sm:$0xff] }
  0x19   : > { %433 = vst [vmem:[%s2115_s12 + $0x10] sm:$0xff] %v432_v2  ;;  %v436_v4 = vld [vmem:[%s2110_s11 + $0x40] sm:$0xff]  ;;  %v438_v5 = vld [vmem:[%s2110_s11 + $0x50] sm:$0xff]  ;;  %435 = vst [vmem:[%s2115_s12 + $0x18] sm:$0xff] %v434_v3 }
  0x1a   : > { %437 = vst [vmem:[%s2115_s12 + $0x20] sm:$0xff] %v436_v4  ;;  %439 = vst [vmem:[%s2115_s12 + $0x28] sm:$0xff] %v438_v5  ;;  %v440_v6 = vld [vmem:[%s2110_s11 + $0x60] sm:$0xff]  ;;  %v442_v7 = vld [vmem:[%s2110_s11 + $0x70] sm:$0xff] }
  0x1b   : > { %v444_v8 = vld [vmem:[%s2110_s11 + $0x80] sm:$0xff]  ;;  %441 = vst [vmem:[%s2115_s12 + $0x30] sm:$0xff] %v440_v6  ;;  %443 = vst [vmem:[%s2115_s12 + $0x38] sm:$0xff] %v442_v7  ;;  %v446_v9 = vld [vmem:[%s2110_s11 + $0x90] sm:$0xff] }
  0x1c   : > { %445 = vst [vmem:[%s2115_s12 + $0x40] sm:$0xff] %v444_v8  ;;  %v448_v10 = vld [vmem:[%s2110_s11 + $0xa0] sm:$0xff]  ;;  %v450_v11 = vld [vmem:[%s2110_s11 + $0xb0] sm:$0xff]  ;;  %447 = vst [vmem:[%s2115_s12 + $0x48] sm:$0xff] %v446_v9 }
  0x1d   : > { %449 = vst [vmem:[%s2115_s12 + $0x50] sm:$0xff] %v448_v10  ;;  %451 = vst [vmem:[%s2115_s12 + $0x58] sm:$0xff] %v450_v11  ;;  %v452_v12 = vld [vmem:[%s2110_s11 + $0xc0] sm:$0xff]  ;;  %v454_v13 = vld [vmem:[%s2110_s11 + $0xd0] sm:$0xff] }
  0x1e   : > { %v456_v14 = vld [vmem:[%s2110_s11 + $0xe0] sm:$0xff]  ;;  %453 = vst [vmem:[%s2115_s12 + $0x60] sm:$0xff] %v452_v12  ;;  %455 = vst [vmem:[%s2115_s12 + $0x68] sm:$0xff] %v454_v13  ;;  %v458_v15 = vld [vmem:[%s2110_s11 + $0xf0] sm:$0xff] }
  0x1f   : > { %457 = vst [vmem:[%s2115_s12 + $0x70] sm:$0xff] %v456_v14  ;;  %v460_v16 = vld [vmem:[%s2110_s11 + $0x100] sm:$0xff]  ;;  %v462_v17 = vld [vmem:[%s2110_s11 + $0x110] sm:$0xff]  ;;  %459 = vst [vmem:[%s2115_s12 + $0x78] sm:$0xff] %v458_v15 }
  0x20   : > { %461 = vst [vmem:[%s2115_s12 + $0x80] sm:$0xff] %v460_v16  ;;  %463 = vst [vmem:[%s2115_s12 + $0x88] sm:$0xff] %v462_v17  ;;  %v464_v18 = vld [vmem:[%s2110_s11 + $0x120] sm:$0xff]  ;;  %v466_v19 = vld [vmem:[%s2110_s11 + $0x130] sm:$0xff] }
  0x21   : > { %v468_v20 = vld [vmem:[%s2110_s11 + $0x140] sm:$0xff]  ;;  %465 = vst [vmem:[%s2115_s12 + $0x90] sm:$0xff] %v464_v18  ;;  %467 = vst [vmem:[%s2115_s12 + $0x98] sm:$0xff] %v466_v19  ;;  %v470_v21 = vld [vmem:[%s2110_s11 + $0x150] sm:$0xff] }
  0x22   : > { %469 = vst [vmem:[%s2115_s12 + $0xa0] sm:$0xff] %v468_v20  ;;  %v472_v22 = vld [vmem:[%s2110_s11 + $0x160] sm:$0xff]  ;;  %v474_v23 = vld [vmem:[%s2110_s11 + $0x170] sm:$0xff]  ;;  %471 = vst [vmem:[%s2115_s12 + $0xa8] sm:$0xff] %v470_v21 }
  0x23   : > { %473 = vst [vmem:[%s2115_s12 + $0xb0] sm:$0xff] %v472_v22  ;;  %475 = vst [vmem:[%s2115_s12 + $0xb8] sm:$0xff] %v474_v23  ;;  %v476_v24 = vld [vmem:[%s2110_s11 + $0x180] sm:$0xff]  ;;  %v478_v25 = vld [vmem:[%s2110_s11 + $0x190] sm:$0xff] }
  0x24   : > { %v480_v26 = vld [vmem:[%s2110_s11 + $0x1a0] sm:$0xff]  ;;  %477 = vst [vmem:[%s2115_s12 + $0xc0] sm:$0xff] %v476_v24  ;;  %479 = vst [vmem:[%s2115_s12 + $0xc8] sm:$0xff] %v478_v25  ;;  %v482_v27 = vld [vmem:[%s2110_s11 + $0x1b0] sm:$0xff] }
  0x25   : > { %481 = vst [vmem:[%s2115_s12 + $0xd0] sm:$0xff] %v480_v26  ;;  %v484_v28 = vld [vmem:[%s2110_s11 + $0x1c0] sm:$0xff]  ;;  %v486_v29 = vld [vmem:[%s2110_s11 + $0x1d0] sm:$0xff]  ;;  %483 = vst [vmem:[%s2115_s12 + $0xd8] sm:$0xff] %v482_v27 }
  0x26   : > { %485 = vst [vmem:[%s2115_s12 + $0xe0] sm:$0xff] %v484_v28  ;;  %487 = vst [vmem:[%s2115_s12 + $0xe8] sm:$0xff] %v486_v29  ;;  %v488_v30 = vld [vmem:[%s2110_s11 + $0x1e0] sm:$0xff]  ;;  %v490_v31 = vld [vmem:[%s2110_s11 + $0x1f0] sm:$0xff] }
  0x27   : > { %v492_v32 = vld [vmem:[%s2110_s11 + $0x200] sm:$0xff]  ;;  %489 = vst [vmem:[%s2115_s12 + $0xf0] sm:$0xff] %v488_v30  ;;  %491 = vst [vmem:[%s2115_s12 + $0xf8] sm:$0xff] %v490_v31  ;;  %v494_v33 = vld [vmem:[%s2110_s11 + $0x210] sm:$0xff] }
  0x28   : > { %493 = vst [vmem:[%s2115_s12 + $0x100] sm:$0xff] %v492_v32  ;;  %v496_v34 = vld [vmem:[%s2110_s11 + $0x220] sm:$0xff]  ;;  %v498_v35 = vld [vmem:[%s2110_s11 + $0x230] sm:$0xff]  ;;  %495 = vst [vmem:[%s2115_s12 + $0x108] sm:$0xff] %v494_v33 }
  0x29   : > { %497 = vst [vmem:[%s2115_s12 + $0x110] sm:$0xff] %v496_v34  ;;  %499 = vst [vmem:[%s2115_s12 + $0x118] sm:$0xff] %v498_v35  ;;  %v500_v36 = vld [vmem:[%s2110_s11 + $0x240] sm:$0xff]  ;;  %v502_v37 = vld [vmem:[%s2110_s11 + $0x250] sm:$0xff] }
  0x2a   : > { %v504_v38 = vld [vmem:[%s2110_s11 + $0x260] sm:$0xff]  ;;  %501 = vst [vmem:[%s2115_s12 + $0x120] sm:$0xff] %v500_v36  ;;  %503 = vst [vmem:[%s2115_s12 + $0x128] sm:$0xff] %v502_v37  ;;  %v506_v39 = vld [vmem:[%s2110_s11 + $0x270] sm:$0xff] }
  0x2b   : > { %505 = vst [vmem:[%s2115_s12 + $0x130] sm:$0xff] %v504_v38  ;;  %v508_v40 = vld [vmem:[%s2110_s11 + $0x280] sm:$0xff]  ;;  %v510_v41 = vld [vmem:[%s2110_s11 + $0x290] sm:$0xff]  ;;  %507 = vst [vmem:[%s2115_s12 + $0x138] sm:$0xff] %v506_v39 }
  0x2c   : > { %509 = vst [vmem:[%s2115_s12 + $0x140] sm:$0xff] %v508_v40  ;;  %511 = vst [vmem:[%s2115_s12 + $0x148] sm:$0xff] %v510_v41  ;;  %v512_v42 = vld [vmem:[%s2110_s11 + $0x2a0] sm:$0xff]  ;;  %v514_v43 = vld [vmem:[%s2110_s11 + $0x2b0] sm:$0xff] }
  0x2d   : > { %v516_v44 = vld [vmem:[%s2110_s11 + $0x2c0] sm:$0xff]  ;;  %513 = vst [vmem:[%s2115_s12 + $0x150] sm:$0xff] %v512_v42  ;;  %515 = vst [vmem:[%s2115_s12 + $0x158] sm:$0xff] %v514_v43  ;;  %v518_v45 = vld [vmem:[%s2110_s11 + $0x2d0] sm:$0xff] }
  0x2e   : > { %517 = vst [vmem:[%s2115_s12 + $0x160] sm:$0xff] %v516_v44  ;;  %v520_v46 = vld [vmem:[%s2110_s11 + $0x2e0] sm:$0xff]  ;;  %v522_v47 = vld [vmem:[%s2110_s11 + $0x2f0] sm:$0xff]  ;;  %519 = vst [vmem:[%s2115_s12 + $0x168] sm:$0xff] %v518_v45 }
  0x2f   : > { %521 = vst [vmem:[%s2115_s12 + $0x170] sm:$0xff] %v520_v46  ;;  %523 = vst [vmem:[%s2115_s12 + $0x178] sm:$0xff] %v522_v47  ;;  %v524_v48 = vld [vmem:[%s2110_s11 + $0x300] sm:$0xff]  ;;  %v526_v49 = vld [vmem:[%s2110_s11 + $0x310] sm:$0xff] }
  0x30   : > { %v528_v50 = vld [vmem:[%s2110_s11 + $0x320] sm:$0xff]  ;;  %525 = vst [vmem:[%s2115_s12 + $0x180] sm:$0xff] %v524_v48  ;;  %527 = vst [vmem:[%s2115_s12 + $0x188] sm:$0xff] %v526_v49  ;;  %v530_v51 = vld [vmem:[%s2110_s11 + $0x330] sm:$0xff] }
  0x31   : > { %529 = vst [vmem:[%s2115_s12 + $0x190] sm:$0xff] %v528_v50  ;;  %v532_v52 = vld [vmem:[%s2110_s11 + $0x340] sm:$0xff]  ;;  %v534_v53 = vld [vmem:[%s2110_s11 + $0x350] sm:$0xff]  ;;  %531 = vst [vmem:[%s2115_s12 + $0x198] sm:$0xff] %v530_v51 }
  0x32   : > { %533 = vst [vmem:[%s2115_s12 + $0x1a0] sm:$0xff] %v532_v52  ;;  %535 = vst [vmem:[%s2115_s12 + $0x1a8] sm:$0xff] %v534_v53  ;;  %v536_v54 = vld [vmem:[%s2110_s11 + $0x360] sm:$0xff]  ;;  %v538_v55 = vld [vmem:[%s2110_s11 + $0x370] sm:$0xff] }
  0x33   : > { %v540_v56 = vld [vmem:[%s2110_s11 + $0x380] sm:$0xff]  ;;  %537 = vst [vmem:[%s2115_s12 + $0x1b0] sm:$0xff] %v536_v54  ;;  %539 = vst [vmem:[%s2115_s12 + $0x1b8] sm:$0xff] %v538_v55  ;;  %v542_v57 = vld [vmem:[%s2110_s11 + $0x390] sm:$0xff] }
  0x34   : > { %541 = vst [vmem:[%s2115_s12 + $0x1c0] sm:$0xff] %v540_v56  ;;  %v544_v58 = vld [vmem:[%s2110_s11 + $0x3a0] sm:$0xff]  ;;  %v546_v59 = vld [vmem:[%s2110_s11 + $0x3b0] sm:$0xff]  ;;  %543 = vst [vmem:[%s2115_s12 + $0x1c8] sm:$0xff] %v542_v57 }
  0x35   : > { %545 = vst [vmem:[%s2115_s12 + $0x1d0] sm:$0xff] %v544_v58  ;;  %547 = vst [vmem:[%s2115_s12 + $0x1d8] sm:$0xff] %v546_v59  ;;  %v548_v60 = vld [vmem:[%s2110_s11 + $0x3c0] sm:$0xff]  ;;  %v550_v61 = vld [vmem:[%s2110_s11 + $0x3d0] sm:$0xff] }
  0x36   : > { %v552_v62 = vld [vmem:[%s2110_s11 + $0x3e0] sm:$0xff]  ;;  %549 = vst [vmem:[%s2115_s12 + $0x1e0] sm:$0xff] %v548_v60  ;;  %551 = vst [vmem:[%s2115_s12 + $0x1e8] sm:$0xff] %v550_v61  ;;  %v554_v63 = vld [vmem:[%s2110_s11 + $0x3f0] sm:$0xff] }
  0x37   : > { %553 = vst [vmem:[%s2115_s12 + $0x1f0] sm:$0xff] %v552_v62  ;;  %v556_v0 = vld [vmem:[%s2110_s11 + $0x400] sm:$0xff]  ;;  %v558_v1 = vld [vmem:[%s2110_s11 + $0x410] sm:$0xff]  ;;  %555 = vst [vmem:[%s2115_s12 + $0x1f8] sm:$0xff] %v554_v63 }
  0x38   : > { %557 = vst [vmem:[%s2115_s12 + $0x200] sm:$0xff] %v556_v0  ;;  %559 = vst [vmem:[%s2115_s12 + $0x208] sm:$0xff] %v558_v1  ;;  %v560_v2 = vld [vmem:[%s2110_s11 + $0x420] sm:$0xff]  ;;  %v562_v3 = vld [vmem:[%s2110_s11 + $0x430] sm:$0xff] }
  0x39   : > { %v564_v4 = vld [vmem:[%s2110_s11 + $0x440] sm:$0xff]  ;;  %561 = vst [vmem:[%s2115_s12 + $0x210] sm:$0xff] %v560_v2  ;;  %563 = vst [vmem:[%s2115_s12 + $0x218] sm:$0xff] %v562_v3  ;;  %v566_v5 = vld [vmem:[%s2110_s11 + $0x450] sm:$0xff] }
  0x3a   : > { %565 = vst [vmem:[%s2115_s12 + $0x220] sm:$0xff] %v564_v4  ;;  %v568_v6 = vld [vmem:[%s2110_s11 + $0x460] sm:$0xff]  ;;  %v570_v7 = vld [vmem:[%s2110_s11 + $0x470] sm:$0xff]  ;;  %567 = vst [vmem:[%s2115_s12 + $0x228] sm:$0xff] %v566_v5 }
  0x3b   : > { %569 = vst [vmem:[%s2115_s12 + $0x230] sm:$0xff] %v568_v6  ;;  %571 = vst [vmem:[%s2115_s12 + $0x238] sm:$0xff] %v570_v7  ;;  %v572_v8 = vld [vmem:[%s2110_s11 + $0x480] sm:$0xff]  ;;  %v574_v9 = vld [vmem:[%s2110_s11 + $0x490] sm:$0xff] }
  0x3c   : > { %v576_v10 = vld [vmem:[%s2110_s11 + $0x4a0] sm:$0xff]  ;;  %573 = vst [vmem:[%s2115_s12 + $0x240] sm:$0xff] %v572_v8  ;;  %575 = vst [vmem:[%s2115_s12 + $0x248] sm:$0xff] %v574_v9  ;;  %v578_v11 = vld [vmem:[%s2110_s11 + $0x4b0] sm:$0xff] }
  0x3d   : > { %577 = vst [vmem:[%s2115_s12 + $0x250] sm:$0xff] %v576_v10  ;;  %v580_v12 = vld [vmem:[%s2110_s11 + $0x4c0] sm:$0xff]  ;;  %v582_v13 = vld [vmem:[%s2110_s11 + $0x4d0] sm:$0xff]  ;;  %579 = vst [vmem:[%s2115_s12 + $0x258] sm:$0xff] %v578_v11 }
  0x3e   : > { %581 = vst [vmem:[%s2115_s12 + $0x260] sm:$0xff] %v580_v12  ;;  %583 = vst [vmem:[%s2115_s12 + $0x268] sm:$0xff] %v582_v13  ;;  %v584_v14 = vld [vmem:[%s2110_s11 + $0x4e0] sm:$0xff]  ;;  %v586_v15 = vld [vmem:[%s2110_s11 + $0x4f0] sm:$0xff] }
  0x3f   : > { %v588_v16 = vld [vmem:[%s2110_s11 + $0x500] sm:$0xff]  ;;  %585 = vst [vmem:[%s2115_s12 + $0x270] sm:$0xff] %v584_v14  ;;  %587 = vst [vmem:[%s2115_s12 + $0x278] sm:$0xff] %v586_v15  ;;  %v590_v17 = vld [vmem:[%s2110_s11 + $0x510] sm:$0xff] }
  0x40   : > { %589 = vst [vmem:[%s2115_s12 + $0x280] sm:$0xff] %v588_v16  ;;  %v592_v18 = vld [vmem:[%s2110_s11 + $0x520] sm:$0xff]  ;;  %v594_v19 = vld [vmem:[%s2110_s11 + $0x530] sm:$0xff]  ;;  %591 = vst [vmem:[%s2115_s12 + $0x288] sm:$0xff] %v590_v17 }
  0x41   : > { %593 = vst [vmem:[%s2115_s12 + $0x290] sm:$0xff] %v592_v18  ;;  %595 = vst [vmem:[%s2115_s12 + $0x298] sm:$0xff] %v594_v19  ;;  %v596_v20 = vld [vmem:[%s2110_s11 + $0x540] sm:$0xff]  ;;  %v598_v21 = vld [vmem:[%s2110_s11 + $0x550] sm:$0xff] }
  0x42   : > { %v600_v22 = vld [vmem:[%s2110_s11 + $0x560] sm:$0xff]  ;;  %597 = vst [vmem:[%s2115_s12 + $0x2a0] sm:$0xff] %v596_v20  ;;  %599 = vst [vmem:[%s2115_s12 + $0x2a8] sm:$0xff] %v598_v21  ;;  %v602_v23 = vld [vmem:[%s2110_s11 + $0x570] sm:$0xff] }
  0x43   : > { %601 = vst [vmem:[%s2115_s12 + $0x2b0] sm:$0xff] %v600_v22  ;;  %v604_v24 = vld [vmem:[%s2110_s11 + $0x580] sm:$0xff]  ;;  %v606_v25 = vld [vmem:[%s2110_s11 + $0x590] sm:$0xff]  ;;  %603 = vst [vmem:[%s2115_s12 + $0x2b8] sm:$0xff] %v602_v23 }
  0x44   : > { %605 = vst [vmem:[%s2115_s12 + $0x2c0] sm:$0xff] %v604_v24  ;;  %607 = vst [vmem:[%s2115_s12 + $0x2c8] sm:$0xff] %v606_v25  ;;  %v608_v26 = vld [vmem:[%s2110_s11 + $0x5a0] sm:$0xff]  ;;  %v610_v27 = vld [vmem:[%s2110_s11 + $0x5b0] sm:$0xff] }
  0x45   : > { %v612_v28 = vld [vmem:[%s2110_s11 + $0x5c0] sm:$0xff]  ;;  %609 = vst [vmem:[%s2115_s12 + $0x2d0] sm:$0xff] %v608_v26  ;;  %611 = vst [vmem:[%s2115_s12 + $0x2d8] sm:$0xff] %v610_v27  ;;  %v614_v29 = vld [vmem:[%s2110_s11 + $0x5d0] sm:$0xff] }
  0x46   : > { %613 = vst [vmem:[%s2115_s12 + $0x2e0] sm:$0xff] %v612_v28  ;;  %v616_v30 = vld [vmem:[%s2110_s11 + $0x5e0] sm:$0xff]  ;;  %v618_v31 = vld [vmem:[%s2110_s11 + $0x5f0] sm:$0xff]  ;;  %615 = vst [vmem:[%s2115_s12 + $0x2e8] sm:$0xff] %v614_v29 }
  0x47   : > { %617 = vst [vmem:[%s2115_s12 + $0x2f0] sm:$0xff] %v616_v30  ;;  %619 = vst [vmem:[%s2115_s12 + $0x2f8] sm:$0xff] %v618_v31 }
  0x48 PF: > { %p1644_p7 = scmp.ge.s32.totalorder %s2022_s21, 1  ;;  %p640_p8 = scmp.lt.s32.totalorder %s2022_s21, 7 }
  0x4a   : > { %p641_p9 = pnand %p1644_p7, %p640_p8 }
  0x4b   : > { %s647_s13 = sand.u32 (!%p641_p9), 1, %s1998_s15   ;;  %s693_s14 = smul.u32 (!%p641_p9), 6, %s2006_s17 }
  0x4c   : > { %644 = sbr.rel (%p641_p9) target bundleno = 437 (0x1b5), region = 70  ;;  %s1646_s25 = sshll.u32 (!%p641_p9), %s2010_s18, 1 }
  0x4d   : > { %s1760_s24 = smul.u32 (!%p641_p9), 768, %s647_s13  ;;  %p696_p10 = scmp.lt.s32.totalorder (!%p641_p9), %s693_s14, 17 }
  0x4e   : > { %p706_p11 = scmp.lt.s32.totalorder (!%p641_p9), %s1646_s25, 3  ;;  %p1650_p12 = scmp.ne.s32.totalorder (!%p641_p9), %s2006_s17, 0 }
  0x4f   : > { %s2332_s13 = scalar_lea.vmem (!%p641_p9), [#allocation3], %s1760_s24 }
  0x51   : > { %s2491_s14 = smov (!%p696_p10, %s693_s14), 17  ;;  %s2493_s25 = smov (!%p706_p11, %s1646_s25), 3 }
  0x52   : > { %s1645_s26 = sshll.u32 %s2491_s14, 2  ;;  %s708_s15 = scalar_lea.vmem %s2475_s2, %s2493_s25 }
  0x53   : > { %s2316_s30 = scalar_lea.vmem %s2473_s0, %s1645_s26  ;;  %s713_s8 = scalar_lea.vmem %s2476_s3, %s2493_s25 }
  0x54   : > { %s1649_s9 = sshll.u32 %s2493_s25, 2  ;;  %728 = sbr.rel (%p1650_p12) target bundleno = 91 (0x5b), region = 78 }
  0x55   : > { %s2330_s12 = scalar_lea.vmem %s2477_s4, %s1649_s9 }
  0x59   : > { %v2024_v32 = vmov 0.0  }
  0x5a   : > { %729 = vst [vmem:[#allocation2] sm:$0xff] %v2024_v32  ;;  %730 = vst [vmem:[#allocation2 + $0x8] sm:$0xff] %v2024_v32 }
  0x5b PF: > { %v1818_v33 = vld [vmem:[%s2332_s13 + $0x74] ss:$8 sps:$4 sm:$0xff]   ;;  %v1822_v35 = vld [vmem:[%s2332_s13 + $0x70] ss:$8 sps:$4 sm:$0xff]   ;;  %v1824_v37 = vld [vmem:[%s2332_s13 + $0x64] ss:$8 sps:$4 sm:$0xff]  }
  0x5c   : > { %v1820_v34 = vld [vmem:[%s2332_s13 + $0x174] ss:$8 sps:$4 sm:$0xff]   ;;  %1333 = vmatprep.subr.bf16.mxu0 %v1818_v33  ;;  %v1823_v36 = vld [vmem:[%s2332_s13 + $0x170] ss:$8 sps:$4 sm:$0xff]   ;;  %v1826_v38 = vld [vmem:[%s2332_s13 + $0x164] ss:$8 sps:$4 sm:$0xff]  }
  0x5d   : > { %1374 = vmatprep.subr.bf16.mxu1 %v1820_v34  ;;  %1334 = vmatpush1.bf16.msra.mxu0 %v1822_v35  ;;  %v1828_v39 = vld [vmem:[%s2332_s13 + $0x60] ss:$8 sps:$4 sm:$0xff]   ;;  %v1830_v41 = vld [vmem:[%s2332_s13 + $0x54] ss:$8 sps:$4 sm:$0xff]   ;;  %v1834_v43 = vld [vmem:[%s2332_s13 + $0x50] ss:$8 sps:$4 sm:$0xff]  }
  0x5e   : > { %1375 = vmatpush1.bf16.msra.mxu1 %v1823_v36  ;;  %1335 = vmatprep.subr.bf16.mxu0 %v1824_v37  ;;  %v1829_v40 = vld [vmem:[%s2332_s13 + $0x160] ss:$8 sps:$4 sm:$0xff]   ;;  %v1832_v42 = vld [vmem:[%s2332_s13 + $0x154] ss:$8 sps:$4 sm:$0xff]   ;;  %v1835_v44 = vld [vmem:[%s2332_s13 + $0x150] ss:$8 sps:$4 sm:$0xff]  }
  0x5f   : > { %1376 = vmatprep.subr.bf16.mxu1 %v1826_v38  ;;  %v1836_v45 = vld [vmem:[%s2332_s13 + $0x44] ss:$8 sps:$4 sm:$0xff]   ;;  %v1840_v47 = vld [vmem:[%s2332_s13 + $0x40] ss:$8 sps:$4 sm:$0xff]   ;;  %v1842_v49 = vld [vmem:[%s2332_s13 + $0x34] ss:$8 sps:$4 sm:$0xff]  }
  0x60   : > { %v1838_v46 = vld [vmem:[%s2332_s13 + $0x144] ss:$8 sps:$4 sm:$0xff]   ;;  %v1841_v48 = vld [vmem:[%s2332_s13 + $0x140] ss:$8 sps:$4 sm:$0xff]   ;;  %v1844_v50 = vld [vmem:[%s2332_s13 + $0x134] ss:$8 sps:$4 sm:$0xff]  }
  0x61   : > { %1336 = vmatpush1.bf16.msra.mxu0 %v1828_v39  ;;  %v1846_v51 = vld [vmem:[%s2332_s13 + $0x30] ss:$8 sps:$4 sm:$0xff]   ;;  %v1848_v53 = vld [vmem:[%s2332_s13 + $0x24] ss:$8 sps:$4 sm:$0xff]   ;;  %v1852_v55 = vld [vmem:[%s2332_s13 + $0x20] ss:$8 sps:$4 sm:$0xff]  }
  0x62   : > { %1377 = vmatpush1.bf16.msra.mxu1 %v1829_v40  ;;  %1337 = vmatprep.subr.bf16.mxu0 %v1830_v41  ;;  %v1847_v52 = vld [vmem:[%s2332_s13 + $0x130] ss:$8 sps:$4 sm:$0xff]   ;;  %v1850_v54 = vld [vmem:[%s2332_s13 + $0x124] ss:$8 sps:$4 sm:$0xff]   ;;  %v1853_v56 = vld [vmem:[%s2332_s13 + $0x120] ss:$8 sps:$4 sm:$0xff]  }
  0x63   : > { %1378 = vmatprep.subr.bf16.mxu1 %v1832_v42  ;;  %v1854_v57 = vld [vmem:[%s2332_s13 + $0x14] ss:$8 sps:$4 sm:$0xff]   ;;  %v1858_v59 = vld [vmem:[%s2332_s13 + $0x10] ss:$8 sps:$4 sm:$0xff]   ;;  %v1860_v61 = vld [vmem:[%s2332_s13 + $0x4] ss:$8 sps:$4 sm:$0xff]  }
  0x64   : > { %v1856_v58 = vld [vmem:[%s2332_s13 + $0x114] ss:$8 sps:$4 sm:$0xff]   ;;  %v1859_v60 = vld [vmem:[%s2332_s13 + $0x110] ss:$8 sps:$4 sm:$0xff]   ;;  %v1862_v62 = vld [vmem:[%s2332_s13 + $0x104] ss:$8 sps:$4 sm:$0xff]  }
  0x65   : > { %1338 = vmatpush1.bf16.msra.mxu0 %v1834_v43  ;;  %v1864_v63 = vld [vmem:[%s2332_s13] ss:$8 sps:$4 sm:$0xff]   ;;  %v1866_v1 = vld [vmem:[%s2332_s13 + $0xf4] ss:$8 sps:$4 sm:$0xff]   ;;  %v1870_v3 = vld [vmem:[%s2332_s13 + $0xf0] ss:$8 sps:$4 sm:$0xff]  }
  0x66   : > { %1379 = vmatpush1.bf16.msra.mxu1 %v1835_v44  ;;  %1339 = vmatprep.subr.bf16.mxu0 %v1836_v45  ;;  %v1865_v0 = vld [vmem:[%s2332_s13 + $0x100] ss:$8 sps:$4 sm:$0xff]   ;;  %v1868_v2 = vld [vmem:[%s2332_s13 + $0x1f4] ss:$8 sps:$4 sm:$0xff]   ;;  %v1871_v4 = vld [vmem:[%s2332_s13 + $0x1f0] ss:$8 sps:$4 sm:$0xff]  }
  0x67   : > { %1380 = vmatprep.subr.bf16.mxu1 %v1838_v46  ;;  %v1872_v5 = vld [vmem:[%s2332_s13 + $0xe4] ss:$8 sps:$4 sm:$0xff]   ;;  %v1876_v7 = vld [vmem:[%s2332_s13 + $0xe0] ss:$8 sps:$4 sm:$0xff]   ;;  %v1878_v9 = vld [vmem:[%s2332_s13 + $0xd4] ss:$8 sps:$4 sm:$0xff]  }
  0x68   : > { %v1874_v6 = vld [vmem:[%s2332_s13 + $0x1e4] ss:$8 sps:$4 sm:$0xff]   ;;  %v1877_v8 = vld [vmem:[%s2332_s13 + $0x1e0] ss:$8 sps:$4 sm:$0xff]   ;;  %v1880_v10 = vld [vmem:[%s2332_s13 + $0x1d4] ss:$8 sps:$4 sm:$0xff]  }
  0x69   : > { %1340 = vmatpush1.bf16.msra.mxu0 %v1840_v47  ;;  %v1882_v11 = vld [vmem:[%s2332_s13 + $0xd0] ss:$8 sps:$4 sm:$0xff]   ;;  %v1884_v13 = vld [vmem:[%s2332_s13 + $0xc4] ss:$8 sps:$4 sm:$0xff]   ;;  %v1888_v18 = vld [vmem:[%s2332_s13 + $0xc0] ss:$8 sps:$4 sm:$0xff]  }
  0x6a   : > { %1381 = vmatpush1.bf16.msra.mxu1 %v1841_v48  ;;  %1341 = vmatprep.subr.bf16.mxu0 %v1842_v49  ;;  %v1883_v12 = vld [vmem:[%s2332_s13 + $0x1d0] ss:$8 sps:$4 sm:$0xff]   ;;  %v1886_v14 = vld [vmem:[%s2332_s13 + $0x1c4] ss:$8 sps:$4 sm:$0xff]   ;;  %v1889_v19 = vld [vmem:[%s2332_s13 + $0x1c0] ss:$8 sps:$4 sm:$0xff]  }
  0x6b   : > { %1382 = vmatprep.subr.bf16.mxu1 %v1844_v50  ;;  %v733_v15 = vld [vmem:[%s2316_s30] sm:$0xff]  ;;  %v734_v17 = vld [vmem:[%s2316_s30 + $0x8] sm:$0xff]  ;;  %v1896_v25 = vld [vmem:[%s2332_s13 + $0xa4] ss:$8 sps:$4 sm:$0xff]   ;;  %p1753_p13 = scmp.ne.s32.totalorder %s2006_s17, 2 }
  0x6c   : > { %v1652_v16 = vcombine.high %v733_v15, %v733_v15  ;;  %v1654_v20 = vcombine.high %v734_v17, %v734_v17  ;;  %v1890_v21 = vld [vmem:[%s2332_s13 + $0xb4] ss:$8 sps:$4 sm:$0xff]   ;;  %v1894_v23 = vld [vmem:[%s2332_s13 + $0xb0] ss:$8 sps:$4 sm:$0xff]   ;;  %v1898_v26 = vld [vmem:[%s2332_s13 + $0x1a4] ss:$8 sps:$4 sm:$0xff]   ;;  %v1651_v38 = vcombine.low %v733_v15, %v733_v15  ;;  %v1653_v39 = vcombine.low %v734_v17, %v734_v17 }
  0x6d   : > { %1342 = vmatpush1.bf16.msra.mxu0 %v1846_v51  ;;  %v1892_v22 = vld [vmem:[%s2332_s13 + $0x1b4] ss:$8 sps:$4 sm:$0xff]   ;;  %v1895_v24 = vld [vmem:[%s2332_s13 + $0x1b0] ss:$8 sps:$4 sm:$0xff]   ;;  %v1900_v27 = vld [vmem:[%s2332_s13 + $0xa0] ss:$8 sps:$4 sm:$0xff]  }
  0x6e   : > { %1383 = vmatpush1.bf16.msra.mxu1 %v1847_v52  ;;  %1343 = vmatprep.subr.bf16.mxu0 %v1848_v53  ;;  %v1901_v28 = vld [vmem:[%s2332_s13 + $0x1a0] ss:$8 sps:$4 sm:$0xff]   ;;  %v1902_v29 = vld [vmem:[%s2332_s13 + $0x94] ss:$8 sps:$4 sm:$0xff]   ;;  %v1906_v31 = vld [vmem:[%s2332_s13 + $0x90] ss:$8 sps:$4 sm:$0xff]  }
  0x6f   : > { %1384 = vmatprep.subr.bf16.mxu1 %v1850_v54  ;;  %1365 = vmatprep.mubr.bf16.mxu0 %v1652_v16  ;;  %v1904_v30 = vld [vmem:[%s2332_s13 + $0x194] ss:$8 sps:$4 sm:$0xff]   ;;  %v1907_v32 = vld [vmem:[%s2332_s13 + $0x190] ss:$8 sps:$4 sm:$0xff]   ;;  %v1908_v33 = vld [vmem:[%s2332_s13 + $0x84] ss:$8 sps:$4 sm:$0xff]  }
  0x70   : > { %1406 = vmatprep.mubr.bf16.mxu1 %v1654_v20  ;;  %v1910_v34 = vld [vmem:[%s2332_s13 + $0x184] ss:$8 sps:$4 sm:$0xff]   ;;  %v1912_v35 = vld [vmem:[%s2332_s13 + $0x80] ss:$8 sps:$4 sm:$0xff]   ;;  %v1920_v37 = vld [vmem:[%s2332_s13 + $0x274] ss:$8 sps:$4 sm:$0xff]  }
  0x71   : > { %1344 = vmatpush1.bf16.msra.mxu0 %v1852_v55  ;;  %v1913_v36 = vld [vmem:[%s2332_s13 + $0x180] ss:$8 sps:$4 sm:$0xff]   ;;  %v1918_v40 = vld [vmem:[%s2332_s13 + $0x270] ss:$8 sps:$4 sm:$0xff]   ;;  %v1923_v42 = vld [vmem:[%s2332_s13 + $0x264] ss:$8 sps:$4 sm:$0xff]  }
  0x72   : > { %1385 = vmatpush1.bf16.msra.mxu1 %v1853_v56  ;;  %1345 = vmatprep.subr.bf16.mxu0 %v1854_v57  ;;  %v2404_v41 = vld [vmem:[%s2316_s30 + $0x10] sm:$0xff]  ;;  %v1926_v45 = vld [vmem:[%s2332_s13 + $0x254] ss:$8 sps:$4 sm:$0xff]   ;;  %v1924_v46 = vld [vmem:[%s2332_s13 + $0x250] ss:$8 sps:$4 sm:$0xff]  }
  0x73   : > { %1386 = vmatprep.subr.bf16.mxu1 %v1856_v58  ;;  %v1656_v43 = vcombine.high %v2404_v41, %v2404_v41  ;;  %v1921_v44 = vld [vmem:[%s2332_s13 + $0x260] ss:$8 sps:$4 sm:$0xff]   ;;  %v1929_v47 = vld [vmem:[%s2332_s13 + $0x244] ss:$8 sps:$4 sm:$0xff]   ;;  %v1932_v49 = vld [vmem:[%s2332_s13 + $0x234] ss:$8 sps:$4 sm:$0xff]  }
  0x74   : > { %v1927_v48 = vld [vmem:[%s2332_s13 + $0x240] ss:$8 sps:$4 sm:$0xff]   ;;  %v1930_v50 = vld [vmem:[%s2332_s13 + $0x230] ss:$8 sps:$4 sm:$0xff]   ;;  %v1935_v51 = vld [vmem:[%s2332_s13 + $0x224] ss:$8 sps:$4 sm:$0xff]  }
  0x75   : > { %1346 = vmatpush1.bf16.msra.mxu0 %v1858_v59  ;;  %v1933_v52 = vld [vmem:[%s2332_s13 + $0x220] ss:$8 sps:$4 sm:$0xff]   ;;  %v1938_v53 = vld [vmem:[%s2332_s13 + $0x214] ss:$8 sps:$4 sm:$0xff]   ;;  %v1936_v54 = vld [vmem:[%s2332_s13 + $0x210] ss:$8 sps:$4 sm:$0xff]  }
  0x76   : > { %1387 = vmatpush1.bf16.msra.mxu1 %v1859_v60  ;;  %1347 = vmatprep.subr.bf16.mxu0 %v1860_v61  ;;  %v1941_v55 = vld [vmem:[%s2332_s13 + $0x204] ss:$8 sps:$4 sm:$0xff]   ;;  %v1939_v56 = vld [vmem:[%s2332_s13 + $0x200] ss:$8 sps:$4 sm:$0xff]   ;;  %v1944_v57 = vld [vmem:[%s2332_s13 + $0x2f4] ss:$8 sps:$4 sm:$0xff]  }
  0x77   : > { %1388 = vmatprep.subr.bf16.mxu1 %v1862_v62  ;;  %v1942_v58 = vld [vmem:[%s2332_s13 + $0x2f0] ss:$8 sps:$4 sm:$0xff]   ;;  %v1947_v59 = vld [vmem:[%s2332_s13 + $0x2e4] ss:$8 sps:$4 sm:$0xff]   ;;  %v1945_v60 = vld [vmem:[%s2332_s13 + $0x2e0] ss:$8 sps:$4 sm:$0xff]  }
  0x78   : > { %v1950_v61 = vld [vmem:[%s2332_s13 + $0x2d4] ss:$8 sps:$4 sm:$0xff]   ;;  %v1948_v62 = vld [vmem:[%s2332_s13 + $0x2d0] ss:$8 sps:$4 sm:$0xff]  }
  0x79   : > { %1348 = vmatpush1.bf16.msra.mxu0 %v1864_v63  ;;  %v1953_v63 = vld [vmem:[%s2332_s13 + $0x2c4] ss:$8 sps:$4 sm:$0xff]  }
  0x7a   : > { %1389 = vmatpush1.bf16.msra.mxu1 %v1865_v0  ;;  %1349 = vmatprep.subr.bf16.mxu0 %v1866_v1  ;;  %v1951_v0 = vld [vmem:[%s2332_s13 + $0x2c0] ss:$8 sps:$4 sm:$0xff]   ;;  %v1956_v1 = vld [vmem:[%s2332_s13 + $0x2b4] ss:$8 sps:$4 sm:$0xff]  }
  0x7b   : > { %1390 = vmatprep.subr.bf16.mxu1 %v1868_v2  ;;  %v1954_v2 = vld [vmem:[%s2332_s13 + $0x2b0] ss:$8 sps:$4 sm:$0xff]  }
  0x7d   : > { %1350 = vmatpush2.bf16.msra.mxu0 %v1870_v3  ;;  %v1959_v3 = vld [vmem:[%s2332_s13 + $0x2a4] ss:$8 sps:$4 sm:$0xff]  }
  0x7e   : > { %1391 = vmatpush2.bf16.msra.mxu1 %v1871_v4  ;;  %1351 = vmatprep.subr.bf16.mxu0 %v1872_v5  ;;  %v1957_v4 = vld [vmem:[%s2332_s13 + $0x2a0] ss:$8 sps:$4 sm:$0xff]   ;;  %v1962_v5 = vld [vmem:[%s2332_s13 + $0x294] ss:$8 sps:$4 sm:$0xff]  }
  0x7f   : > { %1392 = vmatprep.subr.bf16.mxu1 %v1874_v6  ;;  %v1960_v6 = vld [vmem:[%s2332_s13 + $0x290] ss:$8 sps:$4 sm:$0xff]  }
  0x81   : > { %1352 = vmatpush2.bf16.msra.mxu0 %v1876_v7  ;;  %v1965_v7 = vld [vmem:[%s2332_s13 + $0x284] ss:$8 sps:$4 sm:$0xff]  }
  0x82   : > { %1393 = vmatpush2.bf16.msra.mxu1 %v1877_v8  ;;  %1353 = vmatprep.subr.bf16.mxu0 %v1878_v9  ;;  %v1963_v8 = vld [vmem:[%s2332_s13 + $0x280] ss:$8 sps:$4 sm:$0xff]   ;;  %v1655_v9 = vcombine.low %v2404_v41, %v2404_v41 }
  0x83   : > { %1394 = vmatprep.subr.bf16.mxu1 %v1880_v10 }
  0x85   : > { %1354 = vmatpush2.bf16.msra.mxu0 %v1882_v11 }
  0x86   : > { %1395 = vmatpush2.bf16.msra.mxu1 %v1883_v12  ;;  %1355 = vmatprep.subr.bf16.mxu0 %v1884_v13 }
  0x87   : > { %1396 = vmatprep.subr.bf16.mxu1 %v1886_v14 }
  0x89   : > { %1356 = vmatpush2.bf16.msra.mxu0 %v1888_v18 }
  0x8a   : > { %1397 = vmatpush2.bf16.msra.mxu1 %v1889_v19  ;;  %1357 = vmatprep.subr.bf16.mxu0 %v1890_v21  ;;  %v731_v19 = vld [vmem:[#allocation2] sm:$0xff] }
  0x8b   : > { %1398 = vmatprep.subr.bf16.mxu1 %v1892_v22 }
  0x8d   : > { %1358 = vmatpush2.bf16.msra.mxu0 %v1894_v23  ;;  %v732_v23 = vld [vmem:[#allocation2 + $0x8] sm:$0xff] }
  0x8e   : > { %1399 = vmatpush2.bf16.msra.mxu1 %v1895_v24  ;;  %1359 = vmatprep.subr.bf16.mxu0 %v1896_v25 }
  0x8f   : > { %1400 = vmatprep.subr.bf16.mxu1 %v1898_v26 }
  0x91   : > { %1360 = vmatpush2.bf16.msra.mxu0 %v1900_v27 }
  0x92   : > { %1401 = vmatpush2.bf16.msra.mxu1 %v1901_v28  ;;  %1361 = vmatprep.subr.bf16.mxu0 %v1902_v29 }
  0x93   : > { %1402 = vmatprep.subr.bf16.mxu1 %v1904_v30 }
  0x95   : > { %1362 = vmatpush2.bf16.msra.mxu0 %v1906_v31 }
  0x96   : > { %1403 = vmatpush2.bf16.msra.mxu1 %v1907_v32  ;;  %1363 = vmatprep.subr.bf16.mxu0 %v1908_v33 }
  0x97   : > { %1404 = vmatprep.subr.bf16.mxu1 %v1910_v34 }
  0x99   : > { %1364 = vmatpush2.bf16.msra.mxu0 %v1912_v35 }
  0x9a   : > { %1405 = vmatpush2.bf16.msra.mxu1 %v1913_v36  ;;  %1415 = vmatprep.subr.bf16.mxu0 %v1920_v37 }
  0x9c   : > { %1366 = vmatmul.mubr.bf16.vlgmr.msra.gmra.mxu0 %v1651_v38 }
  0x9d   : > { %1407 = vmatmul.mubr.bf16.vlgmr.msra.gmra.mxu1 %v1653_v39  ;;  %1416 = vmatpush1.bf16.msra.mxu0 %v1918_v40 }
  0x9e   : > { %1447 = vmatprep.mubr.bf16.mxu0 %v1656_v43  ;;  %1417 = vmatprep.subr.bf16.mxu0 %v1923_v42 }
  0xa1   : > { %1418 = vmatpush1.bf16.msra.mxu0 %v1921_v44 }
  0xa2   : > { %1419 = vmatprep.subr.bf16.mxu0 %v1926_v45 }
  0xa5   : > { %1420 = vmatpush1.bf16.msra.mxu0 %v1924_v46 }
  0xa6   : > { %1421 = vmatprep.subr.bf16.mxu0 %v1929_v47 }
  0xa9   : > { %1422 = vmatpush1.bf16.msra.mxu0 %v1927_v48 }
  0xaa   : > { %1423 = vmatprep.subr.bf16.mxu0 %v1932_v49 }
  0xad   : > { %1424 = vmatpush1.bf16.msra.mxu0 %v1930_v50 }
  0xae   : > { %1425 = vmatprep.subr.bf16.mxu0 %v1935_v51 }
  0xb1   : > { %1426 = vmatpush1.bf16.msra.mxu0 %v1933_v52 }
  0xb2   : > { %1427 = vmatprep.subr.bf16.mxu0 %v1938_v53 }
  0xb5   : > { %1428 = vmatpush1.bf16.msra.mxu0 %v1936_v54 }
  0xb6   : > { %1429 = vmatprep.subr.bf16.mxu0 %v1941_v55 }
  0xb9   : > { %1430 = vmatpush1.bf16.msra.mxu0 %v1939_v56 }
  0xba   : > { %1431 = vmatprep.subr.bf16.mxu0 %v1944_v57 }
  0xbd   : > { %1432 = vmatpush2.bf16.msra.mxu0 %v1942_v58 }
  0xbe   : > { %1433 = vmatprep.subr.bf16.mxu0 %v1947_v59 }
  0xc1   : > { %1434 = vmatpush2.bf16.msra.mxu0 %v1945_v60 }
  0xc2   : > { %1435 = vmatprep.subr.bf16.mxu0 %v1950_v61 }
  0xc5   : > { %1436 = vmatpush2.bf16.msra.mxu0 %v1948_v62 }
  0xc6   : > { %1437 = vmatprep.subr.bf16.mxu0 %v1953_v63 }
  0xc9   : > { %1438 = vmatpush2.bf16.msra.mxu0 %v1951_v0 }
  0xca   : > { %1439 = vmatprep.subr.bf16.mxu0 %v1956_v1 }
  0xcd   : > { %1440 = vmatpush2.bf16.msra.mxu0 %v1954_v2 }
  0xce   : > { %1441 = vmatprep.subr.bf16.mxu0 %v1959_v3 }
  0xd1   : > { %1442 = vmatpush2.bf16.msra.mxu0 %v1957_v4 }
  0xd2   : > { %1443 = vmatprep.subr.bf16.mxu0 %v1962_v5 }
  0xd5   : > { %1444 = vmatpush2.bf16.msra.mxu0 %v1960_v6 }
  0xd6   : > { %1445 = vmatprep.subr.bf16.mxu0 %v1965_v7 }
  0xd9   : > { %1446 = vmatpush2.bf16.msra.mxu0 %v1963_v8 }
  0xdc   : > { %1448 = vmatmul.mubr.bf16.vlgmr.msra.gmra.mxu0 %v1655_v9 }
 0x15c   : > { %v1367_v10 = vpop.f32.mrf.mxu0 }
 0x15d   : > { %v1408_v11 = vpop.f32.mrf.mxu1 }
 0x15e   : > { %v1369_v12 = vpop.f32.mrf.mxu0  ;;  %v1409_v18 = vadd.f32 %v1408_v11, %v1367_v10 }
 0x15f   : > { %v1410_v13 = vpop.f32.mrf.mxu1 }
 0x160   : > { %v1371_v14 = vpop.f32.mrf.mxu0  ;;  %v1411_v21 = vadd.f32 %v1410_v13, %v1369_v12 }
 0x161   : > { %v1412_v15 = vpop.f32.mrf.mxu1 }
 0x162   : > { %v1372_v16 = vpop.f32.mrf.mxu0 }
 0x163   : > { %v1413_v17 = vpop.f32.mrf.mxu1 }
 0x19c   : > { %v1449_v20 = vpop.f32.mrf.mxu0 }
 0x19d   : > { %v1450_v22 = vadd.f32 %v1449_v20, %v1409_v18 }
 0x19e   : > { %v1451_v24 = vpop.f32.mrf.mxu0 }
 0x19f   : > { %v1456_v25 = vadd.f32 %v1450_v22, %v731_v19  ;;  %v1452_v26 = vadd.f32 %v1451_v24, %v1411_v21  ;;  %1463 = sbr.rel (%p1753_p13) target bundleno = 437 (0x1b5), region = 82 }
 0x1a0   : > { %v1453_v27 = vpop.f32.mrf.mxu0 }
 0x1a1   : > { %1458 = vst [vmem:[#allocation2] sm:$0xff] %v1456_v25  ;;  %v1457_v28 = vadd.f32 %v1452_v26, %v732_v23 }
 0x1a2   : > { %v1454_v29 = vpop.f32.mrf.mxu0 }
 0x1a3   : > { %1459 = vst [vmem:[#allocation2 + $0x8] sm:$0xff] %v1457_v28 }
 0x1a4   : > { %v1468_v30 = vlaneseq  ;;  %v1466_v32 = vld [vmem:[%s708_s15] sm:$0x3] }
 0x1a5   : > { %v1480_v33 = vld [vmem:[%s713_s8] sm:$0x3] }
 0x1a6   : > { %v1469_v31 = vshrl.u32 %v1468_v30, 7 }
 0x1a8   : > { %v1470_v34 = vsub.s32 0, %v1469_v31  ;;  %v1474_v35 = vsub.s32 1, %v1469_v31  ;;  %v1464_v36 = vld [vmem:[#allocation2] sm:$0xff] }
 0x1aa   : > { %v1465_v37 = vld [vmem:[#allocation2 + $0x8] sm:$0xff]  ;;  %v1471_v38 = vrot.slane %v1466_v32, %v1470_v34  ;;  %v1475_v39 = vrot.slane %v1466_v32, %v1474_v35  ;;  %v1485_v40 = vrot.slane %v1480_v33, %v1470_v34  ;;  %v1489_v41 = vrot.slane %v1480_v33, %v1474_v35 }
 0x1ac   : > { %v1478_v42 = vmul.f32 %v1471_v38, %v1464_v36  ;;  %v1479_v43 = vmul.f32 %v1475_v39, %v1465_v37 }
 0x1ae   : > { %v1492_v44 = vadd.f32 %v1485_v40, %v1478_v42  ;;  %v1493_v45 = vadd.f32 %v1489_v41, %v1479_v43 }
 0x1b0   : > { %v1494_v46 = vmax.f32 %v1492_v44, 0.0  ;;  %v1495_v47 = vmax.f32 %v1493_v45, 0.0 }
 0x1b2   : > { %v1758_v48 = vpack.c.bf16 %v1495_v47, %v1494_v46 }
 0x1b4   : > { %1504 = vst [vmem:[%s2330_s12] sm:$0xff] %v1758_v48 }
 0x1b5 PF: > { %s14_s21 = sadd.s32 1, %s2022_s21   ;;  %s2478_s15 = smov %s2002_s16 }
 0x1b6   : > { %p11_p0 = scmp.ge.s32.totalorder %s14_s21, 8   ;;  %s2479_s16 = smov %s2101_s28 }
 0x1b7   : > { %s2480_s17 = smov %s2014_s19  ;;  %s2481_s18 = smov %s2018_s20 }
 0x1b8   : > { %s2482_s19 = smov %s2485_s22  ;;  %s2483_s20 = smov %s2489_s23 }
 0x1b9   :  { %13 = sbr.rel (!%p11_p0) target bundleno = 4 (0x4), region = 126 }

// kernel: simclr_forward.43
= control target key start
LH: loop header
LB: loop body
LE: loop exit
PB: predicated region body
PF: predicated region fallthrough
CT: control target
= control target key end

     0   :  { %s2050_s15 = smov 0   ;;  %s2052_s16 = smov 0   ;;  %s2473_s0 = inlined_call_operand.vmem [shape: bf16[8,4608], index: 0, kind: input, shape index: {}]   ;;  %s2474_s1 = inlined_call_operand.vmem [shape: bf16[4608,512], index: 1, kind: input, shape index: {}]   ;;  %s2475_s2 = inlined_call_operand.vmem [shape: f32[1,512], index: 2, kind: input, shape index: {}]   ;;  %s2476_s3 = inlined_call_operand.vmem [shape: f32[1,512], index: 3, kind: input, shape index: {}]   ;;  %s2477_s4 = inlined_call_operand.vmem [shape: bf16[8,512], index: 4, kind: output, shape index: {}]  }
   0x1   :  { %s2054_s17 = smov 0   ;;  %s2056_s18 = smov 0  }
   0x2   :  { %s2058_s19 = smov 0   ;;  %s2060_s20 = smov 0  }
   0x3   :  { %s2062_s21 = smov 0  }
   0x4 LB: > { %s26_s22 = sadd.s32 1, %s2014_s19  ;;  %s29_s23 = sadd.s32 1, %s2018_s20  ;;  %s2022_s21 = sphi %s2062_s21, %s14_s21   ;;  %s2018_s20 = sphi %s2060_s20, %s2483_s20   ;;  %s2014_s19 = sphi %s2058_s19, %s2482_s19   ;;  %s2010_s18 = sphi %s2056_s18, %s2481_s18   ;;  %s2006_s17 = sphi %s2054_s17, %s2480_s17   ;;  %s2002_s16 = sphi %s2052_s16, %s2479_s16   ;;  %s1998_s15 = sphi %s2050_s15, %s2478_s15  }
   0x5   : > { %p27_p0 = scmp.ge.s32.totalorder %s26_s22, 6  ;;  %p77_p1 = scmp.ne.s32.totalorder %s2002_s16, %s1998_s15 }
   0x6   : > { %p78_p2 = scmp.eq.s32.totalorder %s2022_s21, 0  ;;  %s70_s27 = sadd.s32 1, %s2002_s16 }
   0x7   : > { %s2485_s22 = smov (%p27_p0, %s26_s22), 0  ;;  %s2487_s23 = smov (!%p27_p0, %s29_s23), %s2018_s20 }
   0x8   : > { %p79_p3 = por %p78_p2, %p77_p1  ;;  %p31_p4 = scmp.ge.s32.totalorder %s2487_s23, 2 }
   0x9   : > { %s65_s24 = ssub.s32 %s2014_s19, %s2485_s22  ;;  %p1640_p6 = scmp.ge.s32.totalorder %s2022_s21, 12 }
   0xa   : > { %s2489_s23 = smov (%p31_p4, %s2487_s23), 0 }
   0xb   : > { %s66_s25 = ssub.s32 %s2018_s20, %s2489_s23  ;;  %183 = sbr.rel (%p1640_p6) target bundleno = 72 (0x48), region = 16 }
   0xc   : > { %s67_s26 = sor.u32 %s66_s25, %s65_s24 }
   0xd   : > { %p68_p5 = scmp.eq.s32.totalorder %s67_s26, 0 }
   0xf   : > { %s2101_s28 = scalar_select %p68_p5, %s2002_s16, %s70_s27  }
  0x10   : > { %199 = sbr.rel (!%p79_p3) target bundleno = 72 (0x48), region = 24  ;;  %s201_s29 = sand.u32 (%p79_p3), 1, %s2002_s16  }
  0x11   : > { %s1759_s30 = smul.u32 (%p79_p3), 768, %s201_s29  ;;  %s1641_s5 = sshll.u32 (%p79_p3), %s2018_s20, 1 }
  0x12   : > { %s1757_s6 = smul.u32 (%p79_p3), 384, %s2014_s19 }
  0x13   : > { %s2115_s12 = scalar_lea.vmem (%p79_p3), [#allocation3], %s1759_s30 }
  0x14   : > { %s207_s7 = sadd.s32 (%p79_p3), %s1757_s6, %s1641_s5 }
  0x15   : > { %s1643_s8 = sshll.u32 %s207_s7, 2 }
  0x16   : > { %s2110_s11 = scalar_lea.vmem %s2474_s1, %s1643_s8 }
  0x17   : > { %v428_v0 = vld [vmem:[%s2110_s11] sm:$0xff]  ;;  %v430_v1 = vld [vmem:[%s2110_s11 + $0x10] sm:$0xff] }
  0x18   : > { %v432_v2 = vld [vmem:[%s2110_s11 + $0x20] sm:$0xff]  ;;  %429 = vst [vmem:[%s2115_s12] sm:$0xff] %v428_v0  ;;  %431 = vst [vmem:[%s2115_s12 + $0x8] sm:$0xff] %v430_v1  ;;  %v434_v3 = vld [vmem:[%s2110_s11 + $0x30] sm:$0xff] }
  0x19   : > { %433 = vst [vmem:[%s2115_s12 + $0x10] sm:$0xff] %v432_v2  ;;  %v436_v4 = vld [vmem:[%s2110_s11 + $0x40] sm:$0xff]  ;;  %v438_v5 = vld [vmem:[%s2110_s11 + $0x50] sm:$0xff]  ;;  %435 = vst [vmem:[%s2115_s12 + $0x18] sm:$0xff] %v434_v3 }
  0x1a   : > { %437 = vst [vmem:[%s2115_s12 + $0x20] sm:$0xff] %v436_v4  ;;  %439 = vst [vmem:[%s2115_s12 + $0x28] sm:$0xff] %v438_v5  ;;  %v440_v6 = vld [vmem:[%s2110_s11 + $0x60] sm:$0xff]  ;;  %v442_v7 = vld [vmem:[%s2110_s11 + $0x70] sm:$0xff] }
  0x1b   : > { %v444_v8 = vld [vmem:[%s2110_s11 + $0x80] sm:$0xff]  ;;  %441 = vst [vmem:[%s2115_s12 + $0x30] sm:$0xff] %v440_v6  ;;  %443 = vst [vmem:[%s2115_s12 + $0x38] sm:$0xff] %v442_v7  ;;  %v446_v9 = vld [vmem:[%s2110_s11 + $0x90] sm:$0xff] }
  0x1c   : > { %445 = vst [vmem:[%s2115_s12 + $0x40] sm:$0xff] %v444_v8  ;;  %v448_v10 = vld [vmem:[%s2110_s11 + $0xa0] sm:$0xff]  ;;  %v450_v11 = vld [vmem:[%s2110_s11 + $0xb0] sm:$0xff]  ;;  %447 = vst [vmem:[%s2115_s12 + $0x48] sm:$0xff] %v446_v9 }
  0x1d   : > { %449 = vst [vmem:[%s2115_s12 + $0x50] sm:$0xff] %v448_v10  ;;  %451 = vst [vmem:[%s2115_s12 + $0x58] sm:$0xff] %v450_v11  ;;  %v452_v12 = vld [vmem:[%s2110_s11 + $0xc0] sm:$0xff]  ;;  %v454_v13 = vld [vmem:[%s2110_s11 + $0xd0] sm:$0xff] }
  0x1e   : > { %v456_v14 = vld [vmem:[%s2110_s11 + $0xe0] sm:$0xff]  ;;  %453 = vst [vmem:[%s2115_s12 + $0x60] sm:$0xff] %v452_v12  ;;  %455 = vst [vmem:[%s2115_s12 + $0x68] sm:$0xff] %v454_v13  ;;  %v458_v15 = vld [vmem:[%s2110_s11 + $0xf0] sm:$0xff] }
  0x1f   : > { %457 = vst [vmem:[%s2115_s12 + $0x70] sm:$0xff] %v456_v14  ;;  %v460_v16 = vld [vmem:[%s2110_s11 + $0x100] sm:$0xff]  ;;  %v462_v17 = vld [vmem:[%s2110_s11 + $0x110] sm:$0xff]  ;;  %459 = vst [vmem:[%s2115_s12 + $0x78] sm:$0xff] %v458_v15 }
  0x20   : > { %461 = vst [vmem:[%s2115_s12 + $0x80] sm:$0xff] %v460_v16  ;;  %463 = vst [vmem:[%s2115_s12 + $0x88] sm:$0xff] %v462_v17  ;;  %v464_v18 = vld [vmem:[%s2110_s11 + $0x120] sm:$0xff]  ;;  %v466_v19 = vld [vmem:[%s2110_s11 + $0x130] sm:$0xff] }
  0x21   : > { %v468_v20 = vld [vmem:[%s2110_s11 + $0x140] sm:$0xff]  ;;  %465 = vst [vmem:[%s2115_s12 + $0x90] sm:$0xff] %v464_v18  ;;  %467 = vst [vmem:[%s2115_s12 + $0x98] sm:$0xff] %v466_v19  ;;  %v470_v21 = vld [vmem:[%s2110_s11 + $0x150] sm:$0xff] }
  0x22   : > { %469 = vst [vmem:[%s2115_s12 + $0xa0] sm:$0xff] %v468_v20  ;;  %v472_v22 = vld [vmem:[%s2110_s11 + $0x160] sm:$0xff]  ;;  %v474_v23 = vld [vmem:[%s2110_s11 + $0x170] sm:$0xff]  ;;  %471 = vst [vmem:[%s2115_s12 + $0xa8] sm:$0xff] %v470_v21 }
  0x23   : > { %473 = vst [vmem:[%s2115_s12 + $0xb0] sm:$0xff] %v472_v22  ;;  %475 = vst [vmem:[%s2115_s12 + $0xb8] sm:$0xff] %v474_v23  ;;  %v476_v24 = vld [vmem:[%s2110_s11 + $0x180] sm:$0xff]  ;;  %v478_v25 = vld [vmem:[%s2110_s11 + $0x190] sm:$0xff] }
  0x24   : > { %v480_v26 = vld [vmem:[%s2110_s11 + $0x1a0] sm:$0xff]  ;;  %477 = vst [vmem:[%s2115_s12 + $0xc0] sm:$0xff] %v476_v24  ;;  %479 = vst [vmem:[%s2115_s12 + $0xc8] sm:$0xff] %v478_v25  ;;  %v482_v27 = vld [vmem:[%s2110_s11 + $0x1b0] sm:$0xff] }
  0x25   : > { %481 = vst [vmem:[%s2115_s12 + $0xd0] sm:$0xff] %v480_v26  ;;  %v484_v28 = vld [vmem:[%s2110_s11 + $0x1c0] sm:$0xff]  ;;  %v486_v29 = vld [vmem:[%s2110_s11 + $0x1d0] sm:$0xff]  ;;  %483 = vst [vmem:[%s2115_s12 + $0xd8] sm:$0xff] %v482_v27 }
  0x26   : > { %485 = vst [vmem:[%s2115_s12 + $0xe0] sm:$0xff] %v484_v28  ;;  %487 = vst [vmem:[%s2115_s12 + $0xe8] sm:$0xff] %v486_v29  ;;  %v488_v30 = vld [vmem:[%s2110_s11 + $0x1e0] sm:$0xff]  ;;  %v490_v31 = vld [vmem:[%s2110_s11 + $0x1f0] sm:$0xff] }
  0x27   : > { %v492_v32 = vld [vmem:[%s2110_s11 + $0x200] sm:$0xff]  ;;  %489 = vst [vmem:[%s2115_s12 + $0xf0] sm:$0xff] %v488_v30  ;;  %491 = vst [vmem:[%s2115_s12 + $0xf8] sm:$0xff] %v490_v31  ;;  %v494_v33 = vld [vmem:[%s2110_s11 + $0x210] sm:$0xff] }
  0x28   : > { %493 = vst [vmem:[%s2115_s12 + $0x100] sm:$0xff] %v492_v32  ;;  %v496_v34 = vld [vmem:[%s2110_s11 + $0x220] sm:$0xff]  ;;  %v498_v35 = vld [vmem:[%s2110_s11 + $0x230] sm:$0xff]  ;;  %495 = vst [vmem:[%s2115_s12 + $0x108] sm:$0xff] %v494_v33 }
  0x29   : > { %497 = vst [vmem:[%s2115_s12 + $0x110] sm:$0xff] %v496_v34  ;;  %499 = vst [vmem:[%s2115_s12 + $0x118] sm:$0xff] %v498_v35  ;;  %v500_v36 = vld [vmem:[%s2110_s11 + $0x240] sm:$0xff]  ;;  %v502_v37 = vld [vmem:[%s2110_s11 + $0x250] sm:$0xff] }
  0x2a   : > { %v504_v38 = vld [vmem:[%s2110_s11 + $0x260] sm:$0xff]  ;;  %501 = vst [vmem:[%s2115_s12 + $0x120] sm:$0xff] %v500_v36  ;;  %503 = vst [vmem:[%s2115_s12 + $0x128] sm:$0xff] %v502_v37  ;;  %v506_v39 = vld [vmem:[%s2110_s11 + $0x270] sm:$0xff] }
  0x2b   : > { %505 = vst [vmem:[%s2115_s12 + $0x130] sm:$0xff] %v504_v38  ;;  %v508_v40 = vld [vmem:[%s2110_s11 + $0x280] sm:$0xff]  ;;  %v510_v41 = vld [vmem:[%s2110_s11 + $0x290] sm:$0xff]  ;;  %507 = vst [vmem:[%s2115_s12 + $0x138] sm:$0xff] %v506_v39 }
  0x2c   : > { %509 = vst [vmem:[%s2115_s12 + $0x140] sm:$0xff] %v508_v40  ;;  %511 = vst [vmem:[%s2115_s12 + $0x148] sm:$0xff] %v510_v41  ;;  %v512_v42 = vld [vmem:[%s2110_s11 + $0x2a0] sm:$0xff]  ;;  %v514_v43 = vld [vmem:[%s2110_s11 + $0x2b0] sm:$0xff] }
  0x2d   : > { %v516_v44 = vld [vmem:[%s2110_s11 + $0x2c0] sm:$0xff]  ;;  %513 = vst [vmem:[%s2115_s12 + $0x150] sm:$0xff] %v512_v42  ;;  %515 = vst [vmem:[%s2115_s12 + $0x158] sm:$0xff] %v514_v43  ;;  %v518_v45 = vld [vmem:[%s2110_s11 + $0x2d0] sm:$0xff] }
  0x2e   : > { %517 = vst [vmem:[%s2115_s12 + $0x160] sm:$0xff] %v516_v44  ;;  %v520_v46 = vld [vmem:[%s2110_s11 + $0x2e0] sm:$0xff]  ;;  %v522_v47 = vld [vmem:[%s2110_s11 + $0x2f0] sm:$0xff]  ;;  %519 = vst [vmem:[%s2115_s12 + $0x168] sm:$0xff] %v518_v45 }
  0x2f   : > { %521 = vst [vmem:[%s2115_s12 + $0x170] sm:$0xff] %v520_v46  ;;  %523 = vst [vmem:[%s2115_s12 + $0x178] sm:$0xff] %v522_v47  ;;  %v524_v48 = vld [vmem:[%s2110_s11 + $0x300] sm:$0xff]  ;;  %v526_v49 = vld [vmem:[%s2110_s11 + $0x310] sm:$0xff] }
  0x30   : > { %v528_v50 = vld [vmem:[%s2110_s11 + $0x320] sm:$0xff]  ;;  %525 = vst [vmem:[%s2115_s12 + $0x180] sm:$0xff] %v524_v48  ;;  %527 = vst [vmem:[%s2115_s12 + $0x188] sm:$0xff] %v526_v49  ;;  %v530_v51 = vld [vmem:[%s2110_s11 + $0x330] sm:$0xff] }
  0x31   : > { %529 = vst [vmem:[%s2115_s12 + $0x190] sm:$0xff] %v528_v50  ;;  %v532_v52 = vld [vmem:[%s2110_s11 + $0x340] sm:$0xff]  ;;  %v534_v53 = vld [vmem:[%s2110_s11 + $0x350] sm:$0xff]  ;;  %531 = vst [vmem:[%s2115_s12 + $0x198] sm:$0xff] %v530_v51 }
  0x32   : > { %533 = vst [vmem:[%s2115_s12 + $0x1a0] sm:$0xff] %v532_v52  ;;  %535 = vst [vmem:[%s2115_s12 + $0x1a8] sm:$0xff] %v534_v53  ;;  %v536_v54 = vld [vmem:[%s2110_s11 + $0x360] sm:$0xff]  ;;  %v538_v55 = vld [vmem:[%s2110_s11 + $0x370] sm:$0xff] }
  0x33   : > { %v540_v56 = vld [vmem:[%s2110_s11 + $0x380] sm:$0xff]  ;;  %537 = vst [vmem:[%s2115_s12 + $0x1b0] sm:$0xff] %v536_v54  ;;  %539 = vst [vmem:[%s2115_s12 + $0x1b8] sm:$0xff] %v538_v55  ;;  %v542_v57 = vld [vmem:[%s2110_s11 + $0x390] sm:$0xff] }
  0x34   : > { %541 = vst [vmem:[%s2115_s12 + $0x1c0] sm:$0xff] %v540_v56  ;;  %v544_v58 = vld [vmem:[%s2110_s11 + $0x3a0] sm:$0xff]  ;;  %v546_v59 = vld [vmem:[%s2110_s11 + $0x3b0] sm:$0xff]  ;;  %543 = vst [vmem:[%s2115_s12 + $0x1c8] sm:$0xff] %v542_v57 }
  0x35   : > { %545 = vst [vmem:[%s2115_s12 + $0x1d0] sm:$0xff] %v544_v58  ;;  %547 = vst [vmem:[%s2115_s12 + $0x1d8] sm:$0xff] %v546_v59  ;;  %v548_v60 = vld [vmem:[%s2110_s11 + $0x3c0] sm:$0xff]  ;;  %v550_v61 = vld [vmem:[%s2110_s11 + $0x3d0] sm:$0xff] }
  0x36   : > { %v552_v62 = vld [vmem:[%s2110_s11 + $0x3e0] sm:$0xff]  ;;  %549 = vst [vmem:[%s2115_s12 + $0x1e0] sm:$0xff] %v548_v60  ;;  %551 = vst [vmem:[%s2115_s12 + $0x1e8] sm:$0xff] %v550_v61  ;;  %v554_v63 = vld [vmem:[%s2110_s11 + $0x3f0] sm:$0xff] }
  0x37   : > { %553 = vst [vmem:[%s2115_s12 + $0x1f0] sm:$0xff] %v552_v62  ;;  %v556_v0 = vld [vmem:[%s2110_s11 + $0x400] sm:$0xff]  ;;  %v558_v1 = vld [vmem:[%s2110_s11 + $0x410] sm:$0xff]  ;;  %555 = vst [vmem:[%s2115_s12 + $0x1f8] sm:$0xff] %v554_v63 }
  0x38   : > { %557 = vst [vmem:[%s2115_s12 + $0x200] sm:$0xff] %v556_v0  ;;  %559 = vst [vmem:[%s2115_s12 + $0x208] sm:$0xff] %v558_v1  ;;  %v560_v2 = vld [vmem:[%s2110_s11 + $0x420] sm:$0xff]  ;;  %v562_v3 = vld [vmem:[%s2110_s11 + $0x430] sm:$0xff] }
  0x39   : > { %v564_v4 = vld [vmem:[%s2110_s11 + $0x440] sm:$0xff]  ;;  %561 = vst [vmem:[%s2115_s12 + $0x210] sm:$0xff] %v560_v2  ;;  %563 = vst [vmem:[%s2115_s12 + $0x218] sm:$0xff] %v562_v3  ;;  %v566_v5 = vld [vmem:[%s2110_s11 + $0x450] sm:$0xff] }
  0x3a   : > { %565 = vst [vmem:[%s2115_s12 + $0x220] sm:$0xff] %v564_v4  ;;  %v568_v6 = vld [vmem:[%s2110_s11 + $0x460] sm:$0xff]  ;;  %v570_v7 = vld [vmem:[%s2110_s11 + $0x470] sm:$0xff]  ;;  %567 = vst [vmem:[%s2115_s12 + $0x228] sm:$0xff] %v566_v5 }
  0x3b   : > { %569 = vst [vmem:[%s2115_s12 + $0x230] sm:$0xff] %v568_v6  ;;  %571 = vst [vmem:[%s2115_s12 + $0x238] sm:$0xff] %v570_v7  ;;  %v572_v8 = vld [vmem:[%s2110_s11 + $0x480] sm:$0xff]  ;;  %v574_v9 = vld [vmem:[%s2110_s11 + $0x490] sm:$0xff] }
  0x3c   : > { %v576_v10 = vld [vmem:[%s2110_s11 + $0x4a0] sm:$0xff]  ;;  %573 = vst [vmem:[%s2115_s12 + $0x240] sm:$0xff] %v572_v8  ;;  %575 = vst [vmem:[%s2115_s12 + $0x248] sm:$0xff] %v574_v9  ;;  %v578_v11 = vld [vmem:[%s2110_s11 + $0x4b0] sm:$0xff] }
  0x3d   : > { %577 = vst [vmem:[%s2115_s12 + $0x250] sm:$0xff] %v576_v10  ;;  %v580_v12 = vld [vmem:[%s2110_s11 + $0x4c0] sm:$0xff]  ;;  %v582_v13 = vld [vmem:[%s2110_s11 + $0x4d0] sm:$0xff]  ;;  %579 = vst [vmem:[%s2115_s12 + $0x258] sm:$0xff] %v578_v11 }
  0x3e   : > { %581 = vst [vmem:[%s2115_s12 + $0x260] sm:$0xff] %v580_v12  ;;  %583 = vst [vmem:[%s2115_s12 + $0x268] sm:$0xff] %v582_v13  ;;  %v584_v14 = vld [vmem:[%s2110_s11 + $0x4e0] sm:$0xff]  ;;  %v586_v15 = vld [vmem:[%s2110_s11 + $0x4f0] sm:$0xff] }
  0x3f   : > { %v588_v16 = vld [vmem:[%s2110_s11 + $0x500] sm:$0xff]  ;;  %585 = vst [vmem:[%s2115_s12 + $0x270] sm:$0xff] %v584_v14  ;;  %587 = vst [vmem:[%s2115_s12 + $0x278] sm:$0xff] %v586_v15  ;;  %v590_v17 = vld [vmem:[%s2110_s11 + $0x510] sm:$0xff] }
  0x40   : > { %589 = vst [vmem:[%s2115_s12 + $0x280] sm:$0xff] %v588_v16  ;;  %v592_v18 = vld [vmem:[%s2110_s11 + $0x520] sm:$0xff]  ;;  %v594_v19 = vld [vmem:[%s2110_s11 + $0x530] sm:$0xff]  ;;  %591 = vst [vmem:[%s2115_s12 + $0x288] sm:$0xff] %v590_v17 }
  0x41   : > { %593 = vst [vmem:[%s2115_s12 + $0x290] sm:$0xff] %v592_v18  ;;  %595 = vst [vmem:[%s2115_s12 + $0x298] sm:$0xff] %v594_v19  ;;  %v596_v20 = vld [vmem:[%s2110_s11 + $0x540] sm:$0xff]  ;;  %v598_v21 = vld [vmem:[%s2110_s11 + $0x550] sm:$0xff] }
  0x42   : > { %v600_v22 = vld [vmem:[%s2110_s11 + $0x560] sm:$0xff]  ;;  %597 = vst [vmem:[%s2115_s12 + $0x2a0] sm:$0xff] %v596_v20  ;;  %599 = vst [vmem:[%s2115_s12 + $0x2a8] sm:$0xff] %v598_v21  ;;  %v602_v23 = vld [vmem:[%s2110_s11 + $0x570] sm:$0xff] }
  0x43   : > { %601 = vst [vmem:[%s2115_s12 + $0x2b0] sm:$0xff] %v600_v22  ;;  %v604_v24 = vld [vmem:[%s2110_s11 + $0x580] sm:$0xff]  ;;  %v606_v25 = vld [vmem:[%s2110_s11 + $0x590] sm:$0xff]  ;;  %603 = vst [vmem:[%s2115_s12 + $0x2b8] sm:$0xff] %v602_v23 }
  0x44   : > { %605 = vst [vmem:[%s2115_s12 + $0x2c0] sm:$0xff] %v604_v24  ;;  %607 = vst [vmem:[%s2115_s12 + $0x2c8] sm:$0xff] %v606_v25  ;;  %v608_v26 = vld [vmem:[%s2110_s11 + $0x5a0] sm:$0xff]  ;;  %v610_v27 = vld [vmem:[%s2110_s11 + $0x5b0] sm:$0xff] }
  0x45   : > { %v612_v28 = vld [vmem:[%s2110_s11 + $0x5c0] sm:$0xff]  ;;  %609 = vst [vmem:[%s2115_s12 + $0x2d0] sm:$0xff] %v608_v26  ;;  %611 = vst [vmem:[%s2115_s12 + $0x2d8] sm:$0xff] %v610_v27  ;;  %v614_v29 = vld [vmem:[%s2110_s11 + $0x5d0] sm:$0xff] }
  0x46   : > { %613 = vst [vmem:[%s2115_s12 + $0x2e0] sm:$0xff] %v612_v28  ;;  %v616_v30 = vld [vmem:[%s2110_s11 + $0x5e0] sm:$0xff]  ;;  %v618_v31 = vld [vmem:[%s2110_s11 + $0x5f0] sm:$0xff]  ;;  %615 = vst [vmem:[%s2115_s12 + $0x2e8] sm:$0xff] %v614_v29 }
  0x47   : > { %617 = vst [vmem:[%s2115_s12 + $0x2f0] sm:$0xff] %v616_v30  ;;  %619 = vst [vmem:[%s2115_s12 + $0x2f8] sm:$0xff] %v618_v31 }
  0x48 PF: > { %p1644_p7 = scmp.ge.s32.totalorder %s2022_s21, 1  ;;  %p640_p8 = scmp.lt.s32.totalorder %s2022_s21, 13 }
  0x4a   : > { %p641_p9 = pnand %p1644_p7, %p640_p8 }
  0x4b   : > { %s647_s13 = sand.u32 (!%p641_p9), 1, %s1998_s15   ;;  %s693_s14 = smul.u32 (!%p641_p9), 6, %s2006_s17 }
  0x4c   : > { %644 = sbr.rel (%p641_p9) target bundleno = 437 (0x1b5), region = 70  ;;  %s1646_s25 = sshll.u32 (!%p641_p9), %s2010_s18, 1 }
  0x4d   : > { %s1760_s24 = smul.u32 (!%p641_p9), 768, %s647_s13  ;;  %p696_p10 = scmp.lt.s32.totalorder (!%p641_p9), %s693_s14, 35 }
  0x4e   : > { %p706_p11 = scmp.lt.s32.totalorder (!%p641_p9), %s1646_s25, 3  ;;  %p1650_p12 = scmp.ne.s32.totalorder (!%p641_p9), %s2006_s17, 0 }
  0x4f   : > { %s2332_s13 = scalar_lea.vmem (!%p641_p9), [#allocation3], %s1760_s24 }
  0x51   : > { %s2491_s14 = smov (!%p696_p10, %s693_s14), 35  ;;  %s2493_s25 = smov (!%p706_p11, %s1646_s25), 3 }
  0x52   : > { %s1645_s26 = sshll.u32 %s2491_s14, 2  ;;  %s708_s15 = scalar_lea.vmem %s2475_s2, %s2493_s25 }
  0x53   : > { %s2316_s30 = scalar_lea.vmem %s2473_s0, %s1645_s26  ;;  %s713_s8 = scalar_lea.vmem %s2476_s3, %s2493_s25 }
  0x54   : > { %s1649_s9 = sshll.u32 %s2493_s25, 2  ;;  %728 = sbr.rel (%p1650_p12) target bundleno = 91 (0x5b), region = 78 }
  0x55   : > { %s2330_s12 = scalar_lea.vmem %s2477_s4, %s1649_s9 }
  0x59   : > { %v2024_v32 = vmov 0.0  }
  0x5a   : > { %729 = vst [vmem:[#allocation2] sm:$0xff] %v2024_v32  ;;  %730 = vst [vmem:[#allocation2 + $0x8] sm:$0xff] %v2024_v32 }
  0x5b PF: > { %v1818_v33 = vld [vmem:[%s2332_s13 + $0x74] ss:$8 sps:$4 sm:$0xff]   ;;  %v1822_v35 = vld [vmem:[%s2332_s13 + $0x70] ss:$8 sps:$4 sm:$0xff]   ;;  %v1824_v37 = vld [vmem:[%s2332_s13 + $0x64] ss:$8 sps:$4 sm:$0xff]  }
  0x5c   : > { %v1820_v34 = vld [vmem:[%s2332_s13 + $0x174] ss:$8 sps:$4 sm:$0xff]   ;;  %1333 = vmatprep.subr.bf16.mxu0 %v1818_v33  ;;  %v1823_v36 = vld [vmem:[%s2332_s13 + $0x170] ss:$8 sps:$4 sm:$0xff]   ;;  %v1826_v38 = vld [vmem:[%s2332_s13 + $0x164] ss:$8 sps:$4 sm:$0xff]  }
  0x5d   : > { %1374 = vmatprep.subr.bf16.mxu1 %v1820_v34  ;;  %1334 = vmatpush1.bf16.msra.mxu0 %v1822_v35  ;;  %v1828_v39 = vld [vmem:[%s2332_s13 + $0x60] ss:$8 sps:$4 sm:$0xff]   ;;  %v1830_v41 = vld [vmem:[%s2332_s13 + $0x54] ss:$8 sps:$4 sm:$0xff]   ;;  %v1834_v43 = vld [vmem:[%s2332_s13 + $0x50] ss:$8 sps:$4 sm:$0xff]  }
  0x5e   : > { %1375 = vmatpush1.bf16.msra.mxu1 %v1823_v36  ;;  %1335 = vmatprep.subr.bf16.mxu0 %v1824_v37  ;;  %v1829_v40 = vld [vmem:[%s2332_s13 + $0x160] ss:$8 sps:$4 sm:$0xff]   ;;  %v1832_v42 = vld [vmem:[%s2332_s13 + $0x154] ss:$8 sps:$4 sm:$0xff]   ;;  %v1835_v44 = vld [vmem:[%s2332_s13 + $0x150] ss:$8 sps:$4 sm:$0xff]  }
  0x5f   : > { %1376 = vmatprep.subr.bf16.mxu1 %v1826_v38  ;;  %v1836_v45 = vld [vmem:[%s2332_s13 + $0x44] ss:$8 sps:$4 sm:$0xff]   ;;  %v1840_v47 = vld [vmem:[%s2332_s13 + $0x40] ss:$8 sps:$4 sm:$0xff]   ;;  %v1842_v49 = vld [vmem:[%s2332_s13 + $0x34] ss:$8 sps:$4 sm:$0xff]  }
  0x60   : > { %v1838_v46 = vld [vmem:[%s2332_s13 + $0x144] ss:$8 sps:$4 sm:$0xff]   ;;  %v1841_v48 = vld [vmem:[%s2332_s13 + $0x140] ss:$8 sps:$4 sm:$0xff]   ;;  %v1844_v50 = vld [vmem:[%s2332_s13 + $0x134] ss:$8 sps:$4 sm:$0xff]  }
  0x61   : > { %1336 = vmatpush1.bf16.msra.mxu0 %v1828_v39  ;;  %v1846_v51 = vld [vmem:[%s2332_s13 + $0x30] ss:$8 sps:$4 sm:$0xff]   ;;  %v1848_v53 = vld [vmem:[%s2332_s13 + $0x24] ss:$8 sps:$4 sm:$0xff]   ;;  %v1852_v55 = vld [vmem:[%s2332_s13 + $0x20] ss:$8 sps:$4 sm:$0xff]  }
  0x62   : > { %1377 = vmatpush1.bf16.msra.mxu1 %v1829_v40  ;;  %1337 = vmatprep.subr.bf16.mxu0 %v1830_v41  ;;  %v1847_v52 = vld [vmem:[%s2332_s13 + $0x130] ss:$8 sps:$4 sm:$0xff]   ;;  %v1850_v54 = vld [vmem:[%s2332_s13 + $0x124] ss:$8 sps:$4 sm:$0xff]   ;;  %v1853_v56 = vld [vmem:[%s2332_s13 + $0x120] ss:$8 sps:$4 sm:$0xff]  }
  0x63   : > { %1378 = vmatprep.subr.bf16.mxu1 %v1832_v42  ;;  %v1854_v57 = vld [vmem:[%s2332_s13 + $0x14] ss:$8 sps:$4 sm:$0xff]   ;;  %v1858_v59 = vld [vmem:[%s2332_s13 + $0x10] ss:$8 sps:$4 sm:$0xff]   ;;  %v1860_v61 = vld [vmem:[%s2332_s13 + $0x4] ss:$8 sps:$4 sm:$0xff]  }
  0x64   : > { %v1856_v58 = vld [vmem:[%s2332_s13 + $0x114] ss:$8 sps:$4 sm:$0xff]   ;;  %v1859_v60 = vld [vmem:[%s2332_s13 + $0x110] ss:$8 sps:$4 sm:$0xff]   ;;  %v1862_v62 = vld [vmem:[%s2332_s13 + $0x104] ss:$8 sps:$4 sm:$0xff]  }
  0x65   : > { %1338 = vmatpush1.bf16.msra.mxu0 %v1834_v43  ;;  %v1864_v63 = vld [vmem:[%s2332_s13] ss:$8 sps:$4 sm:$0xff]   ;;  %v1866_v1 = vld [vmem:[%s2332_s13 + $0xf4] ss:$8 sps:$4 sm:$0xff]   ;;  %v1870_v3 = vld [vmem:[%s2332_s13 + $0xf0] ss:$8 sps:$4 sm:$0xff]  }
  0x66   : > { %1379 = vmatpush1.bf16.msra.mxu1 %v1835_v44  ;;  %1339 = vmatprep.subr.bf16.mxu0 %v1836_v45  ;;  %v1865_v0 = vld [vmem:[%s2332_s13 + $0x100] ss:$8 sps:$4 sm:$0xff]   ;;  %v1868_v2 = vld [vmem:[%s2332_s13 + $0x1f4] ss:$8 sps:$4 sm:$0xff]   ;;  %v1871_v4 = vld [vmem:[%s2332_s13 + $0x1f0] ss:$8 sps:$4 sm:$0xff]  }
  0x67   : > { %1380 = vmatprep.subr.bf16.mxu1 %v1838_v46  ;;  %v1872_v5 = vld [vmem:[%s2332_s13 + $0xe4] ss:$8 sps:$4 sm:$0xff]   ;;  %v1876_v7 = vld [vmem:[%s2332_s13 + $0xe0] ss:$8 sps:$4 sm:$0xff]   ;;  %v1878_v9 = vld [vmem:[%s2332_s13 + $0xd4] ss:$8 sps:$4 sm:$0xff]  }
  0x68   : > { %v1874_v6 = vld [vmem:[%s2332_s13 + $0x1e4] ss:$8 sps:$4 sm:$0xff]   ;;  %v1877_v8 = vld [vmem:[%s2332_s13 + $0x1e0] ss:$8 sps:$4 sm:$0xff]   ;;  %v1880_v10 = vld [vmem:[%s2332_s13 + $0x1d4] ss:$8 sps:$4 sm:$0xff]  }
  0x69   : > { %1340 = vmatpush1.bf16.msra.mxu0 %v1840_v47  ;;  %v1882_v11 = vld [vmem:[%s2332_s13 + $0xd0] ss:$8 sps:$4 sm:$0xff]   ;;  %v1884_v13 = vld [vmem:[%s2332_s13 + $0xc4] ss:$8 sps:$4 sm:$0xff]   ;;  %v1888_v18 = vld [vmem:[%s2332_s13 + $0xc0] ss:$8 sps:$4 sm:$0xff]  }
  0x6a   : > { %1381 = vmatpush1.bf16.msra.mxu1 %v1841_v48  ;;  %1341 = vmatprep.subr.bf16.mxu0 %v1842_v49  ;;  %v1883_v12 = vld [vmem:[%s2332_s13 + $0x1d0] ss:$8 sps:$4 sm:$0xff]   ;;  %v1886_v14 = vld [vmem:[%s2332_s13 + $0x1c4] ss:$8 sps:$4 sm:$0xff]   ;;  %v1889_v19 = vld [vmem:[%s2332_s13 + $0x1c0] ss:$8 sps:$4 sm:$0xff]  }
  0x6b   : > { %1382 = vmatprep.subr.bf16.mxu1 %v1844_v50  ;;  %v733_v15 = vld [vmem:[%s2316_s30] sm:$0xff]  ;;  %v734_v17 = vld [vmem:[%s2316_s30 + $0x8] sm:$0xff]  ;;  %v1896_v25 = vld [vmem:[%s2332_s13 + $0xa4] ss:$8 sps:$4 sm:$0xff]   ;;  %p1753_p13 = scmp.ne.s32.totalorder %s2006_s17, 5 }
  0x6c   : > { %v1652_v16 = vcombine.high %v733_v15, %v733_v15  ;;  %v1654_v20 = vcombine.high %v734_v17, %v734_v17  ;;  %v1890_v21 = vld [vmem:[%s2332_s13 + $0xb4] ss:$8 sps:$4 sm:$0xff]   ;;  %v1894_v23 = vld [vmem:[%s2332_s13 + $0xb0] ss:$8 sps:$4 sm:$0xff]   ;;  %v1898_v26 = vld [vmem:[%s2332_s13 + $0x1a4] ss:$8 sps:$4 sm:$0xff]   ;;  %v1651_v38 = vcombine.low %v733_v15, %v733_v15  ;;  %v1653_v39 = vcombine.low %v734_v17, %v734_v17 }
  0x6d   : > { %1342 = vmatpush1.bf16.msra.mxu0 %v1846_v51  ;;  %v1892_v22 = vld [vmem:[%s2332_s13 + $0x1b4] ss:$8 sps:$4 sm:$0xff]   ;;  %v1895_v24 = vld [vmem:[%s2332_s13 + $0x1b0] ss:$8 sps:$4 sm:$0xff]   ;;  %v1900_v27 = vld [vmem:[%s2332_s13 + $0xa0] ss:$8 sps:$4 sm:$0xff]  }
  0x6e   : > { %1383 = vmatpush1.bf16.msra.mxu1 %v1847_v52  ;;  %1343 = vmatprep.subr.bf16.mxu0 %v1848_v53  ;;  %v1901_v28 = vld [vmem:[%s2332_s13 + $0x1a0] ss:$8 sps:$4 sm:$0xff]   ;;  %v1902_v29 = vld [vmem:[%s2332_s13 + $0x94] ss:$8 sps:$4 sm:$0xff]   ;;  %v1906_v31 = vld [vmem:[%s2332_s13 + $0x90] ss:$8 sps:$4 sm:$0xff]  }
  0x6f   : > { %1384 = vmatprep.subr.bf16.mxu1 %v1850_v54  ;;  %1365 = vmatprep.mubr.bf16.mxu0 %v1652_v16  ;;  %v1904_v30 = vld [vmem:[%s2332_s13 + $0x194] ss:$8 sps:$4 sm:$0xff]   ;;  %v1907_v32 = vld [vmem:[%s2332_s13 + $0x190] ss:$8 sps:$4 sm:$0xff]   ;;  %v1908_v33 = vld [vmem:[%s2332_s13 + $0x84] ss:$8 sps:$4 sm:$0xff]  }
  0x70   : > { %1406 = vmatprep.mubr.bf16.mxu1 %v1654_v20  ;;  %v1910_v34 = vld [vmem:[%s2332_s13 + $0x184] ss:$8 sps:$4 sm:$0xff]   ;;  %v1912_v35 = vld [vmem:[%s2332_s13 + $0x80] ss:$8 sps:$4 sm:$0xff]   ;;  %v1920_v37 = vld [vmem:[%s2332_s13 + $0x274] ss:$8 sps:$4 sm:$0xff]  }
  0x71   : > { %1344 = vmatpush1.bf16.msra.mxu0 %v1852_v55  ;;  %v1913_v36 = vld [vmem:[%s2332_s13 + $0x180] ss:$8 sps:$4 sm:$0xff]   ;;  %v1918_v40 = vld [vmem:[%s2332_s13 + $0x270] ss:$8 sps:$4 sm:$0xff]   ;;  %v1923_v42 = vld [vmem:[%s2332_s13 + $0x264] ss:$8 sps:$4 sm:$0xff]  }
  0x72   : > { %1385 = vmatpush1.bf16.msra.mxu1 %v1853_v56  ;;  %1345 = vmatprep.subr.bf16.mxu0 %v1854_v57  ;;  %v2404_v41 = vld [vmem:[%s2316_s30 + $0x10] sm:$0xff]  ;;  %v1926_v45 = vld [vmem:[%s2332_s13 + $0x254] ss:$8 sps:$4 sm:$0xff]   ;;  %v1924_v46 = vld [vmem:[%s2332_s13 + $0x250] ss:$8 sps:$4 sm:$0xff]  }
  0x73   : > { %1386 = vmatprep.subr.bf16.mxu1 %v1856_v58  ;;  %v1656_v43 = vcombine.high %v2404_v41, %v2404_v41  ;;  %v1921_v44 = vld [vmem:[%s2332_s13 + $0x260] ss:$8 sps:$4 sm:$0xff]   ;;  %v1929_v47 = vld [vmem:[%s2332_s13 + $0x244] ss:$8 sps:$4 sm:$0xff]   ;;  %v1932_v49 = vld [vmem:[%s2332_s13 + $0x234] ss:$8 sps:$4 sm:$0xff]  }
  0x74   : > { %v1927_v48 = vld [vmem:[%s2332_s13 + $0x240] ss:$8 sps:$4 sm:$0xff]   ;;  %v1930_v50 = vld [vmem:[%s2332_s13 + $0x230] ss:$8 sps:$4 sm:$0xff]   ;;  %v1935_v51 = vld [vmem:[%s2332_s13 + $0x224] ss:$8 sps:$4 sm:$0xff]  }
  0x75   : > { %1346 = vmatpush1.bf16.msra.mxu0 %v1858_v59  ;;  %v1933_v52 = vld [vmem:[%s2332_s13 + $0x220] ss:$8 sps:$4 sm:$0xff]   ;;  %v1938_v53 = vld [vmem:[%s2332_s13 + $0x214] ss:$8 sps:$4 sm:$0xff]   ;;  %v1936_v54 = vld [vmem:[%s2332_s13 + $0x210] ss:$8 sps:$4 sm:$0xff]  }
  0x76   : > { %1387 = vmatpush1.bf16.msra.mxu1 %v1859_v60  ;;  %1347 = vmatprep.subr.bf16.mxu0 %v1860_v61  ;;  %v1941_v55 = vld [vmem:[%s2332_s13 + $0x204] ss:$8 sps:$4 sm:$0xff]   ;;  %v1939_v56 = vld [vmem:[%s2332_s13 + $0x200] ss:$8 sps:$4 sm:$0xff]   ;;  %v1944_v57 = vld [vmem:[%s2332_s13 + $0x2f4] ss:$8 sps:$4 sm:$0xff]  }
  0x77   : > { %1388 = vmatprep.subr.bf16.mxu1 %v1862_v62  ;;  %v1942_v58 = vld [vmem:[%s2332_s13 + $0x2f0] ss:$8 sps:$4 sm:$0xff]   ;;  %v1947_v59 = vld [vmem:[%s2332_s13 + $0x2e4] ss:$8 sps:$4 sm:$0xff]   ;;  %v1945_v60 = vld [vmem:[%s2332_s13 + $0x2e0] ss:$8 sps:$4 sm:$0xff]  }
  0x78   : > { %v1950_v61 = vld [vmem:[%s2332_s13 + $0x2d4] ss:$8 sps:$4 sm:$0xff]   ;;  %v1948_v62 = vld [vmem:[%s2332_s13 + $0x2d0] ss:$8 sps:$4 sm:$0xff]  }
  0x79   : > { %1348 = vmatpush1.bf16.msra.mxu0 %v1864_v63  ;;  %v1953_v63 = vld [vmem:[%s2332_s13 + $0x2c4] ss:$8 sps:$4 sm:$0xff]  }
  0x7a   : > { %1389 = vmatpush1.bf16.msra.mxu1 %v1865_v0  ;;  %1349 = vmatprep.subr.bf16.mxu0 %v1866_v1  ;;  %v1951_v0 = vld [vmem:[%s2332_s13 + $0x2c0] ss:$8 sps:$4 sm:$0xff]   ;;  %v1956_v1 = vld [vmem:[%s2332_s13 + $0x2b4] ss:$8 sps:$4 sm:$0xff]  }
  0x7b   : > { %1390 = vmatprep.subr.bf16.mxu1 %v1868_v2  ;;  %v1954_v2 = vld [vmem:[%s2332_s13 + $0x2b0] ss:$8 sps:$4 sm:$0xff]  }
  0x7d   : > { %1350 = vmatpush2.bf16.msra.mxu0 %v1870_v3  ;;  %v1959_v3 = vld [vmem:[%s2332_s13 + $0x2a4] ss:$8 sps:$4 sm:$0xff]  }
  0x7e   : > { %1391 = vmatpush2.bf16.msra.mxu1 %v1871_v4  ;;  %1351 = vmatprep.subr.bf16.mxu0 %v1872_v5  ;;  %v1957_v4 = vld [vmem:[%s2332_s13 + $0x2a0] ss:$8 sps:$4 sm:$0xff]   ;;  %v1962_v5 = vld [vmem:[%s2332_s13 + $0x294] ss:$8 sps:$4 sm:$0xff]  }
  0x7f   : > { %1392 = vmatprep.subr.bf16.mxu1 %v1874_v6  ;;  %v1960_v6 = vld [vmem:[%s2332_s13 + $0x290] ss:$8 sps:$4 sm:$0xff]  }
  0x81   : > { %1352 = vmatpush2.bf16.msra.mxu0 %v1876_v7  ;;  %v1965_v7 = vld [vmem:[%s2332_s13 + $0x284] ss:$8 sps:$4 sm:$0xff]  }
  0x82   : > { %1393 = vmatpush2.bf16.msra.mxu1 %v1877_v8  ;;  %1353 = vmatprep.subr.bf16.mxu0 %v1878_v9  ;;  %v1963_v8 = vld [vmem:[%s2332_s13 + $0x280] ss:$8 sps:$4 sm:$0xff]   ;;  %v1655_v9 = vcombine.low %v2404_v41, %v2404_v41 }
  0x83   : > { %1394 = vmatprep.subr.bf16.mxu1 %v1880_v10 }
  0x85   : > { %1354 = vmatpush2.bf16.msra.mxu0 %v1882_v11 }
  0x86   : > { %1395 = vmatpush2.bf16.msra.mxu1 %v1883_v12  ;;  %1355 = vmatprep.subr.bf16.mxu0 %v1884_v13 }
  0x87   : > { %1396 = vmatprep.subr.bf16.mxu1 %v1886_v14 }
  0x89   : > { %1356 = vmatpush2.bf16.msra.mxu0 %v1888_v18 }
  0x8a   : > { %1397 = vmatpush2.bf16.msra.mxu1 %v1889_v19  ;;  %1357 = vmatprep.subr.bf16.mxu0 %v1890_v21  ;;  %v731_v19 = vld [vmem:[#allocation2] sm:$0xff] }
  0x8b   : > { %1398 = vmatprep.subr.bf16.mxu1 %v1892_v22 }
  0x8d   : > { %1358 = vmatpush2.bf16.msra.mxu0 %v1894_v23  ;;  %v732_v23 = vld [vmem:[#allocation2 + $0x8] sm:$0xff] }
  0x8e   : > { %1399 = vmatpush2.bf16.msra.mxu1 %v1895_v24  ;;  %1359 = vmatprep.subr.bf16.mxu0 %v1896_v25 }
  0x8f   : > { %1400 = vmatprep.subr.bf16.mxu1 %v1898_v26 }
  0x91   : > { %1360 = vmatpush2.bf16.msra.mxu0 %v1900_v27 }
  0x92   : > { %1401 = vmatpush2.bf16.msra.mxu1 %v1901_v28  ;;  %1361 = vmatprep.subr.bf16.mxu0 %v1902_v29 }
  0x93   : > { %1402 = vmatprep.subr.bf16.mxu1 %v1904_v30 }
  0x95   : > { %1362 = vmatpush2.bf16.msra.mxu0 %v1906_v31 }
  0x96   : > { %1403 = vmatpush2.bf16.msra.mxu1 %v1907_v32  ;;  %1363 = vmatprep.subr.bf16.mxu0 %v1908_v33 }
  0x97   : > { %1404 = vmatprep.subr.bf16.mxu1 %v1910_v34 }
  0x99   : > { %1364 = vmatpush2.bf16.msra.mxu0 %v1912_v35 }
  0x9a   : > { %1405 = vmatpush2.bf16.msra.mxu1 %v1913_v36  ;;  %1415 = vmatprep.subr.bf16.mxu0 %v1920_v37 }
  0x9c   : > { %1366 = vmatmul.mubr.bf16.vlgmr.msra.gmra.mxu0 %v1651_v38 }
  0x9d   : > { %1407 = vmatmul.mubr.bf16.vlgmr.msra.gmra.mxu1 %v1653_v39  ;;  %1416 = vmatpush1.bf16.msra.mxu0 %v1918_v40 }
  0x9e   : > { %1447 = vmatprep.mubr.bf16.mxu0 %v1656_v43  ;;  %1417 = vmatprep.subr.bf16.mxu0 %v1923_v42 }
  0xa1   : > { %1418 = vmatpush1.bf16.msra.mxu0 %v1921_v44 }
  0xa2   : > { %1419 = vmatprep.subr.bf16.mxu0 %v1926_v45 }
  0xa5   : > { %1420 = vmatpush1.bf16.msra.mxu0 %v1924_v46 }
  0xa6   : > { %1421 = vmatprep.subr.bf16.mxu0 %v1929_v47 }
  0xa9   : > { %1422 = vmatpush1.bf16.msra.mxu0 %v1927_v48 }
  0xaa   : > { %1423 = vmatprep.subr.bf16.mxu0 %v1932_v49 }
  0xad   : > { %1424 = vmatpush1.bf16.msra.mxu0 %v1930_v50 }
  0xae   : > { %1425 = vmatprep.subr.bf16.mxu0 %v1935_v51 }
  0xb1   : > { %1426 = vmatpush1.bf16.msra.mxu0 %v1933_v52 }
  0xb2   : > { %1427 = vmatprep.subr.bf16.mxu0 %v1938_v53 }
  0xb5   : > { %1428 = vmatpush1.bf16.msra.mxu0 %v1936_v54 }
  0xb6   : > { %1429 = vmatprep.subr.bf16.mxu0 %v1941_v55 }
  0xb9   : > { %1430 = vmatpush1.bf16.msra.mxu0 %v1939_v56 }
  0xba   : > { %1431 = vmatprep.subr.bf16.mxu0 %v1944_v57 }
  0xbd   : > { %1432 = vmatpush2.bf16.msra.mxu0 %v1942_v58 }
  0xbe   : > { %1433 = vmatprep.subr.bf16.mxu0 %v1947_v59 }
  0xc1   : > { %1434 = vmatpush2.bf16.msra.mxu0 %v1945_v60 }
  0xc2   : > { %1435 = vmatprep.subr.bf16.mxu0 %v1950_v61 }
  0xc5   : > { %1436 = vmatpush2.bf16.msra.mxu0 %v1948_v62 }
  0xc6   : > { %1437 = vmatprep.subr.bf16.mxu0 %v1953_v63 }
  0xc9   : > { %1438 = vmatpush2.bf16.msra.mxu0 %v1951_v0 }
  0xca   : > { %1439 = vmatprep.subr.bf16.mxu0 %v1956_v1 }
  0xcd   : > { %1440 = vmatpush2.bf16.msra.mxu0 %v1954_v2 }
  0xce   : > { %1441 = vmatprep.subr.bf16.mxu0 %v1959_v3 }
  0xd1   : > { %1442 = vmatpush2.bf16.msra.mxu0 %v1957_v4 }
  0xd2   : > { %1443 = vmatprep.subr.bf16.mxu0 %v1962_v5 }
  0xd5   : > { %1444 = vmatpush2.bf16.msra.mxu0 %v1960_v6 }
  0xd6   : > { %1445 = vmatprep.subr.bf16.mxu0 %v1965_v7 }
  0xd9   : > { %1446 = vmatpush2.bf16.msra.mxu0 %v1963_v8 }
  0xdc   : > { %1448 = vmatmul.mubr.bf16.vlgmr.msra.gmra.mxu0 %v1655_v9 }
 0x15c   : > { %v1367_v10 = vpop.f32.mrf.mxu0 }
 0x15d   : > { %v1408_v11 = vpop.f32.mrf.mxu1 }
 0x15e   : > { %v1369_v12 = vpop.f32.mrf.mxu0  ;;  %v1409_v18 = vadd.f32 %v1408_v11, %v1367_v10 }
 0x15f   : > { %v1410_v13 = vpop.f32.mrf.mxu1 }
 0x160   : > { %v1371_v14 = vpop.f32.mrf.mxu0  ;;  %v1411_v21 = vadd.f32 %v1410_v13, %v1369_v12 }
 0x161   : > { %v1412_v15 = vpop.f32.mrf.mxu1 }
 0x162   : > { %v1372_v16 = vpop.f32.mrf.mxu0 }
 0x163   : > { %v1413_v17 = vpop.f32.mrf.mxu1 }
 0x19c   : > { %v1449_v20 = vpop.f32.mrf.mxu0 }
 0x19d   : > { %v1450_v22 = vadd.f32 %v1449_v20, %v1409_v18 }
 0x19e   : > { %v1451_v24 = vpop.f32.mrf.mxu0 }
 0x19f   : > { %v1456_v25 = vadd.f32 %v1450_v22, %v731_v19  ;;  %v1452_v26 = vadd.f32 %v1451_v24, %v1411_v21  ;;  %1463 = sbr.rel (%p1753_p13) target bundleno = 437 (0x1b5), region = 82 }
 0x1a0   : > { %v1453_v27 = vpop.f32.mrf.mxu0 }
 0x1a1   : > { %1458 = vst [vmem:[#allocation2] sm:$0xff] %v1456_v25  ;;  %v1457_v28 = vadd.f32 %v1452_v26, %v732_v23 }
 0x1a2   : > { %v1454_v29 = vpop.f32.mrf.mxu0 }
 0x1a3   : > { %1459 = vst [vmem:[#allocation2 + $0x8] sm:$0xff] %v1457_v28 }
 0x1a4   : > { %v1468_v30 = vlaneseq  ;;  %v1466_v32 = vld [vmem:[%s708_s15] sm:$0x3] }
 0x1a5   : > { %v1480_v33 = vld [vmem:[%s713_s8] sm:$0x3] }
 0x1a6   : > { %v1469_v31 = vshrl.u32 %v1468_v30, 7 }
 0x1a8   : > { %v1470_v34 = vsub.s32 0, %v1469_v31  ;;  %v1474_v35 = vsub.s32 1, %v1469_v31  ;;  %v1464_v36 = vld [vmem:[#allocation2] sm:$0xff] }
 0x1aa   : > { %v1465_v37 = vld [vmem:[#allocation2 + $0x8] sm:$0xff]  ;;  %v1471_v38 = vrot.slane %v1466_v32, %v1470_v34  ;;  %v1475_v39 = vrot.slane %v1466_v32, %v1474_v35  ;;  %v1485_v40 = vrot.slane %v1480_v33, %v1470_v34  ;;  %v1489_v41 = vrot.slane %v1480_v33, %v1474_v35 }
 0x1ac   : > { %v1478_v42 = vmul.f32 %v1471_v38, %v1464_v36  ;;  %v1479_v43 = vmul.f32 %v1475_v39, %v1465_v37 }
 0x1ae   : > { %v1492_v44 = vadd.f32 %v1485_v40, %v1478_v42  ;;  %v1493_v45 = vadd.f32 %v1489_v41, %v1479_v43 }
 0x1b0   : > { %v1494_v46 = vmax.f32 %v1492_v44, 0.0  ;;  %v1495_v47 = vmax.f32 %v1493_v45, 0.0 }
 0x1b2   : > { %v1758_v48 = vpack.c.bf16 %v1495_v47, %v1494_v46 }
 0x1b4   : > { %1504 = vst [vmem:[%s2330_s12] sm:$0xff] %v1758_v48 }
 0x1b5 PF: > { %s14_s21 = sadd.s32 1, %s2022_s21   ;;  %s2478_s15 = smov %s2002_s16 }
 0x1b6   : > { %p11_p0 = scmp.ge.s32.totalorder %s14_s21, 14   ;;  %s2479_s16 = smov %s2101_s28 }
 0x1b7   : > { %s2480_s17 = smov %s2014_s19  ;;  %s2481_s18 = smov %s2018_s20 }
 0x1b8   : > { %s2482_s19 = smov %s2485_s22  ;;  %s2483_s20 = smov %s2489_s23 }
 0x1b9   :  { %13 = sbr.rel (!%p11_p0) target bundleno = 4 (0x4), region = 126 }

// kernel: simclr_forward.42
= control target key start
LH: loop header
LB: loop body
LE: loop exit
PB: predicated region body
PF: predicated region fallthrough
CT: control target
= control target key end

     0   :  { %s2572_s0 = inlined_call_operand.vmem [shape: bf16[8,4608], index: 0, kind: input, shape index: {}]   ;;  %s2573_s1 = inlined_call_operand.vmem [shape: bf16[4608,512], index: 1, kind: input, shape index: {}]   ;;  %s2574_s2 = inlined_call_operand.vmem [shape: f32[1,512], index: 2, kind: input, shape index: {}]   ;;  %s2575_s3 = inlined_call_operand.vmem [shape: f32[1,512], index: 3, kind: input, shape index: {}]   ;;  %s2576_s4 = inlined_call_operand.vmem [shape: bf16[8,512], index: 4, kind: input, shape index: {}]   ;;  %s2577_s5 = inlined_call_operand.vmem [shape: bf16[8,512], index: 5, kind: output, shape index: {}]  }
   0x1   :  { %2578 = sst [smem:[#allocation4_spill]] %s2573_s1 }
   0x2   :  { %s2143_s18 = smov 0   ;;  %s2145_s19 = smov 0  }
   0x3   :  { %s2147_s20 = smov 0   ;;  %s2149_s21 = smov 0  }
   0x4   :  { %s2151_s22 = smov 0   ;;  %s2153_s23 = smov 0  }
   0x5   :  { %s2155_s24 = smov 0  }
   0x6 LB: > { %s27_s25 = sadd.s32 1, %s2102_s22  ;;  %s30_s26 = sadd.s32 1, %s2106_s23  ;;  %s2110_s24 = sphi %s2155_s24, %s15_s24   ;;  %s2106_s23 = sphi %s2153_s23, %s2585_s23   ;;  %s2102_s22 = sphi %s2151_s22, %s2584_s22   ;;  %s2098_s21 = sphi %s2149_s21, %s2583_s21   ;;  %s2094_s20 = sphi %s2147_s20, %s2582_s20   ;;  %s2090_s19 = sphi %s2145_s19, %s2581_s19   ;;  %s2086_s18 = sphi %s2143_s18, %s2580_s18  }
   0x7   : > { %p28_p0 = scmp.ge.s32.totalorder %s27_s25, 6  ;;  %p78_p1 = scmp.ne.s32.totalorder %s2090_s19, %s2086_s18 }
   0x8   : > { %p79_p2 = scmp.eq.s32.totalorder %s2110_s24, 0  ;;  %s71_s30 = sadd.s32 1, %s2090_s19 }
   0x9   : > { %s2587_s25 = smov (%p28_p0, %s27_s25), 0  ;;  %s2589_s26 = smov (!%p28_p0, %s30_s26), %s2106_s23 }
   0xa   : > { %p80_p3 = por %p79_p2, %p78_p1  ;;  %p32_p4 = scmp.ge.s32.totalorder %s2589_s26, 2 }
   0xb   : > { %s66_s27 = ssub.s32 %s2102_s22, %s2587_s25  ;;  %p1726_p6 = scmp.ge.s32.totalorder %s2110_s24, 12 }
   0xc   : > { %s2591_s26 = smov (%p32_p4, %s2589_s26), 0 }
   0xd   : > { %s67_s28 = ssub.s32 %s2106_s23, %s2591_s26  ;;  %212 = sbr.rel (%p1726_p6) target bundleno = 76 (0x4c), region = 16 }
   0xe   : > { %s68_s29 = sor.u32 %s67_s28, %s66_s27 }
   0xf   : > { %p69_p5 = scmp.eq.s32.totalorder %s68_s29, 0 }
  0x11   : > { %s2194_s6 = scalar_select %p69_p5, %s2090_s19, %s71_s30  }
  0x12   : > { %228 = sbr.rel (!%p80_p3) target bundleno = 76 (0x4c), region = 24  ;;  %s230_s7 = sand.u32 (%p80_p3), 1, %s2090_s19  }
  0x13   : > { %s1847_s8 = smul.u32 (%p80_p3), 768, %s230_s7  ;;  %s1727_s9 = sshll.u32 (%p80_p3), %s2106_s23, 1 }
  0x14   : > { %s1845_s10 = smul.u32 (%p80_p3), 384, %s2102_s22  ;;  %s2579_s1 = sld [smem:[#allocation4_spill]] (%p80_p3) }
  0x15   : > { %s2208_s16 = scalar_lea.vmem (%p80_p3), [#allocation3], %s1847_s8 }
  0x16   : > { %s236_s11 = sadd.s32 (%p80_p3), %s1845_s10, %s1727_s9 }
  0x17   : > { %s1729_s12 = sshll.u32 %s236_s11, 2 }
  0x1a   : > { %s2203_s15 = scalar_lea.vmem %s2579_s1, %s1729_s12 }
  0x1b   : > { %v457_v0 = vld [vmem:[%s2203_s15] sm:$0xff]  ;;  %v459_v1 = vld [vmem:[%s2203_s15 + $0x10] sm:$0xff] }
  0x1c   : > { %v461_v2 = vld [vmem:[%s2203_s15 + $0x20] sm:$0xff]  ;;  %458 = vst [vmem:[%s2208_s16] sm:$0xff] %v457_v0  ;;  %460 = vst [vmem:[%s2208_s16 + $0x8] sm:$0xff] %v459_v1  ;;  %v463_v3 = vld [vmem:[%s2203_s15 + $0x30] sm:$0xff] }
  0x1d   : > { %462 = vst [vmem:[%s2208_s16 + $0x10] sm:$0xff] %v461_v2  ;;  %v465_v4 = vld [vmem:[%s2203_s15 + $0x40] sm:$0xff]  ;;  %v467_v5 = vld [vmem:[%s2203_s15 + $0x50] sm:$0xff]  ;;  %464 = vst [vmem:[%s2208_s16 + $0x18] sm:$0xff] %v463_v3 }
  0x1e   : > { %466 = vst [vmem:[%s2208_s16 + $0x20] sm:$0xff] %v465_v4  ;;  %468 = vst [vmem:[%s2208_s16 + $0x28] sm:$0xff] %v467_v5  ;;  %v469_v6 = vld [vmem:[%s2203_s15 + $0x60] sm:$0xff]  ;;  %v471_v7 = vld [vmem:[%s2203_s15 + $0x70] sm:$0xff] }
  0x1f   : > { %v473_v8 = vld [vmem:[%s2203_s15 + $0x80] sm:$0xff]  ;;  %470 = vst [vmem:[%s2208_s16 + $0x30] sm:$0xff] %v469_v6  ;;  %472 = vst [vmem:[%s2208_s16 + $0x38] sm:$0xff] %v471_v7  ;;  %v475_v9 = vld [vmem:[%s2203_s15 + $0x90] sm:$0xff] }
  0x20   : > { %474 = vst [vmem:[%s2208_s16 + $0x40] sm:$0xff] %v473_v8  ;;  %v477_v10 = vld [vmem:[%s2203_s15 + $0xa0] sm:$0xff]  ;;  %v479_v11 = vld [vmem:[%s2203_s15 + $0xb0] sm:$0xff]  ;;  %476 = vst [vmem:[%s2208_s16 + $0x48] sm:$0xff] %v475_v9 }
  0x21   : > { %478 = vst [vmem:[%s2208_s16 + $0x50] sm:$0xff] %v477_v10  ;;  %480 = vst [vmem:[%s2208_s16 + $0x58] sm:$0xff] %v479_v11  ;;  %v481_v12 = vld [vmem:[%s2203_s15 + $0xc0] sm:$0xff]  ;;  %v483_v13 = vld [vmem:[%s2203_s15 + $0xd0] sm:$0xff] }
  0x22   : > { %v485_v14 = vld [vmem:[%s2203_s15 + $0xe0] sm:$0xff]  ;;  %482 = vst [vmem:[%s2208_s16 + $0x60] sm:$0xff] %v481_v12  ;;  %484 = vst [vmem:[%s2208_s16 + $0x68] sm:$0xff] %v483_v13  ;;  %v487_v15 = vld [vmem:[%s2203_s15 + $0xf0] sm:$0xff] }
  0x23   : > { %486 = vst [vmem:[%s2208_s16 + $0x70] sm:$0xff] %v485_v14  ;;  %v489_v16 = vld [vmem:[%s2203_s15 + $0x100] sm:$0xff]  ;;  %v491_v17 = vld [vmem:[%s2203_s15 + $0x110] sm:$0xff]  ;;  %488 = vst [vmem:[%s2208_s16 + $0x78] sm:$0xff] %v487_v15 }
  0x24   : > { %490 = vst [vmem:[%s2208_s16 + $0x80] sm:$0xff] %v489_v16  ;;  %492 = vst [vmem:[%s2208_s16 + $0x88] sm:$0xff] %v491_v17  ;;  %v493_v18 = vld [vmem:[%s2203_s15 + $0x120] sm:$0xff]  ;;  %v495_v19 = vld [vmem:[%s2203_s15 + $0x130] sm:$0xff] }
  0x25   : > { %v497_v20 = vld [vmem:[%s2203_s15 + $0x140] sm:$0xff]  ;;  %494 = vst [vmem:[%s2208_s16 + $0x90] sm:$0xff] %v493_v18  ;;  %496 = vst [vmem:[%s2208_s16 + $0x98] sm:$0xff] %v495_v19  ;;  %v499_v21 = vld [vmem:[%s2203_s15 + $0x150] sm:$0xff] }
  0x26   : > { %498 = vst [vmem:[%s2208_s16 + $0xa0] sm:$0xff] %v497_v20  ;;  %v501_v22 = vld [vmem:[%s2203_s15 + $0x160] sm:$0xff]  ;;  %v503_v23 = vld [vmem:[%s2203_s15 + $0x170] sm:$0xff]  ;;  %500 = vst [vmem:[%s2208_s16 + $0xa8] sm:$0xff] %v499_v21 }
  0x27   : > { %502 = vst [vmem:[%s2208_s16 + $0xb0] sm:$0xff] %v501_v22  ;;  %504 = vst [vmem:[%s2208_s16 + $0xb8] sm:$0xff] %v503_v23  ;;  %v505_v24 = vld [vmem:[%s2203_s15 + $0x180] sm:$0xff]  ;;  %v507_v25 = vld [vmem:[%s2203_s15 + $0x190] sm:$0xff] }
  0x28   : > { %v509_v26 = vld [vmem:[%s2203_s15 + $0x1a0] sm:$0xff]  ;;  %506 = vst [vmem:[%s2208_s16 + $0xc0] sm:$0xff] %v505_v24  ;;  %508 = vst [vmem:[%s2208_s16 + $0xc8] sm:$0xff] %v507_v25  ;;  %v511_v27 = vld [vmem:[%s2203_s15 + $0x1b0] sm:$0xff] }
  0x29   : > { %510 = vst [vmem:[%s2208_s16 + $0xd0] sm:$0xff] %v509_v26  ;;  %v513_v28 = vld [vmem:[%s2203_s15 + $0x1c0] sm:$0xff]  ;;  %v515_v29 = vld [vmem:[%s2203_s15 + $0x1d0] sm:$0xff]  ;;  %512 = vst [vmem:[%s2208_s16 + $0xd8] sm:$0xff] %v511_v27 }
  0x2a   : > { %514 = vst [vmem:[%s2208_s16 + $0xe0] sm:$0xff] %v513_v28  ;;  %516 = vst [vmem:[%s2208_s16 + $0xe8] sm:$0xff] %v515_v29  ;;  %v517_v30 = vld [vmem:[%s2203_s15 + $0x1e0] sm:$0xff]  ;;  %v519_v31 = vld [vmem:[%s2203_s15 + $0x1f0] sm:$0xff] }
  0x2b   : > { %v521_v32 = vld [vmem:[%s2203_s15 + $0x200] sm:$0xff]  ;;  %518 = vst [vmem:[%s2208_s16 + $0xf0] sm:$0xff] %v517_v30  ;;  %520 = vst [vmem:[%s2208_s16 + $0xf8] sm:$0xff] %v519_v31  ;;  %v523_v33 = vld [vmem:[%s2203_s15 + $0x210] sm:$0xff] }
  0x2c   : > { %522 = vst [vmem:[%s2208_s16 + $0x100] sm:$0xff] %v521_v32  ;;  %v525_v34 = vld [vmem:[%s2203_s15 + $0x220] sm:$0xff]  ;;  %v527_v35 = vld [vmem:[%s2203_s15 + $0x230] sm:$0xff]  ;;  %524 = vst [vmem:[%s2208_s16 + $0x108] sm:$0xff] %v523_v33 }
  0x2d   : > { %526 = vst [vmem:[%s2208_s16 + $0x110] sm:$0xff] %v525_v34  ;;  %528 = vst [vmem:[%s2208_s16 + $0x118] sm:$0xff] %v527_v35  ;;  %v529_v36 = vld [vmem:[%s2203_s15 + $0x240] sm:$0xff]  ;;  %v531_v37 = vld [vmem:[%s2203_s15 + $0x250] sm:$0xff] }
  0x2e   : > { %v533_v38 = vld [vmem:[%s2203_s15 + $0x260] sm:$0xff]  ;;  %530 = vst [vmem:[%s2208_s16 + $0x120] sm:$0xff] %v529_v36  ;;  %532 = vst [vmem:[%s2208_s16 + $0x128] sm:$0xff] %v531_v37  ;;  %v535_v39 = vld [vmem:[%s2203_s15 + $0x270] sm:$0xff] }
  0x2f   : > { %534 = vst [vmem:[%s2208_s16 + $0x130] sm:$0xff] %v533_v38  ;;  %v537_v40 = vld [vmem:[%s2203_s15 + $0x280] sm:$0xff]  ;;  %v539_v41 = vld [vmem:[%s2203_s15 + $0x290] sm:$0xff]  ;;  %536 = vst [vmem:[%s2208_s16 + $0x138] sm:$0xff] %v535_v39 }
  0x30   : > { %538 = vst [vmem:[%s2208_s16 + $0x140] sm:$0xff] %v537_v40  ;;  %540 = vst [vmem:[%s2208_s16 + $0x148] sm:$0xff] %v539_v41  ;;  %v541_v42 = vld [vmem:[%s2203_s15 + $0x2a0] sm:$0xff]  ;;  %v543_v43 = vld [vmem:[%s2203_s15 + $0x2b0] sm:$0xff] }
  0x31   : > { %v545_v44 = vld [vmem:[%s2203_s15 + $0x2c0] sm:$0xff]  ;;  %542 = vst [vmem:[%s2208_s16 + $0x150] sm:$0xff] %v541_v42  ;;  %544 = vst [vmem:[%s2208_s16 + $0x158] sm:$0xff] %v543_v43  ;;  %v547_v45 = vld [vmem:[%s2203_s15 + $0x2d0] sm:$0xff] }
  0x32   : > { %546 = vst [vmem:[%s2208_s16 + $0x160] sm:$0xff] %v545_v44  ;;  %v549_v46 = vld [vmem:[%s2203_s15 + $0x2e0] sm:$0xff]  ;;  %v551_v47 = vld [vmem:[%s2203_s15 + $0x2f0] sm:$0xff]  ;;  %548 = vst [vmem:[%s2208_s16 + $0x168] sm:$0xff] %v547_v45 }
  0x33   : > { %550 = vst [vmem:[%s2208_s16 + $0x170] sm:$0xff] %v549_v46  ;;  %552 = vst [vmem:[%s2208_s16 + $0x178] sm:$0xff] %v551_v47  ;;  %v553_v48 = vld [vmem:[%s2203_s15 + $0x300] sm:$0xff]  ;;  %v555_v49 = vld [vmem:[%s2203_s15 + $0x310] sm:$0xff] }
  0x34   : > { %v557_v50 = vld [vmem:[%s2203_s15 + $0x320] sm:$0xff]  ;;  %554 = vst [vmem:[%s2208_s16 + $0x180] sm:$0xff] %v553_v48  ;;  %556 = vst [vmem:[%s2208_s16 + $0x188] sm:$0xff] %v555_v49  ;;  %v559_v51 = vld [vmem:[%s2203_s15 + $0x330] sm:$0xff] }
  0x35   : > { %558 = vst [vmem:[%s2208_s16 + $0x190] sm:$0xff] %v557_v50  ;;  %v561_v52 = vld [vmem:[%s2203_s15 + $0x340] sm:$0xff]  ;;  %v563_v53 = vld [vmem:[%s2203_s15 + $0x350] sm:$0xff]  ;;  %560 = vst [vmem:[%s2208_s16 + $0x198] sm:$0xff] %v559_v51 }
  0x36   : > { %562 = vst [vmem:[%s2208_s16 + $0x1a0] sm:$0xff] %v561_v52  ;;  %564 = vst [vmem:[%s2208_s16 + $0x1a8] sm:$0xff] %v563_v53  ;;  %v565_v54 = vld [vmem:[%s2203_s15 + $0x360] sm:$0xff]  ;;  %v567_v55 = vld [vmem:[%s2203_s15 + $0x370] sm:$0xff] }
  0x37   : > { %v569_v56 = vld [vmem:[%s2203_s15 + $0x380] sm:$0xff]  ;;  %566 = vst [vmem:[%s2208_s16 + $0x1b0] sm:$0xff] %v565_v54  ;;  %568 = vst [vmem:[%s2208_s16 + $0x1b8] sm:$0xff] %v567_v55  ;;  %v571_v57 = vld [vmem:[%s2203_s15 + $0x390] sm:$0xff] }
  0x38   : > { %570 = vst [vmem:[%s2208_s16 + $0x1c0] sm:$0xff] %v569_v56  ;;  %v573_v58 = vld [vmem:[%s2203_s15 + $0x3a0] sm:$0xff]  ;;  %v575_v59 = vld [vmem:[%s2203_s15 + $0x3b0] sm:$0xff]  ;;  %572 = vst [vmem:[%s2208_s16 + $0x1c8] sm:$0xff] %v571_v57 }
  0x39   : > { %574 = vst [vmem:[%s2208_s16 + $0x1d0] sm:$0xff] %v573_v58  ;;  %576 = vst [vmem:[%s2208_s16 + $0x1d8] sm:$0xff] %v575_v59  ;;  %v577_v60 = vld [vmem:[%s2203_s15 + $0x3c0] sm:$0xff]  ;;  %v579_v61 = vld [vmem:[%s2203_s15 + $0x3d0] sm:$0xff] }
  0x3a   : > { %v581_v62 = vld [vmem:[%s2203_s15 + $0x3e0] sm:$0xff]  ;;  %578 = vst [vmem:[%s2208_s16 + $0x1e0] sm:$0xff] %v577_v60  ;;  %580 = vst [vmem:[%s2208_s16 + $0x1e8] sm:$0xff] %v579_v61  ;;  %v583_v63 = vld [vmem:[%s2203_s15 + $0x3f0] sm:$0xff] }
  0x3b   : > { %582 = vst [vmem:[%s2208_s16 + $0x1f0] sm:$0xff] %v581_v62  ;;  %v585_v0 = vld [vmem:[%s2203_s15 + $0x400] sm:$0xff]  ;;  %v587_v1 = vld [vmem:[%s2203_s15 + $0x410] sm:$0xff]  ;;  %584 = vst [vmem:[%s2208_s16 + $0x1f8] sm:$0xff] %v583_v63 }
  0x3c   : > { %586 = vst [vmem:[%s2208_s16 + $0x200] sm:$0xff] %v585_v0  ;;  %588 = vst [vmem:[%s2208_s16 + $0x208] sm:$0xff] %v587_v1  ;;  %v589_v2 = vld [vmem:[%s2203_s15 + $0x420] sm:$0xff]  ;;  %v591_v3 = vld [vmem:[%s2203_s15 + $0x430] sm:$0xff] }
  0x3d   : > { %v593_v4 = vld [vmem:[%s2203_s15 + $0x440] sm:$0xff]  ;;  %590 = vst [vmem:[%s2208_s16 + $0x210] sm:$0xff] %v589_v2  ;;  %592 = vst [vmem:[%s2208_s16 + $0x218] sm:$0xff] %v591_v3  ;;  %v595_v5 = vld [vmem:[%s2203_s15 + $0x450] sm:$0xff] }
  0x3e   : > { %594 = vst [vmem:[%s2208_s16 + $0x220] sm:$0xff] %v593_v4  ;;  %v597_v6 = vld [vmem:[%s2203_s15 + $0x460] sm:$0xff]  ;;  %v599_v7 = vld [vmem:[%s2203_s15 + $0x470] sm:$0xff]  ;;  %596 = vst [vmem:[%s2208_s16 + $0x228] sm:$0xff] %v595_v5 }
  0x3f   : > { %598 = vst [vmem:[%s2208_s16 + $0x230] sm:$0xff] %v597_v6  ;;  %600 = vst [vmem:[%s2208_s16 + $0x238] sm:$0xff] %v599_v7  ;;  %v601_v8 = vld [vmem:[%s2203_s15 + $0x480] sm:$0xff]  ;;  %v603_v9 = vld [vmem:[%s2203_s15 + $0x490] sm:$0xff] }
  0x40   : > { %v605_v10 = vld [vmem:[%s2203_s15 + $0x4a0] sm:$0xff]  ;;  %602 = vst [vmem:[%s2208_s16 + $0x240] sm:$0xff] %v601_v8  ;;  %604 = vst [vmem:[%s2208_s16 + $0x248] sm:$0xff] %v603_v9  ;;  %v607_v11 = vld [vmem:[%s2203_s15 + $0x4b0] sm:$0xff] }
  0x41   : > { %606 = vst [vmem:[%s2208_s16 + $0x250] sm:$0xff] %v605_v10  ;;  %v609_v12 = vld [vmem:[%s2203_s15 + $0x4c0] sm:$0xff]  ;;  %v611_v13 = vld [vmem:[%s2203_s15 + $0x4d0] sm:$0xff]  ;;  %608 = vst [vmem:[%s2208_s16 + $0x258] sm:$0xff] %v607_v11 }
  0x42   : > { %610 = vst [vmem:[%s2208_s16 + $0x260] sm:$0xff] %v609_v12  ;;  %612 = vst [vmem:[%s2208_s16 + $0x268] sm:$0xff] %v611_v13  ;;  %v613_v14 = vld [vmem:[%s2203_s15 + $0x4e0] sm:$0xff]  ;;  %v615_v15 = vld [vmem:[%s2203_s15 + $0x4f0] sm:$0xff] }
  0x43   : > { %v617_v16 = vld [vmem:[%s2203_s15 + $0x500] sm:$0xff]  ;;  %614 = vst [vmem:[%s2208_s16 + $0x270] sm:$0xff] %v613_v14  ;;  %616 = vst [vmem:[%s2208_s16 + $0x278] sm:$0xff] %v615_v15  ;;  %v619_v17 = vld [vmem:[%s2203_s15 + $0x510] sm:$0xff] }
  0x44   : > { %618 = vst [vmem:[%s2208_s16 + $0x280] sm:$0xff] %v617_v16  ;;  %v621_v18 = vld [vmem:[%s2203_s15 + $0x520] sm:$0xff]  ;;  %v623_v19 = vld [vmem:[%s2203_s15 + $0x530] sm:$0xff]  ;;  %620 = vst [vmem:[%s2208_s16 + $0x288] sm:$0xff] %v619_v17 }
  0x45   : > { %622 = vst [vmem:[%s2208_s16 + $0x290] sm:$0xff] %v621_v18  ;;  %624 = vst [vmem:[%s2208_s16 + $0x298] sm:$0xff] %v623_v19  ;;  %v625_v20 = vld [vmem:[%s2203_s15 + $0x540] sm:$0xff]  ;;  %v627_v21 = vld [vmem:[%s2203_s15 + $0x550] sm:$0xff] }
  0x46   : > { %v629_v22 = vld [vmem:[%s2203_s15 + $0x560] sm:$0xff]  ;;  %626 = vst [vmem:[%s2208_s16 + $0x2a0] sm:$0xff] %v625_v20  ;;  %628 = vst [vmem:[%s2208_s16 + $0x2a8] sm:$0xff] %v627_v21  ;;  %v631_v23 = vld [vmem:[%s2203_s15 + $0x570] sm:$0xff] }
  0x47   : > { %630 = vst [vmem:[%s2208_s16 + $0x2b0] sm:$0xff] %v629_v22  ;;  %v633_v24 = vld [vmem:[%s2203_s15 + $0x580] sm:$0xff]  ;;  %v635_v25 = vld [vmem:[%s2203_s15 + $0x590] sm:$0xff]  ;;  %632 = vst [vmem:[%s2208_s16 + $0x2b8] sm:$0xff] %v631_v23 }
  0x48   : > { %634 = vst [vmem:[%s2208_s16 + $0x2c0] sm:$0xff] %v633_v24  ;;  %636 = vst [vmem:[%s2208_s16 + $0x2c8] sm:$0xff] %v635_v25  ;;  %v637_v26 = vld [vmem:[%s2203_s15 + $0x5a0] sm:$0xff]  ;;  %v639_v27 = vld [vmem:[%s2203_s15 + $0x5b0] sm:$0xff] }
  0x49   : > { %v641_v28 = vld [vmem:[%s2203_s15 + $0x5c0] sm:$0xff]  ;;  %638 = vst [vmem:[%s2208_s16 + $0x2d0] sm:$0xff] %v637_v26  ;;  %640 = vst [vmem:[%s2208_s16 + $0x2d8] sm:$0xff] %v639_v27  ;;  %v643_v29 = vld [vmem:[%s2203_s15 + $0x5d0] sm:$0xff] }
  0x4a   : > { %642 = vst [vmem:[%s2208_s16 + $0x2e0] sm:$0xff] %v641_v28  ;;  %v645_v30 = vld [vmem:[%s2203_s15 + $0x5e0] sm:$0xff]  ;;  %v647_v31 = vld [vmem:[%s2203_s15 + $0x5f0] sm:$0xff]  ;;  %644 = vst [vmem:[%s2208_s16 + $0x2e8] sm:$0xff] %v643_v29 }
  0x4b   : > { %646 = vst [vmem:[%s2208_s16 + $0x2f0] sm:$0xff] %v645_v30  ;;  %648 = vst [vmem:[%s2208_s16 + $0x2f8] sm:$0xff] %v647_v31 }
  0x4c PF: > { %p1730_p7 = scmp.ge.s32.totalorder %s2110_s24, 1  ;;  %p682_p8 = scmp.lt.s32.totalorder %s2110_s24, 13 }
  0x4e   : > { %p683_p9 = pnand %p1730_p7, %p682_p8 }
  0x4f   : > { %s689_s17 = sand.u32 (!%p683_p9), 1, %s2086_s18   ;;  %s746_s27 = smul.u32 (!%p683_p9), 6, %s2094_s20 }
  0x50   : > { %686 = sbr.rel (%p683_p9) target bundleno = 445 (0x1bd), region = 74  ;;  %s1732_s29 = sshll.u32 (!%p683_p9), %s2098_s21, 1 }
  0x51   : > { %s1848_s28 = smul.u32 (!%p683_p9), 768, %s689_s17  ;;  %p749_p10 = scmp.lt.s32.totalorder (!%p683_p9), %s746_s27, 35 }
  0x52   : > { %p759_p11 = scmp.lt.s32.totalorder (!%p683_p9), %s1732_s29, 3  ;;  %p1738_p12 = scmp.ne.s32.totalorder (!%p683_p9), %s2094_s20, 0 }
  0x55   : > { %s2593_s27 = smov (!%p749_p10, %s746_s27), 35  ;;  %s2595_s29 = smov (!%p759_p11, %s1732_s29), 3 }
  0x56   : > { %s1731_s30 = sshll.u32 %s2593_s27, 2  ;;  %s761_s18 = scalar_lea.vmem %s2574_s2, %s2595_s29 }
  0x57   : > { %s2409_s9 = scalar_lea.vmem %s2572_s0, %s1731_s30  ;;  %s766_s13 = scalar_lea.vmem %s2575_s3, %s2595_s29 }
  0x58   : > { %s1735_s14 = sshll.u32 %s2595_s29, 2  ;;  %s2430_s30 = scalar_lea.vmem [#allocation3], %s1848_s28 }
  0x59   : > { %s2423_s17 = scalar_lea.vmem %s2576_s4, %s1735_s14  ;;  %s2428_s7 = scalar_lea.vmem %s2577_s5, %s1735_s14 }
  0x5a   : > { %791 = sbr.rel (%p1738_p12) target bundleno = 97 (0x61), region = 82 }
  0x5f   : > { %v2112_v32 = vmov 0.0  }
  0x60   : > { %792 = vst [vmem:[#allocation2] sm:$0xff] %v2112_v32  ;;  %793 = vst [vmem:[#allocation2 + $0x8] sm:$0xff] %v2112_v32 }
  0x61 PF: > { %v1906_v33 = vld [vmem:[%s2430_s30 + $0x74] ss:$8 sps:$4 sm:$0xff]   ;;  %v1910_v35 = vld [vmem:[%s2430_s30 + $0x70] ss:$8 sps:$4 sm:$0xff]   ;;  %v1912_v37 = vld [vmem:[%s2430_s30 + $0x64] ss:$8 sps:$4 sm:$0xff]  }
  0x62   : > { %v1908_v34 = vld [vmem:[%s2430_s30 + $0x174] ss:$8 sps:$4 sm:$0xff]   ;;  %1396 = vmatprep.subr.bf16.mxu0 %v1906_v33  ;;  %v1911_v36 = vld [vmem:[%s2430_s30 + $0x170] ss:$8 sps:$4 sm:$0xff]   ;;  %v1914_v38 = vld [vmem:[%s2430_s30 + $0x164] ss:$8 sps:$4 sm:$0xff]  }
  0x63   : > { %1437 = vmatprep.subr.bf16.mxu1 %v1908_v34  ;;  %1397 = vmatpush1.bf16.msra.mxu0 %v1910_v35  ;;  %v1916_v39 = vld [vmem:[%s2430_s30 + $0x60] ss:$8 sps:$4 sm:$0xff]   ;;  %v1918_v41 = vld [vmem:[%s2430_s30 + $0x54] ss:$8 sps:$4 sm:$0xff]   ;;  %v1922_v43 = vld [vmem:[%s2430_s30 + $0x50] ss:$8 sps:$4 sm:$0xff]  }
  0x64   : > { %1438 = vmatpush1.bf16.msra.mxu1 %v1911_v36  ;;  %1398 = vmatprep.subr.bf16.mxu0 %v1912_v37  ;;  %v1917_v40 = vld [vmem:[%s2430_s30 + $0x160] ss:$8 sps:$4 sm:$0xff]   ;;  %v1920_v42 = vld [vmem:[%s2430_s30 + $0x154] ss:$8 sps:$4 sm:$0xff]   ;;  %v1923_v44 = vld [vmem:[%s2430_s30 + $0x150] ss:$8 sps:$4 sm:$0xff]  }
  0x65   : > { %1439 = vmatprep.subr.bf16.mxu1 %v1914_v38  ;;  %v1924_v45 = vld [vmem:[%s2430_s30 + $0x44] ss:$8 sps:$4 sm:$0xff]   ;;  %v1928_v47 = vld [vmem:[%s2430_s30 + $0x40] ss:$8 sps:$4 sm:$0xff]   ;;  %v1930_v49 = vld [vmem:[%s2430_s30 + $0x34] ss:$8 sps:$4 sm:$0xff]  }
  0x66   : > { %v1926_v46 = vld [vmem:[%s2430_s30 + $0x144] ss:$8 sps:$4 sm:$0xff]   ;;  %v1929_v48 = vld [vmem:[%s2430_s30 + $0x140] ss:$8 sps:$4 sm:$0xff]   ;;  %v1932_v50 = vld [vmem:[%s2430_s30 + $0x134] ss:$8 sps:$4 sm:$0xff]  }
  0x67   : > { %1399 = vmatpush1.bf16.msra.mxu0 %v1916_v39  ;;  %v1934_v51 = vld [vmem:[%s2430_s30 + $0x30] ss:$8 sps:$4 sm:$0xff]   ;;  %v1936_v53 = vld [vmem:[%s2430_s30 + $0x24] ss:$8 sps:$4 sm:$0xff]   ;;  %v1940_v55 = vld [vmem:[%s2430_s30 + $0x20] ss:$8 sps:$4 sm:$0xff]  }
  0x68   : > { %1440 = vmatpush1.bf16.msra.mxu1 %v1917_v40  ;;  %1400 = vmatprep.subr.bf16.mxu0 %v1918_v41  ;;  %v1935_v52 = vld [vmem:[%s2430_s30 + $0x130] ss:$8 sps:$4 sm:$0xff]   ;;  %v1938_v54 = vld [vmem:[%s2430_s30 + $0x124] ss:$8 sps:$4 sm:$0xff]   ;;  %v1941_v56 = vld [vmem:[%s2430_s30 + $0x120] ss:$8 sps:$4 sm:$0xff]  }
  0x69   : > { %1441 = vmatprep.subr.bf16.mxu1 %v1920_v42  ;;  %v1942_v57 = vld [vmem:[%s2430_s30 + $0x14] ss:$8 sps:$4 sm:$0xff]   ;;  %v1946_v59 = vld [vmem:[%s2430_s30 + $0x10] ss:$8 sps:$4 sm:$0xff]   ;;  %v1948_v61 = vld [vmem:[%s2430_s30 + $0x4] ss:$8 sps:$4 sm:$0xff]  }
  0x6a   : > { %v1944_v58 = vld [vmem:[%s2430_s30 + $0x114] ss:$8 sps:$4 sm:$0xff]   ;;  %v1947_v60 = vld [vmem:[%s2430_s30 + $0x110] ss:$8 sps:$4 sm:$0xff]   ;;  %v1950_v62 = vld [vmem:[%s2430_s30 + $0x104] ss:$8 sps:$4 sm:$0xff]  }
  0x6b   : > { %1401 = vmatpush1.bf16.msra.mxu0 %v1922_v43  ;;  %v1952_v63 = vld [vmem:[%s2430_s30] ss:$8 sps:$4 sm:$0xff]   ;;  %v1954_v1 = vld [vmem:[%s2430_s30 + $0xf4] ss:$8 sps:$4 sm:$0xff]   ;;  %v1958_v3 = vld [vmem:[%s2430_s30 + $0xf0] ss:$8 sps:$4 sm:$0xff]  }
  0x6c   : > { %1442 = vmatpush1.bf16.msra.mxu1 %v1923_v44  ;;  %1402 = vmatprep.subr.bf16.mxu0 %v1924_v45  ;;  %v1953_v0 = vld [vmem:[%s2430_s30 + $0x100] ss:$8 sps:$4 sm:$0xff]   ;;  %v1956_v2 = vld [vmem:[%s2430_s30 + $0x1f4] ss:$8 sps:$4 sm:$0xff]   ;;  %v1959_v4 = vld [vmem:[%s2430_s30 + $0x1f0] ss:$8 sps:$4 sm:$0xff]  }
  0x6d   : > { %1443 = vmatprep.subr.bf16.mxu1 %v1926_v46  ;;  %v1960_v5 = vld [vmem:[%s2430_s30 + $0xe4] ss:$8 sps:$4 sm:$0xff]   ;;  %v1964_v7 = vld [vmem:[%s2430_s30 + $0xe0] ss:$8 sps:$4 sm:$0xff]   ;;  %v1966_v9 = vld [vmem:[%s2430_s30 + $0xd4] ss:$8 sps:$4 sm:$0xff]  }
  0x6e   : > { %v1962_v6 = vld [vmem:[%s2430_s30 + $0x1e4] ss:$8 sps:$4 sm:$0xff]   ;;  %v1965_v8 = vld [vmem:[%s2430_s30 + $0x1e0] ss:$8 sps:$4 sm:$0xff]   ;;  %v1968_v10 = vld [vmem:[%s2430_s30 + $0x1d4] ss:$8 sps:$4 sm:$0xff]  }
  0x6f   : > { %1403 = vmatpush1.bf16.msra.mxu0 %v1928_v47  ;;  %v1970_v11 = vld [vmem:[%s2430_s30 + $0xd0] ss:$8 sps:$4 sm:$0xff]   ;;  %v1972_v13 = vld [vmem:[%s2430_s30 + $0xc4] ss:$8 sps:$4 sm:$0xff]   ;;  %v1976_v18 = vld [vmem:[%s2430_s30 + $0xc0] ss:$8 sps:$4 sm:$0xff]  }
  0x70   : > { %1444 = vmatpush1.bf16.msra.mxu1 %v1929_v48  ;;  %1404 = vmatprep.subr.bf16.mxu0 %v1930_v49  ;;  %v1971_v12 = vld [vmem:[%s2430_s30 + $0x1d0] ss:$8 sps:$4 sm:$0xff]   ;;  %v1974_v14 = vld [vmem:[%s2430_s30 + $0x1c4] ss:$8 sps:$4 sm:$0xff]   ;;  %v1977_v19 = vld [vmem:[%s2430_s30 + $0x1c0] ss:$8 sps:$4 sm:$0xff]  }
  0x71   : > { %1445 = vmatprep.subr.bf16.mxu1 %v1932_v50  ;;  %v796_v15 = vld [vmem:[%s2409_s9] sm:$0xff]  ;;  %v797_v17 = vld [vmem:[%s2409_s9 + $0x8] sm:$0xff]  ;;  %v1984_v25 = vld [vmem:[%s2430_s30 + $0xa4] ss:$8 sps:$4 sm:$0xff]   ;;  %p1841_p13 = scmp.ne.s32.totalorder %s2094_s20, 5 }
  0x72   : > { %v1740_v16 = vcombine.high %v796_v15, %v796_v15  ;;  %v1742_v20 = vcombine.high %v797_v17, %v797_v17  ;;  %v1978_v21 = vld [vmem:[%s2430_s30 + $0xb4] ss:$8 sps:$4 sm:$0xff]   ;;  %v1982_v23 = vld [vmem:[%s2430_s30 + $0xb0] ss:$8 sps:$4 sm:$0xff]   ;;  %v1986_v26 = vld [vmem:[%s2430_s30 + $0x1a4] ss:$8 sps:$4 sm:$0xff]   ;;  %v1739_v38 = vcombine.low %v796_v15, %v796_v15  ;;  %v1741_v39 = vcombine.low %v797_v17, %v797_v17 }
  0x73   : > { %1405 = vmatpush1.bf16.msra.mxu0 %v1934_v51  ;;  %v1980_v22 = vld [vmem:[%s2430_s30 + $0x1b4] ss:$8 sps:$4 sm:$0xff]   ;;  %v1983_v24 = vld [vmem:[%s2430_s30 + $0x1b0] ss:$8 sps:$4 sm:$0xff]   ;;  %v1988_v27 = vld [vmem:[%s2430_s30 + $0xa0] ss:$8 sps:$4 sm:$0xff]  }
  0x74   : > { %1446 = vmatpush1.bf16.msra.mxu1 %v1935_v52  ;;  %1406 = vmatprep.subr.bf16.mxu0 %v1936_v53  ;;  %v1989_v28 = vld [vmem:[%s2430_s30 + $0x1a0] ss:$8 sps:$4 sm:$0xff]   ;;  %v1990_v29 = vld [vmem:[%s2430_s30 + $0x94] ss:$8 sps:$4 sm:$0xff]   ;;  %v1994_v31 = vld [vmem:[%s2430_s30 + $0x90] ss:$8 sps:$4 sm:$0xff]  }
  0x75   : > { %1447 = vmatprep.subr.bf16.mxu1 %v1938_v54  ;;  %1428 = vmatprep.mubr.bf16.mxu0 %v1740_v16  ;;  %v1992_v30 = vld [vmem:[%s2430_s30 + $0x194] ss:$8 sps:$4 sm:$0xff]   ;;  %v1995_v32 = vld [vmem:[%s2430_s30 + $0x190] ss:$8 sps:$4 sm:$0xff]   ;;  %v1996_v33 = vld [vmem:[%s2430_s30 + $0x84] ss:$8 sps:$4 sm:$0xff]  }
  0x76   : > { %1469 = vmatprep.mubr.bf16.mxu1 %v1742_v20  ;;  %v1998_v34 = vld [vmem:[%s2430_s30 + $0x184] ss:$8 sps:$4 sm:$0xff]   ;;  %v2000_v35 = vld [vmem:[%s2430_s30 + $0x80] ss:$8 sps:$4 sm:$0xff]   ;;  %v2008_v37 = vld [vmem:[%s2430_s30 + $0x274] ss:$8 sps:$4 sm:$0xff]  }
  0x77   : > { %1407 = vmatpush1.bf16.msra.mxu0 %v1940_v55  ;;  %v2001_v36 = vld [vmem:[%s2430_s30 + $0x180] ss:$8 sps:$4 sm:$0xff]   ;;  %v2006_v40 = vld [vmem:[%s2430_s30 + $0x270] ss:$8 sps:$4 sm:$0xff]   ;;  %v2011_v42 = vld [vmem:[%s2430_s30 + $0x264] ss:$8 sps:$4 sm:$0xff]  }
  0x78   : > { %1448 = vmatpush1.bf16.msra.mxu1 %v1941_v56  ;;  %1408 = vmatprep.subr.bf16.mxu0 %v1942_v57  ;;  %v2502_v41 = vld [vmem:[%s2409_s9 + $0x10] sm:$0xff]  ;;  %v2014_v45 = vld [vmem:[%s2430_s30 + $0x254] ss:$8 sps:$4 sm:$0xff]   ;;  %v2012_v46 = vld [vmem:[%s2430_s30 + $0x250] ss:$8 sps:$4 sm:$0xff]  }
  0x79   : > { %1449 = vmatprep.subr.bf16.mxu1 %v1944_v58  ;;  %v1744_v43 = vcombine.high %v2502_v41, %v2502_v41  ;;  %v2009_v44 = vld [vmem:[%s2430_s30 + $0x260] ss:$8 sps:$4 sm:$0xff]   ;;  %v2017_v47 = vld [vmem:[%s2430_s30 + $0x244] ss:$8 sps:$4 sm:$0xff]   ;;  %v2020_v49 = vld [vmem:[%s2430_s30 + $0x234] ss:$8 sps:$4 sm:$0xff]  }
  0x7a   : > { %v2015_v48 = vld [vmem:[%s2430_s30 + $0x240] ss:$8 sps:$4 sm:$0xff]   ;;  %v2018_v50 = vld [vmem:[%s2430_s30 + $0x230] ss:$8 sps:$4 sm:$0xff]   ;;  %v2023_v51 = vld [vmem:[%s2430_s30 + $0x224] ss:$8 sps:$4 sm:$0xff]  }
  0x7b   : > { %1409 = vmatpush1.bf16.msra.mxu0 %v1946_v59  ;;  %v2021_v52 = vld [vmem:[%s2430_s30 + $0x220] ss:$8 sps:$4 sm:$0xff]   ;;  %v2026_v53 = vld [vmem:[%s2430_s30 + $0x214] ss:$8 sps:$4 sm:$0xff]   ;;  %v2024_v54 = vld [vmem:[%s2430_s30 + $0x210] ss:$8 sps:$4 sm:$0xff]  }
  0x7c   : > { %1450 = vmatpush1.bf16.msra.mxu1 %v1947_v60  ;;  %1410 = vmatprep.subr.bf16.mxu0 %v1948_v61  ;;  %v2029_v55 = vld [vmem:[%s2430_s30 + $0x204] ss:$8 sps:$4 sm:$0xff]   ;;  %v2027_v56 = vld [vmem:[%s2430_s30 + $0x200] ss:$8 sps:$4 sm:$0xff]   ;;  %v2032_v57 = vld [vmem:[%s2430_s30 + $0x2f4] ss:$8 sps:$4 sm:$0xff]  }
  0x7d   : > { %1451 = vmatprep.subr.bf16.mxu1 %v1950_v62  ;;  %v2030_v58 = vld [vmem:[%s2430_s30 + $0x2f0] ss:$8 sps:$4 sm:$0xff]   ;;  %v2035_v59 = vld [vmem:[%s2430_s30 + $0x2e4] ss:$8 sps:$4 sm:$0xff]   ;;  %v2033_v60 = vld [vmem:[%s2430_s30 + $0x2e0] ss:$8 sps:$4 sm:$0xff]  }
  0x7e   : > { %v2038_v61 = vld [vmem:[%s2430_s30 + $0x2d4] ss:$8 sps:$4 sm:$0xff]   ;;  %v2036_v62 = vld [vmem:[%s2430_s30 + $0x2d0] ss:$8 sps:$4 sm:$0xff]  }
  0x7f   : > { %1411 = vmatpush1.bf16.msra.mxu0 %v1952_v63  ;;  %v2041_v63 = vld [vmem:[%s2430_s30 + $0x2c4] ss:$8 sps:$4 sm:$0xff]  }
  0x80   : > { %1452 = vmatpush1.bf16.msra.mxu1 %v1953_v0  ;;  %1412 = vmatprep.subr.bf16.mxu0 %v1954_v1  ;;  %v2039_v0 = vld [vmem:[%s2430_s30 + $0x2c0] ss:$8 sps:$4 sm:$0xff]   ;;  %v2044_v1 = vld [vmem:[%s2430_s30 + $0x2b4] ss:$8 sps:$4 sm:$0xff]  }
  0x81   : > { %1453 = vmatprep.subr.bf16.mxu1 %v1956_v2  ;;  %v2042_v2 = vld [vmem:[%s2430_s30 + $0x2b0] ss:$8 sps:$4 sm:$0xff]  }
  0x83   : > { %1413 = vmatpush2.bf16.msra.mxu0 %v1958_v3  ;;  %v2047_v3 = vld [vmem:[%s2430_s30 + $0x2a4] ss:$8 sps:$4 sm:$0xff]  }
  0x84   : > { %1454 = vmatpush2.bf16.msra.mxu1 %v1959_v4  ;;  %1414 = vmatprep.subr.bf16.mxu0 %v1960_v5  ;;  %v2045_v4 = vld [vmem:[%s2430_s30 + $0x2a0] ss:$8 sps:$4 sm:$0xff]   ;;  %v2050_v5 = vld [vmem:[%s2430_s30 + $0x294] ss:$8 sps:$4 sm:$0xff]  }
  0x85   : > { %1455 = vmatprep.subr.bf16.mxu1 %v1962_v6  ;;  %v2048_v6 = vld [vmem:[%s2430_s30 + $0x290] ss:$8 sps:$4 sm:$0xff]  }
  0x87   : > { %1415 = vmatpush2.bf16.msra.mxu0 %v1964_v7  ;;  %v2053_v7 = vld [vmem:[%s2430_s30 + $0x284] ss:$8 sps:$4 sm:$0xff]  }
  0x88   : > { %1456 = vmatpush2.bf16.msra.mxu1 %v1965_v8  ;;  %1416 = vmatprep.subr.bf16.mxu0 %v1966_v9  ;;  %v2051_v8 = vld [vmem:[%s2430_s30 + $0x280] ss:$8 sps:$4 sm:$0xff]   ;;  %v1743_v9 = vcombine.low %v2502_v41, %v2502_v41 }
  0x89   : > { %1457 = vmatprep.subr.bf16.mxu1 %v1968_v10 }
  0x8b   : > { %1417 = vmatpush2.bf16.msra.mxu0 %v1970_v11 }
  0x8c   : > { %1458 = vmatpush2.bf16.msra.mxu1 %v1971_v12  ;;  %1418 = vmatprep.subr.bf16.mxu0 %v1972_v13 }
  0x8d   : > { %1459 = vmatprep.subr.bf16.mxu1 %v1974_v14 }
  0x8f   : > { %1419 = vmatpush2.bf16.msra.mxu0 %v1976_v18 }
  0x90   : > { %1460 = vmatpush2.bf16.msra.mxu1 %v1977_v19  ;;  %1420 = vmatprep.subr.bf16.mxu0 %v1978_v21  ;;  %v794_v19 = vld [vmem:[#allocation2] sm:$0xff] }
  0x91   : > { %1461 = vmatprep.subr.bf16.mxu1 %v1980_v22 }
  0x93   : > { %1421 = vmatpush2.bf16.msra.mxu0 %v1982_v23  ;;  %v795_v23 = vld [vmem:[#allocation2 + $0x8] sm:$0xff] }
  0x94   : > { %1462 = vmatpush2.bf16.msra.mxu1 %v1983_v24  ;;  %1422 = vmatprep.subr.bf16.mxu0 %v1984_v25 }
  0x95   : > { %1463 = vmatprep.subr.bf16.mxu1 %v1986_v26 }
  0x97   : > { %1423 = vmatpush2.bf16.msra.mxu0 %v1988_v27 }
  0x98   : > { %1464 = vmatpush2.bf16.msra.mxu1 %v1989_v28  ;;  %1424 = vmatprep.subr.bf16.mxu0 %v1990_v29 }
  0x99   : > { %1465 = vmatprep.subr.bf16.mxu1 %v1992_v30 }
  0x9b   : > { %1425 = vmatpush2.bf16.msra.mxu0 %v1994_v31 }
  0x9c   : > { %1466 = vmatpush2.bf16.msra.mxu1 %v1995_v32  ;;  %1426 = vmatprep.subr.bf16.mxu0 %v1996_v33 }
  0x9d   : > { %1467 = vmatprep.subr.bf16.mxu1 %v1998_v34 }
  0x9f   : > { %1427 = vmatpush2.bf16.msra.mxu0 %v2000_v35 }
  0xa0   : > { %1468 = vmatpush2.bf16.msra.mxu1 %v2001_v36  ;;  %1478 = vmatprep.subr.bf16.mxu0 %v2008_v37 }
  0xa2   : > { %1429 = vmatmul.mubr.bf16.vlgmr.msra.gmra.mxu0 %v1739_v38 }
  0xa3   : > { %1470 = vmatmul.mubr.bf16.vlgmr.msra.gmra.mxu1 %v1741_v39  ;;  %1479 = vmatpush1.bf16.msra.mxu0 %v2006_v40 }
  0xa4   : > { %1510 = vmatprep.mubr.bf16.mxu0 %v1744_v43  ;;  %1480 = vmatprep.subr.bf16.mxu0 %v2011_v42 }
  0xa7   : > { %1481 = vmatpush1.bf16.msra.mxu0 %v2009_v44 }
  0xa8   : > { %1482 = vmatprep.subr.bf16.mxu0 %v2014_v45 }
  0xab   : > { %1483 = vmatpush1.bf16.msra.mxu0 %v2012_v46 }
  0xac   : > { %1484 = vmatprep.subr.bf16.mxu0 %v2017_v47 }
  0xaf   : > { %1485 = vmatpush1.bf16.msra.mxu0 %v2015_v48 }
  0xb0   : > { %1486 = vmatprep.subr.bf16.mxu0 %v2020_v49 }
  0xb3   : > { %1487 = vmatpush1.bf16.msra.mxu0 %v2018_v50 }
  0xb4   : > { %1488 = vmatprep.subr.bf16.mxu0 %v2023_v51 }
  0xb7   : > { %1489 = vmatpush1.bf16.msra.mxu0 %v2021_v52 }
  0xb8   : > { %1490 = vmatprep.subr.bf16.mxu0 %v2026_v53 }
  0xbb   : > { %1491 = vmatpush1.bf16.msra.mxu0 %v2024_v54 }
  0xbc   : > { %1492 = vmatprep.subr.bf16.mxu0 %v2029_v55 }
  0xbf   : > { %1493 = vmatpush1.bf16.msra.mxu0 %v2027_v56 }
  0xc0   : > { %1494 = vmatprep.subr.bf16.mxu0 %v2032_v57 }
  0xc3   : > { %1495 = vmatpush2.bf16.msra.mxu0 %v2030_v58 }
  0xc4   : > { %1496 = vmatprep.subr.bf16.mxu0 %v2035_v59 }
  0xc7   : > { %1497 = vmatpush2.bf16.msra.mxu0 %v2033_v60 }
  0xc8   : > { %1498 = vmatprep.subr.bf16.mxu0 %v2038_v61 }
  0xcb   : > { %1499 = vmatpush2.bf16.msra.mxu0 %v2036_v62 }
  0xcc   : > { %1500 = vmatprep.subr.bf16.mxu0 %v2041_v63 }
  0xcf   : > { %1501 = vmatpush2.bf16.msra.mxu0 %v2039_v0 }
  0xd0   : > { %1502 = vmatprep.subr.bf16.mxu0 %v2044_v1 }
  0xd3   : > { %1503 = vmatpush2.bf16.msra.mxu0 %v2042_v2 }
  0xd4   : > { %1504 = vmatprep.subr.bf16.mxu0 %v2047_v3 }
  0xd7   : > { %1505 = vmatpush2.bf16.msra.mxu0 %v2045_v4 }
  0xd8   : > { %1506 = vmatprep.subr.bf16.mxu0 %v2050_v5 }
  0xdb   : > { %1507 = vmatpush2.bf16.msra.mxu0 %v2048_v6 }
  0xdc   : > { %1508 = vmatprep.subr.bf16.mxu0 %v2053_v7 }
  0xdf   : > { %1509 = vmatpush2.bf16.msra.mxu0 %v2051_v8 }
  0xe2   : > { %1511 = vmatmul.mubr.bf16.vlgmr.msra.gmra.mxu0 %v1743_v9 }
 0x162   : > { %v1430_v10 = vpop.f32.mrf.mxu0 }
 0x163   : > { %v1471_v11 = vpop.f32.mrf.mxu1 }
 0x164   : > { %v1432_v12 = vpop.f32.mrf.mxu0  ;;  %v1472_v18 = vadd.f32 %v1471_v11, %v1430_v10 }
 0x165   : > { %v1473_v13 = vpop.f32.mrf.mxu1 }
 0x166   : > { %v1434_v14 = vpop.f32.mrf.mxu0  ;;  %v1474_v21 = vadd.f32 %v1473_v13, %v1432_v12 }
 0x167   : > { %v1475_v15 = vpop.f32.mrf.mxu1 }
 0x168   : > { %v1435_v16 = vpop.f32.mrf.mxu0 }
 0x169   : > { %v1476_v17 = vpop.f32.mrf.mxu1 }
 0x1a2   : > { %v1512_v20 = vpop.f32.mrf.mxu0 }
 0x1a3   : > { %v1513_v22 = vadd.f32 %v1512_v20, %v1472_v18 }
 0x1a4   : > { %v1514_v24 = vpop.f32.mrf.mxu0 }
 0x1a5   : > { %v1519_v25 = vadd.f32 %v1513_v22, %v794_v19  ;;  %v1515_v26 = vadd.f32 %v1514_v24, %v1474_v21  ;;  %1526 = sbr.rel (%p1841_p13) target bundleno = 445 (0x1bd), region = 86 }
 0x1a6   : > { %v1516_v27 = vpop.f32.mrf.mxu0 }
 0x1a7   : > { %1521 = vst [vmem:[#allocation2] sm:$0xff] %v1519_v25  ;;  %v1520_v28 = vadd.f32 %v1515_v26, %v795_v23 }
 0x1a8   : > { %v1517_v29 = vpop.f32.mrf.mxu0 }
 0x1a9   : > { %1522 = vst [vmem:[#allocation2 + $0x8] sm:$0xff] %v1520_v28 }
 0x1aa   : > { %v1531_v30 = vlaneseq  ;;  %v1529_v32 = vld [vmem:[%s761_s18] sm:$0x3] }
 0x1ab   : > { %v1543_v33 = vld [vmem:[%s766_s13] sm:$0x3] }
 0x1ac   : > { %v1532_v31 = vshrl.u32 %v1531_v30, 7  ;;  %v1557_v38 = vld [vmem:[%s2423_s17] sm:$0xff] }
 0x1ad   : > { %v1558_v45 = vunpack.c.l.bf16 %v1557_v38  ;;  %v1559_v46 = vunpack.c.h.bf16 %v1557_v38 }
 0x1ae   : > { %v1533_v34 = vsub.s32 0, %v1532_v31  ;;  %v1537_v35 = vsub.s32 1, %v1532_v31  ;;  %v1527_v36 = vld [vmem:[#allocation2] sm:$0xff] }
 0x1b0   : > { %v1528_v37 = vld [vmem:[#allocation2 + $0x8] sm:$0xff]  ;;  %v1534_v39 = vrot.slane %v1529_v32, %v1533_v34  ;;  %v1538_v40 = vrot.slane %v1529_v32, %v1537_v35  ;;  %v1548_v41 = vrot.slane %v1543_v33, %v1533_v34  ;;  %v1552_v42 = vrot.slane %v1543_v33, %v1537_v35 }
 0x1b2   : > { %v1541_v43 = vmul.f32 %v1534_v39, %v1527_v36  ;;  %v1542_v44 = vmul.f32 %v1538_v40, %v1528_v37 }
 0x1b4   : > { %v1555_v47 = vadd.f32 %v1548_v41, %v1541_v43  ;;  %v1556_v48 = vadd.f32 %v1552_v42, %v1542_v44 }
 0x1b6   : > { %v1560_v49 = vadd.f32 %v1558_v45, %v1555_v47  ;;  %v1561_v50 = vadd.f32 %v1559_v46, %v1556_v48 }
 0x1b8   : > { %v1562_v51 = vmax.f32 %v1560_v49, 0.0  ;;  %v1563_v52 = vmax.f32 %v1561_v50, 0.0 }
 0x1ba   : > { %v1846_v53 = vpack.c.bf16 %v1563_v52, %v1562_v51 }
 0x1bc   : > { %1572 = vst [vmem:[%s2428_s7] sm:$0xff] %v1846_v53 }
 0x1bd PF: > { %s15_s24 = sadd.s32 1, %s2110_s24   ;;  %s2580_s18 = smov %s2090_s19 }
 0x1be   : > { %p12_p0 = scmp.ge.s32.totalorder %s15_s24, 14   ;;  %s2581_s19 = smov %s2194_s6 }
 0x1bf   : > { %s2582_s20 = smov %s2102_s22  ;;  %s2583_s21 = smov %s2106_s23 }
 0x1c0   : > { %s2584_s22 = smov %s2587_s25  ;;  %s2585_s23 = smov %s2591_s26 }
 0x1c1   :  { %14 = sbr.rel (!%p12_p0) target bundleno = 6 (0x6), region = 133 }

// kernel: simclr_forward.45
= control target key start
LH: loop header
LB: loop body
LE: loop exit
PB: predicated region body
PF: predicated region fallthrough
CT: control target
= control target key end

     0   :  { %s281_s6 = smov 0   ;;  %s302_s0 = inlined_call_operand.vmem [shape: bf16[2,16,512], index: 0, kind: input, shape index: {}]   ;;  %s303_s1 = inlined_call_operand.vmem [shape: f32[2,1,512], index: 1, kind: output, shape index: {}]  }
   0x1 LB: > { %s242_s7 = sadd.s32 4294967295, %s268_s6   ;;  %p246_p0 = scmp.ge.s32.totalorder %s268_s6, 1  ;;  %s268_s6 = sphi %s281_s6, %s11_s6  }
   0x2   : > { %p87_p1 = scmp.lt.s32.totalorder %s268_s6, 3 }
   0x4   : > { %p88_p2 = pnand %p246_p0, %p87_p1 }
   0x5   : > { %p106_p3 = scmp.lt.s32.totalorder (!%p88_p2), %s242_s7, 1 }
   0x6   : > { %91 = sbr.rel (%p88_p2) target bundleno = 41 (0x29), region = 24 }
   0xb   : > { %s305_s7 = smov (!%p106_p3, %s242_s7), 1  ;;  %v270_v20 = vmov 1966171168   ;;  %v164_v22 = vlaneseq }
   0xc   : > { %s252_s8 = sshll.u32 %s305_s7, 5  ;;  %v162_v21 = vunpack.c.l.s4 %v270_v20  ;;  %s249_s12 = sshll.u32 %s305_s7, 2 }
   0xd   : > { %s110_s11 = scalar_lea.vmem %s302_s0, %s252_s8  ;;  %v165_v32 = vshrl.u32 %v164_v22, 7  ;;  %s114_s15 = scalar_lea.vmem %s303_s1, %s249_s12  ;;  %vm186_vm0 = vcmp.lt.s32.totalorder %v164_v22, 512 }
   0xe   : > { %v115_v0 = vld [vmem:[%s110_s11] sm:$0xff]  ;;  %v116_v1 = vld [vmem:[%s110_s11 + $0x8] sm:$0xff]  ;;  %v117_v2 = vld [vmem:[%s110_s11 + $0x10] sm:$0xff]  ;;  %v163_v31 = vunpack.c.0.s8 %v162_v21 }
   0xf   : > { %v118_v3 = vld [vmem:[%s110_s11 + $0x18] sm:$0xff]  ;;  %v119_v4 = vunpack.c.l.bf16 %v115_v0  ;;  %v120_v5 = vunpack.c.h.bf16 %v115_v0  ;;  %v121_v6 = vunpack.c.l.bf16 %v116_v1  ;;  %v122_v7 = vunpack.c.h.bf16 %v116_v1 }
  0x10   : > { %v123_v8 = vunpack.c.l.bf16 %v117_v2  ;;  %v124_v9 = vunpack.c.h.bf16 %v117_v2  ;;  %v125_v10 = vunpack.c.l.bf16 %v118_v3  ;;  %v126_v11 = vunpack.c.h.bf16 %v118_v3 }
  0x11   : > { %v166_v41 = vsub.s32 %v163_v31, %v165_v32 }
  0x12   : > { %v127_v12 = vadd.f32 %v123_v8, %v119_v4  ;;  %v134_v13 = vadd.f32 %v124_v9, %v120_v5  ;;  %v141_v14 = vadd.f32 %v125_v10, %v121_v6  ;;  %v148_v15 = vadd.f32 %v126_v11, %v122_v7 }
  0x14   : > { %v128_v16 = vrot.slane %v127_v12, 4  ;;  %v135_v17 = vrot.slane %v134_v13, 4  ;;  %v142_v18 = vrot.slane %v141_v14, 4  ;;  %v149_v19 = vrot.slane %v148_v15, 4 }
  0x16   : > { %v129_v23 = vadd.f32 %v128_v16, %v127_v12  ;;  %v136_v24 = vadd.f32 %v135_v17, %v134_v13  ;;  %v143_v25 = vadd.f32 %v142_v18, %v141_v14  ;;  %v150_v26 = vadd.f32 %v149_v19, %v148_v15 }
  0x18   : > { %v130_v27 = vrot.slane %v129_v23, 2  ;;  %v137_v28 = vrot.slane %v136_v24, 2  ;;  %v144_v29 = vrot.slane %v143_v25, 2  ;;  %v151_v30 = vrot.slane %v150_v26, 2 }
  0x1a   : > { %v131_v33 = vadd.f32 %v130_v27, %v129_v23  ;;  %v138_v34 = vadd.f32 %v137_v28, %v136_v24  ;;  %v145_v35 = vadd.f32 %v144_v29, %v143_v25  ;;  %v152_v36 = vadd.f32 %v151_v30, %v150_v26 }
  0x1c   : > { %v132_v37 = vrot.slane %v131_v33, 1  ;;  %v139_v38 = vrot.slane %v138_v34, 1  ;;  %v146_v39 = vrot.slane %v145_v35, 1  ;;  %v153_v40 = vrot.slane %v152_v36, 1 }
  0x1e   : > { %v133_v42 = vadd.f32 %v132_v37, %v131_v33  ;;  %v140_v43 = vadd.f32 %v139_v38, %v138_v34  ;;  %v147_v44 = vadd.f32 %v146_v39, %v145_v35  ;;  %v154_v45 = vadd.f32 %v153_v40, %v152_v36 }
  0x20   : > { %v159_v46 = vcombine.low %v133_v42, %v140_v43  ;;  %v160_v47 = vcombine.low %v147_v44, %v154_v45 }
  0x22   : > { %v167_v48 = vrot.slane %v159_v46, %v166_v41  ;;  %v174_v49 = vrot.slane %v160_v47, %v166_v41 }
  0x24   : > { %v175_v50 = vcombine.low %v167_v48, %v174_v49 }
  0x26   : > { %v182_v51 = vrot.slane %v175_v50, %v166_v41 }
  0x28   : > { %188 = vst.msk [vmem:[%s114_s15] sm:$0xf] %vm186_vm0, %v182_v51 }
  0x29 PF: > { %s11_s6 = sadd.s32 1, %s268_s6  }
  0x2a   : > { %p8_p4 = scmp.ge.s32.totalorder %s11_s6, 4  }
  0x2c   :  { %10 = sbr.rel (!%p8_p4) target bundleno = 1 (0x1), region = 54 }

// kernel: simclr_forward.46
= control target key start
LH: loop header
LB: loop body
LE: loop exit
PB: predicated region body
PF: predicated region fallthrough
CT: control target
= control target key end

     0   :  { %s1559_s15 = smov 0   ;;  %s1561_s16 = smov 0   ;;  %s1851_s0 = inlined_call_operand.vmem [shape: bf16[8,512], index: 0, kind: input, shape index: {}]   ;;  %s1852_s1 = inlined_call_operand.vmem [shape: bf16[512,512], index: 1, kind: input, shape index: {}]   ;;  %s1853_s2 = inlined_call_operand.vmem [shape: f32[1,512], index: 2, kind: input, shape index: {}]   ;;  %s1854_s3 = inlined_call_operand.vmem [shape: f32[1,512], index: 3, kind: input, shape index: {}]   ;;  %s1855_s4 = inlined_call_operand.vmem [shape: bf16[8,512], index: 4, kind: output, shape index: {}]  }
   0x1   :  { %s1563_s17 = smov 0   ;;  %s1565_s18 = smov 0  }
   0x2   :  { %s1567_s19 = smov 0  }
   0x3 LB: > { %s29_s20 = sadd.s32 1, %s1528_s18  ;;  %p77_p1 = scmp.ne.s32.totalorder %s1520_s16, %s1516_s15  ;;  %s1532_s19 = sphi %s1567_s19, %s14_s19   ;;  %s1528_s18 = sphi %s1565_s18, %s1859_s18   ;;  %s1524_s17 = sphi %s1563_s17, %s1858_s17   ;;  %s1520_s16 = sphi %s1561_s16, %s1857_s16   ;;  %s1516_s15 = sphi %s1559_s15, %s1856_s15  }
   0x4   : > { %p31_p0 = scmp.ge.s32.totalorder %s29_s20, 2  ;;  %p78_p2 = scmp.eq.s32.totalorder %s1532_s19, 0 }
   0x5   : > { %s70_s22 = sadd.s32 1, %s1520_s16  ;;  %p1271_p5 = scmp.ge.s32.totalorder %s1532_s19, 2 }
   0x6   : > { %s1861_s20 = smov (%p31_p0, %s29_s20), 0  ;;  %p79_p3 = por %p78_p2, %p77_p1 }
   0x7   : > { %s66_s21 = ssub.s32 %s1528_s18, %s1861_s20  ;;  %196 = sbr.rel (%p1271_p5) target bundleno = 48 (0x30), region = 20 }
   0x8   : > { %p68_p4 = scmp.eq.s32.totalorder %s66_s21, 0 }
   0xa   : > { %s1594_s23 = scalar_select %p68_p4, %s1520_s16, %s70_s22  }
   0xc   : > { %199 = sbr.rel (!%p79_p3) target bundleno = 48 (0x30), region = 24  ;;  %s201_s24 = sand.u32 (%p79_p3), 1, %s1520_s16  }
   0xd   : > { %s1352_s25 = sshll.u32 (%p79_p3), %s1528_s18, 3  ;;  %s1272_s26 = sshll.u32 (%p79_p3), %s201_s24, 9 }
   0xe   : > { %s1602_s29 = scalar_lea.vmem (%p79_p3), %s1852_s1, %s1352_s25  ;;  %s1607_s30 = scalar_lea.vmem (%p79_p3), [#allocation3], %s1272_s26 }
   0xf   : > { %v364_v0 = vld [vmem:[%s1602_s29] sm:$0xff] (%p79_p3)  ;;  %v366_v1 = vld [vmem:[%s1602_s29 + $0x10] sm:$0xff] (%p79_p3) }
  0x10   : > { %v368_v2 = vld [vmem:[%s1602_s29 + $0x20] sm:$0xff] (%p79_p3)  ;;  %365 = vst [vmem:[%s1607_s30] sm:$0xff] (%p79_p3), %v364_v0  ;;  %367 = vst [vmem:[%s1607_s30 + $0x8] sm:$0xff] (%p79_p3), %v366_v1  ;;  %v370_v3 = vld [vmem:[%s1602_s29 + $0x30] sm:$0xff] (%p79_p3) }
  0x11   : > { %369 = vst [vmem:[%s1607_s30 + $0x10] sm:$0xff] %v368_v2  ;;  %v372_v4 = vld [vmem:[%s1602_s29 + $0x40] sm:$0xff]  ;;  %v374_v5 = vld [vmem:[%s1602_s29 + $0x50] sm:$0xff]  ;;  %371 = vst [vmem:[%s1607_s30 + $0x18] sm:$0xff] %v370_v3 }
  0x12   : > { %373 = vst [vmem:[%s1607_s30 + $0x20] sm:$0xff] %v372_v4  ;;  %375 = vst [vmem:[%s1607_s30 + $0x28] sm:$0xff] %v374_v5  ;;  %v376_v6 = vld [vmem:[%s1602_s29 + $0x60] sm:$0xff]  ;;  %v378_v7 = vld [vmem:[%s1602_s29 + $0x70] sm:$0xff] }
  0x13   : > { %v380_v8 = vld [vmem:[%s1602_s29 + $0x80] sm:$0xff]  ;;  %377 = vst [vmem:[%s1607_s30 + $0x30] sm:$0xff] %v376_v6  ;;  %379 = vst [vmem:[%s1607_s30 + $0x38] sm:$0xff] %v378_v7  ;;  %v382_v9 = vld [vmem:[%s1602_s29 + $0x90] sm:$0xff] }
  0x14   : > { %381 = vst [vmem:[%s1607_s30 + $0x40] sm:$0xff] %v380_v8  ;;  %v384_v10 = vld [vmem:[%s1602_s29 + $0xa0] sm:$0xff]  ;;  %v386_v11 = vld [vmem:[%s1602_s29 + $0xb0] sm:$0xff]  ;;  %383 = vst [vmem:[%s1607_s30 + $0x48] sm:$0xff] %v382_v9 }
  0x15   : > { %385 = vst [vmem:[%s1607_s30 + $0x50] sm:$0xff] %v384_v10  ;;  %387 = vst [vmem:[%s1607_s30 + $0x58] sm:$0xff] %v386_v11  ;;  %v388_v12 = vld [vmem:[%s1602_s29 + $0xc0] sm:$0xff]  ;;  %v390_v13 = vld [vmem:[%s1602_s29 + $0xd0] sm:$0xff] }
  0x16   : > { %v392_v14 = vld [vmem:[%s1602_s29 + $0xe0] sm:$0xff]  ;;  %389 = vst [vmem:[%s1607_s30 + $0x60] sm:$0xff] %v388_v12  ;;  %391 = vst [vmem:[%s1607_s30 + $0x68] sm:$0xff] %v390_v13  ;;  %v394_v15 = vld [vmem:[%s1602_s29 + $0xf0] sm:$0xff] }
  0x17   : > { %393 = vst [vmem:[%s1607_s30 + $0x70] sm:$0xff] %v392_v14  ;;  %v396_v16 = vld [vmem:[%s1602_s29 + $0x100] sm:$0xff]  ;;  %v398_v17 = vld [vmem:[%s1602_s29 + $0x110] sm:$0xff]  ;;  %395 = vst [vmem:[%s1607_s30 + $0x78] sm:$0xff] %v394_v15 }
  0x18   : > { %397 = vst [vmem:[%s1607_s30 + $0x80] sm:$0xff] %v396_v16  ;;  %399 = vst [vmem:[%s1607_s30 + $0x88] sm:$0xff] %v398_v17  ;;  %v400_v18 = vld [vmem:[%s1602_s29 + $0x120] sm:$0xff]  ;;  %v402_v19 = vld [vmem:[%s1602_s29 + $0x130] sm:$0xff] }
  0x19   : > { %v404_v20 = vld [vmem:[%s1602_s29 + $0x140] sm:$0xff]  ;;  %401 = vst [vmem:[%s1607_s30 + $0x90] sm:$0xff] %v400_v18  ;;  %403 = vst [vmem:[%s1607_s30 + $0x98] sm:$0xff] %v402_v19  ;;  %v406_v21 = vld [vmem:[%s1602_s29 + $0x150] sm:$0xff] }
  0x1a   : > { %405 = vst [vmem:[%s1607_s30 + $0xa0] sm:$0xff] %v404_v20  ;;  %v408_v22 = vld [vmem:[%s1602_s29 + $0x160] sm:$0xff]  ;;  %v410_v23 = vld [vmem:[%s1602_s29 + $0x170] sm:$0xff]  ;;  %407 = vst [vmem:[%s1607_s30 + $0xa8] sm:$0xff] %v406_v21 }
  0x1b   : > { %409 = vst [vmem:[%s1607_s30 + $0xb0] sm:$0xff] %v408_v22  ;;  %411 = vst [vmem:[%s1607_s30 + $0xb8] sm:$0xff] %v410_v23  ;;  %v412_v24 = vld [vmem:[%s1602_s29 + $0x180] sm:$0xff]  ;;  %v414_v25 = vld [vmem:[%s1602_s29 + $0x190] sm:$0xff] }
  0x1c   : > { %v416_v26 = vld [vmem:[%s1602_s29 + $0x1a0] sm:$0xff]  ;;  %413 = vst [vmem:[%s1607_s30 + $0xc0] sm:$0xff] %v412_v24  ;;  %415 = vst [vmem:[%s1607_s30 + $0xc8] sm:$0xff] %v414_v25  ;;  %v418_v27 = vld [vmem:[%s1602_s29 + $0x1b0] sm:$0xff] }
  0x1d   : > { %417 = vst [vmem:[%s1607_s30 + $0xd0] sm:$0xff] %v416_v26  ;;  %v420_v28 = vld [vmem:[%s1602_s29 + $0x1c0] sm:$0xff]  ;;  %v422_v29 = vld [vmem:[%s1602_s29 + $0x1d0] sm:$0xff]  ;;  %419 = vst [vmem:[%s1607_s30 + $0xd8] sm:$0xff] %v418_v27 }
  0x1e   : > { %421 = vst [vmem:[%s1607_s30 + $0xe0] sm:$0xff] %v420_v28  ;;  %423 = vst [vmem:[%s1607_s30 + $0xe8] sm:$0xff] %v422_v29  ;;  %v424_v30 = vld [vmem:[%s1602_s29 + $0x1e0] sm:$0xff]  ;;  %v426_v31 = vld [vmem:[%s1602_s29 + $0x1f0] sm:$0xff] }
  0x1f   : > { %v428_v32 = vld [vmem:[%s1602_s29 + $0x200] sm:$0xff]  ;;  %425 = vst [vmem:[%s1607_s30 + $0xf0] sm:$0xff] %v424_v30  ;;  %427 = vst [vmem:[%s1607_s30 + $0xf8] sm:$0xff] %v426_v31  ;;  %v430_v33 = vld [vmem:[%s1602_s29 + $0x210] sm:$0xff] }
  0x20   : > { %429 = vst [vmem:[%s1607_s30 + $0x100] sm:$0xff] %v428_v32  ;;  %v432_v34 = vld [vmem:[%s1602_s29 + $0x220] sm:$0xff]  ;;  %v434_v35 = vld [vmem:[%s1602_s29 + $0x230] sm:$0xff]  ;;  %431 = vst [vmem:[%s1607_s30 + $0x108] sm:$0xff] %v430_v33 }
  0x21   : > { %433 = vst [vmem:[%s1607_s30 + $0x110] sm:$0xff] %v432_v34  ;;  %435 = vst [vmem:[%s1607_s30 + $0x118] sm:$0xff] %v434_v35  ;;  %v436_v36 = vld [vmem:[%s1602_s29 + $0x240] sm:$0xff]  ;;  %v438_v37 = vld [vmem:[%s1602_s29 + $0x250] sm:$0xff] }
  0x22   : > { %v440_v38 = vld [vmem:[%s1602_s29 + $0x260] sm:$0xff]  ;;  %437 = vst [vmem:[%s1607_s30 + $0x120] sm:$0xff] %v436_v36  ;;  %439 = vst [vmem:[%s1607_s30 + $0x128] sm:$0xff] %v438_v37  ;;  %v442_v39 = vld [vmem:[%s1602_s29 + $0x270] sm:$0xff] }
  0x23   : > { %441 = vst [vmem:[%s1607_s30 + $0x130] sm:$0xff] %v440_v38  ;;  %v444_v40 = vld [vmem:[%s1602_s29 + $0x280] sm:$0xff]  ;;  %v446_v41 = vld [vmem:[%s1602_s29 + $0x290] sm:$0xff]  ;;  %443 = vst [vmem:[%s1607_s30 + $0x138] sm:$0xff] %v442_v39 }
  0x24   : > { %445 = vst [vmem:[%s1607_s30 + $0x140] sm:$0xff] %v444_v40  ;;  %447 = vst [vmem:[%s1607_s30 + $0x148] sm:$0xff] %v446_v41  ;;  %v448_v42 = vld [vmem:[%s1602_s29 + $0x2a0] sm:$0xff]  ;;  %v450_v43 = vld [vmem:[%s1602_s29 + $0x2b0] sm:$0xff] }
  0x25   : > { %v452_v44 = vld [vmem:[%s1602_s29 + $0x2c0] sm:$0xff]  ;;  %449 = vst [vmem:[%s1607_s30 + $0x150] sm:$0xff] %v448_v42  ;;  %451 = vst [vmem:[%s1607_s30 + $0x158] sm:$0xff] %v450_v43  ;;  %v454_v45 = vld [vmem:[%s1602_s29 + $0x2d0] sm:$0xff] }
  0x26   : > { %453 = vst [vmem:[%s1607_s30 + $0x160] sm:$0xff] %v452_v44  ;;  %v456_v46 = vld [vmem:[%s1602_s29 + $0x2e0] sm:$0xff]  ;;  %v458_v47 = vld [vmem:[%s1602_s29 + $0x2f0] sm:$0xff]  ;;  %455 = vst [vmem:[%s1607_s30 + $0x168] sm:$0xff] %v454_v45 }
  0x27   : > { %457 = vst [vmem:[%s1607_s30 + $0x170] sm:$0xff] %v456_v46  ;;  %459 = vst [vmem:[%s1607_s30 + $0x178] sm:$0xff] %v458_v47  ;;  %v460_v48 = vld [vmem:[%s1602_s29 + $0x300] sm:$0xff]  ;;  %v462_v49 = vld [vmem:[%s1602_s29 + $0x310] sm:$0xff] }
  0x28   : > { %v464_v50 = vld [vmem:[%s1602_s29 + $0x320] sm:$0xff]  ;;  %461 = vst [vmem:[%s1607_s30 + $0x180] sm:$0xff] %v460_v48  ;;  %463 = vst [vmem:[%s1607_s30 + $0x188] sm:$0xff] %v462_v49  ;;  %v466_v51 = vld [vmem:[%s1602_s29 + $0x330] sm:$0xff] }
  0x29   : > { %465 = vst [vmem:[%s1607_s30 + $0x190] sm:$0xff] %v464_v50  ;;  %v468_v52 = vld [vmem:[%s1602_s29 + $0x340] sm:$0xff]  ;;  %v470_v53 = vld [vmem:[%s1602_s29 + $0x350] sm:$0xff]  ;;  %467 = vst [vmem:[%s1607_s30 + $0x198] sm:$0xff] %v466_v51 }
  0x2a   : > { %469 = vst [vmem:[%s1607_s30 + $0x1a0] sm:$0xff] %v468_v52  ;;  %471 = vst [vmem:[%s1607_s30 + $0x1a8] sm:$0xff] %v470_v53  ;;  %v472_v54 = vld [vmem:[%s1602_s29 + $0x360] sm:$0xff]  ;;  %v474_v55 = vld [vmem:[%s1602_s29 + $0x370] sm:$0xff] }
  0x2b   : > { %v476_v56 = vld [vmem:[%s1602_s29 + $0x380] sm:$0xff]  ;;  %473 = vst [vmem:[%s1607_s30 + $0x1b0] sm:$0xff] %v472_v54  ;;  %475 = vst [vmem:[%s1607_s30 + $0x1b8] sm:$0xff] %v474_v55  ;;  %v478_v57 = vld [vmem:[%s1602_s29 + $0x390] sm:$0xff] }
  0x2c   : > { %477 = vst [vmem:[%s1607_s30 + $0x1c0] sm:$0xff] %v476_v56  ;;  %v480_v58 = vld [vmem:[%s1602_s29 + $0x3a0] sm:$0xff]  ;;  %v482_v59 = vld [vmem:[%s1602_s29 + $0x3b0] sm:$0xff]  ;;  %479 = vst [vmem:[%s1607_s30 + $0x1c8] sm:$0xff] %v478_v57 }
  0x2d   : > { %481 = vst [vmem:[%s1607_s30 + $0x1d0] sm:$0xff] %v480_v58  ;;  %483 = vst [vmem:[%s1607_s30 + $0x1d8] sm:$0xff] %v482_v59  ;;  %v484_v60 = vld [vmem:[%s1602_s29 + $0x3c0] sm:$0xff]  ;;  %v486_v61 = vld [vmem:[%s1602_s29 + $0x3d0] sm:$0xff] }
  0x2e   : > { %v488_v62 = vld [vmem:[%s1602_s29 + $0x3e0] sm:$0xff]  ;;  %485 = vst [vmem:[%s1607_s30 + $0x1e0] sm:$0xff] %v484_v60  ;;  %487 = vst [vmem:[%s1607_s30 + $0x1e8] sm:$0xff] %v486_v61  ;;  %v490_v63 = vld [vmem:[%s1602_s29 + $0x3f0] sm:$0xff] }
  0x2f   : > { %489 = vst [vmem:[%s1607_s30 + $0x1f0] sm:$0xff] %v488_v62  ;;  %491 = vst [vmem:[%s1607_s30 + $0x1f8] sm:$0xff] %v490_v63 }
  0x30 PF: > { %p1275_p6 = scmp.ge.s32.totalorder %s1532_s19, 1  ;;  %p512_p7 = scmp.lt.s32.totalorder %s1532_s19, 3 }
  0x32   : > { %p513_p8 = pnand %p1275_p6, %p512_p7 }
  0x33   : > { %s519_s5 = sand.u32 (!%p513_p8), 1, %s1516_s15   ;;  %s1277_s12 = sshll.u32 (!%p513_p8), %s1524_s17, 1 }
  0x34   : > { %516 = sbr.rel (%p513_p8) target bundleno = 330 (0x14a), region = 70  ;;  %s1276_s10 = sshll.u32 (!%p513_p8), %s519_s5, 9 }
  0x35   : > { %s1751_s11 = scalar_lea.vmem (!%p513_p8), [#allocation3], %s1276_s10  ;;  %p578_p9 = scmp.lt.s32.totalorder (!%p513_p8), %s1277_s12, 3 }
  0x39   : > { %v1740_v0 = vld [vmem:[%s1851_s0] sm:$0xff]  ;;  %v1745_v1 = vld [vmem:[%s1851_s0 + $0x8] sm:$0xff]  ;;  %v1394_v4 = vld [vmem:[%s1751_s11 + $0x74] ss:$8 sps:$4 sm:$0xff]   ;;  %s1863_s12 = smov (!%p578_p9, %s1277_s12), 3 }
  0x3a   : > { %v1282_v2 = vcombine.high %v1740_v0, %v1740_v0  ;;  %v1284_v3 = vcombine.high %v1745_v1, %v1745_v1  ;;  %v1396_v5 = vld [vmem:[%s1751_s11 + $0x174] ss:$8 sps:$4 sm:$0xff]   ;;  %1005 = vmatprep.subr.bf16.mxu0 %v1394_v4  ;;  %v1398_v6 = vld [vmem:[%s1751_s11 + $0x70] ss:$8 sps:$4 sm:$0xff]   ;;  %v1400_v8 = vld [vmem:[%s1751_s11 + $0x64] ss:$8 sps:$4 sm:$0xff]   ;;  %s580_s15 = scalar_lea.vmem %s1853_s2, %s1863_s12  ;;  %s585_s24 = scalar_lea.vmem %s1854_s3, %s1863_s12 }
  0x3b   : > { %v1399_v7 = vld [vmem:[%s1751_s11 + $0x170] ss:$8 sps:$4 sm:$0xff]   ;;  %1046 = vmatprep.subr.bf16.mxu1 %v1396_v5  ;;  %1006 = vmatpush1.bf16.msra.mxu0 %v1398_v6  ;;  %v1402_v9 = vld [vmem:[%s1751_s11 + $0x164] ss:$8 sps:$4 sm:$0xff]   ;;  %v1404_v10 = vld [vmem:[%s1751_s11 + $0x60] ss:$8 sps:$4 sm:$0xff]   ;;  %v1281_v6 = vcombine.low %v1740_v0, %v1740_v0 }
  0x3c   : > { %1037 = vmatprep.mubr.bf16.mxu0 %v1282_v2  ;;  %1078 = vmatprep.mubr.bf16.mxu1 %v1284_v3  ;;  %v1405_v11 = vld [vmem:[%s1751_s11 + $0x160] ss:$8 sps:$4 sm:$0xff]   ;;  %v1406_v12 = vld [vmem:[%s1751_s11 + $0x54] ss:$8 sps:$4 sm:$0xff]   ;;  %v1410_v14 = vld [vmem:[%s1751_s11 + $0x50] ss:$8 sps:$4 sm:$0xff]  }
  0x3d   : > { %1047 = vmatpush1.bf16.msra.mxu1 %v1399_v7  ;;  %1007 = vmatprep.subr.bf16.mxu0 %v1400_v8  ;;  %v1408_v13 = vld [vmem:[%s1751_s11 + $0x154] ss:$8 sps:$4 sm:$0xff]   ;;  %v1411_v15 = vld [vmem:[%s1751_s11 + $0x150] ss:$8 sps:$4 sm:$0xff]   ;;  %v1412_v16 = vld [vmem:[%s1751_s11 + $0x44] ss:$8 sps:$4 sm:$0xff]   ;;  %v1283_v7 = vcombine.low %v1745_v1, %v1745_v1  ;;  %v1098_v8 = vlaneseq }
  0x3e   : > { %1048 = vmatprep.subr.bf16.mxu1 %v1402_v9  ;;  %v1414_v17 = vld [vmem:[%s1751_s11 + $0x144] ss:$8 sps:$4 sm:$0xff]   ;;  %v1416_v18 = vld [vmem:[%s1751_s11 + $0x40] ss:$8 sps:$4 sm:$0xff]   ;;  %v1418_v20 = vld [vmem:[%s1751_s11 + $0x34] ss:$8 sps:$4 sm:$0xff]  }
  0x3f   : > { %1008 = vmatpush1.bf16.msra.mxu0 %v1404_v10  ;;  %v1417_v19 = vld [vmem:[%s1751_s11 + $0x140] ss:$8 sps:$4 sm:$0xff]   ;;  %v1420_v21 = vld [vmem:[%s1751_s11 + $0x134] ss:$8 sps:$4 sm:$0xff]   ;;  %v1422_v22 = vld [vmem:[%s1751_s11 + $0x30] ss:$8 sps:$4 sm:$0xff]  }
  0x40   : > { %1009 = vmatprep.subr.bf16.mxu0 %v1406_v12  ;;  %v1423_v23 = vld [vmem:[%s1751_s11 + $0x130] ss:$8 sps:$4 sm:$0xff]   ;;  %v1424_v24 = vld [vmem:[%s1751_s11 + $0x24] ss:$8 sps:$4 sm:$0xff]   ;;  %v1428_v26 = vld [vmem:[%s1751_s11 + $0x20] ss:$8 sps:$4 sm:$0xff]  }
  0x41   : > { %1049 = vmatpush1.bf16.msra.mxu1 %v1405_v11  ;;  %v1426_v25 = vld [vmem:[%s1751_s11 + $0x124] ss:$8 sps:$4 sm:$0xff]   ;;  %v1429_v27 = vld [vmem:[%s1751_s11 + $0x120] ss:$8 sps:$4 sm:$0xff]   ;;  %v1430_v28 = vld [vmem:[%s1751_s11 + $0x14] ss:$8 sps:$4 sm:$0xff]  }
  0x42   : > { %1050 = vmatprep.subr.bf16.mxu1 %v1408_v13  ;;  %v1432_v29 = vld [vmem:[%s1751_s11 + $0x114] ss:$8 sps:$4 sm:$0xff]   ;;  %v1434_v30 = vld [vmem:[%s1751_s11 + $0x10] ss:$8 sps:$4 sm:$0xff]   ;;  %v1436_v32 = vld [vmem:[%s1751_s11 + $0x4] ss:$8 sps:$4 sm:$0xff]  }
  0x43   : > { %1010 = vmatpush1.bf16.msra.mxu0 %v1410_v14  ;;  %v1435_v31 = vld [vmem:[%s1751_s11 + $0x110] ss:$8 sps:$4 sm:$0xff]   ;;  %v1438_v33 = vld [vmem:[%s1751_s11 + $0x104] ss:$8 sps:$4 sm:$0xff]   ;;  %v1440_v34 = vld [vmem:[%s1751_s11] ss:$8 sps:$4 sm:$0xff]  }
  0x44   : > { %1011 = vmatprep.subr.bf16.mxu0 %v1412_v16  ;;  %v1441_v35 = vld [vmem:[%s1751_s11 + $0x100] ss:$8 sps:$4 sm:$0xff]   ;;  %v1442_v36 = vld [vmem:[%s1751_s11 + $0xf4] ss:$8 sps:$4 sm:$0xff]   ;;  %v1446_v38 = vld [vmem:[%s1751_s11 + $0xf0] ss:$8 sps:$4 sm:$0xff]  }
  0x45   : > { %1051 = vmatpush1.bf16.msra.mxu1 %v1411_v15  ;;  %v1444_v37 = vld [vmem:[%s1751_s11 + $0x1f4] ss:$8 sps:$4 sm:$0xff]   ;;  %v1447_v39 = vld [vmem:[%s1751_s11 + $0x1f0] ss:$8 sps:$4 sm:$0xff]   ;;  %v1448_v40 = vld [vmem:[%s1751_s11 + $0xe4] ss:$8 sps:$4 sm:$0xff]  }
  0x46   : > { %1052 = vmatprep.subr.bf16.mxu1 %v1414_v17  ;;  %v1450_v41 = vld [vmem:[%s1751_s11 + $0x1e4] ss:$8 sps:$4 sm:$0xff]   ;;  %v1452_v42 = vld [vmem:[%s1751_s11 + $0xe0] ss:$8 sps:$4 sm:$0xff]   ;;  %v1454_v44 = vld [vmem:[%s1751_s11 + $0xd4] ss:$8 sps:$4 sm:$0xff]  }
  0x47   : > { %1012 = vmatpush1.bf16.msra.mxu0 %v1416_v18  ;;  %v1453_v43 = vld [vmem:[%s1751_s11 + $0x1e0] ss:$8 sps:$4 sm:$0xff]   ;;  %v1456_v45 = vld [vmem:[%s1751_s11 + $0x1d4] ss:$8 sps:$4 sm:$0xff]   ;;  %v1458_v46 = vld [vmem:[%s1751_s11 + $0xd0] ss:$8 sps:$4 sm:$0xff]  }
  0x48   : > { %1013 = vmatprep.subr.bf16.mxu0 %v1418_v20  ;;  %v1459_v47 = vld [vmem:[%s1751_s11 + $0x1d0] ss:$8 sps:$4 sm:$0xff]   ;;  %v1460_v48 = vld [vmem:[%s1751_s11 + $0xc4] ss:$8 sps:$4 sm:$0xff]   ;;  %v1464_v50 = vld [vmem:[%s1751_s11 + $0xc0] ss:$8 sps:$4 sm:$0xff]  }
  0x49   : > { %1053 = vmatpush1.bf16.msra.mxu1 %v1417_v19  ;;  %v1462_v49 = vld [vmem:[%s1751_s11 + $0x1c4] ss:$8 sps:$4 sm:$0xff]   ;;  %v1465_v51 = vld [vmem:[%s1751_s11 + $0x1c0] ss:$8 sps:$4 sm:$0xff]   ;;  %v1466_v52 = vld [vmem:[%s1751_s11 + $0xb4] ss:$8 sps:$4 sm:$0xff]  }
  0x4a   : > { %1054 = vmatprep.subr.bf16.mxu1 %v1420_v21  ;;  %v1468_v53 = vld [vmem:[%s1751_s11 + $0x1b4] ss:$8 sps:$4 sm:$0xff]   ;;  %v1470_v54 = vld [vmem:[%s1751_s11 + $0xb0] ss:$8 sps:$4 sm:$0xff]   ;;  %v1472_v56 = vld [vmem:[%s1751_s11 + $0xa4] ss:$8 sps:$4 sm:$0xff]  }
  0x4b   : > { %1014 = vmatpush1.bf16.msra.mxu0 %v1422_v22  ;;  %v1471_v55 = vld [vmem:[%s1751_s11 + $0x1b0] ss:$8 sps:$4 sm:$0xff]   ;;  %v1474_v57 = vld [vmem:[%s1751_s11 + $0x1a4] ss:$8 sps:$4 sm:$0xff]   ;;  %v1476_v58 = vld [vmem:[%s1751_s11 + $0xa0] ss:$8 sps:$4 sm:$0xff]  }
  0x4c   : > { %1015 = vmatprep.subr.bf16.mxu0 %v1424_v24  ;;  %v1477_v59 = vld [vmem:[%s1751_s11 + $0x1a0] ss:$8 sps:$4 sm:$0xff]   ;;  %v1478_v60 = vld [vmem:[%s1751_s11 + $0x94] ss:$8 sps:$4 sm:$0xff]   ;;  %v1482_v62 = vld [vmem:[%s1751_s11 + $0x90] ss:$8 sps:$4 sm:$0xff]  }
  0x4d   : > { %1055 = vmatpush1.bf16.msra.mxu1 %v1423_v23  ;;  %v1480_v61 = vld [vmem:[%s1751_s11 + $0x194] ss:$8 sps:$4 sm:$0xff]   ;;  %v1483_v63 = vld [vmem:[%s1751_s11 + $0x190] ss:$8 sps:$4 sm:$0xff]   ;;  %v1484_v2 = vld [vmem:[%s1751_s11 + $0x84] ss:$8 sps:$4 sm:$0xff]  }
  0x4e   : > { %1056 = vmatprep.subr.bf16.mxu1 %v1426_v25  ;;  %v1486_v3 = vld [vmem:[%s1751_s11 + $0x184] ss:$8 sps:$4 sm:$0xff]   ;;  %v1488_v4 = vld [vmem:[%s1751_s11 + $0x80] ss:$8 sps:$4 sm:$0xff]   ;;  %v1099_v9 = vshrl.u32 %v1098_v8, 7  ;;  %s1280_s17 = sshll.u32 %s1863_s12, 2 }
  0x4f   : > { %1016 = vmatpush1.bf16.msra.mxu0 %v1428_v26  ;;  %v1489_v5 = vld [vmem:[%s1751_s11 + $0x180] ss:$8 sps:$4 sm:$0xff]   ;;  %s595_s27 = scalar_lea.vmem %s1855_s4, %s1280_s17 }
  0x50   : > { %1017 = vmatprep.subr.bf16.mxu0 %v1430_v28  ;;  %v1100_v0 = vsub.s32 0, %v1099_v9  ;;  %v1096_v1 = vld [vmem:[%s580_s15] sm:$0x3]  ;;  %v1104_v10 = vsub.s32 1, %v1099_v9 }
  0x51   : > { %1057 = vmatpush1.bf16.msra.mxu1 %v1429_v27  ;;  %v1110_v11 = vld [vmem:[%s585_s24] sm:$0x3] }
  0x52   : > { %1058 = vmatprep.subr.bf16.mxu1 %v1432_v29  ;;  %v1101_v12 = vrot.slane %v1096_v1, %v1100_v0  ;;  %v1115_v16 = vrot.slane %v1110_v11, %v1100_v0  ;;  %v1105_v17 = vrot.slane %v1096_v1, %v1104_v10  ;;  %v1119_v22 = vrot.slane %v1110_v11, %v1104_v10 }
  0x53   : > { %1018 = vmatpush1.bf16.msra.mxu0 %v1434_v30 }
  0x54   : > { %1019 = vmatprep.subr.bf16.mxu0 %v1436_v32 }
  0x55   : > { %1059 = vmatpush1.bf16.msra.mxu1 %v1435_v31 }
  0x56   : > { %1060 = vmatprep.subr.bf16.mxu1 %v1438_v33 }
  0x57   : > { %1020 = vmatpush1.bf16.msra.mxu0 %v1440_v34 }
  0x58   : > { %1021 = vmatprep.subr.bf16.mxu0 %v1442_v36 }
  0x59   : > { %1061 = vmatpush1.bf16.msra.mxu1 %v1441_v35 }
  0x5a   : > { %1062 = vmatprep.subr.bf16.mxu1 %v1444_v37 }
  0x5b   : > { %1022 = vmatpush2.bf16.msra.mxu0 %v1446_v38 }
  0x5c   : > { %1023 = vmatprep.subr.bf16.mxu0 %v1448_v40 }
  0x5d   : > { %1063 = vmatpush2.bf16.msra.mxu1 %v1447_v39 }
  0x5e   : > { %1064 = vmatprep.subr.bf16.mxu1 %v1450_v41 }
  0x5f   : > { %1024 = vmatpush2.bf16.msra.mxu0 %v1452_v42 }
  0x60   : > { %1025 = vmatprep.subr.bf16.mxu0 %v1454_v44 }
  0x61   : > { %1065 = vmatpush2.bf16.msra.mxu1 %v1453_v43 }
  0x62   : > { %1066 = vmatprep.subr.bf16.mxu1 %v1456_v45 }
  0x63   : > { %1026 = vmatpush2.bf16.msra.mxu0 %v1458_v46 }
  0x64   : > { %1027 = vmatprep.subr.bf16.mxu0 %v1460_v48 }
  0x65   : > { %1067 = vmatpush2.bf16.msra.mxu1 %v1459_v47 }
  0x66   : > { %1068 = vmatprep.subr.bf16.mxu1 %v1462_v49 }
  0x67   : > { %1028 = vmatpush2.bf16.msra.mxu0 %v1464_v50 }
  0x68   : > { %1029 = vmatprep.subr.bf16.mxu0 %v1466_v52 }
  0x69   : > { %1069 = vmatpush2.bf16.msra.mxu1 %v1465_v51 }
  0x6a   : > { %1070 = vmatprep.subr.bf16.mxu1 %v1468_v53 }
  0x6b   : > { %1030 = vmatpush2.bf16.msra.mxu0 %v1470_v54 }
  0x6c   : > { %1031 = vmatprep.subr.bf16.mxu0 %v1472_v56 }
  0x6d   : > { %1071 = vmatpush2.bf16.msra.mxu1 %v1471_v55 }
  0x6e   : > { %1072 = vmatprep.subr.bf16.mxu1 %v1474_v57 }
  0x6f   : > { %1032 = vmatpush2.bf16.msra.mxu0 %v1476_v58 }
  0x70   : > { %1033 = vmatprep.subr.bf16.mxu0 %v1478_v60 }
  0x71   : > { %1073 = vmatpush2.bf16.msra.mxu1 %v1477_v59 }
  0x72   : > { %1074 = vmatprep.subr.bf16.mxu1 %v1480_v61 }
  0x73   : > { %1034 = vmatpush2.bf16.msra.mxu0 %v1482_v62 }
  0x74   : > { %1035 = vmatprep.subr.bf16.mxu0 %v1484_v2 }
  0x75   : > { %1075 = vmatpush2.bf16.msra.mxu1 %v1483_v63 }
  0x76   : > { %1076 = vmatprep.subr.bf16.mxu1 %v1486_v3 }
  0x77   : > { %1036 = vmatpush2.bf16.msra.mxu0 %v1488_v4 }
  0x79   : > { %1077 = vmatpush2.bf16.msra.mxu1 %v1489_v5 }
  0x7a   : > { %1038 = vmatmul.mubr.bf16.vlgmr.msra.gmra.mxu0 %v1281_v6 }
  0x7c   : > { %1079 = vmatmul.mubr.bf16.vlgmr.msra.gmra.mxu1 %v1283_v7 }
 0x13a   : > { %v1039_v13 = vpop.f32.mrf.mxu0 }
 0x13c   : > { %v1080_v14 = vpop.f32.mrf.mxu1  ;;  %v1041_v18 = vpop.f32.mrf.mxu0 }
 0x13d   : > { %v1081_v15 = vadd.f32 %v1080_v14, %v1039_v13 }
 0x13e   : > { %v1082_v19 = vpop.f32.mrf.mxu1  ;;  %v1043_v23 = vpop.f32.mrf.mxu0 }
 0x13f   : > { %v1108_v20 = vmul.f32 %v1101_v12, %v1081_v15  ;;  %v1083_v21 = vadd.f32 %v1082_v19, %v1041_v18 }
 0x140   : > { %v1084_v24 = vpop.f32.mrf.mxu1  ;;  %v1044_v27 = vpop.f32.mrf.mxu0 }
 0x141   : > { %v1122_v25 = vadd.f32 %v1115_v16, %v1108_v20  ;;  %v1109_v26 = vmul.f32 %v1105_v17, %v1083_v21 }
 0x142   : > { %v1085_v28 = vpop.f32.mrf.mxu1 }
 0x143   : > { %v1123_v29 = vadd.f32 %v1119_v22, %v1109_v26  ;;  %v1124_v30 = vmax.f32 %v1122_v25, 0.0 }
 0x145   : > { %v1125_v31 = vmax.f32 %v1123_v29, 0.0 }
 0x147   : > { %v1353_v32 = vpack.c.bf16 %v1125_v31, %v1124_v30 }
 0x149   : > { %1134 = vst [vmem:[%s595_s27] sm:$0xff] %v1353_v32 }
 0x14a PF: > { %s14_s19 = sadd.s32 1, %s1532_s19   ;;  %s1856_s15 = smov %s1520_s16 }
 0x14b   : > { %p11_p10 = scmp.ge.s32.totalorder %s14_s19, 4   ;;  %s1857_s16 = smov %s1594_s23 }
 0x14c   : > { %s1858_s17 = smov %s1528_s18  ;;  %s1859_s18 = smov %s1861_s20 }
 0x14d   :  { %13 = sbr.rel (!%p11_p10) target bundleno = 3 (0x3), region = 126 }

// kernel: simclr_forward.47
= control target key start
LH: loop header
LB: loop body
LE: loop exit
PB: predicated region body
PF: predicated region fallthrough
CT: control target
= control target key end

     0   :  { %s657_s1 = inlined_call_operand.vmem [shape: bf16[512,128], index: 1, kind: input, shape index: {}]   ;;  %s658_s0 = inlined_call_operand.vmem [shape: bf16[8,512], index: 0, kind: input, shape index: {}]   ;;  %s659_s2 = inlined_call_operand.vmem [shape: f32[1,128], index: 2, kind: input, shape index: {}]   ;;  %s660_s3 = inlined_call_operand.vmem [shape: f32[1,128], index: 3, kind: input, shape index: {}]   ;;  %s661_s4 = inlined_call_operand.vmem [shape: f32[8,128], index: 4, kind: output, shape index: {}]  }
   0x1   :  { %v485_v0 = vld [vmem:[%s657_s1 + $0x78] sm:$0xff]   ;;  %v489_v4 = vld [vmem:[%s657_s1 + $0x70] sm:$0xff]   ;;  %v493_v8 = vld [vmem:[%s657_s1 + $0x68] sm:$0xff]  }
   0x2   :  { %v486_v1 = vld [vmem:[%s657_s1 + $0xf8] sm:$0xff]   ;;  %441 = vmatprep.subr.bf16.mxu0 %v485_v0  ;;  %v490_v5 = vld [vmem:[%s657_s1 + $0xf0] sm:$0xff]   ;;  %v494_v9 = vld [vmem:[%s657_s1 + $0xe8] sm:$0xff]  }
   0x3   :  { %v487_v2 = vld [vmem:[%s657_s1 + $0x38] sm:$0xff]   ;;  %463 = vmatprep.subr.bf16.mxu1 %v486_v1  ;;  %v491_v6 = vld [vmem:[%s657_s1 + $0x30] sm:$0xff]   ;;  %v495_v10 = vld [vmem:[%s657_s1 + $0x28] sm:$0xff]  }
   0x4   :  { %v488_v3 = vld [vmem:[%s657_s1 + $0xb8] sm:$0xff]   ;;  %442 = vmatpush3.bf16.msra.mxu0 %v487_v2  ;;  %v492_v7 = vld [vmem:[%s657_s1 + $0xb0] sm:$0xff]   ;;  %v496_v11 = vld [vmem:[%s657_s1 + $0xa8] sm:$0xff]  }
   0x5   :  { %464 = vmatpush3.bf16.msra.mxu1 %v488_v3  ;;  %443 = vmatprep.subr.bf16.mxu0 %v489_v4  ;;  %v497_v12 = vld [vmem:[%s657_s1 + $0x60] sm:$0xff]   ;;  %v501_v16 = vld [vmem:[%s657_s1 + $0x58] sm:$0xff]   ;;  %v505_v20 = vld [vmem:[%s657_s1 + $0x50] sm:$0xff]  }
   0x6   :  { %465 = vmatprep.subr.bf16.mxu1 %v490_v5  ;;  %v498_v13 = vld [vmem:[%s657_s1 + $0xe0] sm:$0xff]   ;;  %v502_v17 = vld [vmem:[%s657_s1 + $0xd8] sm:$0xff]   ;;  %v506_v21 = vld [vmem:[%s657_s1 + $0xd0] sm:$0xff]  }
   0x7   :  { %v499_v14 = vld [vmem:[%s657_s1 + $0x20] sm:$0xff]   ;;  %v503_v18 = vld [vmem:[%s657_s1 + $0x18] sm:$0xff]   ;;  %v507_v22 = vld [vmem:[%s657_s1 + $0x10] sm:$0xff]  }
   0x8   :  { %444 = vmatpush3.bf16.msra.mxu0 %v491_v6  ;;  %v500_v15 = vld [vmem:[%s657_s1 + $0xa0] sm:$0xff]   ;;  %v504_v19 = vld [vmem:[%s657_s1 + $0x98] sm:$0xff]   ;;  %v508_v23 = vld [vmem:[%s657_s1 + $0x90] sm:$0xff]  }
   0x9   :  { %466 = vmatpush3.bf16.msra.mxu1 %v492_v7  ;;  %445 = vmatprep.subr.bf16.mxu0 %v493_v8  ;;  %v509_v24 = vld [vmem:[%s657_s1 + $0x48] sm:$0xff]   ;;  %v513_v28 = vld [vmem:[%s657_s1 + $0x40] sm:$0xff]  }
   0xa   :  { %467 = vmatprep.subr.bf16.mxu1 %v494_v9  ;;  %v510_v25 = vld [vmem:[%s657_s1 + $0xc8] sm:$0xff]   ;;  %v514_v29 = vld [vmem:[%s657_s1 + $0xc0] sm:$0xff]  }
   0xb   :  { %v511_v26 = vld [vmem:[%s657_s1 + $0x8] sm:$0xff]   ;;  %v515_v30 = vld [vmem:[%s657_s1] sm:$0xff]  }
   0xc   :  { %446 = vmatpush3.bf16.msra.mxu0 %v495_v10  ;;  %v512_v27 = vld [vmem:[%s657_s1 + $0x88] sm:$0xff]   ;;  %v516_v31 = vld [vmem:[%s657_s1 + $0x80] sm:$0xff]  }
   0xd   :  { %468 = vmatpush3.bf16.msra.mxu1 %v496_v11  ;;  %447 = vmatprep.subr.bf16.mxu0 %v497_v12  ;;  %v24_v32 = vld [vmem:[%s658_s0] sm:$0xff]  ;;  %v25_v33 = vld [vmem:[%s658_s0 + $0x8] sm:$0xff] }
   0xe   :  { %469 = vmatprep.subr.bf16.mxu1 %v498_v13  ;;  %v403_v34 = vcombine.low %v24_v32, %v24_v32  ;;  %v404_v35 = vcombine.high %v24_v32, %v24_v32  ;;  %v405_v36 = vcombine.low %v25_v33, %v25_v33  ;;  %v406_v37 = vcombine.high %v25_v33, %v25_v33  ;;  %v439_v44 = vld [vmem:[%s659_s2] ss:$0 sm:$0xff] }
   0xf   :  { %v440_v48 = vld [vmem:[%s660_s3] ss:$0 sm:$0xff] }
  0x10   :  { %448 = vmatpush3.bf16.msra.mxu0 %v499_v14  ;;  %328 = vmatprep.mubr.bf16.mxu0 %v404_v35 }
  0x11   :  { %470 = vmatpush3.bf16.msra.mxu1 %v500_v15  ;;  %449 = vmatprep.subr.bf16.mxu0 %v501_v16 }
  0x12   :  { %471 = vmatprep.subr.bf16.mxu1 %v502_v17  ;;  %368 = vmatprep.mubr.bf16.mxu1 %v406_v37 }
  0x14   :  { %450 = vmatpush3.bf16.msra.mxu0 %v503_v18 }
  0x15   :  { %472 = vmatpush3.bf16.msra.mxu1 %v504_v19  ;;  %451 = vmatprep.subr.bf16.mxu0 %v505_v20 }
  0x16   :  { %473 = vmatprep.subr.bf16.mxu1 %v506_v21 }
  0x18   :  { %452 = vmatpush3.bf16.msra.mxu0 %v507_v22 }
  0x19   :  { %474 = vmatpush3.bf16.msra.mxu1 %v508_v23  ;;  %453 = vmatprep.subr.bf16.mxu0 %v509_v24 }
  0x1a   :  { %475 = vmatprep.subr.bf16.mxu1 %v510_v25 }
  0x1c   :  { %454 = vmatpush3.bf16.msra.mxu0 %v511_v26 }
  0x1d   :  { %476 = vmatpush3.bf16.msra.mxu1 %v512_v27  ;;  %455 = vmatprep.subr.bf16.mxu0 %v513_v28 }
  0x1e   :  { %477 = vmatprep.subr.bf16.mxu1 %v514_v29 }
  0x20   :  { %456 = vmatpush3.bf16.msra.mxu0 %v515_v30 }
  0x21   :  { %478 = vmatpush3.bf16.msra.mxu1 %v516_v31 }
  0x23   :  { %329 = vmatmul.mubr.bf16.vlgmr.msra.gmra.mxu0 %v403_v34 }
  0x24   :  { %369 = vmatmul.mubr.bf16.vlgmr.msra.gmra.mxu1 %v405_v36 }
  0xe3   :  { %v457_v38 = vpop.f32.mrf.mxu0 }
  0xe4   :  { %v479_v39 = vpop.f32.mrf.mxu1 }
  0xe5   :  { %v458_v40 = vpop.f32.mrf.mxu0 }
  0xe6   :  { %v480_v41 = vpop.f32.mrf.mxu1  ;;  %v459_v42 = vadd.f32 %v458_v40, %v457_v38 }
  0xe7   :  { %v481_v43 = vadd.f32 %v480_v41, %v479_v39  ;;  %v460_v45 = vpop.f32.mrf.mxu0 }
  0xe8   :  { %v482_v46 = vpop.f32.mrf.mxu1 }
  0xe9   :  { %v371_v47 = vadd.f32 %v481_v43, %v459_v42  ;;  %v461_v49 = vpop.f32.mrf.mxu0 }
  0xea   :  { %v483_v50 = vpop.f32.mrf.mxu1 }
  0xeb   :  { %v389_v51 = vmul.f32 %v439_v44, %v371_v47 }
  0xed   :  { %v397_v52 = vadd.f32 %v440_v48, %v389_v51 }
  0xef   :  { %398 = vst [vmem:[%s661_s4] sm:$0xff] %v397_v52 }

</bundles_post_ra>
